<compile_context>
chip_gen: v7x
topology: tpu7x:2x2x1
jax: 0.10.0
libtpu: 0.0.40
codegen_flags: <defaults>
</compile_context>

<pallas_src>
import functools

import jax
import jax.numpy as jnp
from jax import lax
from jax.experimental import pallas as pl
from jax.experimental.pallas import tpu as pltpu

LANE = 128


def _round_up(x, m):
    return ((x + m - 1) // m) * m


def _vmem_limit_bytes():
    # v5e/v6e: 128 MiB physical -> 96 MiB; v7x: 64 MiB physical -> 48 MiB.
    try:
        cap = int(pltpu.get_tpu_info().vmem_capacity_bytes)
    except Exception:
        cap = 64 * 1024 * 1024
    return int(min(cap * 3 // 4, 96 * 1024 * 1024))


_VMEM_LIMIT = _vmem_limit_bytes()


# --------------------- Buffered(1) capability probe --------------------------

def _probe_copy_kernel(x_ref, o_ref):
    o_ref[...] = x_ref[...]


_CONST_PIPELINE_MODE = ["unset"]


def _const_pipeline_mode():
    """pipeline_mode for constant-index (weight / shift) blocks.

    Single-buffers them (pl.Buffered(1)) when the installed Pallas accepts it;
    otherwise falls back to the default double-buffering.  Probed once with a
    tiny real pallas_call so an unsupported combination can never break the
    network kernels."""
    if _CONST_PIPELINE_MODE[0] != "unset":
        return _CONST_PIPELINE_MODE[0]
    mode = None
    try:
        try:
            cand = pl.Buffered(buffer_count=1)
        except TypeError:
            cand = pl.Buffered(1)
        x = jnp.arange(8 * 128, dtype=jnp.float32).reshape(8, 128)
        out = pl.pallas_call(
            _probe_copy_kernel,
            out_shape=jax.ShapeDtypeStruct((8, 128), jnp.float32),
            grid=(2,),
            in_specs=[pl.BlockSpec((8, 128), lambda i: (0, 0),
                                   pipeline_mode=cand)],
            out_specs=pl.BlockSpec((8, 128), lambda i: (0, 0)),
        )(x)
        jax.block_until_ready(out)
        if bool(jnp.all(out == x)):
            mode = cand
    except Exception:
        mode = None
    _CONST_PIPELINE_MODE[0] = mode
    return mode


def _const_spec(block_shape, index_map):
    mode = _const_pipeline_mode()
    if mode is not None:
        return pl.BlockSpec(block_shape, index_map, pipeline_mode=mode)
    return pl.BlockSpec(block_shape, index_map)


# ----------------------------- Pallas kernels --------------------------------

def _mm_shift_kernel(x_ref, w_ref, b_ref, o_ref, *, relu):
    # (tm, K)bf16 @ (K, Cp)bf16 on the MXU with f32 accumulation,
    # +shift (BN scale already folded into w) and optional ReLU on the VPU.
    y = jnp.dot(x_ref[...], w_ref[...], preferred_element_type=jnp.float32)
    y = y + b_ref[...]
    if relu:
        y = jnp.maximum(y, 0.0)
    o_ref[...] = y.astype(o_ref.dtype)


def _conv3x3_kernel(x_ref, w_ref, b_ref, *rest, relu, has_res, th, Wo, fold):
    """Direct stride-1 3x3 conv for one (batch, output-row-tile) block.

    x_ref : (1, H+2, Wp, Cin)   zero-padded image (whole image per batch n)
    w_ref : fold  -> (3, 3*Cin, Cp)   vertical tap di; K packs (dj, Cin)
            !fold -> (3, 3, Cin, Cp)
    The three W-shifted slabs are materialized once per step (2 sublane
    relayouts instead of 6 unaligned tap slices).  With fold (Cin % 128 == 0)
    they are lane-concatenated so each vertical tap is one K=3*Cin matmul.
    Accumulation is a single chained f32 acc += dot(...) initialized from the
    first tap's dot (no zeros-init VALU pass).
    """
    if has_res:
        r_ref, o_ref = rest
    else:
        (o_ref,) = rest
    cin = x_ref.shape[-1]
    cp = o_ref.shape[-1]
    m = th * Wo
    r0 = pl.program_id(1) * th
    blk = x_ref[0, pl.ds(r0, th + 2), :, :]          # (th+2, Wp, Cin)
    x0 = blk[:, 0:Wo, :]                             # aligned slice (free-ish)
    x1 = blk[:, 1:1 + Wo, :]                         # one sublane relayout
    x2 = blk[:, 2:2 + Wo, :]                         # one sublane relayout
    if fold:
        xc = jnp.concatenate([x0, x1, x2], axis=-1)  # (th+2, Wo, 3*Cin)
        acc = jnp.dot(xc[0:th].reshape(m, 3 * cin), w_ref[0],
                      preferred_element_type=jnp.float32)
        acc = acc + jnp.dot(xc[1:1 + th].reshape(m, 3 * cin), w_ref[1],
                            preferred_element_type=jnp.float32)
        acc = acc + jnp.dot(xc[2:2 + th].reshape(m, 3 * cin), w_ref[2],
                            preferred_element_type=jnp.float32)
    else:
        taps = (x0, x1, x2)
        acc = None
        for di in range(3):
            for dj in range(3):
                d = jnp.dot(taps[dj][di:di + th].reshape(m, cin),
                            w_ref[di, dj],
                            preferred_element_type=jnp.float32)
                acc = d if acc is None else acc + d
    y = acc + b_ref[...]
    if has_res:
        y = y + r_ref[0].reshape(m, cp).astype(jnp.float32)
    if relu:
        y = jnp.maximum(y, 0.0)
    o_ref[0] = y.reshape(th, Wo, cp).astype(o_ref.dtype)


# ------------------------------ wrappers --------------------------------------

def _pick_tm(M, K, Cp):
    """Largest tile <=1024 dividing M that fits the VMEM budget; force >=2
    grid steps only when M >= 2048 (megacore split without tiny tiles)."""
    cands = [t for t in (1024, 512, 256, 128, 64, 32, 16, 8) if M % t == 0]
    if not cands:
        return 0
    budget = max(_VMEM_LIMIT // 2, 8 * 1024 * 1024)

    def fits(t):
        # 2x act tile + weight (<=2x) + 2x out tile + f32 temp + shift.
        return (2 * t * K * 2 + 2 * K * Cp * 2 + 2 * t * Cp * 2
                + t * Cp * 4 + 4 * Cp) <= budget

    good = [t for t in cands if fits(t)] or [cands[-1]]
    if M >= 2048:
        multi = [t for t in good if M // t >= 2]
        if multi:
            return multi[0]
    return good[0]


def _pick_th(H, Wo, Cp, acc_budget=64 * 1024):
    """Output-row tile: largest divisor of H whose f32 accumulator fits the
    budget; prefer >=2 row tiles only when the per-tile matmul M stays >=64."""
    divs = [t for t in range(H, 0, -1) if H % t == 0]
    fit = [t for t in divs if t * Wo * Cp * 4 <= acc_budget] or [1]
    multi = [t for t in fit if H // t >= 2 and t * Wo >= 64]
    return multi[0] if multi else fit[0]


def fused_matmul_shift(x2d, w2d, shift, relu=True):
    """(M,K)bf16 @ (K,Cp)bf16 + shift(f32) [+ReLU] -> (M,Cp)bf16."""
    M, K = x2d.shape
    Cp = w2d.shape[1]
    x2d = x2d.astype(jnp.bfloat16)
    tm = _pick_tm(M, K, Cp)
    Mp = M
    if tm == 0:
        # Rare ragged-M case (not hit by this network): minimal sublane pad.
        Mp = _round_up(M, 8)
        x2d = jnp.pad(x2d, ((0, Mp - M), (0, 0)))
        tm = _pick_tm(Mp, K, Cp)
    shift2 = shift.reshape(1, Cp).astype(jnp.float32)
    cost = pl.CostEstimate(
        flops=2 * Mp * K * Cp, transcendentals=0,
        bytes_accessed=Mp * K * 2 + K * Cp * 2 + Mp * Cp * 2 + 4 * Cp)
    out = pl.pallas_call(
        functools.partial(_mm_shift_kernel, relu=relu),
        out_shape=jax.ShapeDtypeStruct((Mp, Cp), jnp.bfloat16),
        grid=(Mp // tm,),
        in_specs=[pl.BlockSpec((tm, K), lambda i: (i, 0)),
                  _const_spec((K, Cp), lambda i: (0, 0)),
                  _const_spec((1, Cp), lambda i: (0, 0))],
        out_specs=pl.BlockSpec((tm, Cp), lambda i: (i, 0)),
        compiler_params=pltpu.CompilerParams(
            dimension_semantics=("parallel",),
            vmem_limit_bytes=_VMEM_LIMIT),
        cost_estimate=cost,
    )(x2d, w2d.astype(jnp.bfloat16), shift2)
    return out[:M] if Mp != M else out


def conv3x3_s1_direct(x, w, shift, residual=None, relu=True):
    """Stride-1 3x3 conv, padding=1, fused BN-shift / residual / ReLU.

    x: (N,H,W,Cin); w: (3,3,Cin,Cp) with BN scale folded in; shift: (Cp,) f32.
    Output (N,H,W,Cp) bf16.  No im2col materialization in HBM.

    NOTE (invariant): the kernel computes Wo = round_up(W, 8) columns; columns
    >= W hold relu(shift + garbage) and MUST be sliced off before use (done
    below).  They never contaminate columns < W because the input's right
    zero-padding starts at padded column W+1.
    """
    N, H, W, Cin = x.shape
    Cp = w.shape[-1]
    Wo = _round_up(W, 8)
    Wp = Wo + 2
    Hp = H + 2
    assert Wp >= W + 2
    fold = (Cin % LANE == 0)            # lane-aligned concat -> K = 3*Cin taps
    th = _pick_th(H, Wo, Cp)
    R = H // th

    xp = jnp.pad(x.astype(jnp.bfloat16),
                 ((0, 0), (1, 1), (1, Wp - W - 1), (0, 0)))
    shift2 = shift.reshape(1, Cp).astype(jnp.float32)
    if fold:
        w_in = w.reshape(3, 3 * Cin, Cp).astype(jnp.bfloat16)
        w_spec = _const_spec((3, 3 * Cin, Cp), lambda n, r: (0, 0, 0))
    else:
        w_in = w.astype(jnp.bfloat16)                    # (3,3,Cin,Cp)
        w_spec = _const_spec((3, 3, Cin, Cp), lambda n, r: (0, 0, 0, 0))

    in_specs = [pl.BlockSpec((1, Hp, Wp, Cin), lambda n, r: (n, 0, 0, 0)),
                w_spec,
                _const_spec((1, Cp), lambda n, r: (0, 0))]
    args = [xp, w_in, shift2]
    io_alias = {}
    if residual is not None:
        rsd = residual.astype(jnp.bfloat16)
        if Wo != W:
            rsd = jnp.pad(rsd, ((0, 0), (0, 0), (0, Wo - W), (0, 0)))
        in_specs.append(pl.BlockSpec((1, th, Wo, Cp),
                                     lambda n, r: (n, r, 0, 0)))
        args.append(rsd)
        io_alias = {3: 0}               # reuse the residual buffer as output

    cost = pl.CostEstimate(
        flops=2 * N * H * Wo * 9 * Cin * Cp, transcendentals=0,
        bytes_accessed=(N * Hp * Wp * Cin * 2 + 9 * Cin * Cp * 2 + 4 * Cp
                        + N * H * Wo * Cp * 2
                        * (2 if residual is not None else 1)))

    out = pl.pallas_call(
        functools.partial(_conv3x3_kernel, relu=relu,
                          has_res=residual is not None,
                          th=th, Wo=Wo, fold=fold),
        out_shape=jax.ShapeDtypeStruct((N, H, Wo, Cp), jnp.bfloat16),
        grid=(N, R),
        in_specs=in_specs,
        out_specs=pl.BlockSpec((1, th, Wo, Cp), lambda n, r: (n, r, 0, 0)),
        compiler_params=pltpu.CompilerParams(
            dimension_semantics=("parallel", "parallel"),
            vmem_limit_bytes=_VMEM_LIMIT),
        cost_estimate=cost,
        input_output_aliases=io_alias,
    )(*args)
    if Wo != W:
        out = out[:, :, :W, :]
    return out


def _im2col(x, kh, kw, stride, pad):
    """(N,H,W,C) -> (N*Ho*Wo, kh*kw*C) patch matrix (row-major over N,Ho,Wo)."""
    N, H, W, C = x.shape
    xp = jnp.pad(x, ((0, 0), (pad, pad), (pad, pad), (0, 0)))
    Ho = (H + 2 * pad - kh) // stride + 1
    Wo = (W + 2 * pad - kw) // stride + 1
    cols = []
    for i in range(kh):
        for j in range(kw):
            cols.append(xp[:, i:i + stride * (Ho - 1) + 1:stride,
                           j:j + stride * (Wo - 1) + 1:stride, :])
    p = jnp.concatenate(cols, axis=-1)
    return p.reshape(N * Ho * Wo, kh * kw * C), (N, Ho, Wo)


def conv_bn(x, w, shift, stride=1, relu=True, residual=None):
    """Bias-free conv (HWIO, BN scale folded) + shift (+residual) (+ReLU)."""
    kh, kw, cin, cp = w.shape
    if kh == 1 and kw == 1:
        N, H, W, _ = x.shape
        out = fused_matmul_shift(x.reshape(N * H * W, cin),
                                 w.reshape(cin, cp), shift,
                                 relu=relu and residual is None)
        out = out.reshape(N, H, W, cp)
    elif stride == 1 and cin >= 8:
        # Hot path: direct 3x3 conv, no im2col expansion in HBM.
        return conv3x3_s1_direct(x, w, shift, residual=residual, relu=relu)
    else:
        # Stride-2 transition convs and the tiny 3-channel init conv.
        # TODO(synk): in-kernel strided direct conv to drop this HBM
        # round-trip (biggest win on bandwidth-poor v5e).
        pad = kh // 2
        patches, (N, Ho, Wo_) = _im2col(x.astype(jnp.bfloat16), kh, kw,
                                        stride, pad)
        out = fused_matmul_shift(patches, w.reshape(kh * kw * cin, cp), shift,
                                 relu=relu and residual is None)
        out = out.reshape(N, Ho, Wo_, cp)
    if residual is not None:   # defensive fallback; not hit by this network
        out = out.astype(jnp.float32) + residual.astype(jnp.float32)
        if relu:
            out = jnp.maximum(out, 0.0)
        out = out.astype(jnp.bfloat16)
    return out


# -------------------------- parameter construction ---------------------------

BLKCNT = [None, 3, 4, 6, 6, 3]
STRIDES = [(1, 1), (2, 2), (1, 1), (2, 2), (1, 1), (1, 1)]


def _conv_w(key, kh, kw, cin, cout):
    fan_in = kh * kw * cin
    return jax.random.normal(key, (kh, kw, cin, cout), jnp.float32) / jnp.sqrt(
        jnp.float32(fan_in))


def _bn_params(key, c, eps=1e-5):
    k1, k2, k3, k4 = jax.random.split(key, 4)
    gamma = 1.0 + 0.1 * jax.random.normal(k1, (c,), jnp.float32)
    beta = 0.1 * jax.random.normal(k2, (c,), jnp.float32)
    rmean = 0.1 * jax.random.normal(k3, (c,), jnp.float32)
    rvar = 1.0 + 0.1 * jax.random.uniform(k4, (c,), jnp.float32)
    scale = gamma / jnp.sqrt(rvar + eps)
    shift = beta - rmean * scale
    return scale, shift


def build_res45_params(key, inpch, oupch, expf=1.0):
    """Shapes follow res45p_wo_bn / res45p_bn: ochs=[32f,...,512f,oupch]."""
    ochs = [int(32 * expf), int(64 * expf), int(128 * expf),
            int(256 * expf), int(512 * expf), oupch]
    params = {}
    kc = jax.random.fold_in(key, 0)
    params["init"] = {
        "w": _conv_w(jax.random.fold_in(kc, 0), 3, 3, inpch, ochs[0]),
        "bn": _bn_params(jax.random.fold_in(kc, 1), ochs[0]),
    }
    inc = ochs[0]
    for L in range(1, 6):
        outc = ochs[L]
        kl = jax.random.fold_in(key, L)
        layer = {
            "conv_w": _conv_w(jax.random.fold_in(kl, 0), 3, 3, inc, outc),
            "conv_bn": _bn_params(jax.random.fold_in(kl, 1), outc),
            "blocks": [],
        }
        for b in range(BLKCNT[L]):
            kb = jax.random.fold_in(kl, 100 + b)
            layer["blocks"].append({
                "w1": _conv_w(jax.random.fold_in(kb, 0), 1, 1, outc, outc),
                "bn1": _bn_params(jax.random.fold_in(kb, 1), outc),
                "w2": _conv_w(jax.random.fold_in(kb, 2), 3, 3, outc, outc),
                "bn2": _bn_params(jax.random.fold_in(kb, 3), outc),
            })
        params[f"layer{L}"] = layer
        inc = outc
    return params


def _prep_conv(w, bn):
    """Fold the eval-mode BN scale into the weight; keep real channel counts
    (no lane padding), cast weights to bf16 and shifts to f32."""
    scale, shift = bn
    wf = (w * scale.reshape(1, 1, 1, -1)).astype(jnp.bfloat16)
    return wf, shift.astype(jnp.float32)


def prepare_params(params):
    p = params["init"]
    w0, b0 = _prep_conv(p["w"], p["bn"])
    prepped = {"init": {"w": w0, "b": b0}}
    for L in range(1, 6):
        lp = params[f"layer{L}"]
        cw, cb = _prep_conv(lp["conv_w"], lp["conv_bn"])
        blocks = []
        for bp in lp["blocks"]:
            w1, b1 = _prep_conv(bp["w1"], bp["bn1"])
            w2, b2 = _prep_conv(bp["w2"], bp["bn2"])
            blocks.append({"w1": w1, "b1": b1, "w2": w2, "b2": b2})
        prepped[f"layer{L}"] = {"conv_w": cw, "conv_b": cb, "blocks": blocks}
    return prepped


# ------------------------------- forward --------------------------------------

def _forward_impl(prepped, x_nchw, conv_fn):
    """Mirrors res45_net_orig.__call__: returns features where spatial size
    changes plus the final feature, each back in NCHW.
    TODO(synk): NHWC end-to-end I/O would drop the boundary transposes."""
    x = jnp.transpose(x_nchw, (0, 2, 3, 1)).astype(jnp.float32)  # NCHW -> NHWC

    p = prepped["init"]
    x = conv_fn(x, p["w"], p["b"], stride=STRIDES[0][0], relu=True)

    ret = []
    tmp_shape = x.shape[1:3]
    for L in range(1, 6):
        lp = prepped[f"layer{L}"]
        x = conv_fn(x, lp["conv_w"], lp["conv_b"],
                    stride=STRIDES[L][0], relu=True)
        for bp in lp["blocks"]:
            r = x
            y = conv_fn(x, bp["w1"], bp["b1"], stride=1, relu=True)
            x = conv_fn(y, bp["w2"], bp["b2"], stride=1, relu=True, residual=r)
        if L == 5:
            ret.append(x)
        elif x.shape[1:3] != tmp_shape:
            tmp_shape = x.shape[1:3]
            ret.append(x)
    return [jnp.transpose(f, (0, 3, 1, 2)).astype(jnp.float32) for f in ret]


def res45_forward(prepped, x_nchw):
    return _forward_impl(prepped, x_nchw, conv_bn)


# Pure-JAX reference (same bf16 per-layer rounding) for a numerical self-check.
def _conv_ref(x, w, shift, stride=1, relu=True, residual=None):
    kh = w.shape[0]
    pad = kh // 2
    y = lax.conv_general_dilated(
        x.astype(jnp.bfloat16), w.astype(jnp.bfloat16),
        window_strides=(stride, stride), padding=[(pad, pad), (pad, pad)],
        dimension_numbers=("NHWC", "HWIO", "NHWC"),
        preferred_element_type=jnp.float32)
    y = y + shift.reshape(1, 1, 1, -1).astype(jnp.float32)
    if residual is not None:
        y = y + residual.astype(jnp.float32)
    if relu:
        y = jnp.maximum(y, 0.0)
    return y.astype(jnp.bfloat16)


def res45_forward_ref(prepped, x_nchw):
    return _forward_impl(prepped, x_nchw, _conv_ref)


# --------------------------------- demo ----------------------------------------

if __name__ == "__main__":
    _const_pipeline_mode()   # run the Buffered(1) capability probe outside jit

    key = jax.random.PRNGKey(0)
    N, C, H, W = 2, 3, 16, 16                     # small NCHW input
    x = jax.random.normal(jax.random.fold_in(key, 999), (N, C, H, W),
                          jnp.float32)
    # expf=0.25, oupch=32 -> real channels [8,16,32,64,128,32].
    params = build_res45_params(jax.random.fold_in(key, 1),
                                inpch=C, oupch=32, expf=0.25)
    prepped = prepare_params(params)

    fwd = jax.jit(lambda inp: res45_forward(prepped, inp))
    feats = jax.block_until_ready(fwd(x))

    expected = [(N, 16, 8, 8), (N, 64, 4, 4), (N, 32, 4, 4)]
    got = [tuple(f.shape) for f in feats]
    assert got == expected, got
    assert all(bool(jnp.all(jnp.isfinite(f))) for f in feats)

    # Numerical self-check against an XLA conv reference with matching
    # per-layer bf16 rounding (loose tolerance: accumulation order differs).
    refs = jax.block_until_ready(
        jax.jit(lambda inp: res45_forward_ref(prepped, inp))(x))
    for f, r in zip(feats, refs):
        err = float(jnp.max(jnp.abs(f - r)))
        scale = float(jnp.max(jnp.abs(r)))
        assert err <= 0.1 * scale + 0.1, (err, scale)

    print("KERNEL_OK")
</pallas_src>

<mosaic_0001>
module attributes {stable_mosaic.version = 11 : i64} {
  func.func @_probe_copy_kernel(%arg0: i32, %arg1: memref<8x128xf32, #tpu.memory_space<vmem>>, %arg2: memref<8x128xf32, #tpu.memory_space<vmem>>) attributes {dimension_semantics = [#tpu.dimension_semantics<arbitrary>], iteration_bounds = array<i64: 2>, scalar_prefetch = 0 : i64, scratch_operands = 0 : i64, tpu.core_type = #tpu.core_type<tc>, window_params = [{pipeline_mode = #tpu.pipeline_mode<synchronous>, transform_indices = @transform_0, window_bounds = array<i64: 8, 128>}, {pipeline_mode = #tpu.pipeline_mode<synchronous>, transform_indices = @transform_1, window_bounds = array<i64: 8, 128>}]} {
    %c0 = arith.constant 0 : index
    %c0_0 = arith.constant 0 : index
    %0 = vector.load %arg1[%c0, %c0_0] : memref<8x128xf32, #tpu.memory_space<vmem>>, vector<8x128xf32>
    %c0_1 = arith.constant 0 : index
    %c0_2 = arith.constant 0 : index
    %1 = vector.load %arg2[%c0_1, %c0_2] : memref<8x128xf32, #tpu.memory_space<vmem>>, vector<8x128xf32>
    tpu.vector_store %arg2[%c0_1, %c0_2], %0 {strides = array<i32>} : memref<8x128xf32, #tpu.memory_space<vmem>>, vector<8x128xf32>,
    return
  }
  func.func @transform_0(%arg0: i32) -> (i32, i32) {
    %c0_i32 = arith.constant 0 : i32
    %c0_i32_0 = arith.constant 0 : i32
    %c0_i32_1 = arith.constant 0 : i32
    return %c0_i32, %c0_i32_0 : i32, i32
  }
  func.func @transform_1(%arg0: i32) -> (i32, i32) {
    %c0_i32 = arith.constant 0 : i32
    %c0_i32_0 = arith.constant 0 : i32
    %c0_i32_1 = arith.constant 0 : i32
    return %c0_i32, %c0_i32_0 : i32, i32
  }
}

module attributes {stable_mosaic.version = 11 : i64} {
  func.func @_mm_shift_kernel(%arg0: i32, %arg1: memref<512x27xbf16, #tpu.memory_space<vmem>>, %arg2: memref<27x8xbf16, #tpu.memory_space<vmem>>, %arg3: memref<1x8xf32, #tpu.memory_space<vmem>>, %arg4: memref<512x8xbf16, #tpu.memory_space<vmem>>) attributes {dimension_semantics = [#tpu.dimension_semantics<parallel>], iteration_bounds = array<i64: 1>, scalar_prefetch = 0 : i64, scratch_operands = 0 : i64, tpu.core_type = #tpu.core_type<tc>, window_params = [{transform_indices = @transform_0, window_bounds = array<i64: 512, 27>}, {pipeline_mode = #tpu.pipeline_mode<synchronous>, transform_indices = @transform_1, window_bounds = array<i64: 27, 8>}, {pipeline_mode = #tpu.pipeline_mode<synchronous>, transform_indices = @transform_2, window_bounds = array<i64: 1, 8>}, {transform_indices = @transform_3, window_bounds = array<i64: 512, 8>}]} {
    %c0 = arith.constant 0 : index
    %c0_0 = arith.constant 0 : index
    %0 = vector.load %arg1[%c0, %c0_0] : memref<512x27xbf16, #tpu.memory_space<vmem>>, vector<512x27xbf16>
    %c0_1 = arith.constant 0 : index
    %c0_2 = arith.constant 0 : index
    %1 = vector.load %arg2[%c0_1, %c0_2] : memref<27x8xbf16, #tpu.memory_space<vmem>>, vector<27x8xbf16>
    %cst = arith.constant dense<0.000000e+00> : vector<512x8xf32>
    %2 = tpu.matmul %0, %1, %cst {dimension_numbers = #tpu.dot_dimension_numbers<[1], [0], [0], [1], [0, 0, 1, 1], [], []>} : vector<512x27xbf16>, vector<27x8xbf16>, vector<512x8xf32> -> vector<512x8xf32>
    %c0_3 = arith.constant 0 : index
    %c0_4 = arith.constant 0 : index
    %3 = vector.load %arg3[%c0_3, %c0_4] : memref<1x8xf32, #tpu.memory_space<vmem>>, vector<1x8xf32>
    %4 = vector.broadcast %3 : vector<1x8xf32> to vector<512x8xf32>
    %5 = arith.addf %2, %4 : vector<512x8xf32>
    %cst_5 = arith.constant 0.000000e+00 : f32
    %6 = vector.broadcast %cst_5 : f32 to vector<512x8xf32>
    %7 = arith.maximumf %5, %6 : vector<512x8xf32>
    %8 = arith.truncf %7 : vector<512x8xf32> to vector<512x8xbf16>
    %c0_6 = arith.constant 0 : index
    %c0_7 = arith.constant 0 : index
    %9 = vector.load %arg4[%c0_6, %c0_7] : memref<512x8xbf16, #tpu.memory_space<vmem>>, vector<512x8xbf16>
    tpu.vector_store %arg4[%c0_6, %c0_7], %8 {strides = array<i32>} : memref<512x8xbf16, #tpu.memory_space<vmem>>, vector<512x8xbf16>,
    return
  }
  func.func @transform_0(%arg0: i32) -> (i32, i32) {
    %c0_i32 = arith.constant 0 : i32
    %c0_i32_0 = arith.constant 0 : i32
    return %arg0, %c0_i32 : i32, i32
  }
  func.func @transform_1(%arg0: i32) -> (i32, i32) {
    %c0_i32 = arith.constant 0 : i32
    %c0_i32_0 = arith.constant 0 : i32
    %c0_i32_1 = arith.constant 0 : i32
    return %c0_i32, %c0_i32_0 : i32, i32
  }
  func.func @transform_2(%arg0: i32) -> (i32, i32) {
    %c0_i32 = arith.constant 0 : i32
    %c0_i32_0 = arith.constant 0 : i32
    %c0_i32_1 = arith.constant 0 : i32
    return %c0_i32, %c0_i32_0 : i32, i32
  }
  func.func @transform_3(%arg0: i32) -> (i32, i32) {
    %c0_i32 = arith.constant 0 : i32
    %c0_i32_0 = arith.constant 0 : i32
    return %arg0, %c0_i32 : i32, i32
  }
}

module attributes {stable_mosaic.version = 11 : i64} {
  func.func @_mm_shift_kernel(%arg0: i32, %arg1: memref<128x72xbf16, #tpu.memory_space<vmem>>, %arg2: memref<72x16xbf16, #tpu.memory_space<vmem>>, %arg3: memref<1x16xf32, #tpu.memory_space<vmem>>, %arg4: memref<128x16xbf16, #tpu.memory_space<vmem>>) attributes {dimension_semantics = [#tpu.dimension_semantics<parallel>], iteration_bounds = array<i64: 1>, scalar_prefetch = 0 : i64, scratch_operands = 0 : i64, tpu.core_type = #tpu.core_type<tc>, window_params = [{transform_indices = @transform_0, window_bounds = array<i64: 128, 72>}, {pipeline_mode = #tpu.pipeline_mode<synchronous>, transform_indices = @transform_1, window_bounds = array<i64: 72, 16>}, {pipeline_mode = #tpu.pipeline_mode<synchronous>, transform_indices = @transform_2, window_bounds = array<i64: 1, 16>}, {transform_indices = @transform_3, window_bounds = array<i64: 128, 16>}]} {
    %c0 = arith.constant 0 : index
    %c0_0 = arith.constant 0 : index
    %0 = vector.load %arg1[%c0, %c0_0] : memref<128x72xbf16, #tpu.memory_space<vmem>>, vector<128x72xbf16>
    %c0_1 = arith.constant 0 : index
    %c0_2 = arith.constant 0 : index
    %1 = vector.load %arg2[%c0_1, %c0_2] : memref<72x16xbf16, #tpu.memory_space<vmem>>, vector<72x16xbf16>
    %cst = arith.constant dense<0.000000e+00> : vector<128x16xf32>
    %2 = tpu.matmul %0, %1, %cst {dimension_numbers = #tpu.dot_dimension_numbers<[1], [0], [0], [1], [0, 0, 1, 1], [], []>} : vector<128x72xbf16>, vector<72x16xbf16>, vector<128x16xf32> -> vector<128x16xf32>
    %c0_3 = arith.constant 0 : index
    %c0_4 = arith.constant 0 : index
    %3 = vector.load %arg3[%c0_3, %c0_4] : memref<1x16xf32, #tpu.memory_space<vmem>>, vector<1x16xf32>
    %4 = vector.broadcast %3 : vector<1x16xf32> to vector<128x16xf32>
    %5 = arith.addf %2, %4 : vector<128x16xf32>
    %cst_5 = arith.constant 0.000000e+00 : f32
    %6 = vector.broadcast %cst_5 : f32 to vector<128x16xf32>
    %7 = arith.maximumf %5, %6 : vector<128x16xf32>
    %8 = arith.truncf %7 : vector<128x16xf32> to vector<128x16xbf16>
    %c0_6 = arith.constant 0 : index
    %c0_7 = arith.constant 0 : index
    %9 = vector.load %arg4[%c0_6, %c0_7] : memref<128x16xbf16, #tpu.memory_space<vmem>>, vector<128x16xbf16>
    tpu.vector_store %arg4[%c0_6, %c0_7], %8 {strides = array<i32>} : memref<128x16xbf16, #tpu.memory_space<vmem>>, vector<128x16xbf16>,
    return
  }
  func.func @transform_0(%arg0: i32) -> (i32, i32) {
    %c0_i32 = arith.constant 0 : i32
    %c0_i32_0 = arith.constant 0 : i32
    return %arg0, %c0_i32 : i32, i32
  }
  func.func @transform_1(%arg0: i32) -> (i32, i32) {
    %c0_i32 = arith.constant 0 : i32
    %c0_i32_0 = arith.constant 0 : i32
    %c0_i32_1 = arith.constant 0 : i32
    return %c0_i32, %c0_i32_0 : i32, i32
  }
  func.func @transform_2(%arg0: i32) -> (i32, i32) {
    %c0_i32 = arith.constant 0 : i32
    %c0_i32_0 = arith.constant 0 : i32
    %c0_i32_1 = arith.constant 0 : i32
    return %c0_i32, %c0_i32_0 : i32, i32
  }
  func.func @transform_3(%arg0: i32) -> (i32, i32) {
    %c0_i32 = arith.constant 0 : i32
    %c0_i32_0 = arith.constant 0 : i32
    return %arg0, %c0_i32 : i32, i32
  }
}

module attributes {stable_mosaic.version = 11 : i64} {
  func.func @_mm_shift_kernel(%arg0: i32, %arg1: memref<128x16xbf16, #tpu.memory_space<vmem>>, %arg2: memref<16x16xbf16, #tpu.memory_space<vmem>>, %arg3: memref<1x16xf32, #tpu.memory_space<vmem>>, %arg4: memref<128x16xbf16, #tpu.memory_space<vmem>>) attributes {dimension_semantics = [#tpu.dimension_semantics<parallel>], iteration_bounds = array<i64: 1>, scalar_prefetch = 0 : i64, scratch_operands = 0 : i64, tpu.core_type = #tpu.core_type<tc>, window_params = [{transform_indices = @transform_0, window_bounds = array<i64: 128, 16>}, {pipeline_mode = #tpu.pipeline_mode<synchronous>, transform_indices = @transform_1, window_bounds = array<i64: 16, 16>}, {pipeline_mode = #tpu.pipeline_mode<synchronous>, transform_indices = @transform_2, window_bounds = array<i64: 1, 16>}, {transform_indices = @transform_3, window_bounds = array<i64: 128, 16>}]} {
    %c0 = arith.constant 0 : index
    %c0_0 = arith.constant 0 : index
    %0 = vector.load %arg1[%c0, %c0_0] : memref<128x16xbf16, #tpu.memory_space<vmem>>, vector<128x16xbf16>
    %c0_1 = arith.constant 0 : index
    %c0_2 = arith.constant 0 : index
    %1 = vector.load %arg2[%c0_1, %c0_2] : memref<16x16xbf16, #tpu.memory_space<vmem>>, vector<16x16xbf16>
    %cst = arith.constant dense<0.000000e+00> : vector<128x16xf32>
    %2 = tpu.matmul %0, %1, %cst {dimension_numbers = #tpu.dot_dimension_numbers<[1], [0], [0], [1], [0, 0, 1, 1], [], []>} : vector<128x16xbf16>, vector<16x16xbf16>, vector<128x16xf32> -> vector<128x16xf32>
    %c0_3 = arith.constant 0 : index
    %c0_4 = arith.constant 0 : index
    %3 = vector.load %arg3[%c0_3, %c0_4] : memref<1x16xf32, #tpu.memory_space<vmem>>, vector<1x16xf32>
    %4 = vector.broadcast %3 : vector<1x16xf32> to vector<128x16xf32>
    %5 = arith.addf %2, %4 : vector<128x16xf32>
    %cst_5 = arith.constant 0.000000e+00 : f32
    %6 = vector.broadcast %cst_5 : f32 to vector<128x16xf32>
    %7 = arith.maximumf %5, %6 : vector<128x16xf32>
    %8 = arith.truncf %7 : vector<128x16xf32> to vector<128x16xbf16>
    %c0_6 = arith.constant 0 : index
    %c0_7 = arith.constant 0 : index
    %9 = vector.load %arg4[%c0_6, %c0_7] : memref<128x16xbf16, #tpu.memory_space<vmem>>, vector<128x16xbf16>
    tpu.vector_store %arg4[%c0_6, %c0_7], %8 {strides = array<i32>} : memref<128x16xbf16, #tpu.memory_space<vmem>>, vector<128x16xbf16>,
    return
  }
  func.func @transform_0(%arg0: i32) -> (i32, i32) {
    %c0_i32 = arith.constant 0 : i32
    %c0_i32_0 = arith.constant 0 : i32
    return %arg0, %c0_i32 : i32, i32
  }
  func.func @transform_1(%arg0: i32) -> (i32, i32) {
    %c0_i32 = arith.constant 0 : i32
    %c0_i32_0 = arith.constant 0 : i32
    %c0_i32_1 = arith.constant 0 : i32
    return %c0_i32, %c0_i32_0 : i32, i32
  }
  func.func @transform_2(%arg0: i32) -> (i32, i32) {
    %c0_i32 = arith.constant 0 : i32
    %c0_i32_0 = arith.constant 0 : i32
    %c0_i32_1 = arith.constant 0 : i32
    return %c0_i32, %c0_i32_0 : i32, i32
  }
  func.func @transform_3(%arg0: i32) -> (i32, i32) {
    %c0_i32 = arith.constant 0 : i32
    %c0_i32_0 = arith.constant 0 : i32
    return %arg0, %c0_i32 : i32, i32
  }
}

module attributes {stable_mosaic.version = 11 : i64} {
  func.func @_conv3x3_kernel(%arg0: i32, %arg1: i32, %arg2: memref<1x10x10x16xbf16, #tpu.memory_space<vmem>>, %arg3: memref<3x3x16x16xbf16, #tpu.memory_space<vmem>>, %arg4: memref<1x16xf32, #tpu.memory_space<vmem>>, %arg5: memref<1x8x8x16xbf16, #tpu.memory_space<vmem>>, %arg6: memref<1x8x8x16xbf16, #tpu.memory_space<vmem>>) attributes {dimension_semantics = [#tpu.dimension_semantics<parallel>, #tpu.dimension_semantics<parallel>], iteration_bounds = array<i64: 2, 1>, scalar_prefetch = 0 : i64, scratch_operands = 0 : i64, tpu.core_type = #tpu.core_type<tc>, window_params = [{transform_indices = @transform_0, window_bounds = array<i64: 1, 10, 10, 16>}, {pipeline_mode = #tpu.pipeline_mode<synchronous>, transform_indices = @transform_1, window_bounds = array<i64: 3, 3, 16, 16>}, {pipeline_mode = #tpu.pipeline_mode<synchronous>, transform_indices = @transform_2, window_bounds = array<i64: 1, 16>}, {transform_indices = @transform_3, window_bounds = array<i64: 1, 8, 8, 16>}, {transform_indices = @transform_4, window_bounds = array<i64: 1, 8, 8, 16>}]} {
    %c8_i32 = arith.constant 8 : i32
    %0 = arith.muli %arg1, %c8_i32 : i32
    %c0 = arith.constant 0 : index
    %1 = arith.index_cast %0 : i32 to index
    %c0_0 = arith.constant 0 : index
    %c0_1 = arith.constant 0 : index
    %2 = vector.load %arg2[%c0, %1, %c0_0, %c0_1] : memref<1x10x10x16xbf16, #tpu.memory_space<vmem>>, vector<1x10x10x16xbf16>
    %3 = vector.shape_cast %2 : vector<1x10x10x16xbf16> to vector<10x10x16xbf16>
    %4 = vector.extract_strided_slice %3 {offsets = [0, 0, 0], sizes = [10, 8, 16], strides = [1, 1, 1]} : vector<10x10x16xbf16> to vector<10x8x16xbf16>
    %5 = vector.extract_strided_slice %3 {offsets = [0, 1, 0], sizes = [10, 8, 16], strides = [1, 1, 1]} : vector<10x10x16xbf16> to vector<10x8x16xbf16>
    %6 = vector.extract_strided_slice %3 {offsets = [0, 2, 0], sizes = [10, 8, 16], strides = [1, 1, 1]} : vector<10x10x16xbf16> to vector<10x8x16xbf16>
    %7 = vector.extract_strided_slice %4 {offsets = [0, 0, 0], sizes = [8, 8, 16], strides = [1, 1, 1]} : vector<10x8x16xbf16> to vector<8x8x16xbf16>
    %8 = vector.shape_cast %7 : vector<8x8x16xbf16> to vector<64x16xbf16>
    %c0_2 = arith.constant 0 : index
    %c0_3 = arith.constant 0 : index
    %c0_4 = arith.constant 0 : index
    %c0_5 = arith.constant 0 : index
    %9 = vector.load %arg3[%c0_2, %c0_3, %c0_4, %c0_5] : memref<3x3x16x16xbf16, #tpu.memory_space<vmem>>, vector<1x1x16x16xbf16>
    %10 = vector.shape_cast %9 : vector<1x1x16x16xbf16> to vector<16x16xbf16>
    %cst = arith.constant dense<0.000000e+00> : vector<64x16xf32>
    %11 = tpu.matmul %8, %10, %cst {dimension_numbers = #tpu.dot_dimension_numbers<[1], [0], [0], [1], [0, 0, 1, 1], [], []>} : vector<64x16xbf16>, vector<16x16xbf16>, vector<64x16xf32> -> vector<64x16xf32>
    %12 = vector.extract_strided_slice %5 {offsets = [0, 0, 0], sizes = [8, 8, 16], strides = [1, 1, 1]} : vector<10x8x16xbf16> to vector<8x8x16xbf16>
    %13 = vector.shape_cast %12 : vector<8x8x16xbf16> to vector<64x16xbf16>
    %c0_6 = arith.constant 0 : index
    %c1 = arith.constant 1 : index
    %c0_7 = arith.constant 0 : index
    %c0_8 = arith.constant 0 : index
    %14 = vector.load %arg3[%c0_6, %c1, %c0_7, %c0_8] : memref<3x3x16x16xbf16, #tpu.memory_space<vmem>>, vector<1x1x16x16xbf16>
    %15 = vector.shape_cast %14 : vector<1x1x16x16xbf16> to vector<16x16xbf16>
    %cst_9 = arith.constant dense<0.000000e+00> : vector<64x16xf32>
    %16 = tpu.matmul %13, %15, %cst_9 {dimension_numbers = #tpu.dot_dimension_numbers<[1], [0], [0], [1], [0, 0, 1, 1], [], []>} : vector<64x16xbf16>, vector<16x16xbf16>, vector<64x16xf32> -> vector<64x16xf32>
    %17 = arith.addf %11, %16 : vector<64x16xf32>
    %18 = vector.extract_strided_slice %6 {offsets = [0, 0, 0], sizes = [8, 8, 16], strides = [1, 1, 1]} : vector<10x8x16xbf16> to vector<8x8x16xbf16>
    %19 = vector.shape_cast %18 : vector<8x8x16xbf16> to vector<64x16xbf16>
    %c0_10 = arith.constant 0 : index
    %c2 = arith.constant 2 : index
    %c0_11 = arith.constant 0 : index
    %c0_12 = arith.constant 0 : index
    %20 = vector.load %arg3[%c0_10, %c2, %c0_11, %c0_12] : memref<3x3x16x16xbf16, #tpu.memory_space<vmem>>, vector<1x1x16x16xbf16>
    %21 = vector.shape_cast %20 : vector<1x1x16x16xbf16> to vector<16x16xbf16>
    %cst_13 = arith.constant dense<0.000000e+00> : vector<64x16xf32>
    %22 = tpu.matmul %19, %21, %cst_13 {dimension_numbers = #tpu.dot_dimension_numbers<[1], [0], [0], [1], [0, 0, 1, 1], [], []>} : vector<64x16xbf16>, vector<16x16xbf16>, vector<64x16xf32> -> vector<64x16xf32>
    %23 = arith.addf %17, %22 : vector<64x16xf32>
    %24 = vector.extract_strided_slice %4 {offsets = [1, 0, 0], sizes = [8, 8, 16], strides = [1, 1, 1]} : vector<10x8x16xbf16> to vector<8x8x16xbf16>
    %25 = vector.shape_cast %24 : vector<8x8x16xbf16> to vector<64x16xbf16>
    %c1_14 = arith.constant 1 : index
    %c0_15 = arith.constant 0 : index
    %c0_16 = arith.constant 0 : index
    %c0_17 = arith.constant 0 : index
    %26 = vector.load %arg3[%c1_14, %c0_15, %c0_16, %c0_17] : memref<3x3x16x16xbf16, #tpu.memory_space<vmem>>, vector<1x1x16x16xbf16>
    %27 = vector.shape_cast %26 : vector<1x1x16x16xbf16> to vector<16x16xbf16>
    %cst_18 = arith.constant dense<0.000000e+00> : vector<64x16xf32>
    %28 = tpu.matmul %25, %27, %cst_18 {dimension_numbers = #tpu.dot_dimension_numbers<[1], [0], [0], [1], [0, 0, 1, 1], [], []>} : vector<64x16xbf16>, vector<16x16xbf16>, vector<64x16xf32> -> vector<64x16xf32>
    %29 = arith.addf %23, %28 : vector<64x16xf32>
    %30 = vector.extract_strided_slice %5 {offsets = [1, 0, 0], sizes = [8, 8, 16], strides = [1, 1, 1]} : vector<10x8x16xbf16> to vector<8x8x16xbf16>
    %31 = vector.shape_cast %30 : vector<8x8x16xbf16> to vector<64x16xbf16>
    %c1_19 = arith.constant 1 : index
    %c1_20 = arith.constant 1 : index
    %c0_21 = arith.constant 0 : index
    %c0_22 = arith.constant 0 : index
    %32 = vector.load %arg3[%c1_19, %c1_20, %c0_21, %c0_22] : memref<3x3x16x16xbf16, #tpu.memory_space<vmem>>, vector<1x1x16x16xbf16>
    %33 = vector.shape_cast %32 : vector<1x1x16x16xbf16> to vector<16x16xbf16>
    %cst_23 = arith.constant dense<0.000000e+00> : vector<64x16xf32>
    %34 = tpu.matmul %31, %33, %cst_23 {dimension_numbers = #tpu.dot_dimension_numbers<[1], [0], [0], [1], [0, 0, 1, 1], [], []>} : vector<64x16xbf16>, vector<16x16xbf16>, vector<64x16xf32> -> vector<64x16xf32>
    %35 = arith.addf %29, %34 : vector<64x16xf32>
    %36 = vector.extract_strided_slice %6 {offsets = [1, 0, 0], sizes = [8, 8, 16], strides = [1, 1, 1]} : vector<10x8x16xbf16> to vector<8x8x16xbf16>
    %37 = vector.shape_cast %36 : vector<8x8x16xbf16> to vector<64x16xbf16>
    %c1_24 = arith.constant 1 : index
    %c2_25 = arith.constant 2 : index
    %c0_26 = arith.constant 0 : index
    %c0_27 = arith.constant 0 : index
    %38 = vector.load %arg3[%c1_24, %c2_25, %c0_26, %c0_27] : memref<3x3x16x16xbf16, #tpu.memory_space<vmem>>, vector<1x1x16x16xbf16>
    %39 = vector.shape_cast %38 : vector<1x1x16x16xbf16> to vector<16x16xbf16>
    %cst_28 = arith.constant dense<0.000000e+00> : vector<64x16xf32>
    %40 = tpu.matmul %37, %39, %cst_28 {dimension_numbers = #tpu.dot_dimension_numbers<[1], [0], [0], [1], [0, 0, 1, 1], [], []>} : vector<64x16xbf16>, vector<16x16xbf16>, vector<64x16xf32> -> vector<64x16xf32>
    %41 = arith.addf %35, %40 : vector<64x16xf32>
    %42 = vector.extract_strided_slice %4 {offsets = [2, 0, 0], sizes = [8, 8, 16], strides = [1, 1, 1]} : vector<10x8x16xbf16> to vector<8x8x16xbf16>
    %43 = vector.shape_cast %42 : vector<8x8x16xbf16> to vector<64x16xbf16>
    %c2_29 = arith.constant 2 : index
    %c0_30 = arith.constant 0 : index
    %c0_31 = arith.constant 0 : index
    %c0_32 = arith.constant 0 : index
    %44 = vector.load %arg3[%c2_29, %c0_30, %c0_31, %c0_32] : memref<3x3x16x16xbf16, #tpu.memory_space<vmem>>, vector<1x1x16x16xbf16>
    %45 = vector.shape_cast %44 : vector<1x1x16x16xbf16> to vector<16x16xbf16>
    %cst_33 = arith.constant dense<0.000000e+00> : vector<64x16xf32>
    %46 = tpu.matmul %43, %45, %cst_33 {dimension_numbers = #tpu.dot_dimension_numbers<[1], [0], [0], [1], [0, 0, 1, 1], [], []>} : vector<64x16xbf16>, vector<16x16xbf16>, vector<64x16xf32> -> vector<64x16xf32>
    %47 = arith.addf %41, %46 : vector<64x16xf32>
    %48 = vector.extract_strided_slice %5 {offsets = [2, 0, 0], sizes = [8, 8, 16], strides = [1, 1, 1]} : vector<10x8x16xbf16> to vector<8x8x16xbf16>
    %49 = vector.shape_cast %48 : vector<8x8x16xbf16> to vector<64x16xbf16>
    %c2_34 = arith.constant 2 : index
    %c1_35 = arith.constant 1 : index
    %c0_36 = arith.constant 0 : index
    %c0_37 = arith.constant 0 : index
    %50 = vector.load %arg3[%c2_34, %c1_35, %c0_36, %c0_37] : memref<3x3x16x16xbf16, #tpu.memory_space<vmem>>, vector<1x1x16x16xbf16>
    %51 = vector.shape_cast %50 : vector<1x1x16x16xbf16> to vector<16x16xbf16>
    %cst_38 = arith.constant dense<0.000000e+00> : vector<64x16xf32>
    %52 = tpu.matmul %49, %51, %cst_38 {dimension_numbers = #tpu.dot_dimension_numbers<[1], [0], [0], [1], [0, 0, 1, 1], [], []>} : vector<64x16xbf16>, vector<16x16xbf16>, vector<64x16xf32> -> vector<64x16xf32>
    %53 = arith.addf %47, %52 : vector<64x16xf32>
    %54 = vector.extract_strided_slice %6 {offsets = [2, 0, 0], sizes = [8, 8, 16], strides = [1, 1, 1]} : vector<10x8x16xbf16> to vector<8x8x16xbf16>
    %55 = vector.shape_cast %54 : vector<8x8x16xbf16> to vector<64x16xbf16>
    %c2_39 = arith.constant 2 : index
    %c2_40 = arith.constant 2 : index
    %c0_41 = arith.constant 0 : index
    %c0_42 = arith.constant 0 : index
    %56 = vector.load %arg3[%c2_39, %c2_40, %c0_41, %c0_42] : memref<3x3x16x16xbf16, #tpu.memory_space<vmem>>, vector<1x1x16x16xbf16>
    %57 = vector.shape_cast %56 : vector<1x1x16x16xbf16> to vector<16x16xbf16>
    %cst_43 = arith.constant dense<0.000000e+00> : vector<64x16xf32>
    %58 = tpu.matmul %55, %57, %cst_43 {dimension_numbers = #tpu.dot_dimension_numbers<[1], [0], [0], [1], [0, 0, 1, 1], [], []>} : vector<64x16xbf16>, vector<16x16xbf16>, vector<64x16xf32> -> vector<64x16xf32>
    %59 = arith.addf %53, %58 : vector<64x16xf32>
    %c0_44 = arith.constant 0 : index
    %c0_45 = arith.constant 0 : index
    %60 = vector.load %arg4[%c0_44, %c0_45] : memref<1x16xf32, #tpu.memory_space<vmem>>, vector<1x16xf32>
    %61 = vector.broadcast %60 : vector<1x16xf32> to vector<64x16xf32>
    %62 = arith.addf %59, %61 : vector<64x16xf32>
    %c0_46 = arith.constant 0 : index
    %c0_47 = arith.constant 0 : index
    %c0_48 = arith.constant 0 : index
    %c0_49 = arith.constant 0 : index
    %63 = vector.load %arg5[%c0_46, %c0_47, %c0_48, %c0_49] : memref<1x8x8x16xbf16, #tpu.memory_space<vmem>>, vector<1x8x8x16xbf16>
    %64 = vector.shape_cast %63 : vector<1x8x8x16xbf16> to vector<8x8x16xbf16>
    %65 = vector.shape_cast %64 : vector<8x8x16xbf16> to vector<64x16xbf16>
    %66 = arith.extf %65 : vector<64x16xbf16> to vector<64x16xf32>
    %67 = arith.addf %62, %66 : vector<64x16xf32>
    %cst_50 = arith.constant 0.000000e+00 : f32
    %68 = vector.broadcast %cst_50 : f32 to vector<64x16xf32>
    %69 = arith.maximumf %67, %68 : vector<64x16xf32>
    %70 = vector.shape_cast %69 : vector<64x16xf32> to vector<8x8x16xf32>
    %71 = arith.truncf %70 : vector<8x8x16xf32> to vector<8x8x16xbf16>
    %c0_51 = arith.constant 0 : index
    %c0_52 = arith.constant 0 : index
    %c0_53 = arith.constant 0 : index
    %c0_54 = arith.constant 0 : index
    %72 = vector.load %arg6[%c0_51, %c0_52, %c0_53, %c0_54] : memref<1x8x8x16xbf16, #tpu.memory_space<vmem>>, vector<1x8x8x16xbf16>
    %73 = vector.shape_cast %72 : vector<1x8x8x16xbf16> to vector<8x8x16xbf16>
    %74 = vector.shape_cast %71 : vector<8x8x16xbf16> to vector<1x8x8x16xbf16>
    tpu.vector_store %arg6[%c0_51, %c0_52, %c0_53, %c0_54], %74 {strides = array<i32>} : memref<1x8x8x16xbf16, #tpu.memory_space<vmem>>, vector<1x8x8x16xbf16>,
    return
  }
  func.func @transform_0(%arg0: i32, %arg1: i32) -> (i32, i32, i32, i32) {
    %c0_i32 = arith.constant 0 : i32
    %c0_i32_0 = arith.constant 0 : i32
    %c0_i32_1 = arith.constant 0 : i32
    %c0_i32_2 = arith.constant 0 : i32
    return %arg0, %c0_i32, %c0_i32_0, %c0_i32_1 : i32, i32, i32, i32
  }
  func.func @transform_1(%arg0: i32, %arg1: i32) -> (i32, i32, i32, i32) {
    %c0_i32 = arith.constant 0 : i32
    %c0_i32_0 = arith.constant 0 : i32
    %c0_i32_1 = arith.constant 0 : i32
    %c0_i32_2 = arith.constant 0 : i32
    %c0_i32_3 = arith.constant 0 : i32
    return %c0_i32, %c0_i32_0, %c0_i32_1, %c0_i32_2 : i32, i32, i32, i32
  }
  func.func @transform_2(%arg0: i32, %arg1: i32) -> (i32, i32) {
    %c0_i32 = arith.constant 0 : i32
    %c0_i32_0 = arith.constant 0 : i32
    %c0_i32_1 = arith.constant 0 : i32
    return %c0_i32, %c0_i32_0 : i32, i32
  }
  func.func @transform_3(%arg0: i32, %arg1: i32) -> (i32, i32, i32, i32) {
    %c0_i32 = arith.constant 0 : i32
    %c0_i32_0 = arith.constant 0 : i32
    %c0_i32_1 = arith.constant 0 : i32
    return %arg0, %arg1, %c0_i32, %c0_i32_0 : i32, i32, i32, i32
  }
  func.func @transform_4(%arg0: i32, %arg1: i32) -> (i32, i32, i32, i32) {
    %c0_i32 = arith.constant 0 : i32
    %c0_i32_0 = arith.constant 0 : i32
    %c0_i32_1 = arith.constant 0 : i32
    return %arg0, %arg1, %c0_i32, %c0_i32_0 : i32, i32, i32, i32
  }
}

module attributes {stable_mosaic.version = 11 : i64} {
  func.func @_conv3x3_kernel(%arg0: i32, %arg1: i32, %arg2: memref<1x10x10x16xbf16, #tpu.memory_space<vmem>>, %arg3: memref<3x3x16x32xbf16, #tpu.memory_space<vmem>>, %arg4: memref<1x32xf32, #tpu.memory_space<vmem>>, %arg5: memref<1x8x8x32xbf16, #tpu.memory_space<vmem>>) attributes {dimension_semantics = [#tpu.dimension_semantics<parallel>, #tpu.dimension_semantics<parallel>], iteration_bounds = array<i64: 2, 1>, scalar_prefetch = 0 : i64, scratch_operands = 0 : i64, tpu.core_type = #tpu.core_type<tc>, window_params = [{transform_indices = @transform_0, window_bounds = array<i64: 1, 10, 10, 16>}, {pipeline_mode = #tpu.pipeline_mode<synchronous>, transform_indices = @transform_1, window_bounds = array<i64: 3, 3, 16, 32>}, {pipeline_mode = #tpu.pipeline_mode<synchronous>, transform_indices = @transform_2, window_bounds = array<i64: 1, 32>}, {transform_indices = @transform_3, window_bounds = array<i64: 1, 8, 8, 32>}]} {
    %c8_i32 = arith.constant 8 : i32
    %0 = arith.muli %arg1, %c8_i32 : i32
    %c0 = arith.constant 0 : index
    %1 = arith.index_cast %0 : i32 to index
    %c0_0 = arith.constant 0 : index
    %c0_1 = arith.constant 0 : index
    %2 = vector.load %arg2[%c0, %1, %c0_0, %c0_1] : memref<1x10x10x16xbf16, #tpu.memory_space<vmem>>, vector<1x10x10x16xbf16>
    %3 = vector.shape_cast %2 : vector<1x10x10x16xbf16> to vector<10x10x16xbf16>
    %4 = vector.extract_strided_slice %3 {offsets = [0, 0, 0], sizes = [10, 8, 16], strides = [1, 1, 1]} : vector<10x10x16xbf16> to vector<10x8x16xbf16>
    %5 = vector.extract_strided_slice %3 {offsets = [0, 1, 0], sizes = [10, 8, 16], strides = [1, 1, 1]} : vector<10x10x16xbf16> to vector<10x8x16xbf16>
    %6 = vector.extract_strided_slice %3 {offsets = [0, 2, 0], sizes = [10, 8, 16], strides = [1, 1, 1]} : vector<10x10x16xbf16> to vector<10x8x16xbf16>
    %7 = vector.extract_strided_slice %4 {offsets = [0, 0, 0], sizes = [8, 8, 16], strides = [1, 1, 1]} : vector<10x8x16xbf16> to vector<8x8x16xbf16>
    %8 = vector.shape_cast %7 : vector<8x8x16xbf16> to vector<64x16xbf16>
    %c0_2 = arith.constant 0 : index
    %c0_3 = arith.constant 0 : index
    %c0_4 = arith.constant 0 : index
    %c0_5 = arith.constant 0 : index
    %9 = vector.load %arg3[%c0_2, %c0_3, %c0_4, %c0_5] : memref<3x3x16x32xbf16, #tpu.memory_space<vmem>>, vector<1x1x16x32xbf16>
    %10 = vector.shape_cast %9 : vector<1x1x16x32xbf16> to vector<16x32xbf16>
    %cst = arith.constant dense<0.000000e+00> : vector<64x32xf32>
    %11 = tpu.matmul %8, %10, %cst {dimension_numbers = #tpu.dot_dimension_numbers<[1], [0], [0], [1], [0, 0, 1, 1], [], []>} : vector<64x16xbf16>, vector<16x32xbf16>, vector<64x32xf32> -> vector<64x32xf32>
    %12 = vector.extract_strided_slice %5 {offsets = [0, 0, 0], sizes = [8, 8, 16], strides = [1, 1, 1]} : vector<10x8x16xbf16> to vector<8x8x16xbf16>
    %13 = vector.shape_cast %12 : vector<8x8x16xbf16> to vector<64x16xbf16>
    %c0_6 = arith.constant 0 : index
    %c1 = arith.constant 1 : index
    %c0_7 = arith.constant 0 : index
    %c0_8 = arith.constant 0 : index
    %14 = vector.load %arg3[%c0_6, %c1, %c0_7, %c0_8] : memref<3x3x16x32xbf16, #tpu.memory_space<vmem>>, vector<1x1x16x32xbf16>
    %15 = vector.shape_cast %14 : vector<1x1x16x32xbf16> to vector<16x32xbf16>
    %cst_9 = arith.constant dense<0.000000e+00> : vector<64x32xf32>
    %16 = tpu.matmul %13, %15, %cst_9 {dimension_numbers = #tpu.dot_dimension_numbers<[1], [0], [0], [1], [0, 0, 1, 1], [], []>} : vector<64x16xbf16>, vector<16x32xbf16>, vector<64x32xf32> -> vector<64x32xf32>
    %17 = arith.addf %11, %16 : vector<64x32xf32>
    %18 = vector.extract_strided_slice %6 {offsets = [0, 0, 0], sizes = [8, 8, 16], strides = [1, 1, 1]} : vector<10x8x16xbf16> to vector<8x8x16xbf16>
    %19 = vector.shape_cast %18 : vector<8x8x16xbf16> to vector<64x16xbf16>
    %c0_10 = arith.constant 0 : index
    %c2 = arith.constant 2 : index
    %c0_11 = arith.constant 0 : index
    %c0_12 = arith.constant 0 : index
    %20 = vector.load %arg3[%c0_10, %c2, %c0_11, %c0_12] : memref<3x3x16x32xbf16, #tpu.memory_space<vmem>>, vector<1x1x16x32xbf16>
    %21 = vector.shape_cast %20 : vector<1x1x16x32xbf16> to vector<16x32xbf16>
    %cst_13 = arith.constant dense<0.000000e+00> : vector<64x32xf32>
    %22 = tpu.matmul %19, %21, %cst_13 {dimension_numbers = #tpu.dot_dimension_numbers<[1], [0], [0], [1], [0, 0, 1, 1], [], []>} : vector<64x16xbf16>, vector<16x32xbf16>, vector<64x32xf32> -> vector<64x32xf32>
    %23 = arith.addf %17, %22 : vector<64x32xf32>
    %24 = vector.extract_strided_slice %4 {offsets = [1, 0, 0], sizes = [8, 8, 16], strides = [1, 1, 1]} : vector<10x8x16xbf16> to vector<8x8x16xbf16>
    %25 = vector.shape_cast %24 : vector<8x8x16xbf16> to vector<64x16xbf16>
    %c1_14 = arith.constant 1 : index
    %c0_15 = arith.constant 0 : index
    %c0_16 = arith.constant 0 : index
    %c0_17 = arith.constant 0 : index
    %26 = vector.load %arg3[%c1_14, %c0_15, %c0_16, %c0_17] : memref<3x3x16x32xbf16, #tpu.memory_space<vmem>>, vector<1x1x16x32xbf16>
    %27 = vector.shape_cast %26 : vector<1x1x16x32xbf16> to vector<16x32xbf16>
    %cst_18 = arith.constant dense<0.000000e+00> : vector<64x32xf32>
    %28 = tpu.matmul %25, %27, %cst_18 {dimension_numbers = #tpu.dot_dimension_numbers<[1], [0], [0], [1], [0, 0, 1, 1], [], []>} : vector<64x16xbf16>, vector<16x32xbf16>, vector<64x32xf32> -> vector<64x32xf32>
    %29 = arith.addf %23, %28 : vector<64x32xf32>
    %30 = vector.extract_strided_slice %5 {offsets = [1, 0, 0], sizes = [8, 8, 16], strides = [1, 1, 1]} : vector<10x8x16xbf16> to vector<8x8x16xbf16>
    %31 = vector.shape_cast %30 : vector<8x8x16xbf16> to vector<64x16xbf16>
    %c1_19 = arith.constant 1 : index
    %c1_20 = arith.constant 1 : index
    %c0_21 = arith.constant 0 : index
    %c0_22 = arith.constant 0 : index
    %32 = vector.load %arg3[%c1_19, %c1_20, %c0_21, %c0_22] : memref<3x3x16x32xbf16, #tpu.memory_space<vmem>>, vector<1x1x16x32xbf16>
    %33 = vector.shape_cast %32 : vector<1x1x16x32xbf16> to vector<16x32xbf16>
    %cst_23 = arith.constant dense<0.000000e+00> : vector<64x32xf32>
    %34 = tpu.matmul %31, %33, %cst_23 {dimension_numbers = #tpu.dot_dimension_numbers<[1], [0], [0], [1], [0, 0, 1, 1], [], []>} : vector<64x16xbf16>, vector<16x32xbf16>, vector<64x32xf32> -> vector<64x32xf32>
    %35 = arith.addf %29, %34 : vector<64x32xf32>
    %36 = vector.extract_strided_slice %6 {offsets = [1, 0, 0], sizes = [8, 8, 16], strides = [1, 1, 1]} : vector<10x8x16xbf16> to vector<8x8x16xbf16>
    %37 = vector.shape_cast %36 : vector<8x8x16xbf16> to vector<64x16xbf16>
    %c1_24 = arith.constant 1 : index
    %c2_25 = arith.constant 2 : index
    %c0_26 = arith.constant 0 : index
    %c0_27 = arith.constant 0 : index
    %38 = vector.load %arg3[%c1_24, %c2_25, %c0_26, %c0_27] : memref<3x3x16x32xbf16, #tpu.memory_space<vmem>>, vector<1x1x16x32xbf16>
    %39 = vector.shape_cast %38 : vector<1x1x16x32xbf16> to vector<16x32xbf16>
    %cst_28 = arith.constant dense<0.000000e+00> : vector<64x32xf32>
    %40 = tpu.matmul %37, %39, %cst_28 {dimension_numbers = #tpu.dot_dimension_numbers<[1], [0], [0], [1], [0, 0, 1, 1], [], []>} : vector<64x16xbf16>, vector<16x32xbf16>, vector<64x32xf32> -> vector<64x32xf32>
    %41 = arith.addf %35, %40 : vector<64x32xf32>
    %42 = vector.extract_strided_slice %4 {offsets = [2, 0, 0], sizes = [8, 8, 16], strides = [1, 1, 1]} : vector<10x8x16xbf16> to vector<8x8x16xbf16>
    %43 = vector.shape_cast %42 : vector<8x8x16xbf16> to vector<64x16xbf16>
    %c2_29 = arith.constant 2 : index
    %c0_30 = arith.constant 0 : index
    %c0_31 = arith.constant 0 : index
    %c0_32 = arith.constant 0 : index
    %44 = vector.load %arg3[%c2_29, %c0_30, %c0_31, %c0_32] : memref<3x3x16x32xbf16, #tpu.memory_space<vmem>>, vector<1x1x16x32xbf16>
    %45 = vector.shape_cast %44 : vector<1x1x16x32xbf16> to vector<16x32xbf16>
    %cst_33 = arith.constant dense<0.000000e+00> : vector<64x32xf32>
    %46 = tpu.matmul %43, %45, %cst_33 {dimension_numbers = #tpu.dot_dimension_numbers<[1], [0], [0], [1], [0, 0, 1, 1], [], []>} : vector<64x16xbf16>, vector<16x32xbf16>, vector<64x32xf32> -> vector<64x32xf32>
    %47 = arith.addf %41, %46 : vector<64x32xf32>
    %48 = vector.extract_strided_slice %5 {offsets = [2, 0, 0], sizes = [8, 8, 16], strides = [1, 1, 1]} : vector<10x8x16xbf16> to vector<8x8x16xbf16>
    %49 = vector.shape_cast %48 : vector<8x8x16xbf16> to vector<64x16xbf16>
    %c2_34 = arith.constant 2 : index
    %c1_35 = arith.constant 1 : index
    %c0_36 = arith.constant 0 : index
    %c0_37 = arith.constant 0 : index
    %50 = vector.load %arg3[%c2_34, %c1_35, %c0_36, %c0_37] : memref<3x3x16x32xbf16, #tpu.memory_space<vmem>>, vector<1x1x16x32xbf16>
    %51 = vector.shape_cast %50 : vector<1x1x16x32xbf16> to vector<16x32xbf16>
    %cst_38 = arith.constant dense<0.000000e+00> : vector<64x32xf32>
    %52 = tpu.matmul %49, %51, %cst_38 {dimension_numbers = #tpu.dot_dimension_numbers<[1], [0], [0], [1], [0, 0, 1, 1], [], []>} : vector<64x16xbf16>, vector<16x32xbf16>, vector<64x32xf32> -> vector<64x32xf32>
    %53 = arith.addf %47, %52 : vector<64x32xf32>
    %54 = vector.extract_strided_slice %6 {offsets = [2, 0, 0], sizes = [8, 8, 16], strides = [1, 1, 1]} : vector<10x8x16xbf16> to vector<8x8x16xbf16>
    %55 = vector.shape_cast %54 : vector<8x8x16xbf16> to vector<64x16xbf16>
    %c2_39 = arith.constant 2 : index
    %c2_40 = arith.constant 2 : index
    %c0_41 = arith.constant 0 : index
    %c0_42 = arith.constant 0 : index
    %56 = vector.load %arg3[%c2_39, %c2_40, %c0_41, %c0_42] : memref<3x3x16x32xbf16, #tpu.memory_space<vmem>>, vector<1x1x16x32xbf16>
    %57 = vector.shape_cast %56 : vector<1x1x16x32xbf16> to vector<16x32xbf16>
    %cst_43 = arith.constant dense<0.000000e+00> : vector<64x32xf32>
    %58 = tpu.matmul %55, %57, %cst_43 {dimension_numbers = #tpu.dot_dimension_numbers<[1], [0], [0], [1], [0, 0, 1, 1], [], []>} : vector<64x16xbf16>, vector<16x32xbf16>, vector<64x32xf32> -> vector<64x32xf32>
    %59 = arith.addf %53, %58 : vector<64x32xf32>
    %c0_44 = arith.constant 0 : index
    %c0_45 = arith.constant 0 : index
    %60 = vector.load %arg4[%c0_44, %c0_45] : memref<1x32xf32, #tpu.memory_space<vmem>>, vector<1x32xf32>
    %61 = vector.broadcast %60 : vector<1x32xf32> to vector<64x32xf32>
    %62 = arith.addf %59, %61 : vector<64x32xf32>
    %cst_46 = arith.constant 0.000000e+00 : f32
    %63 = vector.broadcast %cst_46 : f32 to vector<64x32xf32>
    %64 = arith.maximumf %62, %63 : vector<64x32xf32>
    %65 = vector.shape_cast %64 : vector<64x32xf32> to vector<8x8x32xf32>
    %66 = arith.truncf %65 : vector<8x8x32xf32> to vector<8x8x32xbf16>
    %c0_47 = arith.constant 0 : index
    %c0_48 = arith.constant 0 : index
    %c0_49 = arith.constant 0 : index
    %c0_50 = arith.constant 0 : index
    %67 = vector.load %arg5[%c0_47, %c0_48, %c0_49, %c0_50] : memref<1x8x8x32xbf16, #tpu.memory_space<vmem>>, vector<1x8x8x32xbf16>
    %68 = vector.shape_cast %67 : vector<1x8x8x32xbf16> to vector<8x8x32xbf16>
    %69 = vector.shape_cast %66 : vector<8x8x32xbf16> to vector<1x8x8x32xbf16>
    tpu.vector_store %arg5[%c0_47, %c0_48, %c0_49, %c0_50], %69 {strides = array<i32>} : memref<1x8x8x32xbf16, #tpu.memory_space<vmem>>, vector<1x8x8x32xbf16>,
    return
  }
  func.func @transform_0(%arg0: i32, %arg1: i32) -> (i32, i32, i32, i32) {
    %c0_i32 = arith.constant 0 : i32
    %c0_i32_0 = arith.constant 0 : i32
    %c0_i32_1 = arith.constant 0 : i32
    %c0_i32_2 = arith.constant 0 : i32
    return %arg0, %c0_i32, %c0_i32_0, %c0_i32_1 : i32, i32, i32, i32
  }
  func.func @transform_1(%arg0: i32, %arg1: i32) -> (i32, i32, i32, i32) {
    %c0_i32 = arith.constant 0 : i32
    %c0_i32_0 = arith.constant 0 : i32
    %c0_i32_1 = arith.constant 0 : i32
    %c0_i32_2 = arith.constant 0 : i32
    %c0_i32_3 = arith.constant 0 : i32
    return %c0_i32, %c0_i32_0, %c0_i32_1, %c0_i32_2 : i32, i32, i32, i32
  }
  func.func @transform_2(%arg0: i32, %arg1: i32) -> (i32, i32) {
    %c0_i32 = arith.constant 0 : i32
    %c0_i32_0 = arith.constant 0 : i32
    %c0_i32_1 = arith.constant 0 : i32
    return %c0_i32, %c0_i32_0 : i32, i32
  }
  func.func @transform_3(%arg0: i32, %arg1: i32) -> (i32, i32, i32, i32) {
    %c0_i32 = arith.constant 0 : i32
    %c0_i32_0 = arith.constant 0 : i32
    %c0_i32_1 = arith.constant 0 : i32
    return %arg0, %arg1, %c0_i32, %c0_i32_0 : i32, i32, i32, i32
  }
}

module attributes {stable_mosaic.version = 11 : i64} {
  func.func @_mm_shift_kernel(%arg0: i32, %arg1: memref<128x32xbf16, #tpu.memory_space<vmem>>, %arg2: memref<32x32xbf16, #tpu.memory_space<vmem>>, %arg3: memref<1x32xf32, #tpu.memory_space<vmem>>, %arg4: memref<128x32xbf16, #tpu.memory_space<vmem>>) attributes {dimension_semantics = [#tpu.dimension_semantics<parallel>], iteration_bounds = array<i64: 1>, scalar_prefetch = 0 : i64, scratch_operands = 0 : i64, tpu.core_type = #tpu.core_type<tc>, window_params = [{transform_indices = @transform_0, window_bounds = array<i64: 128, 32>}, {pipeline_mode = #tpu.pipeline_mode<synchronous>, transform_indices = @transform_1, window_bounds = array<i64: 32, 32>}, {pipeline_mode = #tpu.pipeline_mode<synchronous>, transform_indices = @transform_2, window_bounds = array<i64: 1, 32>}, {transform_indices = @transform_3, window_bounds = array<i64: 128, 32>}]} {
    %c0 = arith.constant 0 : index
    %c0_0 = arith.constant 0 : index
    %0 = vector.load %arg1[%c0, %c0_0] : memref<128x32xbf16, #tpu.memory_space<vmem>>, vector<128x32xbf16>
    %c0_1 = arith.constant 0 : index
    %c0_2 = arith.constant 0 : index
    %1 = vector.load %arg2[%c0_1, %c0_2] : memref<32x32xbf16, #tpu.memory_space<vmem>>, vector<32x32xbf16>
    %cst = arith.constant dense<0.000000e+00> : vector<128x32xf32>
    %2 = tpu.matmul %0, %1, %cst {dimension_numbers = #tpu.dot_dimension_numbers<[1], [0], [0], [1], [0, 0, 1, 1], [], []>} : vector<128x32xbf16>, vector<32x32xbf16>, vector<128x32xf32> -> vector<128x32xf32>
    %c0_3 = arith.constant 0 : index
    %c0_4 = arith.constant 0 : index
    %3 = vector.load %arg3[%c0_3, %c0_4] : memref<1x32xf32, #tpu.memory_space<vmem>>, vector<1x32xf32>
    %4 = vector.broadcast %3 : vector<1x32xf32> to vector<128x32xf32>
    %5 = arith.addf %2, %4 : vector<128x32xf32>
    %cst_5 = arith.constant 0.000000e+00 : f32
    %6 = vector.broadcast %cst_5 : f32 to vector<128x32xf32>
    %7 = arith.maximumf %5, %6 : vector<128x32xf32>
    %8 = arith.truncf %7 : vector<128x32xf32> to vector<128x32xbf16>
    %c0_6 = arith.constant 0 : index
    %c0_7 = arith.constant 0 : index
    %9 = vector.load %arg4[%c0_6, %c0_7] : memref<128x32xbf16, #tpu.memory_space<vmem>>, vector<128x32xbf16>
    tpu.vector_store %arg4[%c0_6, %c0_7], %8 {strides = array<i32>} : memref<128x32xbf16, #tpu.memory_space<vmem>>, vector<128x32xbf16>,
    return
  }
  func.func @transform_0(%arg0: i32) -> (i32, i32) {
    %c0_i32 = arith.constant 0 : i32
    %c0_i32_0 = arith.constant 0 : i32
    return %arg0, %c0_i32 : i32, i32
  }
  func.func @transform_1(%arg0: i32) -> (i32, i32) {
    %c0_i32 = arith.constant 0 : i32
    %c0_i32_0 = arith.constant 0 : i32
    %c0_i32_1 = arith.constant 0 : i32
    return %c0_i32, %c0_i32_0 : i32, i32
  }
  func.func @transform_2(%arg0: i32) -> (i32, i32) {
    %c0_i32 = arith.constant 0 : i32
    %c0_i32_0 = arith.constant 0 : i32
    %c0_i32_1 = arith.constant 0 : i32
    return %c0_i32, %c0_i32_0 : i32, i32
  }
  func.func @transform_3(%arg0: i32) -> (i32, i32) {
    %c0_i32 = arith.constant 0 : i32
    %c0_i32_0 = arith.constant 0 : i32
    return %arg0, %c0_i32 : i32, i32
  }
}

module attributes {stable_mosaic.version = 11 : i64} {
  func.func @_conv3x3_kernel(%arg0: i32, %arg1: i32, %arg2: memref<1x10x10x32xbf16, #tpu.memory_space<vmem>>, %arg3: memref<3x3x32x32xbf16, #tpu.memory_space<vmem>>, %arg4: memref<1x32xf32, #tpu.memory_space<vmem>>, %arg5: memref<1x8x8x32xbf16, #tpu.memory_space<vmem>>, %arg6: memref<1x8x8x32xbf16, #tpu.memory_space<vmem>>) attributes {dimension_semantics = [#tpu.dimension_semantics<parallel>, #tpu.dimension_semantics<parallel>], iteration_bounds = array<i64: 2, 1>, scalar_prefetch = 0 : i64, scratch_operands = 0 : i64, tpu.core_type = #tpu.core_type<tc>, window_params = [{transform_indices = @transform_0, window_bounds = array<i64: 1, 10, 10, 32>}, {pipeline_mode = #tpu.pipeline_mode<synchronous>, transform_indices = @transform_1, window_bounds = array<i64: 3, 3, 32, 32>}, {pipeline_mode = #tpu.pipeline_mode<synchronous>, transform_indices = @transform_2, window_bounds = array<i64: 1, 32>}, {transform_indices = @transform_3, window_bounds = array<i64: 1, 8, 8, 32>}, {transform_indices = @transform_4, window_bounds = array<i64: 1, 8, 8, 32>}]} {
    %c8_i32 = arith.constant 8 : i32
    %0 = arith.muli %arg1, %c8_i32 : i32
    %c0 = arith.constant 0 : index
    %1 = arith.index_cast %0 : i32 to index
    %c0_0 = arith.constant 0 : index
    %c0_1 = arith.constant 0 : index
    %2 = vector.load %arg2[%c0, %1, %c0_0, %c0_1] : memref<1x10x10x32xbf16, #tpu.memory_space<vmem>>, vector<1x10x10x32xbf16>
    %3 = vector.shape_cast %2 : vector<1x10x10x32xbf16> to vector<10x10x32xbf16>
    %4 = vector.extract_strided_slice %3 {offsets = [0, 0, 0], sizes = [10, 8, 32], strides = [1, 1, 1]} : vector<10x10x32xbf16> to vector<10x8x32xbf16>
    %5 = vector.extract_strided_slice %3 {offsets = [0, 1, 0], sizes = [10, 8, 32], strides = [1, 1, 1]} : vector<10x10x32xbf16> to vector<10x8x32xbf16>
    %6 = vector.extract_strided_slice %3 {offsets = [0, 2, 0], sizes = [10, 8, 32], strides = [1, 1, 1]} : vector<10x10x32xbf16> to vector<10x8x32xbf16>
    %7 = vector.extract_strided_slice %4 {offsets = [0, 0, 0], sizes = [8, 8, 32], strides = [1, 1, 1]} : vector<10x8x32xbf16> to vector<8x8x32xbf16>
    %8 = vector.shape_cast %7 : vector<8x8x32xbf16> to vector<64x32xbf16>
    %c0_2 = arith.constant 0 : index
    %c0_3 = arith.constant 0 : index
    %c0_4 = arith.constant 0 : index
    %c0_5 = arith.constant 0 : index
    %9 = vector.load %arg3[%c0_2, %c0_3, %c0_4, %c0_5] : memref<3x3x32x32xbf16, #tpu.memory_space<vmem>>, vector<1x1x32x32xbf16>
    %10 = vector.shape_cast %9 : vector<1x1x32x32xbf16> to vector<32x32xbf16>
    %cst = arith.constant dense<0.000000e+00> : vector<64x32xf32>
    %11 = tpu.matmul %8, %10, %cst {dimension_numbers = #tpu.dot_dimension_numbers<[1], [0], [0], [1], [0, 0, 1, 1], [], []>} : vector<64x32xbf16>, vector<32x32xbf16>, vector<64x32xf32> -> vector<64x32xf32>
    %12 = vector.extract_strided_slice %5 {offsets = [0, 0, 0], sizes = [8, 8, 32], strides = [1, 1, 1]} : vector<10x8x32xbf16> to vector<8x8x32xbf16>
    %13 = vector.shape_cast %12 : vector<8x8x32xbf16> to vector<64x32xbf16>
    %c0_6 = arith.constant 0 : index
    %c1 = arith.constant 1 : index
    %c0_7 = arith.constant 0 : index
    %c0_8 = arith.constant 0 : index
    %14 = vector.load %arg3[%c0_6, %c1, %c0_7, %c0_8] : memref<3x3x32x32xbf16, #tpu.memory_space<vmem>>, vector<1x1x32x32xbf16>
    %15 = vector.shape_cast %14 : vector<1x1x32x32xbf16> to vector<32x32xbf16>
    %cst_9 = arith.constant dense<0.000000e+00> : vector<64x32xf32>
    %16 = tpu.matmul %13, %15, %cst_9 {dimension_numbers = #tpu.dot_dimension_numbers<[1], [0], [0], [1], [0, 0, 1, 1], [], []>} : vector<64x32xbf16>, vector<32x32xbf16>, vector<64x32xf32> -> vector<64x32xf32>
    %17 = arith.addf %11, %16 : vector<64x32xf32>
    %18 = vector.extract_strided_slice %6 {offsets = [0, 0, 0], sizes = [8, 8, 32], strides = [1, 1, 1]} : vector<10x8x32xbf16> to vector<8x8x32xbf16>
    %19 = vector.shape_cast %18 : vector<8x8x32xbf16> to vector<64x32xbf16>
    %c0_10 = arith.constant 0 : index
    %c2 = arith.constant 2 : index
    %c0_11 = arith.constant 0 : index
    %c0_12 = arith.constant 0 : index
    %20 = vector.load %arg3[%c0_10, %c2, %c0_11, %c0_12] : memref<3x3x32x32xbf16, #tpu.memory_space<vmem>>, vector<1x1x32x32xbf16>
    %21 = vector.shape_cast %20 : vector<1x1x32x32xbf16> to vector<32x32xbf16>
    %cst_13 = arith.constant dense<0.000000e+00> : vector<64x32xf32>
    %22 = tpu.matmul %19, %21, %cst_13 {dimension_numbers = #tpu.dot_dimension_numbers<[1], [0], [0], [1], [0, 0, 1, 1], [], []>} : vector<64x32xbf16>, vector<32x32xbf16>, vector<64x32xf32> -> vector<64x32xf32>
    %23 = arith.addf %17, %22 : vector<64x32xf32>
    %24 = vector.extract_strided_slice %4 {offsets = [1, 0, 0], sizes = [8, 8, 32], strides = [1, 1, 1]} : vector<10x8x32xbf16> to vector<8x8x32xbf16>
    %25 = vector.shape_cast %24 : vector<8x8x32xbf16> to vector<64x32xbf16>
    %c1_14 = arith.constant 1 : index
    %c0_15 = arith.constant 0 : index
    %c0_16 = arith.constant 0 : index
    %c0_17 = arith.constant 0 : index
    %26 = vector.load %arg3[%c1_14, %c0_15, %c0_16, %c0_17] : memref<3x3x32x32xbf16, #tpu.memory_space<vmem>>, vector<1x1x32x32xbf16>
    %27 = vector.shape_cast %26 : vector<1x1x32x32xbf16> to vector<32x32xbf16>
    %cst_18 = arith.constant dense<0.000000e+00> : vector<64x32xf32>
    %28 = tpu.matmul %25, %27, %cst_18 {dimension_numbers = #tpu.dot_dimension_numbers<[1], [0], [0], [1], [0, 0, 1, 1], [], []>} : vector<64x32xbf16>, vector<32x32xbf16>, vector<64x32xf32> -> vector<64x32xf32>
    %29 = arith.addf %23, %28 : vector<64x32xf32>
    %30 = vector.extract_strided_slice %5 {offsets = [1, 0, 0], sizes = [8, 8, 32], strides = [1, 1, 1]} : vector<10x8x32xbf16> to vector<8x8x32xbf16>
    %31 = vector.shape_cast %30 : vector<8x8x32xbf16> to vector<64x32xbf16>
    %c1_19 = arith.constant 1 : index
    %c1_20 = arith.constant 1 : index
    %c0_21 = arith.constant 0 : index
    %c0_22 = arith.constant 0 : index
    %32 = vector.load %arg3[%c1_19, %c1_20, %c0_21, %c0_22] : memref<3x3x32x32xbf16, #tpu.memory_space<vmem>>, vector<1x1x32x32xbf16>
    %33 = vector.shape_cast %32 : vector<1x1x32x32xbf16> to vector<32x32xbf16>
    %cst_23 = arith.constant dense<0.000000e+00> : vector<64x32xf32>
    %34 = tpu.matmul %31, %33, %cst_23 {dimension_numbers = #tpu.dot_dimension_numbers<[1], [0], [0], [1], [0, 0, 1, 1], [], []>} : vector<64x32xbf16>, vector<32x32xbf16>, vector<64x32xf32> -> vector<64x32xf32>
    %35 = arith.addf %29, %34 : vector<64x32xf32>
    %36 = vector.extract_strided_slice %6 {offsets = [1, 0, 0], sizes = [8, 8, 32], strides = [1, 1, 1]} : vector<10x8x32xbf16> to vector<8x8x32xbf16>
    %37 = vector.shape_cast %36 : vector<8x8x32xbf16> to vector<64x32xbf16>
    %c1_24 = arith.constant 1 : index
    %c2_25 = arith.constant 2 : index
    %c0_26 = arith.constant 0 : index
    %c0_27 = arith.constant 0 : index
    %38 = vector.load %arg3[%c1_24, %c2_25, %c0_26, %c0_27] : memref<3x3x32x32xbf16, #tpu.memory_space<vmem>>, vector<1x1x32x32xbf16>
    %39 = vector.shape_cast %38 : vector<1x1x32x32xbf16> to vector<32x32xbf16>
    %cst_28 = arith.constant dense<0.000000e+00> : vector<64x32xf32>
    %40 = tpu.matmul %37, %39, %cst_28 {dimension_numbers = #tpu.dot_dimension_numbers<[1], [0], [0], [1], [0, 0, 1, 1], [], []>} : vector<64x32xbf16>, vector<32x32xbf16>, vector<64x32xf32> -> vector<64x32xf32>
    %41 = arith.addf %35, %40 : vector<64x32xf32>
    %42 = vector.extract_strided_slice %4 {offsets = [2, 0, 0], sizes = [8, 8, 32], strides = [1, 1, 1]} : vector<10x8x32xbf16> to vector<8x8x32xbf16>
    %43 = vector.shape_cast %42 : vector<8x8x32xbf16> to vector<64x32xbf16>
    %c2_29 = arith.constant 2 : index
    %c0_30 = arith.constant 0 : index
    %c0_31 = arith.constant 0 : index
    %c0_32 = arith.constant 0 : index
    %44 = vector.load %arg3[%c2_29, %c0_30, %c0_31, %c0_32] : memref<3x3x32x32xbf16, #tpu.memory_space<vmem>>, vector<1x1x32x32xbf16>
    %45 = vector.shape_cast %44 : vector<1x1x32x32xbf16> to vector<32x32xbf16>
    %cst_33 = arith.constant dense<0.000000e+00> : vector<64x32xf32>
    %46 = tpu.matmul %43, %45, %cst_33 {dimension_numbers = #tpu.dot_dimension_numbers<[1], [0], [0], [1], [0, 0, 1, 1], [], []>} : vector<64x32xbf16>, vector<32x32xbf16>, vector<64x32xf32> -> vector<64x32xf32>
    %47 = arith.addf %41, %46 : vector<64x32xf32>
    %48 = vector.extract_strided_slice %5 {offsets = [2, 0, 0], sizes = [8, 8, 32], strides = [1, 1, 1]} : vector<10x8x32xbf16> to vector<8x8x32xbf16>
    %49 = vector.shape_cast %48 : vector<8x8x32xbf16> to vector<64x32xbf16>
    %c2_34 = arith.constant 2 : index
    %c1_35 = arith.constant 1 : index
    %c0_36 = arith.constant 0 : index
    %c0_37 = arith.constant 0 : index
    %50 = vector.load %arg3[%c2_34, %c1_35, %c0_36, %c0_37] : memref<3x3x32x32xbf16, #tpu.memory_space<vmem>>, vector<1x1x32x32xbf16>
    %51 = vector.shape_cast %50 : vector<1x1x32x32xbf16> to vector<32x32xbf16>
    %cst_38 = arith.constant dense<0.000000e+00> : vector<64x32xf32>
    %52 = tpu.matmul %49, %51, %cst_38 {dimension_numbers = #tpu.dot_dimension_numbers<[1], [0], [0], [1], [0, 0, 1, 1], [], []>} : vector<64x32xbf16>, vector<32x32xbf16>, vector<64x32xf32> -> vector<64x32xf32>
    %53 = arith.addf %47, %52 : vector<64x32xf32>
    %54 = vector.extract_strided_slice %6 {offsets = [2, 0, 0], sizes = [8, 8, 32], strides = [1, 1, 1]} : vector<10x8x32xbf16> to vector<8x8x32xbf16>
    %55 = vector.shape_cast %54 : vector<8x8x32xbf16> to vector<64x32xbf16>
    %c2_39 = arith.constant 2 : index
    %c2_40 = arith.constant 2 : index
    %c0_41 = arith.constant 0 : index
    %c0_42 = arith.constant 0 : index
    %56 = vector.load %arg3[%c2_39, %c2_40, %c0_41, %c0_42] : memref<3x3x32x32xbf16, #tpu.memory_space<vmem>>, vector<1x1x32x32xbf16>
    %57 = vector.shape_cast %56 : vector<1x1x32x32xbf16> to vector<32x32xbf16>
    %cst_43 = arith.constant dense<0.000000e+00> : vector<64x32xf32>
    %58 = tpu.matmul %55, %57, %cst_43 {dimension_numbers = #tpu.dot_dimension_numbers<[1], [0], [0], [1], [0, 0, 1, 1], [], []>} : vector<64x32xbf16>, vector<32x32xbf16>, vector<64x32xf32> -> vector<64x32xf32>
    %59 = arith.addf %53, %58 : vector<64x32xf32>
    %c0_44 = arith.constant 0 : index
    %c0_45 = arith.constant 0 : index
    %60 = vector.load %arg4[%c0_44, %c0_45] : memref<1x32xf32, #tpu.memory_space<vmem>>, vector<1x32xf32>
    %61 = vector.broadcast %60 : vector<1x32xf32> to vector<64x32xf32>
    %62 = arith.addf %59, %61 : vector<64x32xf32>
    %c0_46 = arith.constant 0 : index
    %c0_47 = arith.constant 0 : index
    %c0_48 = arith.constant 0 : index
    %c0_49 = arith.constant 0 : index
    %63 = vector.load %arg5[%c0_46, %c0_47, %c0_48, %c0_49] : memref<1x8x8x32xbf16, #tpu.memory_space<vmem>>, vector<1x8x8x32xbf16>
    %64 = vector.shape_cast %63 : vector<1x8x8x32xbf16> to vector<8x8x32xbf16>
    %65 = vector.shape_cast %64 : vector<8x8x32xbf16> to vector<64x32xbf16>
    %66 = arith.extf %65 : vector<64x32xbf16> to vector<64x32xf32>
    %67 = arith.addf %62, %66 : vector<64x32xf32>
    %cst_50 = arith.constant 0.000000e+00 : f32
    %68 = vector.broadcast %cst_50 : f32 to vector<64x32xf32>
    %69 = arith.maximumf %67, %68 : vector<64x32xf32>
    %70 = vector.shape_cast %69 : vector<64x32xf32> to vector<8x8x32xf32>
    %71 = arith.truncf %70 : vector<8x8x32xf32> to vector<8x8x32xbf16>
    %c0_51 = arith.constant 0 : index
    %c0_52 = arith.constant 0 : index
    %c0_53 = arith.constant 0 : index
    %c0_54 = arith.constant 0 : index
    %72 = vector.load %arg6[%c0_51, %c0_52, %c0_53, %c0_54] : memref<1x8x8x32xbf16, #tpu.memory_space<vmem>>, vector<1x8x8x32xbf16>
    %73 = vector.shape_cast %72 : vector<1x8x8x32xbf16> to vector<8x8x32xbf16>
    %74 = vector.shape_cast %71 : vector<8x8x32xbf16> to vector<1x8x8x32xbf16>
    tpu.vector_store %arg6[%c0_51, %c0_52, %c0_53, %c0_54], %74 {strides = array<i32>} : memref<1x8x8x32xbf16, #tpu.memory_space<vmem>>, vector<1x8x8x32xbf16>,
    return
  }
  func.func @transform_0(%arg0: i32, %arg1: i32) -> (i32, i32, i32, i32) {
    %c0_i32 = arith.constant 0 : i32
    %c0_i32_0 = arith.constant 0 : i32
    %c0_i32_1 = arith.constant 0 : i32
    %c0_i32_2 = arith.constant 0 : i32
    return %arg0, %c0_i32, %c0_i32_0, %c0_i32_1 : i32, i32, i32, i32
  }
  func.func @transform_1(%arg0: i32, %arg1: i32) -> (i32, i32, i32, i32) {
    %c0_i32 = arith.constant 0 : i32
    %c0_i32_0 = arith.constant 0 : i32
    %c0_i32_1 = arith.constant 0 : i32
    %c0_i32_2 = arith.constant 0 : i32
    %c0_i32_3 = arith.constant 0 : i32
    return %c0_i32, %c0_i32_0, %c0_i32_1, %c0_i32_2 : i32, i32, i32, i32
  }
  func.func @transform_2(%arg0: i32, %arg1: i32) -> (i32, i32) {
    %c0_i32 = arith.constant 0 : i32
    %c0_i32_0 = arith.constant 0 : i32
    %c0_i32_1 = arith.constant 0 : i32
    return %c0_i32, %c0_i32_0 : i32, i32
  }
  func.func @transform_3(%arg0: i32, %arg1: i32) -> (i32, i32, i32, i32) {
    %c0_i32 = arith.constant 0 : i32
    %c0_i32_0 = arith.constant 0 : i32
    %c0_i32_1 = arith.constant 0 : i32
    return %arg0, %arg1, %c0_i32, %c0_i32_0 : i32, i32, i32, i32
  }
  func.func @transform_4(%arg0: i32, %arg1: i32) -> (i32, i32, i32, i32) {
    %c0_i32 = arith.constant 0 : i32
    %c0_i32_0 = arith.constant 0 : i32
    %c0_i32_1 = arith.constant 0 : i32
    return %arg0, %arg1, %c0_i32, %c0_i32_0 : i32, i32, i32, i32
  }
}

module attributes {stable_mosaic.version = 11 : i64} {
  func.func @_mm_shift_kernel(%arg0: i32, %arg1: memref<32x64xbf16, #tpu.memory_space<vmem>>, %arg2: memref<64x64xbf16, #tpu.memory_space<vmem>>, %arg3: memref<1x64xf32, #tpu.memory_space<vmem>>, %arg4: memref<32x64xbf16, #tpu.memory_space<vmem>>) attributes {dimension_semantics = [#tpu.dimension_semantics<parallel>], iteration_bounds = array<i64: 1>, scalar_prefetch = 0 : i64, scratch_operands = 0 : i64, tpu.core_type = #tpu.core_type<tc>, window_params = [{transform_indices = @transform_0, window_bounds = array<i64: 32, 64>}, {pipeline_mode = #tpu.pipeline_mode<synchronous>, transform_indices = @transform_1, window_bounds = array<i64: 64, 64>}, {pipeline_mode = #tpu.pipeline_mode<synchronous>, transform_indices = @transform_2, window_bounds = array<i64: 1, 64>}, {transform_indices = @transform_3, window_bounds = array<i64: 32, 64>}]} {
    %c0 = arith.constant 0 : index
    %c0_0 = arith.constant 0 : index
    %0 = vector.load %arg1[%c0, %c0_0] : memref<32x64xbf16, #tpu.memory_space<vmem>>, vector<32x64xbf16>
    %c0_1 = arith.constant 0 : index
    %c0_2 = arith.constant 0 : index
    %1 = vector.load %arg2[%c0_1, %c0_2] : memref<64x64xbf16, #tpu.memory_space<vmem>>, vector<64x64xbf16>
    %cst = arith.constant dense<0.000000e+00> : vector<32x64xf32>
    %2 = tpu.matmul %0, %1, %cst {dimension_numbers = #tpu.dot_dimension_numbers<[1], [0], [0], [1], [0, 0, 1, 1], [], []>} : vector<32x64xbf16>, vector<64x64xbf16>, vector<32x64xf32> -> vector<32x64xf32>
    %c0_3 = arith.constant 0 : index
    %c0_4 = arith.constant 0 : index
    %3 = vector.load %arg3[%c0_3, %c0_4] : memref<1x64xf32, #tpu.memory_space<vmem>>, vector<1x64xf32>
    %4 = vector.broadcast %3 : vector<1x64xf32> to vector<32x64xf32>
    %5 = arith.addf %2, %4 : vector<32x64xf32>
    %cst_5 = arith.constant 0.000000e+00 : f32
    %6 = vector.broadcast %cst_5 : f32 to vector<32x64xf32>
    %7 = arith.maximumf %5, %6 : vector<32x64xf32>
    %8 = arith.truncf %7 : vector<32x64xf32> to vector<32x64xbf16>
    %c0_6 = arith.constant 0 : index
    %c0_7 = arith.constant 0 : index
    %9 = vector.load %arg4[%c0_6, %c0_7] : memref<32x64xbf16, #tpu.memory_space<vmem>>, vector<32x64xbf16>
    tpu.vector_store %arg4[%c0_6, %c0_7], %8 {strides = array<i32>} : memref<32x64xbf16, #tpu.memory_space<vmem>>, vector<32x64xbf16>,
    return
  }
  func.func @transform_0(%arg0: i32) -> (i32, i32) {
    %c0_i32 = arith.constant 0 : i32
    %c0_i32_0 = arith.constant 0 : i32
    return %arg0, %c0_i32 : i32, i32
  }
  func.func @transform_1(%arg0: i32) -> (i32, i32) {
    %c0_i32 = arith.constant 0 : i32
    %c0_i32_0 = arith.constant 0 : i32
    %c0_i32_1 = arith.constant 0 : i32
    return %c0_i32, %c0_i32_0 : i32, i32
  }
  func.func @transform_2(%arg0: i32) -> (i32, i32) {
    %c0_i32 = arith.constant 0 : i32
    %c0_i32_0 = arith.constant 0 : i32
    %c0_i32_1 = arith.constant 0 : i32
    return %c0_i32, %c0_i32_0 : i32, i32
  }
  func.func @transform_3(%arg0: i32) -> (i32, i32) {
    %c0_i32 = arith.constant 0 : i32
    %c0_i32_0 = arith.constant 0 : i32
    return %arg0, %c0_i32 : i32, i32
  }
}

module attributes {stable_mosaic.version = 11 : i64} {
  func.func @_mm_shift_kernel(%arg0: i32, %arg1: memref<32x288xbf16, #tpu.memory_space<vmem>>, %arg2: memref<288x64xbf16, #tpu.memory_space<vmem>>, %arg3: memref<1x64xf32, #tpu.memory_space<vmem>>, %arg4: memref<32x64xbf16, #tpu.memory_space<vmem>>) attributes {dimension_semantics = [#tpu.dimension_semantics<parallel>], iteration_bounds = array<i64: 1>, scalar_prefetch = 0 : i64, scratch_operands = 0 : i64, tpu.core_type = #tpu.core_type<tc>, window_params = [{transform_indices = @transform_0, window_bounds = array<i64: 32, 288>}, {pipeline_mode = #tpu.pipeline_mode<synchronous>, transform_indices = @transform_1, window_bounds = array<i64: 288, 64>}, {pipeline_mode = #tpu.pipeline_mode<synchronous>, transform_indices = @transform_2, window_bounds = array<i64: 1, 64>}, {transform_indices = @transform_3, window_bounds = array<i64: 32, 64>}]} {
    %c0 = arith.constant 0 : index
    %c0_0 = arith.constant 0 : index
    %0 = vector.load %arg1[%c0, %c0_0] : memref<32x288xbf16, #tpu.memory_space<vmem>>, vector<32x288xbf16>
    %c0_1 = arith.constant 0 : index
    %c0_2 = arith.constant 0 : index
    %1 = vector.load %arg2[%c0_1, %c0_2] : memref<288x64xbf16, #tpu.memory_space<vmem>>, vector<288x64xbf16>
    %cst = arith.constant dense<0.000000e+00> : vector<32x64xf32>
    %2 = tpu.matmul %0, %1, %cst {dimension_numbers = #tpu.dot_dimension_numbers<[1], [0], [0], [1], [0, 0, 1, 1], [], []>} : vector<32x288xbf16>, vector<288x64xbf16>, vector<32x64xf32> -> vector<32x64xf32>
    %c0_3 = arith.constant 0 : index
    %c0_4 = arith.constant 0 : index
    %3 = vector.load %arg3[%c0_3, %c0_4] : memref<1x64xf32, #tpu.memory_space<vmem>>, vector<1x64xf32>
    %4 = vector.broadcast %3 : vector<1x64xf32> to vector<32x64xf32>
    %5 = arith.addf %2, %4 : vector<32x64xf32>
    %cst_5 = arith.constant 0.000000e+00 : f32
    %6 = vector.broadcast %cst_5 : f32 to vector<32x64xf32>
    %7 = arith.maximumf %5, %6 : vector<32x64xf32>
    %8 = arith.truncf %7 : vector<32x64xf32> to vector<32x64xbf16>
    %c0_6 = arith.constant 0 : index
    %c0_7 = arith.constant 0 : index
    %9 = vector.load %arg4[%c0_6, %c0_7] : memref<32x64xbf16, #tpu.memory_space<vmem>>, vector<32x64xbf16>
    tpu.vector_store %arg4[%c0_6, %c0_7], %8 {strides = array<i32>} : memref<32x64xbf16, #tpu.memory_space<vmem>>, vector<32x64xbf16>,
    return
  }
  func.func @transform_0(%arg0: i32) -> (i32, i32) {
    %c0_i32 = arith.constant 0 : i32
    %c0_i32_0 = arith.constant 0 : i32
    return %arg0, %c0_i32 : i32, i32
  }
  func.func @transform_1(%arg0: i32) -> (i32, i32) {
    %c0_i32 = arith.constant 0 : i32
    %c0_i32_0 = arith.constant 0 : i32
    %c0_i32_1 = arith.constant 0 : i32
    return %c0_i32, %c0_i32_0 : i32, i32
  }
  func.func @transform_2(%arg0: i32) -> (i32, i32) {
    %c0_i32 = arith.constant 0 : i32
    %c0_i32_0 = arith.constant 0 : i32
    %c0_i32_1 = arith.constant 0 : i32
    return %c0_i32, %c0_i32_0 : i32, i32
  }
  func.func @transform_3(%arg0: i32) -> (i32, i32) {
    %c0_i32 = arith.constant 0 : i32
    %c0_i32_0 = arith.constant 0 : i32
    return %arg0, %c0_i32 : i32, i32
  }
}

module attributes {stable_mosaic.version = 11 : i64} {
  func.func @_conv3x3_kernel(%arg0: i32, %arg1: i32, %arg2: memref<1x6x10x64xbf16, #tpu.memory_space<vmem>>, %arg3: memref<3x3x64x64xbf16, #tpu.memory_space<vmem>>, %arg4: memref<1x64xf32, #tpu.memory_space<vmem>>, %arg5: memref<1x4x8x64xbf16, #tpu.memory_space<vmem>>, %arg6: memref<1x4x8x64xbf16, #tpu.memory_space<vmem>>) attributes {dimension_semantics = [#tpu.dimension_semantics<parallel>, #tpu.dimension_semantics<parallel>], iteration_bounds = array<i64: 2, 1>, scalar_prefetch = 0 : i64, scratch_operands = 0 : i64, tpu.core_type = #tpu.core_type<tc>, window_params = [{transform_indices = @transform_0, window_bounds = array<i64: 1, 6, 10, 64>}, {pipeline_mode = #tpu.pipeline_mode<synchronous>, transform_indices = @transform_1, window_bounds = array<i64: 3, 3, 64, 64>}, {pipeline_mode = #tpu.pipeline_mode<synchronous>, transform_indices = @transform_2, window_bounds = array<i64: 1, 64>}, {transform_indices = @transform_3, window_bounds = array<i64: 1, 4, 8, 64>}, {transform_indices = @transform_4, window_bounds = array<i64: 1, 4, 8, 64>}]} {
    %c4_i32 = arith.constant 4 : i32
    %0 = arith.muli %arg1, %c4_i32 : i32
    %c0 = arith.constant 0 : index
    %1 = arith.index_cast %0 : i32 to index
    %c0_0 = arith.constant 0 : index
    %c0_1 = arith.constant 0 : index
    %2 = vector.load %arg2[%c0, %1, %c0_0, %c0_1] : memref<1x6x10x64xbf16, #tpu.memory_space<vmem>>, vector<1x6x10x64xbf16>
    %3 = vector.shape_cast %2 : vector<1x6x10x64xbf16> to vector<6x10x64xbf16>
    %4 = vector.extract_strided_slice %3 {offsets = [0, 0, 0], sizes = [6, 8, 64], strides = [1, 1, 1]} : vector<6x10x64xbf16> to vector<6x8x64xbf16>
    %5 = vector.extract_strided_slice %3 {offsets = [0, 1, 0], sizes = [6, 8, 64], strides = [1, 1, 1]} : vector<6x10x64xbf16> to vector<6x8x64xbf16>
    %6 = vector.extract_strided_slice %3 {offsets = [0, 2, 0], sizes = [6, 8, 64], strides = [1, 1, 1]} : vector<6x10x64xbf16> to vector<6x8x64xbf16>
    %7 = vector.extract_strided_slice %4 {offsets = [0, 0, 0], sizes = [4, 8, 64], strides = [1, 1, 1]} : vector<6x8x64xbf16> to vector<4x8x64xbf16>
    %8 = vector.shape_cast %7 : vector<4x8x64xbf16> to vector<32x64xbf16>
    %c0_2 = arith.constant 0 : index
    %c0_3 = arith.constant 0 : index
    %c0_4 = arith.constant 0 : index
    %c0_5 = arith.constant 0 : index
    %9 = vector.load %arg3[%c0_2, %c0_3, %c0_4, %c0_5] : memref<3x3x64x64xbf16, #tpu.memory_space<vmem>>, vector<1x1x64x64xbf16>
    %10 = vector.shape_cast %9 : vector<1x1x64x64xbf16> to vector<64x64xbf16>
    %cst = arith.constant dense<0.000000e+00> : vector<32x64xf32>
    %11 = tpu.matmul %8, %10, %cst {dimension_numbers = #tpu.dot_dimension_numbers<[1], [0], [0], [1], [0, 0, 1, 1], [], []>} : vector<32x64xbf16>, vector<64x64xbf16>, vector<32x64xf32> -> vector<32x64xf32>
    %12 = vector.extract_strided_slice %5 {offsets = [0, 0, 0], sizes = [4, 8, 64], strides = [1, 1, 1]} : vector<6x8x64xbf16> to vector<4x8x64xbf16>
    %13 = vector.shape_cast %12 : vector<4x8x64xbf16> to vector<32x64xbf16>
    %c0_6 = arith.constant 0 : index
    %c1 = arith.constant 1 : index
    %c0_7 = arith.constant 0 : index
    %c0_8 = arith.constant 0 : index
    %14 = vector.load %arg3[%c0_6, %c1, %c0_7, %c0_8] : memref<3x3x64x64xbf16, #tpu.memory_space<vmem>>, vector<1x1x64x64xbf16>
    %15 = vector.shape_cast %14 : vector<1x1x64x64xbf16> to vector<64x64xbf16>
    %cst_9 = arith.constant dense<0.000000e+00> : vector<32x64xf32>
    %16 = tpu.matmul %13, %15, %cst_9 {dimension_numbers = #tpu.dot_dimension_numbers<[1], [0], [0], [1], [0, 0, 1, 1], [], []>} : vector<32x64xbf16>, vector<64x64xbf16>, vector<32x64xf32> -> vector<32x64xf32>
    %17 = arith.addf %11, %16 : vector<32x64xf32>
    %18 = vector.extract_strided_slice %6 {offsets = [0, 0, 0], sizes = [4, 8, 64], strides = [1, 1, 1]} : vector<6x8x64xbf16> to vector<4x8x64xbf16>
    %19 = vector.shape_cast %18 : vector<4x8x64xbf16> to vector<32x64xbf16>
    %c0_10 = arith.constant 0 : index
    %c2 = arith.constant 2 : index
    %c0_11 = arith.constant 0 : index
    %c0_12 = arith.constant 0 : index
    %20 = vector.load %arg3[%c0_10, %c2, %c0_11, %c0_12] : memref<3x3x64x64xbf16, #tpu.memory_space<vmem>>, vector<1x1x64x64xbf16>
    %21 = vector.shape_cast %20 : vector<1x1x64x64xbf16> to vector<64x64xbf16>
    %cst_13 = arith.constant dense<0.000000e+00> : vector<32x64xf32>
    %22 = tpu.matmul %19, %21, %cst_13 {dimension_numbers = #tpu.dot_dimension_numbers<[1], [0], [0], [1], [0, 0, 1, 1], [], []>} : vector<32x64xbf16>, vector<64x64xbf16>, vector<32x64xf32> -> vector<32x64xf32>
    %23 = arith.addf %17, %22 : vector<32x64xf32>
    %24 = vector.extract_strided_slice %4 {offsets = [1, 0, 0], sizes = [4, 8, 64], strides = [1, 1, 1]} : vector<6x8x64xbf16> to vector<4x8x64xbf16>
    %25 = vector.shape_cast %24 : vector<4x8x64xbf16> to vector<32x64xbf16>
    %c1_14 = arith.constant 1 : index
    %c0_15 = arith.constant 0 : index
    %c0_16 = arith.constant 0 : index
    %c0_17 = arith.constant 0 : index
    %26 = vector.load %arg3[%c1_14, %c0_15, %c0_16, %c0_17] : memref<3x3x64x64xbf16, #tpu.memory_space<vmem>>, vector<1x1x64x64xbf16>
    %27 = vector.shape_cast %26 : vector<1x1x64x64xbf16> to vector<64x64xbf16>
    %cst_18 = arith.constant dense<0.000000e+00> : vector<32x64xf32>
    %28 = tpu.matmul %25, %27, %cst_18 {dimension_numbers = #tpu.dot_dimension_numbers<[1], [0], [0], [1], [0, 0, 1, 1], [], []>} : vector<32x64xbf16>, vector<64x64xbf16>, vector<32x64xf32> -> vector<32x64xf32>
    %29 = arith.addf %23, %28 : vector<32x64xf32>
    %30 = vector.extract_strided_slice %5 {offsets = [1, 0, 0], sizes = [4, 8, 64], strides = [1, 1, 1]} : vector<6x8x64xbf16> to vector<4x8x64xbf16>
    %31 = vector.shape_cast %30 : vector<4x8x64xbf16> to vector<32x64xbf16>
    %c1_19 = arith.constant 1 : index
    %c1_20 = arith.constant 1 : index
    %c0_21 = arith.constant 0 : index
    %c0_22 = arith.constant 0 : index
    %32 = vector.load %arg3[%c1_19, %c1_20, %c0_21, %c0_22] : memref<3x3x64x64xbf16, #tpu.memory_space<vmem>>, vector<1x1x64x64xbf16>
    %33 = vector.shape_cast %32 : vector<1x1x64x64xbf16> to vector<64x64xbf16>
    %cst_23 = arith.constant dense<0.000000e+00> : vector<32x64xf32>
    %34 = tpu.matmul %31, %33, %cst_23 {dimension_numbers = #tpu.dot_dimension_numbers<[1], [0], [0], [1], [0, 0, 1, 1], [], []>} : vector<32x64xbf16>, vector<64x64xbf16>, vector<32x64xf32> -> vector<32x64xf32>
    %35 = arith.addf %29, %34 : vector<32x64xf32>
    %36 = vector.extract_strided_slice %6 {offsets = [1, 0, 0], sizes = [4, 8, 64], strides = [1, 1, 1]} : vector<6x8x64xbf16> to vector<4x8x64xbf16>
    %37 = vector.shape_cast %36 : vector<4x8x64xbf16> to vector<32x64xbf16>
    %c1_24 = arith.constant 1 : index
    %c2_25 = arith.constant 2 : index
    %c0_26 = arith.constant 0 : index
    %c0_27 = arith.constant 0 : index
    %38 = vector.load %arg3[%c1_24, %c2_25, %c0_26, %c0_27] : memref<3x3x64x64xbf16, #tpu.memory_space<vmem>>, vector<1x1x64x64xbf16>
    %39 = vector.shape_cast %38 : vector<1x1x64x64xbf16> to vector<64x64xbf16>
    %cst_28 = arith.constant dense<0.000000e+00> : vector<32x64xf32>
    %40 = tpu.matmul %37, %39, %cst_28 {dimension_numbers = #tpu.dot_dimension_numbers<[1], [0], [0], [1], [0, 0, 1, 1], [], []>} : vector<32x64xbf16>, vector<64x64xbf16>, vector<32x64xf32> -> vector<32x64xf32>
    %41 = arith.addf %35, %40 : vector<32x64xf32>
    %42 = vector.extract_strided_slice %4 {offsets = [2, 0, 0], sizes = [4, 8, 64], strides = [1, 1, 1]} : vector<6x8x64xbf16> to vector<4x8x64xbf16>
    %43 = vector.shape_cast %42 : vector<4x8x64xbf16> to vector<32x64xbf16>
    %c2_29 = arith.constant 2 : index
    %c0_30 = arith.constant 0 : index
    %c0_31 = arith.constant 0 : index
    %c0_32 = arith.constant 0 : index
    %44 = vector.load %arg3[%c2_29, %c0_30, %c0_31, %c0_32] : memref<3x3x64x64xbf16, #tpu.memory_space<vmem>>, vector<1x1x64x64xbf16>
    %45 = vector.shape_cast %44 : vector<1x1x64x64xbf16> to vector<64x64xbf16>
    %cst_33 = arith.constant dense<0.000000e+00> : vector<32x64xf32>
    %46 = tpu.matmul %43, %45, %cst_33 {dimension_numbers = #tpu.dot_dimension_numbers<[1], [0], [0], [1], [0, 0, 1, 1], [], []>} : vector<32x64xbf16>, vector<64x64xbf16>, vector<32x64xf32> -> vector<32x64xf32>
    %47 = arith.addf %41, %46 : vector<32x64xf32>
    %48 = vector.extract_strided_slice %5 {offsets = [2, 0, 0], sizes = [4, 8, 64], strides = [1, 1, 1]} : vector<6x8x64xbf16> to vector<4x8x64xbf16>
    %49 = vector.shape_cast %48 : vector<4x8x64xbf16> to vector<32x64xbf16>
    %c2_34 = arith.constant 2 : index
    %c1_35 = arith.constant 1 : index
    %c0_36 = arith.constant 0 : index
    %c0_37 = arith.constant 0 : index
    %50 = vector.load %arg3[%c2_34, %c1_35, %c0_36, %c0_37] : memref<3x3x64x64xbf16, #tpu.memory_space<vmem>>, vector<1x1x64x64xbf16>
    %51 = vector.shape_cast %50 : vector<1x1x64x64xbf16> to vector<64x64xbf16>
    %cst_38 = arith.constant dense<0.000000e+00> : vector<32x64xf32>
    %52 = tpu.matmul %49, %51, %cst_38 {dimension_numbers = #tpu.dot_dimension_numbers<[1], [0], [0], [1], [0, 0, 1, 1], [], []>} : vector<32x64xbf16>, vector<64x64xbf16>, vector<32x64xf32> -> vector<32x64xf32>
    %53 = arith.addf %47, %52 : vector<32x64xf32>
    %54 = vector.extract_strided_slice %6 {offsets = [2, 0, 0], sizes = [4, 8, 64], strides = [1, 1, 1]} : vector<6x8x64xbf16> to vector<4x8x64xbf16>
    %55 = vector.shape_cast %54 : vector<4x8x64xbf16> to vector<32x64xbf16>
    %c2_39 = arith.constant 2 : index
    %c2_40 = arith.constant 2 : index
    %c0_41 = arith.constant 0 : index
    %c0_42 = arith.constant 0 : index
    %56 = vector.load %arg3[%c2_39, %c2_40, %c0_41, %c0_42] : memref<3x3x64x64xbf16, #tpu.memory_space<vmem>>, vector<1x1x64x64xbf16>
    %57 = vector.shape_cast %56 : vector<1x1x64x64xbf16> to vector<64x64xbf16>
    %cst_43 = arith.constant dense<0.000000e+00> : vector<32x64xf32>
    %58 = tpu.matmul %55, %57, %cst_43 {dimension_numbers = #tpu.dot_dimension_numbers<[1], [0], [0], [1], [0, 0, 1, 1], [], []>} : vector<32x64xbf16>, vector<64x64xbf16>, vector<32x64xf32> -> vector<32x64xf32>
    %59 = arith.addf %53, %58 : vector<32x64xf32>
    %c0_44 = arith.constant 0 : index
    %c0_45 = arith.constant 0 : index
    %60 = vector.load %arg4[%c0_44, %c0_45] : memref<1x64xf32, #tpu.memory_space<vmem>>, vector<1x64xf32>
    %61 = vector.broadcast %60 : vector<1x64xf32> to vector<32x64xf32>
    %62 = arith.addf %59, %61 : vector<32x64xf32>
    %c0_46 = arith.constant 0 : index
    %c0_47 = arith.constant 0 : index
    %c0_48 = arith.constant 0 : index
    %c0_49 = arith.constant 0 : index
    %63 = vector.load %arg5[%c0_46, %c0_47, %c0_48, %c0_49] : memref<1x4x8x64xbf16, #tpu.memory_space<vmem>>, vector<1x4x8x64xbf16>
    %64 = vector.shape_cast %63 : vector<1x4x8x64xbf16> to vector<4x8x64xbf16>
    %65 = vector.shape_cast %64 : vector<4x8x64xbf16> to vector<32x64xbf16>
    %66 = arith.extf %65 : vector<32x64xbf16> to vector<32x64xf32>
    %67 = arith.addf %62, %66 : vector<32x64xf32>
    %cst_50 = arith.constant 0.000000e+00 : f32
    %68 = vector.broadcast %cst_50 : f32 to vector<32x64xf32>
    %69 = arith.maximumf %67, %68 : vector<32x64xf32>
    %70 = vector.shape_cast %69 : vector<32x64xf32> to vector<4x8x64xf32>
    %71 = arith.truncf %70 : vector<4x8x64xf32> to vector<4x8x64xbf16>
    %c0_51 = arith.constant 0 : index
    %c0_52 = arith.constant 0 : index
    %c0_53 = arith.constant 0 : index
    %c0_54 = arith.constant 0 : index
    %72 = vector.load %arg6[%c0_51, %c0_52, %c0_53, %c0_54] : memref<1x4x8x64xbf16, #tpu.memory_space<vmem>>, vector<1x4x8x64xbf16>
    %73 = vector.shape_cast %72 : vector<1x4x8x64xbf16> to vector<4x8x64xbf16>
    %74 = vector.shape_cast %71 : vector<4x8x64xbf16> to vector<1x4x8x64xbf16>
    tpu.vector_store %arg6[%c0_51, %c0_52, %c0_53, %c0_54], %74 {strides = array<i32>} : memref<1x4x8x64xbf16, #tpu.memory_space<vmem>>, vector<1x4x8x64xbf16>,
    return
  }
  func.func @transform_0(%arg0: i32, %arg1: i32) -> (i32, i32, i32, i32) {
    %c0_i32 = arith.constant 0 : i32
    %c0_i32_0 = arith.constant 0 : i32
    %c0_i32_1 = arith.constant 0 : i32
    %c0_i32_2 = arith.constant 0 : i32
    return %arg0, %c0_i32, %c0_i32_0, %c0_i32_1 : i32, i32, i32, i32
  }
  func.func @transform_1(%arg0: i32, %arg1: i32) -> (i32, i32, i32, i32) {
    %c0_i32 = arith.constant 0 : i32
    %c0_i32_0 = arith.constant 0 : i32
    %c0_i32_1 = arith.constant 0 : i32
    %c0_i32_2 = arith.constant 0 : i32
    %c0_i32_3 = arith.constant 0 : i32
    return %c0_i32, %c0_i32_0, %c0_i32_1, %c0_i32_2 : i32, i32, i32, i32
  }
  func.func @transform_2(%arg0: i32, %arg1: i32) -> (i32, i32) {
    %c0_i32 = arith.constant 0 : i32
    %c0_i32_0 = arith.constant 0 : i32
    %c0_i32_1 = arith.constant 0 : i32
    return %c0_i32, %c0_i32_0 : i32, i32
  }
  func.func @transform_3(%arg0: i32, %arg1: i32) -> (i32, i32, i32, i32) {
    %c0_i32 = arith.constant 0 : i32
    %c0_i32_0 = arith.constant 0 : i32
    %c0_i32_1 = arith.constant 0 : i32
    return %arg0, %arg1, %c0_i32, %c0_i32_0 : i32, i32, i32, i32
  }
  func.func @transform_4(%arg0: i32, %arg1: i32) -> (i32, i32, i32, i32) {
    %c0_i32 = arith.constant 0 : i32
    %c0_i32_0 = arith.constant 0 : i32
    %c0_i32_1 = arith.constant 0 : i32
    return %arg0, %arg1, %c0_i32, %c0_i32_0 : i32, i32, i32, i32
  }
}

module attributes {stable_mosaic.version = 11 : i64} {
  func.func @_mm_shift_kernel(%arg0: i32, %arg1: memref<32x128xbf16, #tpu.memory_space<vmem>>, %arg2: memref<128x128xbf16, #tpu.memory_space<vmem>>, %arg3: memref<1x128xf32, #tpu.memory_space<vmem>>, %arg4: memref<32x128xbf16, #tpu.memory_space<vmem>>) attributes {dimension_semantics = [#tpu.dimension_semantics<parallel>], iteration_bounds = array<i64: 1>, scalar_prefetch = 0 : i64, scratch_operands = 0 : i64, tpu.core_type = #tpu.core_type<tc>, window_params = [{transform_indices = @transform_0, window_bounds = array<i64: 32, 128>}, {pipeline_mode = #tpu.pipeline_mode<synchronous>, transform_indices = @transform_1, window_bounds = array<i64: 128, 128>}, {pipeline_mode = #tpu.pipeline_mode<synchronous>, transform_indices = @transform_2, window_bounds = array<i64: 1, 128>}, {transform_indices = @transform_3, window_bounds = array<i64: 32, 128>}]} {
    %c0 = arith.constant 0 : index
    %c0_0 = arith.constant 0 : index
    %0 = vector.load %arg1[%c0, %c0_0] : memref<32x128xbf16, #tpu.memory_space<vmem>>, vector<32x128xbf16>
    %c0_1 = arith.constant 0 : index
    %c0_2 = arith.constant 0 : index
    %1 = vector.load %arg2[%c0_1, %c0_2] : memref<128x128xbf16, #tpu.memory_space<vmem>>, vector<128x128xbf16>
    %cst = arith.constant dense<0.000000e+00> : vector<32x128xf32>
    %2 = tpu.matmul %0, %1, %cst {dimension_numbers = #tpu.dot_dimension_numbers<[1], [0], [0], [1], [0, 0, 1, 1], [], []>} : vector<32x128xbf16>, vector<128x128xbf16>, vector<32x128xf32> -> vector<32x128xf32>
    %c0_3 = arith.constant 0 : index
    %c0_4 = arith.constant 0 : index
    %3 = vector.load %arg3[%c0_3, %c0_4] : memref<1x128xf32, #tpu.memory_space<vmem>>, vector<1x128xf32>
    %4 = vector.broadcast %3 : vector<1x128xf32> to vector<32x128xf32>
    %5 = arith.addf %2, %4 : vector<32x128xf32>
    %cst_5 = arith.constant 0.000000e+00 : f32
    %6 = vector.broadcast %cst_5 : f32 to vector<32x128xf32>
    %7 = arith.maximumf %5, %6 : vector<32x128xf32>
    %8 = arith.truncf %7 : vector<32x128xf32> to vector<32x128xbf16>
    %c0_6 = arith.constant 0 : index
    %c0_7 = arith.constant 0 : index
    %9 = vector.load %arg4[%c0_6, %c0_7] : memref<32x128xbf16, #tpu.memory_space<vmem>>, vector<32x128xbf16>
    tpu.vector_store %arg4[%c0_6, %c0_7], %8 {strides = array<i32>} : memref<32x128xbf16, #tpu.memory_space<vmem>>, vector<32x128xbf16>,
    return
  }
  func.func @transform_0(%arg0: i32) -> (i32, i32) {
    %c0_i32 = arith.constant 0 : i32
    %c0_i32_0 = arith.constant 0 : i32
    return %arg0, %c0_i32 : i32, i32
  }
  func.func @transform_1(%arg0: i32) -> (i32, i32) {
    %c0_i32 = arith.constant 0 : i32
    %c0_i32_0 = arith.constant 0 : i32
    %c0_i32_1 = arith.constant 0 : i32
    return %c0_i32, %c0_i32_0 : i32, i32
  }
  func.func @transform_2(%arg0: i32) -> (i32, i32) {
    %c0_i32 = arith.constant 0 : i32
    %c0_i32_0 = arith.constant 0 : i32
    %c0_i32_1 = arith.constant 0 : i32
    return %c0_i32, %c0_i32_0 : i32, i32
  }
  func.func @transform_3(%arg0: i32) -> (i32, i32) {
    %c0_i32 = arith.constant 0 : i32
    %c0_i32_0 = arith.constant 0 : i32
    return %arg0, %c0_i32 : i32, i32
  }
}

module attributes {stable_mosaic.version = 11 : i64} {
  func.func @_conv3x3_kernel(%arg0: i32, %arg1: i32, %arg2: memref<1x6x10x64xbf16, #tpu.memory_space<vmem>>, %arg3: memref<3x3x64x128xbf16, #tpu.memory_space<vmem>>, %arg4: memref<1x128xf32, #tpu.memory_space<vmem>>, %arg5: memref<1x4x8x128xbf16, #tpu.memory_space<vmem>>) attributes {dimension_semantics = [#tpu.dimension_semantics<parallel>, #tpu.dimension_semantics<parallel>], iteration_bounds = array<i64: 2, 1>, scalar_prefetch = 0 : i64, scratch_operands = 0 : i64, tpu.core_type = #tpu.core_type<tc>, window_params = [{transform_indices = @transform_0, window_bounds = array<i64: 1, 6, 10, 64>}, {pipeline_mode = #tpu.pipeline_mode<synchronous>, transform_indices = @transform_1, window_bounds = array<i64: 3, 3, 64, 128>}, {pipeline_mode = #tpu.pipeline_mode<synchronous>, transform_indices = @transform_2, window_bounds = array<i64: 1, 128>}, {transform_indices = @transform_3, window_bounds = array<i64: 1, 4, 8, 128>}]} {
    %c4_i32 = arith.constant 4 : i32
    %0 = arith.muli %arg1, %c4_i32 : i32
    %c0 = arith.constant 0 : index
    %1 = arith.index_cast %0 : i32 to index
    %c0_0 = arith.constant 0 : index
    %c0_1 = arith.constant 0 : index
    %2 = vector.load %arg2[%c0, %1, %c0_0, %c0_1] : memref<1x6x10x64xbf16, #tpu.memory_space<vmem>>, vector<1x6x10x64xbf16>
    %3 = vector.shape_cast %2 : vector<1x6x10x64xbf16> to vector<6x10x64xbf16>
    %4 = vector.extract_strided_slice %3 {offsets = [0, 0, 0], sizes = [6, 8, 64], strides = [1, 1, 1]} : vector<6x10x64xbf16> to vector<6x8x64xbf16>
    %5 = vector.extract_strided_slice %3 {offsets = [0, 1, 0], sizes = [6, 8, 64], strides = [1, 1, 1]} : vector<6x10x64xbf16> to vector<6x8x64xbf16>
    %6 = vector.extract_strided_slice %3 {offsets = [0, 2, 0], sizes = [6, 8, 64], strides = [1, 1, 1]} : vector<6x10x64xbf16> to vector<6x8x64xbf16>
    %7 = vector.extract_strided_slice %4 {offsets = [0, 0, 0], sizes = [4, 8, 64], strides = [1, 1, 1]} : vector<6x8x64xbf16> to vector<4x8x64xbf16>
    %8 = vector.shape_cast %7 : vector<4x8x64xbf16> to vector<32x64xbf16>
    %c0_2 = arith.constant 0 : index
    %c0_3 = arith.constant 0 : index
    %c0_4 = arith.constant 0 : index
    %c0_5 = arith.constant 0 : index
    %9 = vector.load %arg3[%c0_2, %c0_3, %c0_4, %c0_5] : memref<3x3x64x128xbf16, #tpu.memory_space<vmem>>, vector<1x1x64x128xbf16>
    %10 = vector.shape_cast %9 : vector<1x1x64x128xbf16> to vector<64x128xbf16>
    %cst = arith.constant dense<0.000000e+00> : vector<32x128xf32>
    %11 = tpu.matmul %8, %10, %cst {dimension_numbers = #tpu.dot_dimension_numbers<[1], [0], [0], [1], [0, 0, 1, 1], [], []>} : vector<32x64xbf16>, vector<64x128xbf16>, vector<32x128xf32> -> vector<32x128xf32>
    %12 = vector.extract_strided_slice %5 {offsets = [0, 0, 0], sizes = [4, 8, 64], strides = [1, 1, 1]} : vector<6x8x64xbf16> to vector<4x8x64xbf16>
    %13 = vector.shape_cast %12 : vector<4x8x64xbf16> to vector<32x64xbf16>
    %c0_6 = arith.constant 0 : index
    %c1 = arith.constant 1 : index
    %c0_7 = arith.constant 0 : index
    %c0_8 = arith.constant 0 : index
    %14 = vector.load %arg3[%c0_6, %c1, %c0_7, %c0_8] : memref<3x3x64x128xbf16, #tpu.memory_space<vmem>>, vector<1x1x64x128xbf16>
    %15 = vector.shape_cast %14 : vector<1x1x64x128xbf16> to vector<64x128xbf16>
    %cst_9 = arith.constant dense<0.000000e+00> : vector<32x128xf32>
    %16 = tpu.matmul %13, %15, %cst_9 {dimension_numbers = #tpu.dot_dimension_numbers<[1], [0], [0], [1], [0, 0, 1, 1], [], []>} : vector<32x64xbf16>, vector<64x128xbf16>, vector<32x128xf32> -> vector<32x128xf32>
    %17 = arith.addf %11, %16 : vector<32x128xf32>
    %18 = vector.extract_strided_slice %6 {offsets = [0, 0, 0], sizes = [4, 8, 64], strides = [1, 1, 1]} : vector<6x8x64xbf16> to vector<4x8x64xbf16>
    %19 = vector.shape_cast %18 : vector<4x8x64xbf16> to vector<32x64xbf16>
    %c0_10 = arith.constant 0 : index
    %c2 = arith.constant 2 : index
    %c0_11 = arith.constant 0 : index
    %c0_12 = arith.constant 0 : index
    %20 = vector.load %arg3[%c0_10, %c2, %c0_11, %c0_12] : memref<3x3x64x128xbf16, #tpu.memory_space<vmem>>, vector<1x1x64x128xbf16>
    %21 = vector.shape_cast %20 : vector<1x1x64x128xbf16> to vector<64x128xbf16>
    %cst_13 = arith.constant dense<0.000000e+00> : vector<32x128xf32>
    %22 = tpu.matmul %19, %21, %cst_13 {dimension_numbers = #tpu.dot_dimension_numbers<[1], [0], [0], [1], [0, 0, 1, 1], [], []>} : vector<32x64xbf16>, vector<64x128xbf16>, vector<32x128xf32> -> vector<32x128xf32>
    %23 = arith.addf %17, %22 : vector<32x128xf32>
    %24 = vector.extract_strided_slice %4 {offsets = [1, 0, 0], sizes = [4, 8, 64], strides = [1, 1, 1]} : vector<6x8x64xbf16> to vector<4x8x64xbf16>
    %25 = vector.shape_cast %24 : vector<4x8x64xbf16> to vector<32x64xbf16>
    %c1_14 = arith.constant 1 : index
    %c0_15 = arith.constant 0 : index
    %c0_16 = arith.constant 0 : index
    %c0_17 = arith.constant 0 : index
    %26 = vector.load %arg3[%c1_14, %c0_15, %c0_16, %c0_17] : memref<3x3x64x128xbf16, #tpu.memory_space<vmem>>, vector<1x1x64x128xbf16>
    %27 = vector.shape_cast %26 : vector<1x1x64x128xbf16> to vector<64x128xbf16>
    %cst_18 = arith.constant dense<0.000000e+00> : vector<32x128xf32>
    %28 = tpu.matmul %25, %27, %cst_18 {dimension_numbers = #tpu.dot_dimension_numbers<[1], [0], [0], [1], [0, 0, 1, 1], [], []>} : vector<32x64xbf16>, vector<64x128xbf16>, vector<32x128xf32> -> vector<32x128xf32>
    %29 = arith.addf %23, %28 : vector<32x128xf32>
    %30 = vector.extract_strided_slice %5 {offsets = [1, 0, 0], sizes = [4, 8, 64], strides = [1, 1, 1]} : vector<6x8x64xbf16> to vector<4x8x64xbf16>
    %31 = vector.shape_cast %30 : vector<4x8x64xbf16> to vector<32x64xbf16>
    %c1_19 = arith.constant 1 : index
    %c1_20 = arith.constant 1 : index
    %c0_21 = arith.constant 0 : index
    %c0_22 = arith.constant 0 : index
    %32 = vector.load %arg3[%c1_19, %c1_20, %c0_21, %c0_22] : memref<3x3x64x128xbf16, #tpu.memory_space<vmem>>, vector<1x1x64x128xbf16>
    %33 = vector.shape_cast %32 : vector<1x1x64x128xbf16> to vector<64x128xbf16>
    %cst_23 = arith.constant dense<0.000000e+00> : vector<32x128xf32>
    %34 = tpu.matmul %31, %33, %cst_23 {dimension_numbers = #tpu.dot_dimension_numbers<[1], [0], [0], [1], [0, 0, 1, 1], [], []>} : vector<32x64xbf16>, vector<64x128xbf16>, vector<32x128xf32> -> vector<32x128xf32>
    %35 = arith.addf %29, %34 : vector<32x128xf32>
    %36 = vector.extract_strided_slice %6 {offsets = [1, 0, 0], sizes = [4, 8, 64], strides = [1, 1, 1]} : vector<6x8x64xbf16> to vector<4x8x64xbf16>
    %37 = vector.shape_cast %36 : vector<4x8x64xbf16> to vector<32x64xbf16>
    %c1_24 = arith.constant 1 : index
    %c2_25 = arith.constant 2 : index
    %c0_26 = arith.constant 0 : index
    %c0_27 = arith.constant 0 : index
    %38 = vector.load %arg3[%c1_24, %c2_25, %c0_26, %c0_27] : memref<3x3x64x128xbf16, #tpu.memory_space<vmem>>, vector<1x1x64x128xbf16>
    %39 = vector.shape_cast %38 : vector<1x1x64x128xbf16> to vector<64x128xbf16>
    %cst_28 = arith.constant dense<0.000000e+00> : vector<32x128xf32>
    %40 = tpu.matmul %37, %39, %cst_28 {dimension_numbers = #tpu.dot_dimension_numbers<[1], [0], [0], [1], [0, 0, 1, 1], [], []>} : vector<32x64xbf16>, vector<64x128xbf16>, vector<32x128xf32> -> vector<32x128xf32>
    %41 = arith.addf %35, %40 : vector<32x128xf32>
    %42 = vector.extract_strided_slice %4 {offsets = [2, 0, 0], sizes = [4, 8, 64], strides = [1, 1, 1]} : vector<6x8x64xbf16> to vector<4x8x64xbf16>
    %43 = vector.shape_cast %42 : vector<4x8x64xbf16> to vector<32x64xbf16>
    %c2_29 = arith.constant 2 : index
    %c0_30 = arith.constant 0 : index
    %c0_31 = arith.constant 0 : index
    %c0_32 = arith.constant 0 : index
    %44 = vector.load %arg3[%c2_29, %c0_30, %c0_31, %c0_32] : memref<3x3x64x128xbf16, #tpu.memory_space<vmem>>, vector<1x1x64x128xbf16>
    %45 = vector.shape_cast %44 : vector<1x1x64x128xbf16> to vector<64x128xbf16>
    %cst_33 = arith.constant dense<0.000000e+00> : vector<32x128xf32>
    %46 = tpu.matmul %43, %45, %cst_33 {dimension_numbers = #tpu.dot_dimension_numbers<[1], [0], [0], [1], [0, 0, 1, 1], [], []>} : vector<32x64xbf16>, vector<64x128xbf16>, vector<32x128xf32> -> vector<32x128xf32>
    %47 = arith.addf %41, %46 : vector<32x128xf32>
    %48 = vector.extract_strided_slice %5 {offsets = [2, 0, 0], sizes = [4, 8, 64], strides = [1, 1, 1]} : vector<6x8x64xbf16> to vector<4x8x64xbf16>
    %49 = vector.shape_cast %48 : vector<4x8x64xbf16> to vector<32x64xbf16>
    %c2_34 = arith.constant 2 : index
    %c1_35 = arith.constant 1 : index
    %c0_36 = arith.constant 0 : index
    %c0_37 = arith.constant 0 : index
    %50 = vector.load %arg3[%c2_34, %c1_35, %c0_36, %c0_37] : memref<3x3x64x128xbf16, #tpu.memory_space<vmem>>, vector<1x1x64x128xbf16>
    %51 = vector.shape_cast %50 : vector<1x1x64x128xbf16> to vector<64x128xbf16>
    %cst_38 = arith.constant dense<0.000000e+00> : vector<32x128xf32>
    %52 = tpu.matmul %49, %51, %cst_38 {dimension_numbers = #tpu.dot_dimension_numbers<[1], [0], [0], [1], [0, 0, 1, 1], [], []>} : vector<32x64xbf16>, vector<64x128xbf16>, vector<32x128xf32> -> vector<32x128xf32>
    %53 = arith.addf %47, %52 : vector<32x128xf32>
    %54 = vector.extract_strided_slice %6 {offsets = [2, 0, 0], sizes = [4, 8, 64], strides = [1, 1, 1]} : vector<6x8x64xbf16> to vector<4x8x64xbf16>
    %55 = vector.shape_cast %54 : vector<4x8x64xbf16> to vector<32x64xbf16>
    %c2_39 = arith.constant 2 : index
    %c2_40 = arith.constant 2 : index
    %c0_41 = arith.constant 0 : index
    %c0_42 = arith.constant 0 : index
    %56 = vector.load %arg3[%c2_39, %c2_40, %c0_41, %c0_42] : memref<3x3x64x128xbf16, #tpu.memory_space<vmem>>, vector<1x1x64x128xbf16>
    %57 = vector.shape_cast %56 : vector<1x1x64x128xbf16> to vector<64x128xbf16>
    %cst_43 = arith.constant dense<0.000000e+00> : vector<32x128xf32>
    %58 = tpu.matmul %55, %57, %cst_43 {dimension_numbers = #tpu.dot_dimension_numbers<[1], [0], [0], [1], [0, 0, 1, 1], [], []>} : vector<32x64xbf16>, vector<64x128xbf16>, vector<32x128xf32> -> vector<32x128xf32>
    %59 = arith.addf %53, %58 : vector<32x128xf32>
    %c0_44 = arith.constant 0 : index
    %c0_45 = arith.constant 0 : index
    %60 = vector.load %arg4[%c0_44, %c0_45] : memref<1x128xf32, #tpu.memory_space<vmem>>, vector<1x128xf32>
    %61 = vector.broadcast %60 : vector<1x128xf32> to vector<32x128xf32>
    %62 = arith.addf %59, %61 : vector<32x128xf32>
    %cst_46 = arith.constant 0.000000e+00 : f32
    %63 = vector.broadcast %cst_46 : f32 to vector<32x128xf32>
    %64 = arith.maximumf %62, %63 : vector<32x128xf32>
    %65 = vector.shape_cast %64 : vector<32x128xf32> to vector<4x8x128xf32>
    %66 = arith.truncf %65 : vector<4x8x128xf32> to vector<4x8x128xbf16>
    %c0_47 = arith.constant 0 : index
    %c0_48 = arith.constant 0 : index
    %c0_49 = arith.constant 0 : index
    %c0_50 = arith.constant 0 : index
    %67 = vector.load %arg5[%c0_47, %c0_48, %c0_49, %c0_50] : memref<1x4x8x128xbf16, #tpu.memory_space<vmem>>, vector<1x4x8x128xbf16>
    %68 = vector.shape_cast %67 : vector<1x4x8x128xbf16> to vector<4x8x128xbf16>
    %69 = vector.shape_cast %66 : vector<4x8x128xbf16> to vector<1x4x8x128xbf16>
    tpu.vector_store %arg5[%c0_47, %c0_48, %c0_49, %c0_50], %69 {strides = array<i32>} : memref<1x4x8x128xbf16, #tpu.memory_space<vmem>>, vector<1x4x8x128xbf16>,
    return
  }
  func.func @transform_0(%arg0: i32, %arg1: i32) -> (i32, i32, i32, i32) {
    %c0_i32 = arith.constant 0 : i32
    %c0_i32_0 = arith.constant 0 : i32
    %c0_i32_1 = arith.constant 0 : i32
    %c0_i32_2 = arith.constant 0 : i32
    return %arg0, %c0_i32, %c0_i32_0, %c0_i32_1 : i32, i32, i32, i32
  }
  func.func @transform_1(%arg0: i32, %arg1: i32) -> (i32, i32, i32, i32) {
    %c0_i32 = arith.constant 0 : i32
    %c0_i32_0 = arith.constant 0 : i32
    %c0_i32_1 = arith.constant 0 : i32
    %c0_i32_2 = arith.constant 0 : i32
    %c0_i32_3 = arith.constant 0 : i32
    return %c0_i32, %c0_i32_0, %c0_i32_1, %c0_i32_2 : i32, i32, i32, i32
  }
  func.func @transform_2(%arg0: i32, %arg1: i32) -> (i32, i32) {
    %c0_i32 = arith.constant 0 : i32
    %c0_i32_0 = arith.constant 0 : i32
    %c0_i32_1 = arith.constant 0 : i32
    return %c0_i32, %c0_i32_0 : i32, i32
  }
  func.func @transform_3(%arg0: i32, %arg1: i32) -> (i32, i32, i32, i32) {
    %c0_i32 = arith.constant 0 : i32
    %c0_i32_0 = arith.constant 0 : i32
    %c0_i32_1 = arith.constant 0 : i32
    return %arg0, %arg1, %c0_i32, %c0_i32_0 : i32, i32, i32, i32
  }
}

module attributes {stable_mosaic.version = 11 : i64} {
  func.func @_conv3x3_kernel(%arg0: i32, %arg1: i32, %arg2: memref<1x6x10x128xbf16, #tpu.memory_space<vmem>>, %arg3: memref<3x384x128xbf16, #tpu.memory_space<vmem>>, %arg4: memref<1x128xf32, #tpu.memory_space<vmem>>, %arg5: memref<1x4x8x128xbf16, #tpu.memory_space<vmem>>, %arg6: memref<1x4x8x128xbf16, #tpu.memory_space<vmem>>) attributes {dimension_semantics = [#tpu.dimension_semantics<parallel>, #tpu.dimension_semantics<parallel>], iteration_bounds = array<i64: 2, 1>, scalar_prefetch = 0 : i64, scratch_operands = 0 : i64, tpu.core_type = #tpu.core_type<tc>, window_params = [{transform_indices = @transform_0, window_bounds = array<i64: 1, 6, 10, 128>}, {pipeline_mode = #tpu.pipeline_mode<synchronous>, transform_indices = @transform_1, window_bounds = array<i64: 3, 384, 128>}, {pipeline_mode = #tpu.pipeline_mode<synchronous>, transform_indices = @transform_2, window_bounds = array<i64: 1, 128>}, {transform_indices = @transform_3, window_bounds = array<i64: 1, 4, 8, 128>}, {transform_indices = @transform_4, window_bounds = array<i64: 1, 4, 8, 128>}]} {
    %c4_i32 = arith.constant 4 : i32
    %0 = arith.muli %arg1, %c4_i32 : i32
    %c0 = arith.constant 0 : index
    %1 = arith.index_cast %0 : i32 to index
    %c0_0 = arith.constant 0 : index
    %c0_1 = arith.constant 0 : index
    %2 = vector.load %arg2[%c0, %1, %c0_0, %c0_1] : memref<1x6x10x128xbf16, #tpu.memory_space<vmem>>, vector<1x6x10x128xbf16>
    %3 = vector.shape_cast %2 : vector<1x6x10x128xbf16> to vector<6x10x128xbf16>
    %4 = vector.extract_strided_slice %3 {offsets = [0, 0, 0], sizes = [6, 8, 128], strides = [1, 1, 1]} : vector<6x10x128xbf16> to vector<6x8x128xbf16>
    %5 = vector.extract_strided_slice %3 {offsets = [0, 1, 0], sizes = [6, 8, 128], strides = [1, 1, 1]} : vector<6x10x128xbf16> to vector<6x8x128xbf16>
    %6 = vector.extract_strided_slice %3 {offsets = [0, 2, 0], sizes = [6, 8, 128], strides = [1, 1, 1]} : vector<6x10x128xbf16> to vector<6x8x128xbf16>
    %7 = tpu.concatenate %4, %5, %6 in 2 : vector<6x8x128xbf16>, vector<6x8x128xbf16>, vector<6x8x128xbf16> -> vector<6x8x384xbf16>
    %8 = vector.extract_strided_slice %7 {offsets = [0, 0, 0], sizes = [4, 8, 384], strides = [1, 1, 1]} : vector<6x8x384xbf16> to vector<4x8x384xbf16>
    %9 = vector.shape_cast %8 : vector<4x8x384xbf16> to vector<32x384xbf16>
    %c0_2 = arith.constant 0 : index
    %c0_3 = arith.constant 0 : index
    %c0_4 = arith.constant 0 : index
    %10 = vector.load %arg3[%c0_2, %c0_3, %c0_4] : memref<3x384x128xbf16, #tpu.memory_space<vmem>>, vector<1x384x128xbf16>
    %11 = vector.shape_cast %10 : vector<1x384x128xbf16> to vector<384x128xbf16>
    %cst = arith.constant dense<0.000000e+00> : vector<32x128xf32>
    %12 = tpu.matmul %9, %11, %cst {dimension_numbers = #tpu.dot_dimension_numbers<[1], [0], [0], [1], [0, 0, 1, 1], [], []>} : vector<32x384xbf16>, vector<384x128xbf16>, vector<32x128xf32> -> vector<32x128xf32>
    %13 = vector.extract_strided_slice %7 {offsets = [1, 0, 0], sizes = [4, 8, 384], strides = [1, 1, 1]} : vector<6x8x384xbf16> to vector<4x8x384xbf16>
    %14 = vector.shape_cast %13 : vector<4x8x384xbf16> to vector<32x384xbf16>
    %c1 = arith.constant 1 : index
    %c0_5 = arith.constant 0 : index
    %c0_6 = arith.constant 0 : index
    %15 = vector.load %arg3[%c1, %c0_5, %c0_6] : memref<3x384x128xbf16, #tpu.memory_space<vmem>>, vector<1x384x128xbf16>
    %16 = vector.shape_cast %15 : vector<1x384x128xbf16> to vector<384x128xbf16>
    %cst_7 = arith.constant dense<0.000000e+00> : vector<32x128xf32>
    %17 = tpu.matmul %14, %16, %cst_7 {dimension_numbers = #tpu.dot_dimension_numbers<[1], [0], [0], [1], [0, 0, 1, 1], [], []>} : vector<32x384xbf16>, vector<384x128xbf16>, vector<32x128xf32> -> vector<32x128xf32>
    %18 = arith.addf %12, %17 : vector<32x128xf32>
    %19 = vector.extract_strided_slice %7 {offsets = [2, 0, 0], sizes = [4, 8, 384], strides = [1, 1, 1]} : vector<6x8x384xbf16> to vector<4x8x384xbf16>
    %20 = vector.shape_cast %19 : vector<4x8x384xbf16> to vector<32x384xbf16>
    %c2 = arith.constant 2 : index
    %c0_8 = arith.constant 0 : index
    %c0_9 = arith.constant 0 : index
    %21 = vector.load %arg3[%c2, %c0_8, %c0_9] : memref<3x384x128xbf16, #tpu.memory_space<vmem>>, vector<1x384x128xbf16>
    %22 = vector.shape_cast %21 : vector<1x384x128xbf16> to vector<384x128xbf16>
    %cst_10 = arith.constant dense<0.000000e+00> : vector<32x128xf32>
    %23 = tpu.matmul %20, %22, %cst_10 {dimension_numbers = #tpu.dot_dimension_numbers<[1], [0], [0], [1], [0, 0, 1, 1], [], []>} : vector<32x384xbf16>, vector<384x128xbf16>, vector<32x128xf32> -> vector<32x128xf32>
    %24 = arith.addf %18, %23 : vector<32x128xf32>
    %c0_11 = arith.constant 0 : index
    %c0_12 = arith.constant 0 : index
    %25 = vector.load %arg4[%c0_11, %c0_12] : memref<1x128xf32, #tpu.memory_space<vmem>>, vector<1x128xf32>
    %26 = vector.broadcast %25 : vector<1x128xf32> to vector<32x128xf32>
    %27 = arith.addf %24, %26 : vector<32x128xf32>
    %c0_13 = arith.constant 0 : index
    %c0_14 = arith.constant 0 : index
    %c0_15 = arith.constant 0 : index
    %c0_16 = arith.constant 0 : index
    %28 = vector.load %arg5[%c0_13, %c0_14, %c0_15, %c0_16] : memref<1x4x8x128xbf16, #tpu.memory_space<vmem>>, vector<1x4x8x128xbf16>
    %29 = vector.shape_cast %28 : vector<1x4x8x128xbf16> to vector<4x8x128xbf16>
    %30 = vector.shape_cast %29 : vector<4x8x128xbf16> to vector<32x128xbf16>
    %31 = arith.extf %30 : vector<32x128xbf16> to vector<32x128xf32>
    %32 = arith.addf %27, %31 : vector<32x128xf32>
    %cst_17 = arith.constant 0.000000e+00 : f32
    %33 = vector.broadcast %cst_17 : f32 to vector<32x128xf32>
    %34 = arith.maximumf %32, %33 : vector<32x128xf32>
    %35 = vector.shape_cast %34 : vector<32x128xf32> to vector<4x8x128xf32>
    %36 = arith.truncf %35 : vector<4x8x128xf32> to vector<4x8x128xbf16>
    %c0_18 = arith.constant 0 : index
    %c0_19 = arith.constant 0 : index
    %c0_20 = arith.constant 0 : index
    %c0_21 = arith.constant 0 : index
    %37 = vector.load %arg6[%c0_18, %c0_19, %c0_20, %c0_21] : memref<1x4x8x128xbf16, #tpu.memory_space<vmem>>, vector<1x4x8x128xbf16>
    %38 = vector.shape_cast %37 : vector<1x4x8x128xbf16> to vector<4x8x128xbf16>
    %39 = vector.shape_cast %36 : vector<4x8x128xbf16> to vector<1x4x8x128xbf16>
    tpu.vector_store %arg6[%c0_18, %c0_19, %c0_20, %c0_21], %39 {strides = array<i32>} : memref<1x4x8x128xbf16, #tpu.memory_space<vmem>>, vector<1x4x8x128xbf16>,
    return
  }
  func.func @transform_0(%arg0: i32, %arg1: i32) -> (i32, i32, i32, i32) {
    %c0_i32 = arith.constant 0 : i32
    %c0_i32_0 = arith.constant 0 : i32
    %c0_i32_1 = arith.constant 0 : i32
    %c0_i32_2 = arith.constant 0 : i32
    return %arg0, %c0_i32, %c0_i32_0, %c0_i32_1 : i32, i32, i32, i32
  }
  func.func @transform_1(%arg0: i32, %arg1: i32) -> (i32, i32, i32) {
    %c0_i32 = arith.constant 0 : i32
    %c0_i32_0 = arith.constant 0 : i32
    %c0_i32_1 = arith.constant 0 : i32
    %c0_i32_2 = arith.constant 0 : i32
    return %c0_i32, %c0_i32_0, %c0_i32_1 : i32, i32, i32
  }
  func.func @transform_2(%arg0: i32, %arg1: i32) -> (i32, i32) {
    %c0_i32 = arith.constant 0 : i32
    %c0_i32_0 = arith.constant 0 : i32
    %c0_i32_1 = arith.constant 0 : i32
    return %c0_i32, %c0_i32_0 : i32, i32
  }
  func.func @transform_3(%arg0: i32, %arg1: i32) -> (i32, i32, i32, i32) {
    %c0_i32 = arith.constant 0 : i32
    %c0_i32_0 = arith.constant 0 : i32
    %c0_i32_1 = arith.constant 0 : i32
    return %arg0, %arg1, %c0_i32, %c0_i32_0 : i32, i32, i32, i32
  }
  func.func @transform_4(%arg0: i32, %arg1: i32) -> (i32, i32, i32, i32) {
    %c0_i32 = arith.constant 0 : i32
    %c0_i32_0 = arith.constant 0 : i32
    %c0_i32_1 = arith.constant 0 : i32
    return %arg0, %arg1, %c0_i32, %c0_i32_0 : i32, i32, i32, i32
  }
}

module attributes {stable_mosaic.version = 11 : i64} {
  func.func @_conv3x3_kernel(%arg0: i32, %arg1: i32, %arg2: memref<1x6x10x128xbf16, #tpu.memory_space<vmem>>, %arg3: memref<3x384x32xbf16, #tpu.memory_space<vmem>>, %arg4: memref<1x32xf32, #tpu.memory_space<vmem>>, %arg5: memref<1x4x8x32xbf16, #tpu.memory_space<vmem>>) attributes {dimension_semantics = [#tpu.dimension_semantics<parallel>, #tpu.dimension_semantics<parallel>], iteration_bounds = array<i64: 2, 1>, scalar_prefetch = 0 : i64, scratch_operands = 0 : i64, tpu.core_type = #tpu.core_type<tc>, window_params = [{transform_indices = @transform_0, window_bounds = array<i64: 1, 6, 10, 128>}, {pipeline_mode = #tpu.pipeline_mode<synchronous>, transform_indices = @transform_1, window_bounds = array<i64: 3, 384, 32>}, {pipeline_mode = #tpu.pipeline_mode<synchronous>, transform_indices = @transform_2, window_bounds = array<i64: 1, 32>}, {transform_indices = @transform_3, window_bounds = array<i64: 1, 4, 8, 32>}]} {
    %c4_i32 = arith.constant 4 : i32
    %0 = arith.muli %arg1, %c4_i32 : i32
    %c0 = arith.constant 0 : index
    %1 = arith.index_cast %0 : i32 to index
    %c0_0 = arith.constant 0 : index
    %c0_1 = arith.constant 0 : index
    %2 = vector.load %arg2[%c0, %1, %c0_0, %c0_1] : memref<1x6x10x128xbf16, #tpu.memory_space<vmem>>, vector<1x6x10x128xbf16>
    %3 = vector.shape_cast %2 : vector<1x6x10x128xbf16> to vector<6x10x128xbf16>
    %4 = vector.extract_strided_slice %3 {offsets = [0, 0, 0], sizes = [6, 8, 128], strides = [1, 1, 1]} : vector<6x10x128xbf16> to vector<6x8x128xbf16>
    %5 = vector.extract_strided_slice %3 {offsets = [0, 1, 0], sizes = [6, 8, 128], strides = [1, 1, 1]} : vector<6x10x128xbf16> to vector<6x8x128xbf16>
    %6 = vector.extract_strided_slice %3 {offsets = [0, 2, 0], sizes = [6, 8, 128], strides = [1, 1, 1]} : vector<6x10x128xbf16> to vector<6x8x128xbf16>
    %7 = tpu.concatenate %4, %5, %6 in 2 : vector<6x8x128xbf16>, vector<6x8x128xbf16>, vector<6x8x128xbf16> -> vector<6x8x384xbf16>
    %8 = vector.extract_strided_slice %7 {offsets = [0, 0, 0], sizes = [4, 8, 384], strides = [1, 1, 1]} : vector<6x8x384xbf16> to vector<4x8x384xbf16>
    %9 = vector.shape_cast %8 : vector<4x8x384xbf16> to vector<32x384xbf16>
    %c0_2 = arith.constant 0 : index
    %c0_3 = arith.constant 0 : index
    %c0_4 = arith.constant 0 : index
    %10 = vector.load %arg3[%c0_2, %c0_3, %c0_4] : memref<3x384x32xbf16, #tpu.memory_space<vmem>>, vector<1x384x32xbf16>
    %11 = vector.shape_cast %10 : vector<1x384x32xbf16> to vector<384x32xbf16>
    %cst = arith.constant dense<0.000000e+00> : vector<32x32xf32>
    %12 = tpu.matmul %9, %11, %cst {dimension_numbers = #tpu.dot_dimension_numbers<[1], [0], [0], [1], [0, 0, 1, 1], [], []>} : vector<32x384xbf16>, vector<384x32xbf16>, vector<32x32xf32> -> vector<32x32xf32>
    %13 = vector.extract_strided_slice %7 {offsets = [1, 0, 0], sizes = [4, 8, 384], strides = [1, 1, 1]} : vector<6x8x384xbf16> to vector<4x8x384xbf16>
    %14 = vector.shape_cast %13 : vector<4x8x384xbf16> to vector<32x384xbf16>
    %c1 = arith.constant 1 : index
    %c0_5 = arith.constant 0 : index
    %c0_6 = arith.constant 0 : index
    %15 = vector.load %arg3[%c1, %c0_5, %c0_6] : memref<3x384x32xbf16, #tpu.memory_space<vmem>>, vector<1x384x32xbf16>
    %16 = vector.shape_cast %15 : vector<1x384x32xbf16> to vector<384x32xbf16>
    %cst_7 = arith.constant dense<0.000000e+00> : vector<32x32xf32>
    %17 = tpu.matmul %14, %16, %cst_7 {dimension_numbers = #tpu.dot_dimension_numbers<[1], [0], [0], [1], [0, 0, 1, 1], [], []>} : vector<32x384xbf16>, vector<384x32xbf16>, vector<32x32xf32> -> vector<32x32xf32>
    %18 = arith.addf %12, %17 : vector<32x32xf32>
    %19 = vector.extract_strided_slice %7 {offsets = [2, 0, 0], sizes = [4, 8, 384], strides = [1, 1, 1]} : vector<6x8x384xbf16> to vector<4x8x384xbf16>
    %20 = vector.shape_cast %19 : vector<4x8x384xbf16> to vector<32x384xbf16>
    %c2 = arith.constant 2 : index
    %c0_8 = arith.constant 0 : index
    %c0_9 = arith.constant 0 : index
    %21 = vector.load %arg3[%c2, %c0_8, %c0_9] : memref<3x384x32xbf16, #tpu.memory_space<vmem>>, vector<1x384x32xbf16>
    %22 = vector.shape_cast %21 : vector<1x384x32xbf16> to vector<384x32xbf16>
    %cst_10 = arith.constant dense<0.000000e+00> : vector<32x32xf32>
    %23 = tpu.matmul %20, %22, %cst_10 {dimension_numbers = #tpu.dot_dimension_numbers<[1], [0], [0], [1], [0, 0, 1, 1], [], []>} : vector<32x384xbf16>, vector<384x32xbf16>, vector<32x32xf32> -> vector<32x32xf32>
    %24 = arith.addf %18, %23 : vector<32x32xf32>
    %c0_11 = arith.constant 0 : index
    %c0_12 = arith.constant 0 : index
    %25 = vector.load %arg4[%c0_11, %c0_12] : memref<1x32xf32, #tpu.memory_space<vmem>>, vector<1x32xf32>
    %26 = vector.broadcast %25 : vector<1x32xf32> to vector<32x32xf32>
    %27 = arith.addf %24, %26 : vector<32x32xf32>
    %cst_13 = arith.constant 0.000000e+00 : f32
    %28 = vector.broadcast %cst_13 : f32 to vector<32x32xf32>
    %29 = arith.maximumf %27, %28 : vector<32x32xf32>
    %30 = vector.shape_cast %29 : vector<32x32xf32> to vector<4x8x32xf32>
    %31 = arith.truncf %30 : vector<4x8x32xf32> to vector<4x8x32xbf16>
    %c0_14 = arith.constant 0 : index
    %c0_15 = arith.constant 0 : index
    %c0_16 = arith.constant 0 : index
    %c0_17 = arith.constant 0 : index
    %32 = vector.load %arg5[%c0_14, %c0_15, %c0_16, %c0_17] : memref<1x4x8x32xbf16, #tpu.memory_space<vmem>>, vector<1x4x8x32xbf16>
    %33 = vector.shape_cast %32 : vector<1x4x8x32xbf16> to vector<4x8x32xbf16>
    %34 = vector.shape_cast %31 : vector<4x8x32xbf16> to vector<1x4x8x32xbf16>
    tpu.vector_store %arg5[%c0_14, %c0_15, %c0_16, %c0_17], %34 {strides = array<i32>} : memref<1x4x8x32xbf16, #tpu.memory_space<vmem>>, vector<1x4x8x32xbf16>,
    return
  }
  func.func @transform_0(%arg0: i32, %arg1: i32) -> (i32, i32, i32, i32) {
    %c0_i32 = arith.constant 0 : i32
    %c0_i32_0 = arith.constant 0 : i32
    %c0_i32_1 = arith.constant 0 : i32
    %c0_i32_2 = arith.constant 0 : i32
    return %arg0, %c0_i32, %c0_i32_0, %c0_i32_1 : i32, i32, i32, i32
  }
  func.func @transform_1(%arg0: i32, %arg1: i32) -> (i32, i32, i32) {
    %c0_i32 = arith.constant 0 : i32
    %c0_i32_0 = arith.constant 0 : i32
    %c0_i32_1 = arith.constant 0 : i32
    %c0_i32_2 = arith.constant 0 : i32
    return %c0_i32, %c0_i32_0, %c0_i32_1 : i32, i32, i32
  }
  func.func @transform_2(%arg0: i32, %arg1: i32) -> (i32, i32) {
    %c0_i32 = arith.constant 0 : i32
    %c0_i32_0 = arith.constant 0 : i32
    %c0_i32_1 = arith.constant 0 : i32
    return %c0_i32, %c0_i32_0 : i32, i32
  }
  func.func @transform_3(%arg0: i32, %arg1: i32) -> (i32, i32, i32, i32) {
    %c0_i32 = arith.constant 0 : i32
    %c0_i32_0 = arith.constant 0 : i32
    %c0_i32_1 = arith.constant 0 : i32
    return %arg0, %arg1, %c0_i32, %c0_i32_0 : i32, i32, i32, i32
  }
}

module attributes {stable_mosaic.version = 11 : i64} {
  func.func @_mm_shift_kernel(%arg0: i32, %arg1: memref<32x32xbf16, #tpu.memory_space<vmem>>, %arg2: memref<32x32xbf16, #tpu.memory_space<vmem>>, %arg3: memref<1x32xf32, #tpu.memory_space<vmem>>, %arg4: memref<32x32xbf16, #tpu.memory_space<vmem>>) attributes {dimension_semantics = [#tpu.dimension_semantics<parallel>], iteration_bounds = array<i64: 1>, scalar_prefetch = 0 : i64, scratch_operands = 0 : i64, tpu.core_type = #tpu.core_type<tc>, window_params = [{transform_indices = @transform_0, window_bounds = array<i64: 32, 32>}, {pipeline_mode = #tpu.pipeline_mode<synchronous>, transform_indices = @transform_1, window_bounds = array<i64: 32, 32>}, {pipeline_mode = #tpu.pipeline_mode<synchronous>, transform_indices = @transform_2, window_bounds = array<i64: 1, 32>}, {transform_indices = @transform_3, window_bounds = array<i64: 32, 32>}]} {
    %c0 = arith.constant 0 : index
    %c0_0 = arith.constant 0 : index
    %0 = vector.load %arg1[%c0, %c0_0] : memref<32x32xbf16, #tpu.memory_space<vmem>>, vector<32x32xbf16>
    %c0_1 = arith.constant 0 : index
    %c0_2 = arith.constant 0 : index
    %1 = vector.load %arg2[%c0_1, %c0_2] : memref<32x32xbf16, #tpu.memory_space<vmem>>, vector<32x32xbf16>
    %cst = arith.constant dense<0.000000e+00> : vector<32x32xf32>
    %2 = tpu.matmul %0, %1, %cst {dimension_numbers = #tpu.dot_dimension_numbers<[1], [0], [0], [1], [0, 0, 1, 1], [], []>} : vector<32x32xbf16>, vector<32x32xbf16>, vector<32x32xf32> -> vector<32x32xf32>
    %c0_3 = arith.constant 0 : index
    %c0_4 = arith.constant 0 : index
    %3 = vector.load %arg3[%c0_3, %c0_4] : memref<1x32xf32, #tpu.memory_space<vmem>>, vector<1x32xf32>
    %4 = vector.broadcast %3 : vector<1x32xf32> to vector<32x32xf32>
    %5 = arith.addf %2, %4 : vector<32x32xf32>
    %cst_5 = arith.constant 0.000000e+00 : f32
    %6 = vector.broadcast %cst_5 : f32 to vector<32x32xf32>
    %7 = arith.maximumf %5, %6 : vector<32x32xf32>
    %8 = arith.truncf %7 : vector<32x32xf32> to vector<32x32xbf16>
    %c0_6 = arith.constant 0 : index
    %c0_7 = arith.constant 0 : index
    %9 = vector.load %arg4[%c0_6, %c0_7] : memref<32x32xbf16, #tpu.memory_space<vmem>>, vector<32x32xbf16>
    tpu.vector_store %arg4[%c0_6, %c0_7], %8 {strides = array<i32>} : memref<32x32xbf16, #tpu.memory_space<vmem>>, vector<32x32xbf16>,
    return
  }
  func.func @transform_0(%arg0: i32) -> (i32, i32) {
    %c0_i32 = arith.constant 0 : i32
    %c0_i32_0 = arith.constant 0 : i32
    return %arg0, %c0_i32 : i32, i32
  }
  func.func @transform_1(%arg0: i32) -> (i32, i32) {
    %c0_i32 = arith.constant 0 : i32
    %c0_i32_0 = arith.constant 0 : i32
    %c0_i32_1 = arith.constant 0 : i32
    return %c0_i32, %c0_i32_0 : i32, i32
  }
  func.func @transform_2(%arg0: i32) -> (i32, i32) {
    %c0_i32 = arith.constant 0 : i32
    %c0_i32_0 = arith.constant 0 : i32
    %c0_i32_1 = arith.constant 0 : i32
    return %c0_i32, %c0_i32_0 : i32, i32
  }
  func.func @transform_3(%arg0: i32) -> (i32, i32) {
    %c0_i32 = arith.constant 0 : i32
    %c0_i32_0 = arith.constant 0 : i32
    return %arg0, %c0_i32 : i32, i32
  }
}

module attributes {stable_mosaic.version = 11 : i64} {
  func.func @_conv3x3_kernel(%arg0: i32, %arg1: i32, %arg2: memref<1x6x10x32xbf16, #tpu.memory_space<vmem>>, %arg3: memref<3x3x32x32xbf16, #tpu.memory_space<vmem>>, %arg4: memref<1x32xf32, #tpu.memory_space<vmem>>, %arg5: memref<1x4x8x32xbf16, #tpu.memory_space<vmem>>, %arg6: memref<1x4x8x32xbf16, #tpu.memory_space<vmem>>) attributes {dimension_semantics = [#tpu.dimension_semantics<parallel>, #tpu.dimension_semantics<parallel>], iteration_bounds = array<i64: 2, 1>, scalar_prefetch = 0 : i64, scratch_operands = 0 : i64, tpu.core_type = #tpu.core_type<tc>, window_params = [{transform_indices = @transform_0, window_bounds = array<i64: 1, 6, 10, 32>}, {pipeline_mode = #tpu.pipeline_mode<synchronous>, transform_indices = @transform_1, window_bounds = array<i64: 3, 3, 32, 32>}, {pipeline_mode = #tpu.pipeline_mode<synchronous>, transform_indices = @transform_2, window_bounds = array<i64: 1, 32>}, {transform_indices = @transform_3, window_bounds = array<i64: 1, 4, 8, 32>}, {transform_indices = @transform_4, window_bounds = array<i64: 1, 4, 8, 32>}]} {
    %c4_i32 = arith.constant 4 : i32
    %0 = arith.muli %arg1, %c4_i32 : i32
    %c0 = arith.constant 0 : index
    %1 = arith.index_cast %0 : i32 to index
    %c0_0 = arith.constant 0 : index
    %c0_1 = arith.constant 0 : index
    %2 = vector.load %arg2[%c0, %1, %c0_0, %c0_1] : memref<1x6x10x32xbf16, #tpu.memory_space<vmem>>, vector<1x6x10x32xbf16>
    %3 = vector.shape_cast %2 : vector<1x6x10x32xbf16> to vector<6x10x32xbf16>
    %4 = vector.extract_strided_slice %3 {offsets = [0, 0, 0], sizes = [6, 8, 32], strides = [1, 1, 1]} : vector<6x10x32xbf16> to vector<6x8x32xbf16>
    %5 = vector.extract_strided_slice %3 {offsets = [0, 1, 0], sizes = [6, 8, 32], strides = [1, 1, 1]} : vector<6x10x32xbf16> to vector<6x8x32xbf16>
    %6 = vector.extract_strided_slice %3 {offsets = [0, 2, 0], sizes = [6, 8, 32], strides = [1, 1, 1]} : vector<6x10x32xbf16> to vector<6x8x32xbf16>
    %7 = vector.extract_strided_slice %4 {offsets = [0, 0, 0], sizes = [4, 8, 32], strides = [1, 1, 1]} : vector<6x8x32xbf16> to vector<4x8x32xbf16>
    %8 = vector.shape_cast %7 : vector<4x8x32xbf16> to vector<32x32xbf16>
    %c0_2 = arith.constant 0 : index
    %c0_3 = arith.constant 0 : index
    %c0_4 = arith.constant 0 : index
    %c0_5 = arith.constant 0 : index
    %9 = vector.load %arg3[%c0_2, %c0_3, %c0_4, %c0_5] : memref<3x3x32x32xbf16, #tpu.memory_space<vmem>>, vector<1x1x32x32xbf16>
    %10 = vector.shape_cast %9 : vector<1x1x32x32xbf16> to vector<32x32xbf16>
    %cst = arith.constant dense<0.000000e+00> : vector<32x32xf32>
    %11 = tpu.matmul %8, %10, %cst {dimension_numbers = #tpu.dot_dimension_numbers<[1], [0], [0], [1], [0, 0, 1, 1], [], []>} : vector<32x32xbf16>, vector<32x32xbf16>, vector<32x32xf32> -> vector<32x32xf32>
    %12 = vector.extract_strided_slice %5 {offsets = [0, 0, 0], sizes = [4, 8, 32], strides = [1, 1, 1]} : vector<6x8x32xbf16> to vector<4x8x32xbf16>
    %13 = vector.shape_cast %12 : vector<4x8x32xbf16> to vector<32x32xbf16>
    %c0_6 = arith.constant 0 : index
    %c1 = arith.constant 1 : index
    %c0_7 = arith.constant 0 : index
    %c0_8 = arith.constant 0 : index
    %14 = vector.load %arg3[%c0_6, %c1, %c0_7, %c0_8] : memref<3x3x32x32xbf16, #tpu.memory_space<vmem>>, vector<1x1x32x32xbf16>
    %15 = vector.shape_cast %14 : vector<1x1x32x32xbf16> to vector<32x32xbf16>
    %cst_9 = arith.constant dense<0.000000e+00> : vector<32x32xf32>
    %16 = tpu.matmul %13, %15, %cst_9 {dimension_numbers = #tpu.dot_dimension_numbers<[1], [0], [0], [1], [0, 0, 1, 1], [], []>} : vector<32x32xbf16>, vector<32x32xbf16>, vector<32x32xf32> -> vector<32x32xf32>
    %17 = arith.addf %11, %16 : vector<32x32xf32>
    %18 = vector.extract_strided_slice %6 {offsets = [0, 0, 0], sizes = [4, 8, 32], strides = [1, 1, 1]} : vector<6x8x32xbf16> to vector<4x8x32xbf16>
    %19 = vector.shape_cast %18 : vector<4x8x32xbf16> to vector<32x32xbf16>
    %c0_10 = arith.constant 0 : index
    %c2 = arith.constant 2 : index
    %c0_11 = arith.constant 0 : index
    %c0_12 = arith.constant 0 : index
    %20 = vector.load %arg3[%c0_10, %c2, %c0_11, %c0_12] : memref<3x3x32x32xbf16, #tpu.memory_space<vmem>>, vector<1x1x32x32xbf16>
    %21 = vector.shape_cast %20 : vector<1x1x32x32xbf16> to vector<32x32xbf16>
    %cst_13 = arith.constant dense<0.000000e+00> : vector<32x32xf32>
    %22 = tpu.matmul %19, %21, %cst_13 {dimension_numbers = #tpu.dot_dimension_numbers<[1], [0], [0], [1], [0, 0, 1, 1], [], []>} : vector<32x32xbf16>, vector<32x32xbf16>, vector<32x32xf32> -> vector<32x32xf32>
    %23 = arith.addf %17, %22 : vector<32x32xf32>
    %24 = vector.extract_strided_slice %4 {offsets = [1, 0, 0], sizes = [4, 8, 32], strides = [1, 1, 1]} : vector<6x8x32xbf16> to vector<4x8x32xbf16>
    %25 = vector.shape_cast %24 : vector<4x8x32xbf16> to vector<32x32xbf16>
    %c1_14 = arith.constant 1 : index
    %c0_15 = arith.constant 0 : index
    %c0_16 = arith.constant 0 : index
    %c0_17 = arith.constant 0 : index
    %26 = vector.load %arg3[%c1_14, %c0_15, %c0_16, %c0_17] : memref<3x3x32x32xbf16, #tpu.memory_space<vmem>>, vector<1x1x32x32xbf16>
    %27 = vector.shape_cast %26 : vector<1x1x32x32xbf16> to vector<32x32xbf16>
    %cst_18 = arith.constant dense<0.000000e+00> : vector<32x32xf32>
    %28 = tpu.matmul %25, %27, %cst_18 {dimension_numbers = #tpu.dot_dimension_numbers<[1], [0], [0], [1], [0, 0, 1, 1], [], []>} : vector<32x32xbf16>, vector<32x32xbf16>, vector<32x32xf32> -> vector<32x32xf32>
    %29 = arith.addf %23, %28 : vector<32x32xf32>
    %30 = vector.extract_strided_slice %5 {offsets = [1, 0, 0], sizes = [4, 8, 32], strides = [1, 1, 1]} : vector<6x8x32xbf16> to vector<4x8x32xbf16>
    %31 = vector.shape_cast %30 : vector<4x8x32xbf16> to vector<32x32xbf16>
    %c1_19 = arith.constant 1 : index
    %c1_20 = arith.constant 1 : index
    %c0_21 = arith.constant 0 : index
    %c0_22 = arith.constant 0 : index
    %32 = vector.load %arg3[%c1_19, %c1_20, %c0_21, %c0_22] : memref<3x3x32x32xbf16, #tpu.memory_space<vmem>>, vector<1x1x32x32xbf16>
    %33 = vector.shape_cast %32 : vector<1x1x32x32xbf16> to vector<32x32xbf16>
    %cst_23 = arith.constant dense<0.000000e+00> : vector<32x32xf32>
    %34 = tpu.matmul %31, %33, %cst_23 {dimension_numbers = #tpu.dot_dimension_numbers<[1], [0], [0], [1], [0, 0, 1, 1], [], []>} : vector<32x32xbf16>, vector<32x32xbf16>, vector<32x32xf32> -> vector<32x32xf32>
    %35 = arith.addf %29, %34 : vector<32x32xf32>
    %36 = vector.extract_strided_slice %6 {offsets = [1, 0, 0], sizes = [4, 8, 32], strides = [1, 1, 1]} : vector<6x8x32xbf16> to vector<4x8x32xbf16>
    %37 = vector.shape_cast %36 : vector<4x8x32xbf16> to vector<32x32xbf16>
    %c1_24 = arith.constant 1 : index
    %c2_25 = arith.constant 2 : index
    %c0_26 = arith.constant 0 : index
    %c0_27 = arith.constant 0 : index
    %38 = vector.load %arg3[%c1_24, %c2_25, %c0_26, %c0_27] : memref<3x3x32x32xbf16, #tpu.memory_space<vmem>>, vector<1x1x32x32xbf16>
    %39 = vector.shape_cast %38 : vector<1x1x32x32xbf16> to vector<32x32xbf16>
    %cst_28 = arith.constant dense<0.000000e+00> : vector<32x32xf32>
    %40 = tpu.matmul %37, %39, %cst_28 {dimension_numbers = #tpu.dot_dimension_numbers<[1], [0], [0], [1], [0, 0, 1, 1], [], []>} : vector<32x32xbf16>, vector<32x32xbf16>, vector<32x32xf32> -> vector<32x32xf32>
    %41 = arith.addf %35, %40 : vector<32x32xf32>
    %42 = vector.extract_strided_slice %4 {offsets = [2, 0, 0], sizes = [4, 8, 32], strides = [1, 1, 1]} : vector<6x8x32xbf16> to vector<4x8x32xbf16>
    %43 = vector.shape_cast %42 : vector<4x8x32xbf16> to vector<32x32xbf16>
    %c2_29 = arith.constant 2 : index
    %c0_30 = arith.constant 0 : index
    %c0_31 = arith.constant 0 : index
    %c0_32 = arith.constant 0 : index
    %44 = vector.load %arg3[%c2_29, %c0_30, %c0_31, %c0_32] : memref<3x3x32x32xbf16, #tpu.memory_space<vmem>>, vector<1x1x32x32xbf16>
    %45 = vector.shape_cast %44 : vector<1x1x32x32xbf16> to vector<32x32xbf16>
    %cst_33 = arith.constant dense<0.000000e+00> : vector<32x32xf32>
    %46 = tpu.matmul %43, %45, %cst_33 {dimension_numbers = #tpu.dot_dimension_numbers<[1], [0], [0], [1], [0, 0, 1, 1], [], []>} : vector<32x32xbf16>, vector<32x32xbf16>, vector<32x32xf32> -> vector<32x32xf32>
    %47 = arith.addf %41, %46 : vector<32x32xf32>
    %48 = vector.extract_strided_slice %5 {offsets = [2, 0, 0], sizes = [4, 8, 32], strides = [1, 1, 1]} : vector<6x8x32xbf16> to vector<4x8x32xbf16>
    %49 = vector.shape_cast %48 : vector<4x8x32xbf16> to vector<32x32xbf16>
    %c2_34 = arith.constant 2 : index
    %c1_35 = arith.constant 1 : index
    %c0_36 = arith.constant 0 : index
    %c0_37 = arith.constant 0 : index
    %50 = vector.load %arg3[%c2_34, %c1_35, %c0_36, %c0_37] : memref<3x3x32x32xbf16, #tpu.memory_space<vmem>>, vector<1x1x32x32xbf16>
    %51 = vector.shape_cast %50 : vector<1x1x32x32xbf16> to vector<32x32xbf16>
    %cst_38 = arith.constant dense<0.000000e+00> : vector<32x32xf32>
    %52 = tpu.matmul %49, %51, %cst_38 {dimension_numbers = #tpu.dot_dimension_numbers<[1], [0], [0], [1], [0, 0, 1, 1], [], []>} : vector<32x32xbf16>, vector<32x32xbf16>, vector<32x32xf32> -> vector<32x32xf32>
    %53 = arith.addf %47, %52 : vector<32x32xf32>
    %54 = vector.extract_strided_slice %6 {offsets = [2, 0, 0], sizes = [4, 8, 32], strides = [1, 1, 1]} : vector<6x8x32xbf16> to vector<4x8x32xbf16>
    %55 = vector.shape_cast %54 : vector<4x8x32xbf16> to vector<32x32xbf16>
    %c2_39 = arith.constant 2 : index
    %c2_40 = arith.constant 2 : index
    %c0_41 = arith.constant 0 : index
    %c0_42 = arith.constant 0 : index
    %56 = vector.load %arg3[%c2_39, %c2_40, %c0_41, %c0_42] : memref<3x3x32x32xbf16, #tpu.memory_space<vmem>>, vector<1x1x32x32xbf16>
    %57 = vector.shape_cast %56 : vector<1x1x32x32xbf16> to vector<32x32xbf16>
    %cst_43 = arith.constant dense<0.000000e+00> : vector<32x32xf32>
    %58 = tpu.matmul %55, %57, %cst_43 {dimension_numbers = #tpu.dot_dimension_numbers<[1], [0], [0], [1], [0, 0, 1, 1], [], []>} : vector<32x32xbf16>, vector<32x32xbf16>, vector<32x32xf32> -> vector<32x32xf32>
    %59 = arith.addf %53, %58 : vector<32x32xf32>
    %c0_44 = arith.constant 0 : index
    %c0_45 = arith.constant 0 : index
    %60 = vector.load %arg4[%c0_44, %c0_45] : memref<1x32xf32, #tpu.memory_space<vmem>>, vector<1x32xf32>
    %61 = vector.broadcast %60 : vector<1x32xf32> to vector<32x32xf32>
    %62 = arith.addf %59, %61 : vector<32x32xf32>
    %c0_46 = arith.constant 0 : index
    %c0_47 = arith.constant 0 : index
    %c0_48 = arith.constant 0 : index
    %c0_49 = arith.constant 0 : index
    %63 = vector.load %arg5[%c0_46, %c0_47, %c0_48, %c0_49] : memref<1x4x8x32xbf16, #tpu.memory_space<vmem>>, vector<1x4x8x32xbf16>
    %64 = vector.shape_cast %63 : vector<1x4x8x32xbf16> to vector<4x8x32xbf16>
    %65 = vector.shape_cast %64 : vector<4x8x32xbf16> to vector<32x32xbf16>
    %66 = arith.extf %65 : vector<32x32xbf16> to vector<32x32xf32>
    %67 = arith.addf %62, %66 : vector<32x32xf32>
    %cst_50 = arith.constant 0.000000e+00 : f32
    %68 = vector.broadcast %cst_50 : f32 to vector<32x32xf32>
    %69 = arith.maximumf %67, %68 : vector<32x32xf32>
    %70 = vector.shape_cast %69 : vector<32x32xf32> to vector<4x8x32xf32>
    %71 = arith.truncf %70 : vector<4x8x32xf32> to vector<4x8x32xbf16>
    %c0_51 = arith.constant 0 : index
    %c0_52 = arith.constant 0 : index
    %c0_53 = arith.constant 0 : index
    %c0_54 = arith.constant 0 : index
    %72 = vector.load %arg6[%c0_51, %c0_52, %c0_53, %c0_54] : memref<1x4x8x32xbf16, #tpu.memory_space<vmem>>, vector<1x4x8x32xbf16>
    %73 = vector.shape_cast %72 : vector<1x4x8x32xbf16> to vector<4x8x32xbf16>
    %74 = vector.shape_cast %71 : vector<4x8x32xbf16> to vector<1x4x8x32xbf16>
    tpu.vector_store %arg6[%c0_51, %c0_52, %c0_53, %c0_54], %74 {strides = array<i32>} : memref<1x4x8x32xbf16, #tpu.memory_space<vmem>>, vector<1x4x8x32xbf16>,
    return
  }
  func.func @transform_0(%arg0: i32, %arg1: i32) -> (i32, i32, i32, i32) {
    %c0_i32 = arith.constant 0 : i32
    %c0_i32_0 = arith.constant 0 : i32
    %c0_i32_1 = arith.constant 0 : i32
    %c0_i32_2 = arith.constant 0 : i32
    return %arg0, %c0_i32, %c0_i32_0, %c0_i32_1 : i32, i32, i32, i32
  }
  func.func @transform_1(%arg0: i32, %arg1: i32) -> (i32, i32, i32, i32) {
    %c0_i32 = arith.constant 0 : i32
    %c0_i32_0 = arith.constant 0 : i32
    %c0_i32_1 = arith.constant 0 : i32
    %c0_i32_2 = arith.constant 0 : i32
    %c0_i32_3 = arith.constant 0 : i32
    return %c0_i32, %c0_i32_0, %c0_i32_1, %c0_i32_2 : i32, i32, i32, i32
  }
  func.func @transform_2(%arg0: i32, %arg1: i32) -> (i32, i32) {
    %c0_i32 = arith.constant 0 : i32
    %c0_i32_0 = arith.constant 0 : i32
    %c0_i32_1 = arith.constant 0 : i32
    return %c0_i32, %c0_i32_0 : i32, i32
  }
  func.func @transform_3(%arg0: i32, %arg1: i32) -> (i32, i32, i32, i32) {
    %c0_i32 = arith.constant 0 : i32
    %c0_i32_0 = arith.constant 0 : i32
    %c0_i32_1 = arith.constant 0 : i32
    return %arg0, %arg1, %c0_i32, %c0_i32_0 : i32, i32, i32, i32
  }
  func.func @transform_4(%arg0: i32, %arg1: i32) -> (i32, i32, i32, i32) {
    %c0_i32 = arith.constant 0 : i32
    %c0_i32_0 = arith.constant 0 : i32
    %c0_i32_1 = arith.constant 0 : i32
    return %arg0, %arg1, %c0_i32, %c0_i32_0 : i32, i32, i32, i32
  }
}

</mosaic_0001>

<bundles_post_ra>
// kernel: tpu_custom_call.1
= control target key start
LH: loop header
LB: loop body
LE: loop exit
PB: predicated region body
PF: predicated region fallthrough
CT: control target
= control target key end

     0   :  { %6 = vsyncpa [#allocation3], 0  ;;  %s340_s0 = inlined_call_operand.hbm [shape: f32[8,128], index: 0, kind: input, shape index: {}]   ;;  %s341_s1 = inlined_call_operand.hbm [shape: f32[8,128], index: 1, kind: output, shape index: {}]  }
   0x1   :  { %7 = vsyncpa [#allocation4], 0  ;;  %s261_s6 = smov 0  }
   0x2 LB: > { %s144_s7 = sadd.s32 4294967295, %s247_s6   ;;  %p145_p0 = scmp.ge.s32.totalorder %s247_s6, 1  ;;  %s247_s6 = sphi %s261_s6, %s13_s6  }
   0x3   : > { %p60_p1 = scmp.lt.s32.totalorder %s247_s6, 3  ;;  %p275_p3 = scmp.eq.s32.totalorder %s144_s7, 0 }
   0x4   : > { %s249_s10 = smov [#allocation2]   ;;  %s179_s15 = scalar_lea.hbm %s340_s0, 128 }
   0x5   : > { %p269_p2 = pnand %p145_p0, %p60_p1  ;;  %s73_s11 = sshll.u32 %s249_s10, 4  ;;  %s74_s11 = int_to_ptr.vmem [resolvable:$true] %s73_s11 }
   0x6   : > { %s346_s9 = scalar_select %p275_p3, 1, 0 }
   0x7   : > { %s345_s8 = scalar_select %p269_p2, 1, 0 }
   0x8   : > { %p161_p4 = pneg %p269_p2  ;;  %p180_p6 = scmp.ne.s32.totalorder %s340_s0, %s179_s15 }
   0x9   : > { %p186_p10 = scmp.lt.u32.totalorder %s179_s15, %s340_s0 }
   0xa   : > { %p283_p5 = pnand %p275_p3, %p161_p4 }
   0xc   : > { %p181_p7 = pneg %p283_p5 }
   0xe   : > { %p182_p8 = pnand %p181_p7, %p180_p6 }
  0x10   : > { %p183_p9 = pneg %p182_p8 }
  0x12   : > { %p188_p11 = pnand %p186_p10, %p183_p9 }
  0x14   : > { %191 = shalt.err (!%p188_p11)
}
  0x15   : > { %s192_s20 = scalar_lea.vmem %s74_s11, 128  ;;  %p200_p1 = scmp.lt.s32.totalorder %s74_s11, %s74_s11 }
  0x16   : > { %p193_p12 = scmp.ne.s32.totalorder %s74_s11, %s192_s20  ;;  %p201_p4 = scmp.lt.s32.totalorder %s192_s20, %s192_s20 }
  0x18   : > { %p195_p13 = pnand %p193_p12, %p181_p7  ;;  %p202_p3 = por %p201_p4, %p200_p1 }
  0x1a   : > { %p196_p0 = pneg %p195_p13 }
  0x1c   : > { %p203_p2 = pnand %p202_p3, %p196_p0 }
  0x1e   : > { %206 = shalt.err (!%p203_p2)
}
  0x1f   : > { %164 = dma.hbm_to_vmem [thread:$0]  (!%p283_p5), %s340_s0, 128, %s74_s11, [#allocation3]  }
  0x20   : > { %p348_p6 = scmp.ne.s32.totalorder %s345_s8, 0 }
  0x21   : > { %p349_p8 = scmp.ne.s32.totalorder (!%p348_p6), %s346_s9, 0 }
  0x22   : > { %86 = sbr.rel (%p348_p6) target bundleno = 67 (0x43), region = 24 }
  0x29   : > { %238 = dma.done.wait (%p349_p8), [#allocation3], 128  }
  0x2a   : > { %240 = vsyncadd (%p349_p8), [#allocation3], 4294967168  ;;  %s250_s23 = smov [#allocation5]   ;;  %p311_p2 = scmp.eq.s32.totalorder %s144_s7, 1  ;;  %v96_v0 = vld [vmem:[#allocation2] sm:$0xff] }
  0x2b   : > { %s105_s24 = sshll.u32 %s250_s23, 4  ;;  %97 = vst [vmem:[#allocation5] sm:$0xff] %v96_v0  ;;  %s106_s24 = int_to_ptr.vmem [resolvable:$true] %s105_s24 }
  0x2c   : > { %s207_s26 = scalar_lea.vmem %s106_s24, 128  ;;  %p214_p9 = scmp.lt.s32.totalorder %s106_s24, %s106_s24 }
  0x2d   : > { %p208_p3 = scmp.ne.s32.totalorder %s106_s24, %s207_s26  ;;  %p215_p10 = scmp.lt.s32.totalorder %s207_s26, %s207_s26 }
  0x2f   : > { %p209_p5 = pnand %p208_p3, %p311_p2  ;;  %p216_p11 = por %p215_p10, %p214_p9 }
  0x31   : > { %p210_p7 = pneg %p209_p5 }
  0x33   : > { %p217_p12 = pnand %p216_p11, %p210_p7 }
  0x35   : > { %220 = shalt.err (!%p217_p12)
}
  0x36   : > { %s221_s29 = scalar_lea.hbm %s341_s1, 128 }
  0x37   : > { %p222_p13 = scmp.ne.s32.totalorder %s341_s1, %s221_s29  ;;  %p227_p4 = scmp.lt.u32.totalorder %s221_s29, %s341_s1 }
  0x39   : > { %p223_p0 = pnand %p222_p13, %p311_p2 }
  0x3b   : > { %p224_p1 = pneg %p223_p0 }
  0x3d   : > { %p229_p6 = pnand %p227_p4, %p224_p1 }
  0x3f   : > { %232 = shalt.err (!%p229_p6)
}
  0x40   : > { %158 = dma.vmem_to_hbm [thread:$0]  (%p311_p2), %s106_s24, 128, %s341_s1, [#allocation4]  }
  0x41   : > { %242 = dma.done.wait (%p311_p2), [#allocation4], 128  }
  0x42   : > { %244 = vsyncadd (%p311_p2), [#allocation4], 4294967168 }
  0x43 PF: > { %s13_s6 = sadd.s32 1, %s247_s6  }
  0x44   : > { %p10_p8 = scmp.ge.s32.totalorder %s13_s6, 4  }
  0x46   :  { %12 = sbr.rel (!%p10_p8) target bundleno = 2 (0x2), region = 53 }
  0x4d   :  { %118 = vsyncpa [#allocation3], 1 }
  0x4e   :  { %120 = vsyncpa [#allocation3 + $0x1], 1 }
  0x4f   :  { %121 = vsyncpa [#allocation4], 1 }
  0x50   :  { %123 = vsyncpa [#allocation4 + $0x1], 1 }

// kernel: _lambda_.50
= control target key start
LH: loop header
LB: loop body
LE: loop exit
PB: predicated region body
PF: predicated region fallthrough
CT: control target
= control target key end

     0   :  { %vm358_vm0 = vcmask 1044480   ;;  %vm359_vm1 = vcmask 1045504   ;;  %vm261_vm2 = vcmask 220160   ;;  %v1379_v1 = vmov 65535   ;;  %s1859_s1 = inlined_call_operand.vmem [shape: bf16[27,8], index: 1, kind: input, shape index: {}]   ;;  %s1860_s0 = inlined_call_operand.vmem [shape: bf16[512,27], index: 0, kind: input, shape index: {}]   ;;  %s1861_s2 = inlined_call_operand.vmem [shape: f32[1,8], index: 2, kind: input, shape index: {}]   ;;  %s1862_s3 = inlined_call_operand.vmem [shape: bf16[512,8], index: 3, kind: output, shape index: {}]  }
   0x1   :  { %v1345_v0 = vld [vmem:[%s1859_s1] sm:$0xff]   ;;  %v360_v2 = vsel %vm358_vm0, 4294967295, %v1379_v1  ;;  %v1346_v3 = vld [vmem:[%s1859_s1 + $0x8] sm:$0x3f]   ;;  %v1351_v10 = vld [vmem:[%s1860_s0 + $0x10] sm:$0xff]   ;;  %vm974_vm3 = vcmask 60416  }
   0x2   :  { %1272 = vmatprep.subr.bf16.mxu0 %v1345_v0  ;;  %1340 = vmatprep.subr.bf16.mxu1 %v1345_v0  ;;  %v361_v4 = vsel %vm359_vm1, %v360_v2, 0  ;;  %v1347_v5 = vld [vmem:[%s1860_s0] sm:$0xff]   ;;  %v1349_v8 = vld [vmem:[%s1860_s0 + $0x8] sm:$0xff]   ;;  %v1352_v11 = vld [vmem:[%s1860_s0 + $0x90] sm:$0xff]  }
   0x3   :  { %1273 = vmatpush3.bf16.msra.mxu0 %v1345_v0  ;;  %1342 = vmatpush3.bf16.msra.mxu1 %v1345_v0  ;;  %v363_v6 = vand.u32 %v1346_v3, %v361_v4  ;;  %v1348_v7 = vld [vmem:[%s1860_s0 + $0x80] sm:$0xff]   ;;  %v1350_v9 = vld [vmem:[%s1860_s0 + $0x88] sm:$0xff]   ;;  %v1353_v12 = vld [vmem:[%s1860_s0 + $0x18] sm:$0xff]  }
   0x4   :  { %1276 = vmatprep.mubr.msk.bf16.mxu0 %vm261_vm2, %v1347_v5  ;;  %1308 = vmatprep.mubr.msk.bf16.mxu1 %vm261_vm2, %v1348_v7  ;;  %v1354_v13 = vld [vmem:[%s1860_s0 + $0x98] sm:$0xff]   ;;  %v1355_v14 = vld [vmem:[%s1860_s0 + $0x20] sm:$0xff]   ;;  %v1357_v16 = vld [vmem:[%s1860_s0 + $0x28] sm:$0xff]  }
   0x5   :  { %1274 = vmatprep.subr.bf16.mxu0 %v363_v6  ;;  %1341 = vmatprep.subr.bf16.mxu1 %v363_v6  ;;  %v1356_v15 = vld [vmem:[%s1860_s0 + $0xa0] sm:$0xff]   ;;  %v1358_v17 = vld [vmem:[%s1860_s0 + $0xa8] sm:$0xff]   ;;  %v1359_v18 = vld [vmem:[%s1860_s0 + $0x30] sm:$0xff]  }
   0x6   :  { %v1360_v19 = vld [vmem:[%s1860_s0 + $0xb0] sm:$0xff]   ;;  %v1361_v20 = vld [vmem:[%s1860_s0 + $0x38] sm:$0xff]   ;;  %v1363_v22 = vld [vmem:[%s1860_s0 + $0x40] sm:$0xff]  }
   0x7   :  { %1275 = vmatpush3.bf16.msra.mxu0 %v363_v6  ;;  %1343 = vmatpush3.bf16.msra.mxu1 %v363_v6  ;;  %v1362_v21 = vld [vmem:[%s1860_s0 + $0xb8] sm:$0xff]   ;;  %v1364_v23 = vld [vmem:[%s1860_s0 + $0xc0] sm:$0xff]   ;;  %v1365_v24 = vld [vmem:[%s1860_s0 + $0x48] sm:$0xff]  }
   0x8   :  { %v1366_v25 = vld [vmem:[%s1860_s0 + $0xc8] sm:$0xff]   ;;  %v1367_v26 = vld [vmem:[%s1860_s0 + $0x50] sm:$0xff]   ;;  %v1369_v28 = vld [vmem:[%s1860_s0 + $0x58] sm:$0xff]  }
   0x9   :  { %v1368_v27 = vld [vmem:[%s1860_s0 + $0xd0] sm:$0xff]   ;;  %v1370_v29 = vld [vmem:[%s1860_s0 + $0xd8] sm:$0xff]   ;;  %v1371_v30 = vld [vmem:[%s1860_s0 + $0x60] sm:$0xff]  }
   0xa   :  { %1277 = vmatmul.mubr.msk.bf16.vlgmr.msra.gmra.mrb[0].mxu0 %vm261_vm2, %v1349_v8  ;;  %1309 = vmatmul.mubr.msk.bf16.vlgmr.msra.gmra.mrb[0].mxu1 %vm261_vm2, %v1350_v9  ;;  %v1372_v31 = vld [vmem:[%s1860_s0 + $0xe0] sm:$0xff]   ;;  %v1373_v32 = vld [vmem:[%s1860_s0 + $0x68] sm:$0xff]   ;;  %v1375_v34 = vld [vmem:[%s1860_s0 + $0x70] sm:$0xff]  }
   0xb   :  { %1280 = vmatprep.mubr.msk.bf16.mxu0 %vm261_vm2, %v1351_v10  ;;  %1312 = vmatprep.mubr.msk.bf16.mxu1 %vm261_vm2, %v1352_v11  ;;  %v1374_v33 = vld [vmem:[%s1860_s0 + $0xe8] sm:$0xff]   ;;  %v1376_v35 = vld [vmem:[%s1860_s0 + $0xf0] sm:$0xff]   ;;  %v1377_v36 = vld [vmem:[%s1860_s0 + $0x78] sm:$0xff]  }
   0xc   :  { %v1378_v37 = vld [vmem:[%s1860_s0 + $0xf8] sm:$0xff]   ;;  %v1537_v38 = vld [vmem:[%s1861_s2] ss:$0 sm:$0xff] }
  0x12   :  { %1281 = vmatmul.mubr.msk.bf16.gmra.mrb[4].mxu0 %vm261_vm2, %v1353_v12  ;;  %1313 = vmatmul.mubr.msk.bf16.gmra.mrb[4].mxu1 %vm261_vm2, %v1354_v13 }
  0x13   :  { %1284 = vmatprep.mubr.msk.bf16.mxu0 %vm261_vm2, %v1355_v14  ;;  %1316 = vmatprep.mubr.msk.bf16.mxu1 %vm261_vm2, %v1356_v15 }
  0x1a   :  { %1285 = vmatmul.mubr.msk.bf16.gmra.mrb[8].mxu0 %vm261_vm2, %v1357_v16  ;;  %1317 = vmatmul.mubr.msk.bf16.gmra.mrb[8].mxu1 %vm261_vm2, %v1358_v17 }
  0x1b   :  { %1288 = vmatprep.mubr.msk.bf16.mxu0 %vm261_vm2, %v1359_v18  ;;  %1320 = vmatprep.mubr.msk.bf16.mxu1 %vm261_vm2, %v1360_v19 }
  0x22   :  { %1289 = vmatmul.mubr.msk.bf16.gmra.mrb[12].mxu0 %vm261_vm2, %v1361_v20  ;;  %1321 = vmatmul.mubr.msk.bf16.gmra.mrb[12].mxu1 %vm261_vm2, %v1362_v21 }
  0x23   :  { %1292 = vmatprep.mubr.msk.bf16.mxu0 %vm261_vm2, %v1363_v22  ;;  %1324 = vmatprep.mubr.msk.bf16.mxu1 %vm261_vm2, %v1364_v23 }
  0x2a   :  { %1293 = vmatmul.mubr.msk.bf16.gmra.mrb[16].mxu0 %vm261_vm2, %v1365_v24  ;;  %1325 = vmatmul.mubr.msk.bf16.gmra.mrb[16].mxu1 %vm261_vm2, %v1366_v25 }
  0x2b   :  { %1296 = vmatprep.mubr.msk.bf16.mxu0 %vm261_vm2, %v1367_v26  ;;  %1328 = vmatprep.mubr.msk.bf16.mxu1 %vm261_vm2, %v1368_v27 }
  0x32   :  { %1297 = vmatmul.mubr.msk.bf16.gmra.mrb[20].mxu0 %vm261_vm2, %v1369_v28  ;;  %1329 = vmatmul.mubr.msk.bf16.gmra.mrb[20].mxu1 %vm261_vm2, %v1370_v29 }
  0x33   :  { %1300 = vmatprep.mubr.msk.bf16.mxu0 %vm261_vm2, %v1371_v30  ;;  %1332 = vmatprep.mubr.msk.bf16.mxu1 %vm261_vm2, %v1372_v31 }
  0x3a   :  { %1301 = vmatmul.mubr.msk.bf16.gmra.mrb[24].mxu0 %vm261_vm2, %v1373_v32  ;;  %1333 = vmatmul.mubr.msk.bf16.gmra.mrb[24].mxu1 %vm261_vm2, %v1374_v33 }
  0x3b   :  { %1304 = vmatprep.mubr.msk.bf16.mxu0 %vm261_vm2, %v1375_v34  ;;  %1336 = vmatprep.mubr.msk.bf16.mxu1 %vm261_vm2, %v1376_v35 }
  0x42   :  { %1305 = vmatmul.mubr.msk.bf16.gmra.mrb[28].mxu0 %vm261_vm2, %v1377_v36  ;;  %1337 = vmatmul.mubr.msk.bf16.gmra.mrb[28].mxu1 %vm261_vm2, %v1378_v37 }
  0xdd   :  { %v1278_v39 = vpop.f32.mrb[0].mxu0  ;;  %v1310_v40 = vpop.f32.mrb[0].mxu1 }
  0xde   :  { %v408_v41 = vadd.f32 %v1278_v39, %v1537_v38  ;;  %v536_v42 = vadd.f32 %v1310_v40, %v1537_v38  ;;  %v399_v43 = vpop.f32.mrb[1].mxu0  ;;  %v527_v44 = vpop.f32.mrb[1].mxu1 }
  0xdf   :  { %v400_v45 = vadd.f32 %v1537_v38, %v399_v43  ;;  %v528_v46 = vadd.f32 %v1537_v38, %v527_v44  ;;  %v1279_v47 = vpop.f32.mrb[2].mxu0  ;;  %v1311_v48 = vpop.f32.mrb[2].mxu1 }
  0xe0   :  { %v656_v49 = vmax.f32 %v408_v41, 0.0  ;;  %v688_v50 = vmax.f32 %v536_v42, 0.0  ;;  %v411_v51 = vadd.f32 %v1279_v47, %v1537_v38  ;;  %v539_v52 = vadd.f32 %v1311_v48, %v1537_v38  ;;  %v402_v53 = vpop.f32.mrb[3].mxu0  ;;  %v530_v54 = vpop.f32.mrb[3].mxu1 }
  0xe1   :  { %v654_v55 = vmax.f32 %v400_v45, 0.0  ;;  %v686_v56 = vmax.f32 %v528_v46, 0.0  ;;  %v403_v57 = vadd.f32 %v1537_v38, %v402_v53  ;;  %v531_v58 = vadd.f32 %v1537_v38, %v530_v54 }
  0xe2   :  { %v1176_v59 = vpack.c.bf16 %v656_v49, %v656_v49  ;;  %v1208_v60 = vpack.c.bf16 %v688_v50, %v688_v50  ;;  %v657_v61 = vmax.f32 %v411_v51, 0.0  ;;  %v689_v62 = vmax.f32 %v539_v52, 0.0 }
  0xe3   :  { %v1174_v63 = vpack.c.bf16 %v654_v55, %v654_v55  ;;  %v1206_v0 = vpack.c.bf16 %v686_v56, %v686_v56  ;;  %v655_v1 = vmax.f32 %v403_v57, 0.0  ;;  %v687_v2 = vmax.f32 %v531_v58, 0.0 }
  0xe4   :  { %977 = vst.msk [vmem:[%s1862_s3 + $0x8] sm:$0xf] %vm974_vm3, %v1176_v59  ;;  %1009 = vst.msk [vmem:[%s1862_s3 + $0x88] sm:$0xf] %vm974_vm3, %v1208_v60  ;;  %v1177_v3 = vpack.c.bf16 %v657_v61, %v657_v61  ;;  %v1209_v4 = vpack.c.bf16 %v689_v62, %v689_v62 }
  0xe5   :  { %975 = vst.msk [vmem:[%s1862_s3] sm:$0xf] %vm974_vm3, %v1174_v63  ;;  %1007 = vst.msk [vmem:[%s1862_s3 + $0x80] sm:$0xf] %vm974_vm3, %v1206_v0  ;;  %v1175_v5 = vpack.c.bf16 %v655_v1, %v655_v1  ;;  %v1207_v6 = vpack.c.bf16 %v687_v2, %v687_v2  ;;  %v1282_v7 = vpop.f32.mrb[4].mxu0  ;;  %v1314_v8 = vpop.f32.mrb[4].mxu1 }
  0xe6   :  { %978 = vst.msk [vmem:[%s1862_s3 + $0xc] sm:$0xf] %vm974_vm3, %v1177_v3  ;;  %1010 = vst.msk [vmem:[%s1862_s3 + $0x8c] sm:$0xf] %vm974_vm3, %v1209_v4  ;;  %v424_v9 = vadd.f32 %v1282_v7, %v1537_v38  ;;  %v552_v10 = vadd.f32 %v1314_v8, %v1537_v38  ;;  %v415_v11 = vpop.f32.mrb[5].mxu0  ;;  %v543_v12 = vpop.f32.mrb[5].mxu1 }
  0xe7   :  { %976 = vst.msk [vmem:[%s1862_s3 + $0x4] sm:$0xf] %vm974_vm3, %v1175_v5  ;;  %1008 = vst.msk [vmem:[%s1862_s3 + $0x84] sm:$0xf] %vm974_vm3, %v1207_v6  ;;  %v416_v13 = vadd.f32 %v1537_v38, %v415_v11  ;;  %v544_v14 = vadd.f32 %v1537_v38, %v543_v12  ;;  %v1283_v15 = vpop.f32.mrb[6].mxu0  ;;  %v1315_v16 = vpop.f32.mrb[6].mxu1 }
  0xe8   :  { %v660_v17 = vmax.f32 %v424_v9, 0.0  ;;  %v692_v18 = vmax.f32 %v552_v10, 0.0  ;;  %v427_v19 = vadd.f32 %v1283_v15, %v1537_v38  ;;  %v555_v20 = vadd.f32 %v1315_v16, %v1537_v38  ;;  %v418_v21 = vpop.f32.mrb[7].mxu0  ;;  %v546_v22 = vpop.f32.mrb[7].mxu1 }
  0xe9   :  { %v658_v23 = vmax.f32 %v416_v13, 0.0  ;;  %v690_v24 = vmax.f32 %v544_v14, 0.0  ;;  %v419_v25 = vadd.f32 %v1537_v38, %v418_v21  ;;  %v547_v26 = vadd.f32 %v1537_v38, %v546_v22 }
  0xea   :  { %v1180_v27 = vpack.c.bf16 %v660_v17, %v660_v17  ;;  %v1212_v28 = vpack.c.bf16 %v692_v18, %v692_v18  ;;  %v661_v29 = vmax.f32 %v427_v19, 0.0  ;;  %v693_v30 = vmax.f32 %v555_v20, 0.0 }
  0xeb   :  { %v1178_v31 = vpack.c.bf16 %v658_v23, %v658_v23  ;;  %v1210_v32 = vpack.c.bf16 %v690_v24, %v690_v24  ;;  %v659_v33 = vmax.f32 %v419_v25, 0.0  ;;  %v691_v34 = vmax.f32 %v547_v26, 0.0 }
  0xec   :  { %981 = vst.msk [vmem:[%s1862_s3 + $0x18] sm:$0xf] %vm974_vm3, %v1180_v27  ;;  %1013 = vst.msk [vmem:[%s1862_s3 + $0x98] sm:$0xf] %vm974_vm3, %v1212_v28  ;;  %v1181_v35 = vpack.c.bf16 %v661_v29, %v661_v29  ;;  %v1213_v36 = vpack.c.bf16 %v693_v30, %v693_v30 }
  0xed   :  { %979 = vst.msk [vmem:[%s1862_s3 + $0x10] sm:$0xf] %vm974_vm3, %v1178_v31  ;;  %1011 = vst.msk [vmem:[%s1862_s3 + $0x90] sm:$0xf] %vm974_vm3, %v1210_v32  ;;  %v1179_v37 = vpack.c.bf16 %v659_v33, %v659_v33  ;;  %v1211_v39 = vpack.c.bf16 %v691_v34, %v691_v34  ;;  %v1286_v40 = vpop.f32.mrb[8].mxu0  ;;  %v1318_v41 = vpop.f32.mrb[8].mxu1 }
  0xee   :  { %982 = vst.msk [vmem:[%s1862_s3 + $0x1c] sm:$0xf] %vm974_vm3, %v1181_v35  ;;  %1014 = vst.msk [vmem:[%s1862_s3 + $0x9c] sm:$0xf] %vm974_vm3, %v1213_v36  ;;  %v440_v42 = vadd.f32 %v1286_v40, %v1537_v38  ;;  %v568_v43 = vadd.f32 %v1318_v41, %v1537_v38  ;;  %v431_v44 = vpop.f32.mrb[9].mxu0  ;;  %v559_v45 = vpop.f32.mrb[9].mxu1 }
  0xef   :  { %980 = vst.msk [vmem:[%s1862_s3 + $0x14] sm:$0xf] %vm974_vm3, %v1179_v37  ;;  %1012 = vst.msk [vmem:[%s1862_s3 + $0x94] sm:$0xf] %vm974_vm3, %v1211_v39  ;;  %v432_v46 = vadd.f32 %v1537_v38, %v431_v44  ;;  %v560_v47 = vadd.f32 %v1537_v38, %v559_v45  ;;  %v1287_v48 = vpop.f32.mrb[10].mxu0  ;;  %v1319_v49 = vpop.f32.mrb[10].mxu1 }
  0xf0   :  { %v664_v50 = vmax.f32 %v440_v42, 0.0  ;;  %v696_v51 = vmax.f32 %v568_v43, 0.0  ;;  %v443_v52 = vadd.f32 %v1287_v48, %v1537_v38  ;;  %v571_v53 = vadd.f32 %v1319_v49, %v1537_v38  ;;  %v434_v54 = vpop.f32.mrb[11].mxu0  ;;  %v562_v55 = vpop.f32.mrb[11].mxu1 }
  0xf1   :  { %v662_v56 = vmax.f32 %v432_v46, 0.0  ;;  %v694_v57 = vmax.f32 %v560_v47, 0.0  ;;  %v435_v58 = vadd.f32 %v1537_v38, %v434_v54  ;;  %v563_v59 = vadd.f32 %v1537_v38, %v562_v55 }
  0xf2   :  { %v1184_v60 = vpack.c.bf16 %v664_v50, %v664_v50  ;;  %v1216_v61 = vpack.c.bf16 %v696_v51, %v696_v51  ;;  %v665_v62 = vmax.f32 %v443_v52, 0.0  ;;  %v697_v63 = vmax.f32 %v571_v53, 0.0 }
  0xf3   :  { %v1182_v0 = vpack.c.bf16 %v662_v56, %v662_v56  ;;  %v1214_v1 = vpack.c.bf16 %v694_v57, %v694_v57  ;;  %v663_v2 = vmax.f32 %v435_v58, 0.0  ;;  %v695_v3 = vmax.f32 %v563_v59, 0.0 }
  0xf4   :  { %985 = vst.msk [vmem:[%s1862_s3 + $0x28] sm:$0xf] %vm974_vm3, %v1184_v60  ;;  %1017 = vst.msk [vmem:[%s1862_s3 + $0xa8] sm:$0xf] %vm974_vm3, %v1216_v61  ;;  %v1185_v4 = vpack.c.bf16 %v665_v62, %v665_v62  ;;  %v1217_v5 = vpack.c.bf16 %v697_v63, %v697_v63 }
  0xf5   :  { %983 = vst.msk [vmem:[%s1862_s3 + $0x20] sm:$0xf] %vm974_vm3, %v1182_v0  ;;  %1015 = vst.msk [vmem:[%s1862_s3 + $0xa0] sm:$0xf] %vm974_vm3, %v1214_v1  ;;  %v1183_v6 = vpack.c.bf16 %v663_v2, %v663_v2  ;;  %v1215_v7 = vpack.c.bf16 %v695_v3, %v695_v3  ;;  %v1290_v8 = vpop.f32.mrb[12].mxu0  ;;  %v1322_v9 = vpop.f32.mrb[12].mxu1 }
  0xf6   :  { %986 = vst.msk [vmem:[%s1862_s3 + $0x2c] sm:$0xf] %vm974_vm3, %v1185_v4  ;;  %1018 = vst.msk [vmem:[%s1862_s3 + $0xac] sm:$0xf] %vm974_vm3, %v1217_v5  ;;  %v456_v10 = vadd.f32 %v1290_v8, %v1537_v38  ;;  %v584_v11 = vadd.f32 %v1322_v9, %v1537_v38  ;;  %v447_v12 = vpop.f32.mrb[13].mxu0  ;;  %v575_v13 = vpop.f32.mrb[13].mxu1 }
  0xf7   :  { %984 = vst.msk [vmem:[%s1862_s3 + $0x24] sm:$0xf] %vm974_vm3, %v1183_v6  ;;  %1016 = vst.msk [vmem:[%s1862_s3 + $0xa4] sm:$0xf] %vm974_vm3, %v1215_v7  ;;  %v448_v14 = vadd.f32 %v1537_v38, %v447_v12  ;;  %v576_v15 = vadd.f32 %v1537_v38, %v575_v13  ;;  %v1291_v16 = vpop.f32.mrb[14].mxu0  ;;  %v1323_v17 = vpop.f32.mrb[14].mxu1 }
  0xf8   :  { %v668_v18 = vmax.f32 %v456_v10, 0.0  ;;  %v700_v19 = vmax.f32 %v584_v11, 0.0  ;;  %v459_v20 = vadd.f32 %v1291_v16, %v1537_v38  ;;  %v587_v21 = vadd.f32 %v1323_v17, %v1537_v38  ;;  %v450_v22 = vpop.f32.mrb[15].mxu0  ;;  %v578_v23 = vpop.f32.mrb[15].mxu1 }
  0xf9   :  { %v666_v24 = vmax.f32 %v448_v14, 0.0  ;;  %v698_v25 = vmax.f32 %v576_v15, 0.0  ;;  %v451_v26 = vadd.f32 %v1537_v38, %v450_v22  ;;  %v579_v27 = vadd.f32 %v1537_v38, %v578_v23 }
  0xfa   :  { %v1188_v28 = vpack.c.bf16 %v668_v18, %v668_v18  ;;  %v1220_v29 = vpack.c.bf16 %v700_v19, %v700_v19  ;;  %v669_v30 = vmax.f32 %v459_v20, 0.0  ;;  %v701_v31 = vmax.f32 %v587_v21, 0.0 }
  0xfb   :  { %v1186_v32 = vpack.c.bf16 %v666_v24, %v666_v24  ;;  %v1218_v33 = vpack.c.bf16 %v698_v25, %v698_v25  ;;  %v667_v34 = vmax.f32 %v451_v26, 0.0  ;;  %v699_v35 = vmax.f32 %v579_v27, 0.0 }
  0xfc   :  { %989 = vst.msk [vmem:[%s1862_s3 + $0x38] sm:$0xf] %vm974_vm3, %v1188_v28  ;;  %1021 = vst.msk [vmem:[%s1862_s3 + $0xb8] sm:$0xf] %vm974_vm3, %v1220_v29  ;;  %v1189_v36 = vpack.c.bf16 %v669_v30, %v669_v30  ;;  %v1221_v37 = vpack.c.bf16 %v701_v31, %v701_v31 }
  0xfd   :  { %987 = vst.msk [vmem:[%s1862_s3 + $0x30] sm:$0xf] %vm974_vm3, %v1186_v32  ;;  %1019 = vst.msk [vmem:[%s1862_s3 + $0xb0] sm:$0xf] %vm974_vm3, %v1218_v33  ;;  %v1187_v39 = vpack.c.bf16 %v667_v34, %v667_v34  ;;  %v1219_v40 = vpack.c.bf16 %v699_v35, %v699_v35  ;;  %v1294_v41 = vpop.f32.mrb[16].mxu0  ;;  %v1326_v42 = vpop.f32.mrb[16].mxu1 }
  0xfe   :  { %990 = vst.msk [vmem:[%s1862_s3 + $0x3c] sm:$0xf] %vm974_vm3, %v1189_v36  ;;  %1022 = vst.msk [vmem:[%s1862_s3 + $0xbc] sm:$0xf] %vm974_vm3, %v1221_v37  ;;  %v472_v43 = vadd.f32 %v1294_v41, %v1537_v38  ;;  %v600_v44 = vadd.f32 %v1326_v42, %v1537_v38  ;;  %v463_v45 = vpop.f32.mrb[17].mxu0  ;;  %v591_v46 = vpop.f32.mrb[17].mxu1 }
  0xff   :  { %988 = vst.msk [vmem:[%s1862_s3 + $0x34] sm:$0xf] %vm974_vm3, %v1187_v39  ;;  %1020 = vst.msk [vmem:[%s1862_s3 + $0xb4] sm:$0xf] %vm974_vm3, %v1219_v40  ;;  %v464_v47 = vadd.f32 %v1537_v38, %v463_v45  ;;  %v592_v48 = vadd.f32 %v1537_v38, %v591_v46  ;;  %v1295_v49 = vpop.f32.mrb[18].mxu0  ;;  %v1327_v50 = vpop.f32.mrb[18].mxu1 }
 0x100   :  { %v672_v51 = vmax.f32 %v472_v43, 0.0  ;;  %v704_v52 = vmax.f32 %v600_v44, 0.0  ;;  %v475_v53 = vadd.f32 %v1295_v49, %v1537_v38  ;;  %v603_v54 = vadd.f32 %v1327_v50, %v1537_v38  ;;  %v466_v55 = vpop.f32.mrb[19].mxu0  ;;  %v594_v56 = vpop.f32.mrb[19].mxu1 }
 0x101   :  { %v670_v57 = vmax.f32 %v464_v47, 0.0  ;;  %v702_v58 = vmax.f32 %v592_v48, 0.0  ;;  %v467_v59 = vadd.f32 %v1537_v38, %v466_v55  ;;  %v595_v60 = vadd.f32 %v1537_v38, %v594_v56 }
 0x102   :  { %v1192_v61 = vpack.c.bf16 %v672_v51, %v672_v51  ;;  %v1224_v62 = vpack.c.bf16 %v704_v52, %v704_v52  ;;  %v673_v63 = vmax.f32 %v475_v53, 0.0  ;;  %v705_v0 = vmax.f32 %v603_v54, 0.0 }
 0x103   :  { %v1190_v1 = vpack.c.bf16 %v670_v57, %v670_v57  ;;  %v1222_v2 = vpack.c.bf16 %v702_v58, %v702_v58  ;;  %v671_v3 = vmax.f32 %v467_v59, 0.0  ;;  %v703_v4 = vmax.f32 %v595_v60, 0.0 }
 0x104   :  { %993 = vst.msk [vmem:[%s1862_s3 + $0x48] sm:$0xf] %vm974_vm3, %v1192_v61  ;;  %1025 = vst.msk [vmem:[%s1862_s3 + $0xc8] sm:$0xf] %vm974_vm3, %v1224_v62  ;;  %v1193_v5 = vpack.c.bf16 %v673_v63, %v673_v63  ;;  %v1225_v6 = vpack.c.bf16 %v705_v0, %v705_v0 }
 0x105   :  { %991 = vst.msk [vmem:[%s1862_s3 + $0x40] sm:$0xf] %vm974_vm3, %v1190_v1  ;;  %1023 = vst.msk [vmem:[%s1862_s3 + $0xc0] sm:$0xf] %vm974_vm3, %v1222_v2  ;;  %v1191_v7 = vpack.c.bf16 %v671_v3, %v671_v3  ;;  %v1223_v8 = vpack.c.bf16 %v703_v4, %v703_v4  ;;  %v1298_v9 = vpop.f32.mrb[20].mxu0  ;;  %v1330_v10 = vpop.f32.mrb[20].mxu1 }
 0x106   :  { %994 = vst.msk [vmem:[%s1862_s3 + $0x4c] sm:$0xf] %vm974_vm3, %v1193_v5  ;;  %1026 = vst.msk [vmem:[%s1862_s3 + $0xcc] sm:$0xf] %vm974_vm3, %v1225_v6  ;;  %v488_v11 = vadd.f32 %v1298_v9, %v1537_v38  ;;  %v616_v12 = vadd.f32 %v1330_v10, %v1537_v38  ;;  %v479_v13 = vpop.f32.mrb[21].mxu0  ;;  %v607_v14 = vpop.f32.mrb[21].mxu1 }
 0x107   :  { %992 = vst.msk [vmem:[%s1862_s3 + $0x44] sm:$0xf] %vm974_vm3, %v1191_v7  ;;  %1024 = vst.msk [vmem:[%s1862_s3 + $0xc4] sm:$0xf] %vm974_vm3, %v1223_v8  ;;  %v480_v15 = vadd.f32 %v1537_v38, %v479_v13  ;;  %v608_v16 = vadd.f32 %v1537_v38, %v607_v14  ;;  %v1299_v17 = vpop.f32.mrb[22].mxu0  ;;  %v1331_v18 = vpop.f32.mrb[22].mxu1 }
 0x108   :  { %v676_v19 = vmax.f32 %v488_v11, 0.0  ;;  %v708_v20 = vmax.f32 %v616_v12, 0.0  ;;  %v491_v21 = vadd.f32 %v1299_v17, %v1537_v38  ;;  %v619_v22 = vadd.f32 %v1331_v18, %v1537_v38  ;;  %v482_v23 = vpop.f32.mrb[23].mxu0  ;;  %v610_v24 = vpop.f32.mrb[23].mxu1 }
 0x109   :  { %v674_v25 = vmax.f32 %v480_v15, 0.0  ;;  %v706_v26 = vmax.f32 %v608_v16, 0.0  ;;  %v483_v27 = vadd.f32 %v1537_v38, %v482_v23  ;;  %v611_v28 = vadd.f32 %v1537_v38, %v610_v24 }
 0x10a   :  { %v1196_v29 = vpack.c.bf16 %v676_v19, %v676_v19  ;;  %v1228_v30 = vpack.c.bf16 %v708_v20, %v708_v20  ;;  %v677_v31 = vmax.f32 %v491_v21, 0.0  ;;  %v709_v32 = vmax.f32 %v619_v22, 0.0 }
 0x10b   :  { %v1194_v33 = vpack.c.bf16 %v674_v25, %v674_v25  ;;  %v1226_v34 = vpack.c.bf16 %v706_v26, %v706_v26  ;;  %v675_v35 = vmax.f32 %v483_v27, 0.0  ;;  %v707_v36 = vmax.f32 %v611_v28, 0.0 }
 0x10c   :  { %997 = vst.msk [vmem:[%s1862_s3 + $0x58] sm:$0xf] %vm974_vm3, %v1196_v29  ;;  %1029 = vst.msk [vmem:[%s1862_s3 + $0xd8] sm:$0xf] %vm974_vm3, %v1228_v30  ;;  %v1197_v37 = vpack.c.bf16 %v677_v31, %v677_v31  ;;  %v1229_v39 = vpack.c.bf16 %v709_v32, %v709_v32 }
 0x10d   :  { %995 = vst.msk [vmem:[%s1862_s3 + $0x50] sm:$0xf] %vm974_vm3, %v1194_v33  ;;  %1027 = vst.msk [vmem:[%s1862_s3 + $0xd0] sm:$0xf] %vm974_vm3, %v1226_v34  ;;  %v1195_v40 = vpack.c.bf16 %v675_v35, %v675_v35  ;;  %v1227_v41 = vpack.c.bf16 %v707_v36, %v707_v36  ;;  %v1302_v42 = vpop.f32.mrb[24].mxu0  ;;  %v1334_v43 = vpop.f32.mrb[24].mxu1 }
 0x10e   :  { %998 = vst.msk [vmem:[%s1862_s3 + $0x5c] sm:$0xf] %vm974_vm3, %v1197_v37  ;;  %1030 = vst.msk [vmem:[%s1862_s3 + $0xdc] sm:$0xf] %vm974_vm3, %v1229_v39  ;;  %v504_v44 = vadd.f32 %v1302_v42, %v1537_v38  ;;  %v632_v45 = vadd.f32 %v1334_v43, %v1537_v38  ;;  %v495_v46 = vpop.f32.mrb[25].mxu0  ;;  %v623_v47 = vpop.f32.mrb[25].mxu1 }
 0x10f   :  { %996 = vst.msk [vmem:[%s1862_s3 + $0x54] sm:$0xf] %vm974_vm3, %v1195_v40  ;;  %1028 = vst.msk [vmem:[%s1862_s3 + $0xd4] sm:$0xf] %vm974_vm3, %v1227_v41  ;;  %v496_v48 = vadd.f32 %v1537_v38, %v495_v46  ;;  %v624_v49 = vadd.f32 %v1537_v38, %v623_v47  ;;  %v1303_v50 = vpop.f32.mrb[26].mxu0  ;;  %v1335_v51 = vpop.f32.mrb[26].mxu1 }
 0x110   :  { %v680_v52 = vmax.f32 %v504_v44, 0.0  ;;  %v712_v53 = vmax.f32 %v632_v45, 0.0  ;;  %v507_v54 = vadd.f32 %v1303_v50, %v1537_v38  ;;  %v635_v55 = vadd.f32 %v1335_v51, %v1537_v38  ;;  %v498_v56 = vpop.f32.mrb[27].mxu0  ;;  %v626_v57 = vpop.f32.mrb[27].mxu1 }
 0x111   :  { %v678_v58 = vmax.f32 %v496_v48, 0.0  ;;  %v710_v59 = vmax.f32 %v624_v49, 0.0  ;;  %v499_v60 = vadd.f32 %v1537_v38, %v498_v56  ;;  %v627_v61 = vadd.f32 %v1537_v38, %v626_v57 }
 0x112   :  { %v1200_v62 = vpack.c.bf16 %v680_v52, %v680_v52  ;;  %v1232_v63 = vpack.c.bf16 %v712_v53, %v712_v53  ;;  %v681_v0 = vmax.f32 %v507_v54, 0.0  ;;  %v713_v1 = vmax.f32 %v635_v55, 0.0 }
 0x113   :  { %v1198_v2 = vpack.c.bf16 %v678_v58, %v678_v58  ;;  %v1230_v3 = vpack.c.bf16 %v710_v59, %v710_v59  ;;  %v679_v4 = vmax.f32 %v499_v60, 0.0  ;;  %v711_v5 = vmax.f32 %v627_v61, 0.0 }
 0x114   :  { %1001 = vst.msk [vmem:[%s1862_s3 + $0x68] sm:$0xf] %vm974_vm3, %v1200_v62  ;;  %1033 = vst.msk [vmem:[%s1862_s3 + $0xe8] sm:$0xf] %vm974_vm3, %v1232_v63  ;;  %v1201_v6 = vpack.c.bf16 %v681_v0, %v681_v0  ;;  %v1233_v7 = vpack.c.bf16 %v713_v1, %v713_v1 }
 0x115   :  { %999 = vst.msk [vmem:[%s1862_s3 + $0x60] sm:$0xf] %vm974_vm3, %v1198_v2  ;;  %1031 = vst.msk [vmem:[%s1862_s3 + $0xe0] sm:$0xf] %vm974_vm3, %v1230_v3  ;;  %v1199_v8 = vpack.c.bf16 %v679_v4, %v679_v4  ;;  %v1231_v9 = vpack.c.bf16 %v711_v5, %v711_v5  ;;  %v1306_v10 = vpop.f32.mrb[28].mxu0  ;;  %v1338_v11 = vpop.f32.mrb[28].mxu1 }
 0x116   :  { %1002 = vst.msk [vmem:[%s1862_s3 + $0x6c] sm:$0xf] %vm974_vm3, %v1201_v6  ;;  %1034 = vst.msk [vmem:[%s1862_s3 + $0xec] sm:$0xf] %vm974_vm3, %v1233_v7  ;;  %v520_v12 = vadd.f32 %v1306_v10, %v1537_v38  ;;  %v648_v13 = vadd.f32 %v1338_v11, %v1537_v38  ;;  %v511_v14 = vpop.f32.mrb[29].mxu0  ;;  %v639_v15 = vpop.f32.mrb[29].mxu1 }
 0x117   :  { %1000 = vst.msk [vmem:[%s1862_s3 + $0x64] sm:$0xf] %vm974_vm3, %v1199_v8  ;;  %1032 = vst.msk [vmem:[%s1862_s3 + $0xe4] sm:$0xf] %vm974_vm3, %v1231_v9  ;;  %v512_v16 = vadd.f32 %v1537_v38, %v511_v14  ;;  %v640_v17 = vadd.f32 %v1537_v38, %v639_v15  ;;  %v1307_v18 = vpop.f32.mrb[30].mxu0  ;;  %v1339_v19 = vpop.f32.mrb[30].mxu1 }
 0x118   :  { %v684_v20 = vmax.f32 %v520_v12, 0.0  ;;  %v716_v21 = vmax.f32 %v648_v13, 0.0  ;;  %v523_v22 = vadd.f32 %v1307_v18, %v1537_v38  ;;  %v651_v23 = vadd.f32 %v1339_v19, %v1537_v38  ;;  %v514_v24 = vpop.f32.mrb[31].mxu0  ;;  %v642_v25 = vpop.f32.mrb[31].mxu1 }
 0x119   :  { %v682_v26 = vmax.f32 %v512_v16, 0.0  ;;  %v714_v27 = vmax.f32 %v640_v17, 0.0  ;;  %v515_v28 = vadd.f32 %v1537_v38, %v514_v24  ;;  %v643_v29 = vadd.f32 %v1537_v38, %v642_v25 }
 0x11a   :  { %v1204_v30 = vpack.c.bf16 %v684_v20, %v684_v20  ;;  %v1236_v31 = vpack.c.bf16 %v716_v21, %v716_v21  ;;  %v685_v32 = vmax.f32 %v523_v22, 0.0  ;;  %v717_v33 = vmax.f32 %v651_v23, 0.0 }
 0x11b   :  { %v1202_v34 = vpack.c.bf16 %v682_v26, %v682_v26  ;;  %v1234_v35 = vpack.c.bf16 %v714_v27, %v714_v27  ;;  %v683_v36 = vmax.f32 %v515_v28, 0.0  ;;  %v715_v37 = vmax.f32 %v643_v29, 0.0 }
 0x11c   :  { %1005 = vst.msk [vmem:[%s1862_s3 + $0x78] sm:$0xf] %vm974_vm3, %v1204_v30  ;;  %1037 = vst.msk [vmem:[%s1862_s3 + $0xf8] sm:$0xf] %vm974_vm3, %v1236_v31  ;;  %v1205_v39 = vpack.c.bf16 %v685_v32, %v685_v32  ;;  %v1237_v38 = vpack.c.bf16 %v717_v33, %v717_v33 }
 0x11d   :  { %1003 = vst.msk [vmem:[%s1862_s3 + $0x70] sm:$0xf] %vm974_vm3, %v1202_v34  ;;  %1035 = vst.msk [vmem:[%s1862_s3 + $0xf0] sm:$0xf] %vm974_vm3, %v1234_v35  ;;  %v1203_v40 = vpack.c.bf16 %v683_v36, %v683_v36  ;;  %v1235_v41 = vpack.c.bf16 %v715_v37, %v715_v37 }
 0x11e   :  { %1006 = vst.msk [vmem:[%s1862_s3 + $0x7c] sm:$0xf] %vm974_vm3, %v1205_v39  ;;  %1038 = vst.msk [vmem:[%s1862_s3 + $0xfc] sm:$0xf] %vm974_vm3, %v1237_v38 }
 0x11f   :  { %1004 = vst.msk [vmem:[%s1862_s3 + $0x74] sm:$0xf] %vm974_vm3, %v1203_v40  ;;  %1036 = vst.msk [vmem:[%s1862_s3 + $0xf4] sm:$0xf] %vm974_vm3, %v1235_v41 }

// kernel: _lambda_.51
= control target key start
LH: loop header
LB: loop body
LE: loop exit
PB: predicated region body
PF: predicated region fallthrough
CT: control target
= control target key end

     0   :  { %vm114_vm0 = vcmask 588800   ;;  %vm139_vm1 = vcmask 1043456   ;;  %vm320_vm2 = vcmask 125952   ;;  %s593_s1 = inlined_call_operand.vmem [shape: bf16[72,16], index: 1, kind: input, shape index: {}]   ;;  %s594_s0 = inlined_call_operand.vmem [shape: bf16[128,72], index: 0, kind: input, shape index: {}]   ;;  %s595_s2 = inlined_call_operand.vmem [shape: f32[1,16], index: 2, kind: input, shape index: {}]   ;;  %s596_s3 = inlined_call_operand.vmem [shape: bf16[128,16], index: 3, kind: output, shape index: {}]  }
   0x1   :  { %v446_v0 = vld [vmem:[%s593_s1] sm:$0xff]   ;;  %v447_v1 = vld [vmem:[%s593_s1 + $0x8] sm:$0xff]   ;;  %v448_v2 = vld [vmem:[%s593_s1 + $0x10] sm:$0xff]  }
   0x2   :  { %408 = vmatprep.subr.bf16.mxu0 %v446_v0  ;;  %434 = vmatprep.subr.bf16.mxu1 %v446_v0  ;;  %v451_v3 = vld [vmem:[%s594_s0] sm:$0xff]   ;;  %v449_v5 = vld [vmem:[%s593_s1 + $0x18] sm:$0xff]   ;;  %v453_v8 = vld [vmem:[%s594_s0 + $0x8] sm:$0xff]  }
   0x3   :  { %409 = vmatpush3.bf16.msra.mxu0 %v446_v0  ;;  %439 = vmatpush3.bf16.msra.mxu1 %v446_v0  ;;  %v452_v4 = vld [vmem:[%s594_s0 + $0x20] sm:$0xff]   ;;  %v454_v9 = vld [vmem:[%s594_s0 + $0x28] sm:$0xff]   ;;  %v455_v10 = vld [vmem:[%s594_s0 + $0x10] sm:$0xff]  }
   0x4   :  { %410 = vmatprep.subr.bf16.mxu0 %v447_v1  ;;  %435 = vmatprep.subr.bf16.mxu1 %v447_v1  ;;  %v450_v6 = vld [vmem:[%s593_s1 + $0x20] ss:$0 sps:$4 sm:$0xff]   ;;  %v456_v11 = vld [vmem:[%s594_s0 + $0x30] sm:$0xff]   ;;  %v457_v12 = vld [vmem:[%s594_s0 + $0x18] sm:$0xff]  }
   0x5   :  { %418 = vmatprep.mubr.msk.bf16.mxu0 %vm114_vm0, %v451_v3  ;;  %426 = vmatprep.mubr.msk.bf16.mxu1 %vm114_vm0, %v452_v4  ;;  %v141_v7 = vsel %vm139_vm1, %v450_v6, 0  ;;  %v458_v13 = vld [vmem:[%s594_s0 + $0x38] sm:$0xff]   ;;  %v341_v14 = vld [vmem:[%s595_s2] ss:$0 sm:$0xff] }
   0x7   :  { %411 = vmatpush3.bf16.msra.mxu0 %v447_v1  ;;  %440 = vmatpush3.bf16.msra.mxu1 %v447_v1 }
   0x8   :  { %412 = vmatprep.subr.bf16.mxu0 %v448_v2  ;;  %436 = vmatprep.subr.bf16.mxu1 %v448_v2 }
   0xb   :  { %413 = vmatpush3.bf16.msra.mxu0 %v448_v2  ;;  %441 = vmatpush3.bf16.msra.mxu1 %v448_v2 }
   0xc   :  { %414 = vmatprep.subr.bf16.mxu0 %v449_v5  ;;  %437 = vmatprep.subr.bf16.mxu1 %v449_v5 }
   0xf   :  { %415 = vmatpush3.bf16.msra.mxu0 %v449_v5  ;;  %442 = vmatpush3.bf16.msra.mxu1 %v449_v5 }
  0x10   :  { %444 = vmatprep.subr.msk.bf16.mxu0 %vm139_vm1, %v450_v6  ;;  %445 = vmatprep.subr.msk.bf16.mxu1 %vm139_vm1, %v450_v6 }
  0x13   :  { %417 = vmatpush3.bf16.msra.mxu0 %v141_v7  ;;  %443 = vmatpush3.bf16.msra.mxu1 %v141_v7 }
  0x16   :  { %419 = vmatmul.mubr.msk.bf16.vlgmr.msra.gmra.mrb[0].mxu0 %vm114_vm0, %v453_v8  ;;  %427 = vmatmul.mubr.msk.bf16.vlgmr.msra.gmra.mrb[0].mxu1 %vm114_vm0, %v454_v9 }
  0x17   :  { %422 = vmatprep.mubr.msk.bf16.mxu0 %vm114_vm0, %v455_v10  ;;  %430 = vmatprep.mubr.msk.bf16.mxu1 %vm114_vm0, %v456_v11 }
  0x1e   :  { %423 = vmatmul.mubr.msk.bf16.gmra.mrb[4].mxu0 %vm114_vm0, %v457_v12  ;;  %431 = vmatmul.mubr.msk.bf16.gmra.mrb[4].mxu1 %vm114_vm0, %v458_v13 }
  0xe9   :  { %v420_v15 = vpop.f32.mrb[0].mxu0  ;;  %v428_v16 = vpop.f32.mrb[0].mxu1 }
  0xea   :  { %v186_v17 = vadd.f32 %v420_v15, %v341_v14  ;;  %v218_v18 = vadd.f32 %v428_v16, %v341_v14  ;;  %v177_v19 = vpop.f32.mrb[1].mxu0  ;;  %v209_v20 = vpop.f32.mrb[1].mxu1 }
  0xeb   :  { %v178_v21 = vadd.f32 %v341_v14, %v177_v19  ;;  %v210_v22 = vadd.f32 %v341_v14, %v209_v20  ;;  %v421_v23 = vpop.f32.mrb[2].mxu0  ;;  %v429_v24 = vpop.f32.mrb[2].mxu1 }
  0xec   :  { %v242_v25 = vmax.f32 %v186_v17, 0.0  ;;  %v250_v26 = vmax.f32 %v218_v18, 0.0  ;;  %v189_v27 = vadd.f32 %v421_v23, %v341_v14  ;;  %v221_v28 = vadd.f32 %v429_v24, %v341_v14  ;;  %v180_v29 = vpop.f32.mrb[3].mxu0  ;;  %v212_v30 = vpop.f32.mrb[3].mxu1 }
  0xed   :  { %v240_v31 = vmax.f32 %v178_v21, 0.0  ;;  %v248_v32 = vmax.f32 %v210_v22, 0.0  ;;  %v181_v33 = vadd.f32 %v341_v14, %v180_v29  ;;  %v213_v34 = vadd.f32 %v341_v14, %v212_v30 }
  0xee   :  { %v381_v35 = vpack.c.bf16 %v242_v25, %v242_v25  ;;  %v389_v36 = vpack.c.bf16 %v250_v26, %v250_v26  ;;  %v243_v37 = vmax.f32 %v189_v27, 0.0  ;;  %v251_v38 = vmax.f32 %v221_v28, 0.0 }
  0xef   :  { %v379_v39 = vpack.c.bf16 %v240_v31, %v240_v31  ;;  %v387_v40 = vpack.c.bf16 %v248_v32, %v248_v32  ;;  %v241_v41 = vmax.f32 %v181_v33, 0.0  ;;  %v249_v42 = vmax.f32 %v213_v34, 0.0 }
  0xf0   :  { %323 = vst.msk [vmem:[%s596_s3 + $0x8] sm:$0xf] %vm320_vm2, %v381_v35  ;;  %331 = vst.msk [vmem:[%s596_s3 + $0x28] sm:$0xf] %vm320_vm2, %v389_v36  ;;  %v382_v43 = vpack.c.bf16 %v243_v37, %v243_v37  ;;  %v390_v44 = vpack.c.bf16 %v251_v38, %v251_v38 }
  0xf1   :  { %321 = vst.msk [vmem:[%s596_s3] sm:$0xf] %vm320_vm2, %v379_v39  ;;  %329 = vst.msk [vmem:[%s596_s3 + $0x20] sm:$0xf] %vm320_vm2, %v387_v40  ;;  %v380_v45 = vpack.c.bf16 %v241_v41, %v241_v41  ;;  %v388_v46 = vpack.c.bf16 %v249_v42, %v249_v42  ;;  %v424_v47 = vpop.f32.mrb[4].mxu0  ;;  %v432_v48 = vpop.f32.mrb[4].mxu1 }
  0xf2   :  { %324 = vst.msk [vmem:[%s596_s3 + $0xc] sm:$0xf] %vm320_vm2, %v382_v43  ;;  %332 = vst.msk [vmem:[%s596_s3 + $0x2c] sm:$0xf] %vm320_vm2, %v390_v44  ;;  %v202_v49 = vadd.f32 %v424_v47, %v341_v14  ;;  %v234_v50 = vadd.f32 %v432_v48, %v341_v14  ;;  %v193_v51 = vpop.f32.mrb[5].mxu0  ;;  %v225_v52 = vpop.f32.mrb[5].mxu1 }
  0xf3   :  { %322 = vst.msk [vmem:[%s596_s3 + $0x4] sm:$0xf] %vm320_vm2, %v380_v45  ;;  %330 = vst.msk [vmem:[%s596_s3 + $0x24] sm:$0xf] %vm320_vm2, %v388_v46  ;;  %v194_v53 = vadd.f32 %v341_v14, %v193_v51  ;;  %v226_v54 = vadd.f32 %v341_v14, %v225_v52  ;;  %v425_v55 = vpop.f32.mrb[6].mxu0  ;;  %v433_v56 = vpop.f32.mrb[6].mxu1 }
  0xf4   :  { %v246_v57 = vmax.f32 %v202_v49, 0.0  ;;  %v254_v58 = vmax.f32 %v234_v50, 0.0  ;;  %v205_v59 = vadd.f32 %v425_v55, %v341_v14  ;;  %v237_v60 = vadd.f32 %v433_v56, %v341_v14  ;;  %v196_v61 = vpop.f32.mrb[7].mxu0  ;;  %v228_v62 = vpop.f32.mrb[7].mxu1 }
  0xf5   :  { %v244_v63 = vmax.f32 %v194_v53, 0.0  ;;  %v252_v0 = vmax.f32 %v226_v54, 0.0  ;;  %v197_v1 = vadd.f32 %v341_v14, %v196_v61  ;;  %v229_v2 = vadd.f32 %v341_v14, %v228_v62 }
  0xf6   :  { %v385_v3 = vpack.c.bf16 %v246_v57, %v246_v57  ;;  %v393_v4 = vpack.c.bf16 %v254_v58, %v254_v58  ;;  %v247_v5 = vmax.f32 %v205_v59, 0.0  ;;  %v255_v6 = vmax.f32 %v237_v60, 0.0 }
  0xf7   :  { %v383_v7 = vpack.c.bf16 %v244_v63, %v244_v63  ;;  %v391_v8 = vpack.c.bf16 %v252_v0, %v252_v0  ;;  %v245_v9 = vmax.f32 %v197_v1, 0.0  ;;  %v253_v10 = vmax.f32 %v229_v2, 0.0 }
  0xf8   :  { %327 = vst.msk [vmem:[%s596_s3 + $0x18] sm:$0xf] %vm320_vm2, %v385_v3  ;;  %335 = vst.msk [vmem:[%s596_s3 + $0x38] sm:$0xf] %vm320_vm2, %v393_v4  ;;  %v386_v11 = vpack.c.bf16 %v247_v5, %v247_v5  ;;  %v394_v12 = vpack.c.bf16 %v255_v6, %v255_v6 }
  0xf9   :  { %325 = vst.msk [vmem:[%s596_s3 + $0x10] sm:$0xf] %vm320_vm2, %v383_v7  ;;  %333 = vst.msk [vmem:[%s596_s3 + $0x30] sm:$0xf] %vm320_vm2, %v391_v8  ;;  %v384_v13 = vpack.c.bf16 %v245_v9, %v245_v9  ;;  %v392_v14 = vpack.c.bf16 %v253_v10, %v253_v10 }
  0xfa   :  { %328 = vst.msk [vmem:[%s596_s3 + $0x1c] sm:$0xf] %vm320_vm2, %v386_v11  ;;  %336 = vst.msk [vmem:[%s596_s3 + $0x3c] sm:$0xf] %vm320_vm2, %v394_v12 }
  0xfb   :  { %326 = vst.msk [vmem:[%s596_s3 + $0x14] sm:$0xf] %vm320_vm2, %v384_v13  ;;  %334 = vst.msk [vmem:[%s596_s3 + $0x34] sm:$0xf] %vm320_vm2, %v392_v14 }

// kernel: _lambda_.52
= control target key start
LH: loop header
LB: loop body
LE: loop exit
PB: predicated region body
PF: predicated region fallthrough
CT: control target
= control target key end

     0   :  { %vm86_vm0 = vcmask 130048   ;;  %vm288_vm1 = vcmask 125952   ;;  %s519_s1 = inlined_call_operand.vmem [shape: bf16[16,16], index: 1, kind: input, shape index: {}]   ;;  %s520_s0 = inlined_call_operand.vmem [shape: bf16[128,16], index: 0, kind: input, shape index: {}]   ;;  %s521_s2 = inlined_call_operand.vmem [shape: f32[1,16], index: 2, kind: input, shape index: {}]   ;;  %s522_s3 = inlined_call_operand.vmem [shape: bf16[128,16], index: 3, kind: output, shape index: {}]  }
   0x1   :  { %v388_v0 = vld [vmem:[%s519_s1] sm:$0xff]   ;;  %v391_v3 = vld [vmem:[%s520_s0 + $0x8] sm:$0xff]   ;;  %v393_v5 = vld [vmem:[%s520_s0 + $0x10] sm:$0xff]  }
   0x2   :  { %v389_v1 = vld [vmem:[%s520_s0] sm:$0xff]   ;;  %368 = vmatprep.subr.bf16.mxu0 %v388_v0  ;;  %386 = vmatprep.subr.bf16.mxu1 %v388_v0  ;;  %v392_v4 = vld [vmem:[%s520_s0 + $0x28] sm:$0xff]   ;;  %v394_v6 = vld [vmem:[%s520_s0 + $0x30] sm:$0xff]  }
   0x3   :  { %v390_v2 = vld [vmem:[%s520_s0 + $0x20] sm:$0xff]   ;;  %369 = vmatpush3.bf16.msra.mxu0 %v388_v0  ;;  %387 = vmatpush3.bf16.msra.mxu1 %v388_v0  ;;  %v395_v7 = vld [vmem:[%s520_s0 + $0x18] sm:$0xff]  }
   0x4   :  { %370 = vmatprep.mubr.msk.bf16.mxu0 %vm86_vm0, %v389_v1  ;;  %378 = vmatprep.mubr.msk.bf16.mxu1 %vm86_vm0, %v390_v2  ;;  %v396_v8 = vld [vmem:[%s520_s0 + $0x38] sm:$0xff]   ;;  %v309_v9 = vld [vmem:[%s521_s2] ss:$0 sm:$0xff] }
   0x6   :  { %371 = vmatmul.mubr.msk.bf16.vlgmr.msra.gmra.mrb[0].mxu0 %vm86_vm0, %v391_v3  ;;  %379 = vmatmul.mubr.msk.bf16.vlgmr.msra.gmra.mrb[0].mxu1 %vm86_vm0, %v392_v4 }
   0x7   :  { %374 = vmatprep.mubr.msk.bf16.mxu0 %vm86_vm0, %v393_v5  ;;  %382 = vmatprep.mubr.msk.bf16.mxu1 %vm86_vm0, %v394_v6 }
   0xe   :  { %375 = vmatmul.mubr.msk.bf16.gmra.mrb[4].mxu0 %vm86_vm0, %v395_v7  ;;  %383 = vmatmul.mubr.msk.bf16.gmra.mrb[4].mxu1 %vm86_vm0, %v396_v8 }
  0xd9   :  { %v372_v10 = vpop.f32.mrb[0].mxu0  ;;  %v380_v11 = vpop.f32.mrb[0].mxu1 }
  0xda   :  { %v154_v12 = vadd.f32 %v372_v10, %v309_v9  ;;  %v186_v13 = vadd.f32 %v380_v11, %v309_v9  ;;  %v145_v14 = vpop.f32.mrb[1].mxu0  ;;  %v177_v15 = vpop.f32.mrb[1].mxu1 }
  0xdb   :  { %v146_v16 = vadd.f32 %v309_v9, %v145_v14  ;;  %v178_v17 = vadd.f32 %v309_v9, %v177_v15  ;;  %v373_v18 = vpop.f32.mrb[2].mxu0  ;;  %v381_v19 = vpop.f32.mrb[2].mxu1 }
  0xdc   :  { %v210_v20 = vmax.f32 %v154_v12, 0.0  ;;  %v218_v21 = vmax.f32 %v186_v13, 0.0  ;;  %v157_v22 = vadd.f32 %v373_v18, %v309_v9  ;;  %v189_v23 = vadd.f32 %v381_v19, %v309_v9  ;;  %v148_v24 = vpop.f32.mrb[3].mxu0  ;;  %v180_v25 = vpop.f32.mrb[3].mxu1 }
  0xdd   :  { %v208_v26 = vmax.f32 %v146_v16, 0.0  ;;  %v216_v27 = vmax.f32 %v178_v17, 0.0  ;;  %v149_v28 = vadd.f32 %v309_v9, %v148_v24  ;;  %v181_v29 = vadd.f32 %v309_v9, %v180_v25 }
  0xde   :  { %v345_v30 = vpack.c.bf16 %v210_v20, %v210_v20  ;;  %v353_v31 = vpack.c.bf16 %v218_v21, %v218_v21  ;;  %v211_v32 = vmax.f32 %v157_v22, 0.0  ;;  %v219_v33 = vmax.f32 %v189_v23, 0.0 }
  0xdf   :  { %v343_v34 = vpack.c.bf16 %v208_v26, %v208_v26  ;;  %v351_v35 = vpack.c.bf16 %v216_v27, %v216_v27  ;;  %v209_v36 = vmax.f32 %v149_v28, 0.0  ;;  %v217_v37 = vmax.f32 %v181_v29, 0.0 }
  0xe0   :  { %291 = vst.msk [vmem:[%s522_s3 + $0x8] sm:$0xf] %vm288_vm1, %v345_v30  ;;  %299 = vst.msk [vmem:[%s522_s3 + $0x28] sm:$0xf] %vm288_vm1, %v353_v31  ;;  %v346_v38 = vpack.c.bf16 %v211_v32, %v211_v32  ;;  %v354_v39 = vpack.c.bf16 %v219_v33, %v219_v33 }
  0xe1   :  { %289 = vst.msk [vmem:[%s522_s3] sm:$0xf] %vm288_vm1, %v343_v34  ;;  %297 = vst.msk [vmem:[%s522_s3 + $0x20] sm:$0xf] %vm288_vm1, %v351_v35  ;;  %v344_v40 = vpack.c.bf16 %v209_v36, %v209_v36  ;;  %v352_v41 = vpack.c.bf16 %v217_v37, %v217_v37  ;;  %v376_v42 = vpop.f32.mrb[4].mxu0  ;;  %v384_v43 = vpop.f32.mrb[4].mxu1 }
  0xe2   :  { %292 = vst.msk [vmem:[%s522_s3 + $0xc] sm:$0xf] %vm288_vm1, %v346_v38  ;;  %300 = vst.msk [vmem:[%s522_s3 + $0x2c] sm:$0xf] %vm288_vm1, %v354_v39  ;;  %v170_v44 = vadd.f32 %v376_v42, %v309_v9  ;;  %v202_v45 = vadd.f32 %v384_v43, %v309_v9  ;;  %v161_v46 = vpop.f32.mrb[5].mxu0  ;;  %v193_v47 = vpop.f32.mrb[5].mxu1 }
  0xe3   :  { %290 = vst.msk [vmem:[%s522_s3 + $0x4] sm:$0xf] %vm288_vm1, %v344_v40  ;;  %298 = vst.msk [vmem:[%s522_s3 + $0x24] sm:$0xf] %vm288_vm1, %v352_v41  ;;  %v162_v48 = vadd.f32 %v309_v9, %v161_v46  ;;  %v194_v49 = vadd.f32 %v309_v9, %v193_v47  ;;  %v377_v50 = vpop.f32.mrb[6].mxu0  ;;  %v385_v51 = vpop.f32.mrb[6].mxu1 }
  0xe4   :  { %v214_v52 = vmax.f32 %v170_v44, 0.0  ;;  %v222_v53 = vmax.f32 %v202_v45, 0.0  ;;  %v173_v54 = vadd.f32 %v377_v50, %v309_v9  ;;  %v205_v55 = vadd.f32 %v385_v51, %v309_v9  ;;  %v164_v56 = vpop.f32.mrb[7].mxu0  ;;  %v196_v57 = vpop.f32.mrb[7].mxu1 }
  0xe5   :  { %v212_v58 = vmax.f32 %v162_v48, 0.0  ;;  %v220_v59 = vmax.f32 %v194_v49, 0.0  ;;  %v165_v60 = vadd.f32 %v309_v9, %v164_v56  ;;  %v197_v61 = vadd.f32 %v309_v9, %v196_v57 }
  0xe6   :  { %v349_v62 = vpack.c.bf16 %v214_v52, %v214_v52  ;;  %v357_v63 = vpack.c.bf16 %v222_v53, %v222_v53  ;;  %v215_v0 = vmax.f32 %v173_v54, 0.0  ;;  %v223_v1 = vmax.f32 %v205_v55, 0.0 }
  0xe7   :  { %v347_v2 = vpack.c.bf16 %v212_v58, %v212_v58  ;;  %v355_v3 = vpack.c.bf16 %v220_v59, %v220_v59  ;;  %v213_v4 = vmax.f32 %v165_v60, 0.0  ;;  %v221_v5 = vmax.f32 %v197_v61, 0.0 }
  0xe8   :  { %295 = vst.msk [vmem:[%s522_s3 + $0x18] sm:$0xf] %vm288_vm1, %v349_v62  ;;  %303 = vst.msk [vmem:[%s522_s3 + $0x38] sm:$0xf] %vm288_vm1, %v357_v63  ;;  %v350_v6 = vpack.c.bf16 %v215_v0, %v215_v0  ;;  %v358_v7 = vpack.c.bf16 %v223_v1, %v223_v1 }
  0xe9   :  { %293 = vst.msk [vmem:[%s522_s3 + $0x10] sm:$0xf] %vm288_vm1, %v347_v2  ;;  %301 = vst.msk [vmem:[%s522_s3 + $0x30] sm:$0xf] %vm288_vm1, %v355_v3  ;;  %v348_v8 = vpack.c.bf16 %v213_v4, %v213_v4  ;;  %v356_v9 = vpack.c.bf16 %v221_v5, %v221_v5 }
  0xea   :  { %296 = vst.msk [vmem:[%s522_s3 + $0x1c] sm:$0xf] %vm288_vm1, %v350_v6  ;;  %304 = vst.msk [vmem:[%s522_s3 + $0x3c] sm:$0xf] %vm288_vm1, %v358_v7 }
  0xeb   :  { %294 = vst.msk [vmem:[%s522_s3 + $0x14] sm:$0xf] %vm288_vm1, %v348_v8  ;;  %302 = vst.msk [vmem:[%s522_s3 + $0x34] sm:$0xf] %vm288_vm1, %v356_v9 }

// kernel: _lambda_.59
= control target key start
LH: loop header
LB: loop body
LE: loop exit
PB: predicated region body
PF: predicated region fallthrough
CT: control target
= control target key end

     0   :  { %vm94_vm0 = vcmask 261120   ;;  %vm296_vm1 = vcmask 257024   ;;  %s537_s1 = inlined_call_operand.vmem [shape: bf16[32,32], index: 1, kind: input, shape index: {}]   ;;  %s538_s0 = inlined_call_operand.vmem [shape: bf16[128,32], index: 0, kind: input, shape index: {}]   ;;  %s539_s2 = inlined_call_operand.vmem [shape: f32[1,32], index: 2, kind: input, shape index: {}]   ;;  %s540_s3 = inlined_call_operand.vmem [shape: bf16[128,32], index: 3, kind: output, shape index: {}]  }
   0x1   :  { %v402_v0 = vld [vmem:[%s537_s1] sm:$0xff]   ;;  %v403_v1 = vld [vmem:[%s537_s1 + $0x8] sm:$0xff]   ;;  %v408_v6 = vld [vmem:[%s538_s0 + $0x10] sm:$0xff]  }
   0x2   :  { %378 = vmatprep.subr.bf16.mxu0 %v402_v0  ;;  %398 = vmatprep.subr.bf16.mxu1 %v402_v0  ;;  %v404_v2 = vld [vmem:[%s538_s0] sm:$0xff]   ;;  %v406_v4 = vld [vmem:[%s538_s0 + $0x8] sm:$0xff]   ;;  %v409_v7 = vld [vmem:[%s538_s0 + $0x30] sm:$0xff]  }
   0x3   :  { %379 = vmatpush3.bf16.msra.mxu0 %v402_v0  ;;  %400 = vmatpush3.bf16.msra.mxu1 %v402_v0  ;;  %v405_v3 = vld [vmem:[%s538_s0 + $0x20] sm:$0xff]   ;;  %v407_v5 = vld [vmem:[%s538_s0 + $0x28] sm:$0xff]   ;;  %v410_v8 = vld [vmem:[%s538_s0 + $0x18] sm:$0xff]  }
   0x4   :  { %380 = vmatprep.subr.bf16.mxu0 %v403_v1  ;;  %399 = vmatprep.subr.bf16.mxu1 %v403_v1  ;;  %v411_v9 = vld [vmem:[%s538_s0 + $0x38] sm:$0xff]   ;;  %v317_v10 = vld [vmem:[%s539_s2] ss:$0 sm:$0xff] }
   0x5   :  { %382 = vmatprep.mubr.msk.bf16.mxu0 %vm94_vm0, %v404_v2  ;;  %390 = vmatprep.mubr.msk.bf16.mxu1 %vm94_vm0, %v405_v3 }
   0x7   :  { %381 = vmatpush3.bf16.msra.mxu0 %v403_v1  ;;  %401 = vmatpush3.bf16.msra.mxu1 %v403_v1 }
   0xa   :  { %383 = vmatmul.mubr.msk.bf16.vlgmr.msra.gmra.mrb[0].mxu0 %vm94_vm0, %v406_v4  ;;  %391 = vmatmul.mubr.msk.bf16.vlgmr.msra.gmra.mrb[0].mxu1 %vm94_vm0, %v407_v5 }
   0xb   :  { %386 = vmatprep.mubr.msk.bf16.mxu0 %vm94_vm0, %v408_v6  ;;  %394 = vmatprep.mubr.msk.bf16.mxu1 %vm94_vm0, %v409_v7 }
  0x12   :  { %387 = vmatmul.mubr.msk.bf16.gmra.mrb[4].mxu0 %vm94_vm0, %v410_v8  ;;  %395 = vmatmul.mubr.msk.bf16.gmra.mrb[4].mxu1 %vm94_vm0, %v411_v9 }
  0xdd   :  { %v384_v11 = vpop.f32.mrb[0].mxu0  ;;  %v392_v12 = vpop.f32.mrb[0].mxu1 }
  0xde   :  { %v162_v13 = vadd.f32 %v384_v11, %v317_v10  ;;  %v194_v14 = vadd.f32 %v392_v12, %v317_v10  ;;  %v153_v15 = vpop.f32.mrb[1].mxu0  ;;  %v185_v16 = vpop.f32.mrb[1].mxu1 }
  0xdf   :  { %v154_v17 = vadd.f32 %v317_v10, %v153_v15  ;;  %v186_v18 = vadd.f32 %v317_v10, %v185_v16  ;;  %v385_v19 = vpop.f32.mrb[2].mxu0  ;;  %v393_v20 = vpop.f32.mrb[2].mxu1 }
  0xe0   :  { %v218_v21 = vmax.f32 %v162_v13, 0.0  ;;  %v226_v22 = vmax.f32 %v194_v14, 0.0  ;;  %v165_v23 = vadd.f32 %v385_v19, %v317_v10  ;;  %v197_v24 = vadd.f32 %v393_v20, %v317_v10  ;;  %v156_v25 = vpop.f32.mrb[3].mxu0  ;;  %v188_v26 = vpop.f32.mrb[3].mxu1 }
  0xe1   :  { %v216_v27 = vmax.f32 %v154_v17, 0.0  ;;  %v224_v28 = vmax.f32 %v186_v18, 0.0  ;;  %v157_v29 = vadd.f32 %v317_v10, %v156_v25  ;;  %v189_v30 = vadd.f32 %v317_v10, %v188_v26 }
  0xe2   :  { %v354_v31 = vpack.c.bf16 %v218_v21, %v218_v21  ;;  %v362_v32 = vpack.c.bf16 %v226_v22, %v226_v22  ;;  %v219_v33 = vmax.f32 %v165_v23, 0.0  ;;  %v227_v34 = vmax.f32 %v197_v24, 0.0 }
  0xe3   :  { %v352_v35 = vpack.c.bf16 %v216_v27, %v216_v27  ;;  %v360_v36 = vpack.c.bf16 %v224_v28, %v224_v28  ;;  %v217_v37 = vmax.f32 %v157_v29, 0.0  ;;  %v225_v38 = vmax.f32 %v189_v30, 0.0 }
  0xe4   :  { %299 = vst.msk [vmem:[%s540_s3 + $0x8] sm:$0xf] %vm296_vm1, %v354_v31  ;;  %307 = vst.msk [vmem:[%s540_s3 + $0x28] sm:$0xf] %vm296_vm1, %v362_v32  ;;  %v355_v39 = vpack.c.bf16 %v219_v33, %v219_v33  ;;  %v363_v40 = vpack.c.bf16 %v227_v34, %v227_v34 }
  0xe5   :  { %297 = vst.msk [vmem:[%s540_s3] sm:$0xf] %vm296_vm1, %v352_v35  ;;  %305 = vst.msk [vmem:[%s540_s3 + $0x20] sm:$0xf] %vm296_vm1, %v360_v36  ;;  %v353_v41 = vpack.c.bf16 %v217_v37, %v217_v37  ;;  %v361_v42 = vpack.c.bf16 %v225_v38, %v225_v38  ;;  %v388_v43 = vpop.f32.mrb[4].mxu0  ;;  %v396_v44 = vpop.f32.mrb[4].mxu1 }
  0xe6   :  { %300 = vst.msk [vmem:[%s540_s3 + $0xc] sm:$0xf] %vm296_vm1, %v355_v39  ;;  %308 = vst.msk [vmem:[%s540_s3 + $0x2c] sm:$0xf] %vm296_vm1, %v363_v40  ;;  %v178_v45 = vadd.f32 %v388_v43, %v317_v10  ;;  %v210_v46 = vadd.f32 %v396_v44, %v317_v10  ;;  %v169_v47 = vpop.f32.mrb[5].mxu0  ;;  %v201_v48 = vpop.f32.mrb[5].mxu1 }
  0xe7   :  { %298 = vst.msk [vmem:[%s540_s3 + $0x4] sm:$0xf] %vm296_vm1, %v353_v41  ;;  %306 = vst.msk [vmem:[%s540_s3 + $0x24] sm:$0xf] %vm296_vm1, %v361_v42  ;;  %v170_v49 = vadd.f32 %v317_v10, %v169_v47  ;;  %v202_v50 = vadd.f32 %v317_v10, %v201_v48  ;;  %v389_v51 = vpop.f32.mrb[6].mxu0  ;;  %v397_v52 = vpop.f32.mrb[6].mxu1 }
  0xe8   :  { %v222_v53 = vmax.f32 %v178_v45, 0.0  ;;  %v230_v54 = vmax.f32 %v210_v46, 0.0  ;;  %v181_v55 = vadd.f32 %v389_v51, %v317_v10  ;;  %v213_v56 = vadd.f32 %v397_v52, %v317_v10  ;;  %v172_v57 = vpop.f32.mrb[7].mxu0  ;;  %v204_v58 = vpop.f32.mrb[7].mxu1 }
  0xe9   :  { %v220_v59 = vmax.f32 %v170_v49, 0.0  ;;  %v228_v60 = vmax.f32 %v202_v50, 0.0  ;;  %v173_v61 = vadd.f32 %v317_v10, %v172_v57  ;;  %v205_v62 = vadd.f32 %v317_v10, %v204_v58 }
  0xea   :  { %v358_v63 = vpack.c.bf16 %v222_v53, %v222_v53  ;;  %v366_v0 = vpack.c.bf16 %v230_v54, %v230_v54  ;;  %v223_v1 = vmax.f32 %v181_v55, 0.0  ;;  %v231_v2 = vmax.f32 %v213_v56, 0.0 }
  0xeb   :  { %v356_v3 = vpack.c.bf16 %v220_v59, %v220_v59  ;;  %v364_v4 = vpack.c.bf16 %v228_v60, %v228_v60  ;;  %v221_v5 = vmax.f32 %v173_v61, 0.0  ;;  %v229_v6 = vmax.f32 %v205_v62, 0.0 }
  0xec   :  { %303 = vst.msk [vmem:[%s540_s3 + $0x18] sm:$0xf] %vm296_vm1, %v358_v63  ;;  %311 = vst.msk [vmem:[%s540_s3 + $0x38] sm:$0xf] %vm296_vm1, %v366_v0  ;;  %v359_v7 = vpack.c.bf16 %v223_v1, %v223_v1  ;;  %v367_v8 = vpack.c.bf16 %v231_v2, %v231_v2 }
  0xed   :  { %301 = vst.msk [vmem:[%s540_s3 + $0x10] sm:$0xf] %vm296_vm1, %v356_v3  ;;  %309 = vst.msk [vmem:[%s540_s3 + $0x30] sm:$0xf] %vm296_vm1, %v364_v4  ;;  %v357_v9 = vpack.c.bf16 %v221_v5, %v221_v5  ;;  %v365_v10 = vpack.c.bf16 %v229_v6, %v229_v6 }
  0xee   :  { %304 = vst.msk [vmem:[%s540_s3 + $0x1c] sm:$0xf] %vm296_vm1, %v359_v7  ;;  %312 = vst.msk [vmem:[%s540_s3 + $0x3c] sm:$0xf] %vm296_vm1, %v367_v8 }
  0xef   :  { %302 = vst.msk [vmem:[%s540_s3 + $0x14] sm:$0xf] %vm296_vm1, %v357_v9  ;;  %310 = vst.msk [vmem:[%s540_s3 + $0x34] sm:$0xf] %vm296_vm1, %v365_v10 }

// kernel: _lambda_.53
= control target key start
LH: loop header
LB: loop body
LE: loop exit
PB: predicated region body
PF: predicated region fallthrough
CT: control target
= control target key end

     0   :  { %s1938_s15 = smov 0   ;;  %s1940_s16 = smov 0   ;;  %s2289_s0 = inlined_call_operand.vmem [shape: bf16[2,10,10,16], index: 0, kind: input, shape index: {}]   ;;  %s2290_s1 = inlined_call_operand.vmem [shape: bf16[3,3,16,16], index: 1, kind: input, shape index: {}]   ;;  %s2291_s2 = inlined_call_operand.vmem [shape: f32[1,16], index: 2, kind: input, shape index: {}]   ;;  %s2292_s3 = inlined_call_operand.vmem [shape: bf16[2,8,8,16], index: 3, kind: input, shape index: {}, may-alias: {3,4}]   ;;  %s2293_s4 = inlined_call_operand.vmem [shape: bf16[2,8,8,16], index: 4, kind: output, shape index: {}, may-alias: {3,4}]  }
   0x1   :  { %s1942_s17 = smov 0  }
   0x2 LB: > { %s26_s18 = sadd.s32 1, %s1907_s16  ;;  %p1517_p0 = scmp.ge.s32.totalorder %s1911_s17, 1  ;;  %s1911_s17 = sphi %s1942_s17, %s14_s17   ;;  %s1907_s16 = sphi %s1940_s16, %s2299_s16   ;;  %s1903_s15 = sphi %s1938_s15, %s2298_s15  }
   0x3   : > { %p28_p1 = scmp.ge.s32.totalorder %s26_s18, 2  ;;  %p193_p2 = scmp.lt.s32.totalorder %s1911_s17, 3 }
   0x5   : > { %s2301_s18 = smov (%p28_p1, %s26_s18), 0  ;;  %p194_p3 = pnand %p1517_p0, %p193_p2 }
   0x6   : > { %v1871_v0 = vld [vmem:[%s2290_s1 + $0x8] sm:$0xff] (!%p194_p3)   ;;  %p232_p4 = scmp.lt.s32.totalorder (!%p194_p3), %s1903_s15, 1  ;;  %v1962_v1 = vld [vmem:[%s2290_s1 + $0x20] sm:$0xff] (!%p194_p3)   ;;  %vm284_vm0 = vsmask.f32 (!%p194_p3), 3328  ;;  %vm420_vm2 = vcmask (!%p194_p3), 130048  }
   0x7   : > { %197 = sbr.rel (%p194_p3) target bundleno = 332 (0x14c), region = 36  ;;  %1690 = vmatprep.subr.bf16.mxu1 (!%p194_p3), %v1871_v0  ;;  %v1969_v2 = vld [vmem:[%s2290_s1] sm:$0xff] (!%p194_p3)   ;;  %1730 = vmatprep.subr.bf16.mxu0 (!%p194_p3), %v1962_v1  ;;  %v1978_v3 = vld [vmem:[%s2290_s1 + $0x28] sm:$0xff] (!%p194_p3)   ;;  %vm285_vm1 = vsmask.f32 (!%p194_p3), 7440  ;;  %vm609_vm4 = vcmask (!%p194_p3), 1042432  }
   0x8   : > { %1691 = vmatpush3.bf16.msra.mxu1 (!%p194_p3), %v1871_v0  ;;  %1731 = vmatpush3.bf16.msra.mxu0 (!%p194_p3), %v1962_v1  ;;  %vm2021_vm3 = vmor (!%p194_p3), %vm284_vm0, %vm285_vm1  ;;  %vm610_vm5 = vcmask (!%p194_p3), 1046532   ;;  %vm1403_vm7 = vcmask (!%p194_p3), 125952  }
   0x9   : > { %1700 = vmatprep.subr.bf16.mxu1 (!%p194_p3), %v1969_v2  ;;  %1740 = vmatprep.subr.bf16.mxu0 (!%p194_p3), %v1978_v3  ;;  %vm2092_vm6 = vmor (!%p194_p3), %vm609_vm4, %vm610_vm5 }
   0xe   : > { %s2303_s15 = smov (!%p232_p4, %s1903_s15), 1 }
   0xf   : > { %s1846_s25 = smul.u32 80, %s2303_s15  ;;  %s1624_s19 = sshll.u32 %s2303_s15, 5 }
  0x10   : > { %s245_s22 = scalar_lea.vmem %s2292_s3, %s1624_s19  ;;  %s2262_s26 = scalar_lea.vmem %s2293_s4, %s1624_s19 }
  0x11   : > { %s1983_s30 = scalar_lea.vmem %s2289_s0, %s1846_s25 }
  0x12   : > { %v1987_v4 = vld [vmem:[%s1983_s30] sm:$0xf]  ;;  %v1990_v5 = vld [vmem:[%s1983_s30 + $0x4] sm:$0x1]  ;;  %v1993_v6 = vld [vmem:[%s1983_s30 + $0x8] sm:$0xf] }
  0x13   : > { %v1996_v7 = vld [vmem:[%s1983_s30 + $0xc] sm:$0x1]  ;;  %v288_v8 = vshrl.u32 %v1987_v4, 16  ;;  %v291_v9 = vshll.u32 %v1987_v4, 16  ;;  %v297_v10 = vshll.u32 %v1990_v5, 16  ;;  %v302_v11 = vshrl.u32 %v1993_v6, 16 }
  0x14   : > { %v305_v12 = vshll.u32 %v1993_v6, 16  ;;  %v311_v13 = vshll.u32 %v1996_v7, 16  ;;  %v2005_v14 = vld [vmem:[%s1983_s30 + $0x10] sm:$0xf]  ;;  %v618_v18 = vrot.slane %v1996_v7, 5  ;;  %v1534_v7 = vcombine.low %v1987_v4, %v1993_v6 }
  0x15   : > { %v290_v15 = vrot.slane %v288_v8, 4  ;;  %v293_v16 = vrot.slane %v291_v9, 5  ;;  %v304_v17 = vrot.slane %v302_v11, 4  ;;  %v2009_v19 = vld [vmem:[%s1983_s30 + $0x14] sm:$0x1]  ;;  %v299_v20 = vrot.slane %v297_v10, 5 }
  0x16   : > { %v307_v21 = vrot.slane %v305_v12, 5  ;;  %v2012_v22 = vld [vmem:[%s1983_s30 + $0x18] sm:$0xf]  ;;  %v2015_v23 = vld [vmem:[%s1983_s30 + $0x1c] sm:$0x1]  ;;  %v313_v25 = vrot.slane %v311_v13, 5 }
  0x17   : > { %v294_v24 = vor.u32 %v293_v16, %v290_v15  ;;  %v316_v26 = vshrl.u32 %v2005_v14, 16  ;;  %v319_v27 = vshll.u32 %v2005_v14, 16  ;;  %v2026_v30 = vld [vmem:[%s1983_s30 + $0x20] sm:$0xf]  ;;  %v325_v31 = vshll.u32 %v2009_v19, 16 }
  0x18   : > { %v308_v29 = vor.u32 %v307_v21, %v304_v17  ;;  %v330_v32 = vshrl.u32 %v2012_v22, 16  ;;  %v333_v33 = vshll.u32 %v2012_v22, 16  ;;  %v2032_v35 = vld [vmem:[%s1983_s30 + $0x24] sm:$0x1]  ;;  %v339_v38 = vshll.u32 %v2015_v23, 16 }
  0x19   : > { %v295_v34 = vrot.slane %v294_v24, 4  ;;  %v318_v36 = vrot.slane %v316_v26, 4  ;;  %v321_v37 = vrot.slane %v319_v27, 5  ;;  %v327_v40 = vrot.slane %v325_v31, 5  ;;  %v2039_v47 = vld [vmem:[%s1983_s30 + $0x28] sm:$0xf] }
  0x1a   : > { %v309_v39 = vrot.slane %v308_v29, 4  ;;  %v332_v41 = vrot.slane %v330_v32, 4  ;;  %v335_v42 = vrot.slane %v333_v33, 5  ;;  %v341_v45 = vrot.slane %v339_v38, 5  ;;  %v2046_v52 = vld [vmem:[%s1983_s30 + $0x2c] sm:$0x1] }
  0x1b   : > { %v300_v43 = vsel %vm2021_vm3, %v295_v34, %v299_v20  ;;  %v322_v44 = vor.u32 %v321_v37, %v318_v36  ;;  %v344_v46 = vshrl.u32 %v2026_v30, 16  ;;  %v347_v50 = vshll.u32 %v2026_v30, 16  ;;  %v2049_v53 = vld [vmem:[%s1983_s30 + $0x30] sm:$0xf]  ;;  %v2053_v58 = vld [vmem:[%s1983_s30 + $0x34] sm:$0x1] }
  0x1c   : > { %v314_v48 = vsel %vm2021_vm3, %v309_v39, %v313_v25  ;;  %v336_v49 = vor.u32 %v335_v42, %v332_v41  ;;  %v353_v51 = vshll.u32 %v2032_v35, 16  ;;  %v622_v57 = vrot.slane %v2009_v19, 5  ;;  %v2057_v63 = vld [vmem:[%s1983_s30 + $0x38] sm:$0xf]  ;;  %v2071_v20 = vld [vmem:[%s1983_s30 + $0x3c] sm:$0x1] }
  0x1d   : > { %v1525_v54 = vcombine.low %v300_v43, %v314_v48  ;;  %v323_v55 = vrot.slane %v322_v44, 4  ;;  %v346_v56 = vrot.slane %v344_v46, 4  ;;  %v349_v60 = vrot.slane %v347_v50, 5  ;;  %v2077_v24 = vld [vmem:[%s2290_s1 + $0x10] sm:$0xff]  }
  0x1e   : > { %v337_v59 = vrot.slane %v336_v49, 4  ;;  %v355_v61 = vrot.slane %v353_v51, 5  ;;  %v626_v62 = vrot.slane %v2015_v23, 5  ;;  %v630_v8 = vrot.slane %v2032_v35, 5 }
  0x1f   : > { %1692 = vmatprep.mubr.msk.bf16.mxu1 %vm420_vm2, %v1525_v54  ;;  %v328_v0 = vsel %vm2021_vm3, %v323_v55, %v327_v40  ;;  %v358_v9 = vshrl.u32 %v2039_v47, 16  ;;  %v361_v10 = vshll.u32 %v2039_v47, 16  ;;  %v350_v12 = vor.u32 %v349_v60, %v346_v56 }
  0x20   : > { %v342_v11 = vsel %vm2021_vm3, %v337_v59, %v341_v45  ;;  %v1575_v13 = vcombine.low %v314_v48, %v328_v0  ;;  %v367_v15 = vshll.u32 %v2046_v52, 16  ;;  %v372_v21 = vshrl.u32 %v2049_v53, 16  ;;  %v1875_v45 = vld [vmem:[%s2290_s1 + $0x30] sm:$0xff]  }
  0x21   : > { %v2068_v16 = vcombine.low %v328_v0, %v342_v11  ;;  %v360_v17 = vrot.slane %v358_v9, 4  ;;  %v363_v19 = vrot.slane %v361_v10, 5  ;;  %v351_v25 = vrot.slane %v350_v12, 4 }
  0x22   : > { %1732 = vmatprep.mubr.msk.bf16.mxu0 %vm420_vm2, %v1575_v13  ;;  %v369_v26 = vrot.slane %v367_v15, 5  ;;  %v375_v27 = vshll.u32 %v2049_v53, 16  ;;  %v381_v29 = vshll.u32 %v2053_v58, 16  ;;  %v374_v32 = vrot.slane %v372_v21, 4  ;;  %v2156_v21 = vld [vmem:[%s1983_s30 + $0x44] sm:$0x1] }
  0x23   : > { %1693 = vmatmul.mubr.msk.bf16.vlgmr.msra.gmra.mrb[0].mxu1 %vm420_vm2, %v2068_v16  ;;  %v364_v31 = vor.u32 %v363_v19, %v360_v17  ;;  %v386_v33 = vshrl.u32 %v2057_v63, 16  ;;  %v389_v34 = vshll.u32 %v2057_v63, 16  ;;  %v356_v36 = vsel %vm2021_vm3, %v351_v25, %v355_v61  ;;  %v2153_v19 = vld [vmem:[%s1983_s30 + $0x40] sm:$0xf] }
  0x24   : > { %1701 = vmatpush3.bf16.msra.mxu1 %v1969_v2  ;;  %v377_v37 = vrot.slane %v375_v27, 5  ;;  %v383_v38 = vrot.slane %v381_v29, 5  ;;  %v395_v39 = vshll.u32 %v2071_v20, 16  ;;  %v1576_v40 = vcombine.low %v342_v11, %v356_v36  ;;  %v1881_v27 = vld [vmem:[%s2290_s1 + $0x38] sm:$0xff]  }
  0x25   : > { %v365_v41 = vrot.slane %v364_v31, 4  ;;  %v388_v42 = vrot.slane %v386_v33, 4  ;;  %v391_v43 = vrot.slane %v389_v34, 5  ;;  %1710 = vmatprep.subr.bf16.mxu1 %v2077_v24  ;;  %v1544_v48 = vrot.slane %v1993_v6, 9 }
  0x26   : > { %v378_v2 = vor.u32 %v377_v37, %v374_v32  ;;  %v397_v46 = vrot.slane %v395_v39, 5  ;;  %v1545_v49 = vrot.slane %v2005_v14, 9  ;;  %1733 = vmatmul.mubr.msk.bf16.vlgmr.msra.gmra.mrb[0].mxu0 %vm420_vm2, %v1576_v40  ;;  %v1546_v54 = vrot.slane %v2012_v22, 9  ;;  %v281_v37 = vld [vmem:[%s1983_s30 + $0x4c] sm:$0x1] }
  0x27   : > { %v2105_v50 = vsel %vm2021_vm3, %v365_v41, %v369_v26  ;;  %v392_v51 = vor.u32 %v391_v43, %v388_v42  ;;  %v1547_v55 = vrot.slane %v2026_v30, 9  ;;  %1741 = vmatpush3.bf16.msra.mxu0 %v1978_v3  ;;  %v619_v60 = vsel %vm2092_vm6, %v1544_v48, %v618_v18 }
  0x28   : > { %v2111_v56 = vcombine.low %v356_v36, %v2105_v50  ;;  %v379_v59 = vrot.slane %v378_v2, 4  ;;  %v623_v61 = vsel %vm2092_vm6, %v1545_v49, %v622_v57  ;;  %1750 = vmatprep.subr.bf16.mxu0 %v1875_v45  ;;  %v1548_v18 = vrot.slane %v2039_v47, 9  ;;  %v280_v36 = vld [vmem:[%s1983_s30 + $0x48] sm:$0xf] }
  0x29   : > { %v393_v0 = vrot.slane %v392_v51, 4  ;;  %v1587_v9 = vcombine.low %v619_v60, %v623_v61  ;;  %v634_v10 = vrot.slane %v2046_v52, 5  ;;  %v1549_v11 = vrot.slane %v2049_v53, 9 }
  0x2a   : > { %1696 = vmatprep.mubr.msk.bf16.mxu1 %vm420_vm2, %v2111_v56  ;;  %v2123_v3 = vsel %vm2021_vm3, %v379_v59, %v383_v38  ;;  %v638_v12 = vrot.slane %v2053_v58, 5  ;;  %v627_v15 = vsel %vm2092_vm6, %v1546_v54, %v626_v62  ;;  %v631_v17 = vsel %vm2092_vm6, %v1547_v55, %v630_v8 }
  0x2b   : > { %v2130_v57 = vsel %vm2021_vm3, %v393_v0, %v397_v46  ;;  %1742 = vmatprep.mubr.msk.bf16.mxu0 %vm420_vm2, %v1587_v9  ;;  %v635_v52 = vsel %vm2092_vm6, %v1548_v18, %v634_v10  ;;  %v1588_v23 = vcombine.low %v627_v15, %v631_v17  ;;  %v1550_v35 = vrot.slane %v2057_v63, 9 }
  0x2c   : > { %v2138_v13 = vcombine.low %v2123_v3, %v2130_v57  ;;  %v639_v58 = vsel %vm2092_vm6, %v1549_v11, %v638_v12  ;;  %v642_v8 = vrot.slane %v2071_v20, 5  ;;  %v1584_v25 = vrot.slane %v2153_v19, 9 }
  0x2d   : > { %v1589_v62 = vcombine.low %v635_v52, %v639_v58  ;;  %v966_v26 = vrot.slane %v2156_v21, 5  ;;  %v1535_v29 = vcombine.low %v2005_v14, %v2012_v22  ;;  %v614_v31 = vrot.slane %v1990_v5, 5  ;;  %v1882_v5 = vld [vmem:[%s2290_s1 + $0x18] sm:$0xff]  }
  0x2e   : > { %1697 = vmatmul.mubr.msk.bf16.gmra.mrb[4].mxu1 %vm420_vm2, %v2138_v13  ;;  %v1536_v32 = vcombine.low %v2026_v30, %v2039_v47  ;;  %v643_v20 = vsel %vm2092_vm6, %v1550_v35, %v642_v8  ;;  %v1543_v34 = vrot.slane %v1987_v4, 9  ;;  %v1612_v38 = vrot.slane %v280_v36, 9 }
  0x2f   : > { %1702 = vmatprep.mubr.msk.bf16.mxu1 %vm420_vm2, %v1534_v7  ;;  %v2179_v33 = vsel %vm2092_vm6, %v1584_v25, %v966_v26  ;;  %v1259_v39 = vrot.slane %v281_v37, 5  ;;  %v1537_v42 = vcombine.low %v2049_v53, %v2057_v63  ;;  %v1555_v44 = vcombine.low %v631_v17, %v635_v52 }
  0x30   : > { %v1590_v40 = vcombine.low %v643_v20, %v2179_v33  ;;  %v615_v41 = vsel %vm2092_vm6, %v1543_v34, %v614_v31  ;;  %v1156_v2 = vshrl.u32 %v280_v36, 16  ;;  %v1159_v46 = vshll.u32 %v280_v36, 16 }
  0x31   : > { %v2193_v4 = vsel %vm2092_vm6, %v1612_v38, %v1259_v39  ;;  %v1553_v43 = vcombine.low %v615_v41, %v619_v60  ;;  %v851_v48 = vshrl.u32 %v2153_v19, 16  ;;  %v854_v49 = vshll.u32 %v2153_v19, 16  ;;  %v1643_v38 = vld [vmem:[%s245_s22 + $0x10] sm:$0xff]  }
  0x32   : > { %1743 = vmatmul.mubr.msk.bf16.vlgmr.msra.gmra.mrb[0].mxu0 %vm420_vm2, %v1588_v23  ;;  %v1598_v51 = vcombine.low %v2153_v19, %v280_v36  ;;  %v1158_v59 = vrot.slane %v1156_v2, 4  ;;  %v1161_v60 = vrot.slane %v1159_v46, 5  ;;  %v1564_v0 = vcombine.low %v1993_v6, %v2005_v14 }
  0x33   : > { %1751 = vmatpush3.bf16.msra.mxu0 %v1875_v45  ;;  %1746 = vmatprep.mubr.msk.bf16.mxu0 %vm420_vm2, %v1589_v62  ;;  %v1554_v45 = vcombine.low %v623_v61, %v627_v15  ;;  %v853_v54 = vrot.slane %v851_v48, 4  ;;  %v856_v55 = vrot.slane %v854_v49, 5  ;;  %v1556_v61 = vcombine.low %v639_v58, %v643_v20 }
  0x34   : > { %1760 = vmatprep.subr.bf16.mxu0 %v1881_v27  ;;  %v860_v7 = vshll.u32 %v2156_v21, 16  ;;  %v1162_v18 = vor.u32 %v1161_v60, %v1158_v59  ;;  %v1165_v10 = vshll.u32 %v281_v37, 16  ;;  %v1565_v52 = vcombine.low %v2012_v22, %v2026_v30 }
  0x35   : > { %v857_v9 = vor.u32 %v856_v55, %v853_v54  ;;  %v1566_v6 = vcombine.low %v2039_v47, %v2049_v53  ;;  %v1567_v30 = vcombine.low %v2057_v63, %v2153_v19  ;;  %v1577_v47 = vcombine.low %v2105_v50, %v2123_v3  ;;  %v1642_v3 = vld [vmem:[%s245_s22 + $0x8] sm:$0xff]  }
  0x36   : > { %1703 = vmatmul.mubr.msk.bf16.vlgmr.msra.gmra.mrb[0].mxu1 %vm420_vm2, %v1535_v29  ;;  %v862_v12 = vrot.slane %v860_v7, 5  ;;  %v1163_v15 = vrot.slane %v1162_v18, 4  ;;  %v1167_v17 = vrot.slane %v1165_v10, 5  ;;  %v1615_v28 = vcombine.low %v2179_v33, %v2193_v4 }
  0x37   : > { %1711 = vmatpush3.bf16.msra.mxu1 %v2077_v24  ;;  %1706 = vmatprep.mubr.msk.bf16.mxu1 %vm420_vm2, %v1536_v32  ;;  %v1884_v24 = vld [vmem:[%s2290_s1 + $0x40] sm:$0xff]   ;;  %v858_v11 = vrot.slane %v857_v9, 4  ;;  %v1632_v21 = vunpack.c.l.bf16 %v1642_v3  ;;  %v1636_v59 = vunpack.c.l.bf16 %v1643_v38 }
  0x38   : > { %1720 = vmatprep.subr.bf16.mxu1 %v1882_v5 }
  0x39   : > { %v863_v14 = vsel %vm2021_vm3, %v858_v11, %v862_v12 }
  0x3a   : > { %1747 = vmatmul.mubr.msk.bf16.gmra.mrb[4].mxu0 %vm420_vm2, %v1590_v40 }
  0x3b   : > { %1752 = vmatprep.mubr.msk.bf16.mxu0 %vm420_vm2, %v1535_v29 }
  0x3e   : > { %1707 = vmatmul.mubr.msk.bf16.gmra.mrb[4].mxu1 %vm420_vm2, %v1537_v42 }
  0x3f   : > { %1712 = vmatprep.mubr.msk.bf16.mxu1 %vm420_vm2, %v1553_v43 }
  0x42   : > { %1753 = vmatmul.mubr.msk.bf16.vlgmr.msra.gmra.mrb[0].mxu0 %vm420_vm2, %v1536_v32 }
  0x43   : > { %1761 = vmatpush3.bf16.msra.mxu0 %v1881_v27  ;;  %1756 = vmatprep.mubr.msk.bf16.mxu0 %vm420_vm2, %v1537_v42  ;;  %v1633_v27 = vunpack.c.h.bf16 %v1642_v3 }
  0x44   : > { %1770 = vmatprep.subr.bf16.mxu0 %v1884_v24 }
  0x46   : > { %1713 = vmatmul.mubr.msk.bf16.vlgmr.msra.gmra.mrb[0].mxu1 %vm420_vm2, %v1554_v45 }
  0x47   : > { %1721 = vmatpush3.bf16.msra.mxu1 %v1882_v5  ;;  %1716 = vmatprep.mubr.msk.bf16.mxu1 %vm420_vm2, %v1555_v44  ;;  %v1644_v5 = vld [vmem:[%s245_s22 + $0x18] sm:$0xff]  }
  0x48   : > { %1780 = vmatprep.subr.bf16.mxu1 %v1962_v1  ;;  %v1640_v46 = vunpack.c.l.bf16 %v1644_v5  ;;  %v1641_v18 = vunpack.c.h.bf16 %v1644_v5 }
  0x4a   : > { %1757 = vmatmul.mubr.msk.bf16.gmra.mrb[4].mxu0 %vm420_vm2, %v1598_v51 }
  0x4b   : > { %1762 = vmatprep.mubr.msk.bf16.mxu0 %vm420_vm2, %v2068_v16  ;;  %v1168_v16 = vsel %vm2021_vm3, %v1163_v15, %v1167_v17  ;;  %v1637_v17 = vunpack.c.h.bf16 %v1643_v38 }
  0x4c   : > { %v1606_v22 = vcombine.low %v863_v14, %v1168_v16 }
  0x4e   : > { %1717 = vmatmul.mubr.msk.bf16.gmra.mrb[4].mxu1 %vm420_vm2, %v1556_v61 }
  0x4f   : > { %1722 = vmatprep.mubr.msk.bf16.mxu1 %vm420_vm2, %v1564_v0 }
  0x52   : > { %1763 = vmatmul.mubr.msk.bf16.vlgmr.msra.gmra.mrb[0].mxu0 %vm420_vm2, %v2111_v56 }
  0x53   : > { %1771 = vmatpush3.bf16.msra.mxu0 %v1884_v24  ;;  %1766 = vmatprep.mubr.msk.bf16.mxu0 %vm420_vm2, %v2138_v13  ;;  %v1627_v13 = vld [vmem:[%s245_s22] sm:$0xff]  }
  0x54   : > { %v1628_v62 = vunpack.c.l.bf16 %v1627_v13  ;;  %v1629_v20 = vunpack.c.h.bf16 %v1627_v13 }
  0x56   : > { %1723 = vmatmul.mubr.msk.bf16.vlgmr.msra.gmra.mrb[0].mxu1 %vm420_vm2, %v1565_v52 }
  0x57   : > { %1781 = vmatpush3.bf16.msra.mxu1 %v1962_v1  ;;  %1726 = vmatprep.mubr.msk.bf16.mxu1 %vm420_vm2, %v1566_v6  ;;  %v1578_v1 = vcombine.low %v2130_v57, %v863_v14  ;;  %v1621_v57 = vld [vmem:[%s2291_s2] ss:$0 sm:$0xff] }
  0x5a   : > { %1767 = vmatmul.mubr.msk.bf16.gmra.mrb[4].mxu0 %vm420_vm2, %v1606_v22 }
  0x5b   : > { %1772 = vmatprep.mubr.msk.bf16.mxu0 %vm420_vm2, %v1554_v45 }
  0x5e   : > { %1727 = vmatmul.mubr.msk.bf16.gmra.mrb[4].mxu1 %vm420_vm2, %v1567_v30 }
  0x5f   : > { %1736 = vmatprep.mubr.msk.bf16.mxu1 %vm420_vm2, %v1577_v47 }
  0x62   : > { %1773 = vmatmul.mubr.msk.bf16.vlgmr.msra.gmra.mrb[0].mxu0 %vm420_vm2, %v1555_v44 }
  0x63   : > { %1776 = vmatprep.mubr.msk.bf16.mxu0 %vm420_vm2, %v1556_v61 }
  0x6a   : > { %1737 = vmatmul.mubr.msk.bf16.vlgmr.msra.gmra.mrb[4].mxu1 %vm420_vm2, %v1578_v1  ;;  %1777 = vmatmul.mubr.msk.bf16.gmra.mrb[4].mxu0 %vm420_vm2, %v1615_v28 }
 0x129   : > { %v1724_v53 = vpop.f32.mrb[0].mxu1 }
 0x12a   : > { %v811_v63 = vpop.f32.mrb[1].mxu1 }
 0x12b   : > { %v1725_v50 = vpop.f32.mrb[2].mxu1 }
 0x12c   : > { %v814_v56 = vpop.f32.mrb[3].mxu1 }
 0x135   : > { %v1774_v58 = vpop.f32.mrb[0].mxu0 }
 0x136   : > { %v1782_v19 = vadd.f32 %v1774_v58, %v1724_v53  ;;  %v1309_v23 = vpop.f32.mrb[1].mxu0 }
 0x137   : > { %v1783_v35 = vadd.f32 %v1309_v23, %v811_v63  ;;  %v1775_v8 = vpop.f32.mrb[2].mxu0 }
 0x138   : > { %v1357_v25 = vadd.f32 %v1782_v19, %v1621_v57  ;;  %v1784_v26 = vadd.f32 %v1775_v8, %v1725_v50  ;;  %v1312_v29 = vpop.f32.mrb[3].mxu0 }
 0x139   : > { %v1355_v31 = vadd.f32 %v1783_v35, %v1621_v57  ;;  %v1785_v32 = vadd.f32 %v1312_v29, %v814_v56 }
 0x13a   : > { %v1381_v33 = vadd.f32 %v1632_v21, %v1357_v25  ;;  %v1358_v34 = vadd.f32 %v1784_v26, %v1621_v57 }
 0x13b   : > { %v1379_v36 = vadd.f32 %v1628_v62, %v1355_v31  ;;  %v1356_v37 = vadd.f32 %v1785_v32, %v1621_v57 }
 0x13c   : > { %v1389_v39 = vmax.f32 %v1381_v33, 0.0  ;;  %v1382_v40 = vadd.f32 %v1633_v27, %v1358_v34 }
 0x13d   : > { %v1738_v4 = vpop.f32.mrb[4].mxu1  ;;  %v1387_v41 = vmax.f32 %v1379_v36, 0.0  ;;  %v1380_v42 = vadd.f32 %v1629_v20, %v1356_v37  ;;  %v1778_v43 = vpop.f32.mrb[4].mxu0 }
 0x13e   : > { %v940_v24 = vpop.f32.mrb[5].mxu1  ;;  %v1397_v45 = vpack.c.bf16 %v1389_v39, %v1389_v39  ;;  %v1390_v44 = vmax.f32 %v1382_v40, 0.0  ;;  %v1786_v2 = vadd.f32 %v1778_v43, %v1738_v4  ;;  %v1325_v48 = vpop.f32.mrb[5].mxu0 }
 0x13f   : > { %v1739_v49 = vpop.f32.mrb[6].mxu1  ;;  %v1395_v51 = vpack.c.bf16 %v1387_v41, %v1387_v41  ;;  %v1388_v54 = vmax.f32 %v1380_v42, 0.0  ;;  %v1787_v55 = vadd.f32 %v1325_v48, %v940_v24  ;;  %v1779_v60 = vpop.f32.mrb[6].mxu0 }
 0x140   : > { %v943_v61 = vpop.f32.mrb[7].mxu1  ;;  %1406 = vst.msk [vmem:[%s2262_s26 + $0x8] sm:$0xf] %vm1403_vm7, %v1397_v45  ;;  %v1398_v0 = vpack.c.bf16 %v1390_v44, %v1390_v44  ;;  %v1361_v9 = vadd.f32 %v1786_v2, %v1621_v57  ;;  %v1788_v7 = vadd.f32 %v1779_v60, %v1739_v49  ;;  %v1328_v10 = vpop.f32.mrb[7].mxu0 }
 0x141   : > { %1404 = vst.msk [vmem:[%s2262_s26] sm:$0xf] %vm1403_vm7, %v1395_v51  ;;  %v1396_v11 = vpack.c.bf16 %v1388_v54, %v1388_v54  ;;  %v1359_v12 = vadd.f32 %v1787_v55, %v1621_v57  ;;  %v1789_v15 = vadd.f32 %v1328_v10, %v943_v61 }
 0x142   : > { %1407 = vst.msk [vmem:[%s2262_s26 + $0xc] sm:$0xf] %vm1403_vm7, %v1398_v0  ;;  %v1385_v52 = vadd.f32 %v1640_v46, %v1361_v9  ;;  %v1362_v6 = vadd.f32 %v1788_v7, %v1621_v57 }
 0x143   : > { %1405 = vst.msk [vmem:[%s2262_s26 + $0x4] sm:$0xf] %vm1403_vm7, %v1396_v11  ;;  %v1383_v14 = vadd.f32 %v1636_v59, %v1359_v12  ;;  %v1360_v16 = vadd.f32 %v1789_v15, %v1621_v57 }
 0x144   : > { %v1393_v22 = vmax.f32 %v1385_v52, 0.0  ;;  %v1386_v30 = vadd.f32 %v1641_v18, %v1362_v6 }
 0x145   : > { %v1391_v47 = vmax.f32 %v1383_v14, 0.0  ;;  %v1384_v1 = vadd.f32 %v1637_v17, %v1360_v16 }
 0x146   : > { %v1401_v28 = vpack.c.bf16 %v1393_v22, %v1393_v22  ;;  %v1394_v53 = vmax.f32 %v1386_v30, 0.0 }
 0x147   : > { %v1399_v63 = vpack.c.bf16 %v1391_v47, %v1391_v47  ;;  %v1392_v50 = vmax.f32 %v1384_v1, 0.0 }
 0x148   : > { %1410 = vst.msk [vmem:[%s2262_s26 + $0x18] sm:$0xf] %vm1403_vm7, %v1401_v28  ;;  %v1402_v56 = vpack.c.bf16 %v1394_v53, %v1394_v53 }
 0x149   : > { %1408 = vst.msk [vmem:[%s2262_s26 + $0x10] sm:$0xf] %vm1403_vm7, %v1399_v63  ;;  %v1400_v3 = vpack.c.bf16 %v1392_v50, %v1392_v50 }
 0x14a   : > { %1411 = vst.msk [vmem:[%s2262_s26 + $0x1c] sm:$0xf] %vm1403_vm7, %v1402_v56 }
 0x14b   : > { %1409 = vst.msk [vmem:[%s2262_s26 + $0x14] sm:$0xf] %vm1403_vm7, %v1400_v3 }
 0x14c PF: > { %s14_s17 = sadd.s32 1, %s1911_s17   ;;  %s2298_s15 = smov %s1907_s16 }
 0x14d   : > { %p11_p5 = scmp.ge.s32.totalorder %s14_s17, 4   ;;  %s2299_s16 = smov %s2301_s18 }
 0x14f   :  { %13 = sbr.rel (!%p11_p5) target bundleno = 2 (0x2), region = 78 }

// kernel: _lambda_.58
= control target key start
LH: loop header
LB: loop body
LE: loop exit
PB: predicated region body
PF: predicated region fallthrough
CT: control target
= control target key end

     0   :  { %s1806_s12 = smov 0   ;;  %s1808_s13 = smov 0   ;;  %s2154_s0 = inlined_call_operand.vmem [shape: bf16[2,10,10,16], index: 0, kind: input, shape index: {}]   ;;  %s2155_s1 = inlined_call_operand.vmem [shape: bf16[3,3,16,32], index: 1, kind: input, shape index: {}]   ;;  %s2156_s2 = inlined_call_operand.vmem [shape: f32[1,32], index: 2, kind: input, shape index: {}]   ;;  %s2157_s3 = inlined_call_operand.vmem [shape: bf16[2,8,8,32], index: 3, kind: output, shape index: {}]  }
   0x1   :  { %s1810_s14 = smov 0  }
   0x2 LB: > { %s25_s15 = sadd.s32 1, %s1780_s13  ;;  %p1412_p0 = scmp.ge.s32.totalorder %s1784_s14, 1  ;;  %s1784_s14 = sphi %s1810_s14, %s13_s14   ;;  %s1780_s13 = sphi %s1808_s13, %s2163_s13   ;;  %s1776_s12 = sphi %s1806_s12, %s2162_s12  }
   0x3   : > { %p27_p1 = scmp.ge.s32.totalorder %s25_s15, 2  ;;  %p151_p2 = scmp.lt.s32.totalorder %s1784_s14, 3 }
   0x5   : > { %s2165_s15 = smov (%p27_p1, %s25_s15), 0  ;;  %p152_p3 = pnand %p1412_p0, %p151_p2 }
   0x6   : > { %v1744_v0 = vld [vmem:[%s2155_s1 + $0x8] sm:$0xff] (!%p152_p3)   ;;  %p179_p4 = scmp.lt.s32.totalorder (!%p152_p3), %s1776_s12, 1  ;;  %v1830_v1 = vld [vmem:[%s2155_s1 + $0x20] sm:$0xff] (!%p152_p3)   ;;  %vm221_vm0 = vsmask.f32 (!%p152_p3), 3328  ;;  %vm357_vm2 = vcmask (!%p152_p3), 130048  }
   0x7   : > { %155 = sbr.rel (%p152_p3) target bundleno = 330 (0x14a), region = 32  ;;  %1563 = vmatprep.subr.bf16.mxu1 (!%p152_p3), %v1744_v0  ;;  %v1837_v2 = vld [vmem:[%s2155_s1] sm:$0xff] (!%p152_p3)   ;;  %1603 = vmatprep.subr.bf16.mxu0 (!%p152_p3), %v1830_v1  ;;  %v1846_v3 = vld [vmem:[%s2155_s1 + $0x28] sm:$0xff] (!%p152_p3)   ;;  %vm222_vm1 = vsmask.f32 (!%p152_p3), 7440  ;;  %vm546_vm4 = vcmask (!%p152_p3), 1042432  }
   0x8   : > { %1564 = vmatpush3.bf16.msra.mxu1 (!%p152_p3), %v1744_v0  ;;  %1604 = vmatpush3.bf16.msra.mxu0 (!%p152_p3), %v1830_v1  ;;  %vm1889_vm3 = vmor (!%p152_p3), %vm221_vm0, %vm222_vm1  ;;  %vm547_vm5 = vcmask (!%p152_p3), 1046532   ;;  %vm1316_vm7 = vcmask (!%p152_p3), 257024  }
   0x9   : > { %1573 = vmatprep.subr.bf16.mxu1 (!%p152_p3), %v1837_v2  ;;  %1613 = vmatprep.subr.bf16.mxu0 (!%p152_p3), %v1846_v3  ;;  %vm1960_vm6 = vmor (!%p152_p3), %vm546_vm4, %vm547_vm5 }
   0xe   : > { %s2167_s12 = smov (!%p179_p4, %s1776_s12), 1 }
   0xf   : > { %s1719_s22 = smul.u32 80, %s2167_s12  ;;  %s1517_s17 = sshll.u32 %s2167_s12, 5 }
  0x10   : > { %s2127_s20 = scalar_lea.vmem %s2157_s3, %s1517_s17 }
  0x11   : > { %s1851_s27 = scalar_lea.vmem %s2154_s0, %s1719_s22 }
  0x12   : > { %v1855_v4 = vld [vmem:[%s1851_s27] sm:$0xf]  ;;  %v1858_v5 = vld [vmem:[%s1851_s27 + $0x4] sm:$0x1]  ;;  %v1861_v6 = vld [vmem:[%s1851_s27 + $0x8] sm:$0xf] }
  0x13   : > { %v1864_v7 = vld [vmem:[%s1851_s27 + $0xc] sm:$0x1]  ;;  %v225_v8 = vshrl.u32 %v1855_v4, 16  ;;  %v228_v9 = vshll.u32 %v1855_v4, 16  ;;  %v234_v10 = vshll.u32 %v1858_v5, 16  ;;  %v239_v11 = vshrl.u32 %v1861_v6, 16 }
  0x14   : > { %v242_v12 = vshll.u32 %v1861_v6, 16  ;;  %v248_v13 = vshll.u32 %v1864_v7, 16  ;;  %v1873_v14 = vld [vmem:[%s1851_s27 + $0x10] sm:$0xf]  ;;  %v555_v18 = vrot.slane %v1864_v7, 5  ;;  %v1427_v7 = vcombine.low %v1855_v4, %v1861_v6 }
  0x15   : > { %v227_v15 = vrot.slane %v225_v8, 4  ;;  %v230_v16 = vrot.slane %v228_v9, 5  ;;  %v241_v17 = vrot.slane %v239_v11, 4  ;;  %v1877_v19 = vld [vmem:[%s1851_s27 + $0x14] sm:$0x1]  ;;  %v236_v20 = vrot.slane %v234_v10, 5 }
  0x16   : > { %v244_v21 = vrot.slane %v242_v12, 5  ;;  %v1880_v22 = vld [vmem:[%s1851_s27 + $0x18] sm:$0xf]  ;;  %v1883_v23 = vld [vmem:[%s1851_s27 + $0x1c] sm:$0x1]  ;;  %v250_v25 = vrot.slane %v248_v13, 5 }
  0x17   : > { %v231_v24 = vor.u32 %v230_v16, %v227_v15  ;;  %v253_v26 = vshrl.u32 %v1873_v14, 16  ;;  %v256_v27 = vshll.u32 %v1873_v14, 16  ;;  %v1894_v30 = vld [vmem:[%s1851_s27 + $0x20] sm:$0xf]  ;;  %v262_v31 = vshll.u32 %v1877_v19, 16 }
  0x18   : > { %v245_v29 = vor.u32 %v244_v21, %v241_v17  ;;  %v267_v32 = vshrl.u32 %v1880_v22, 16  ;;  %v270_v33 = vshll.u32 %v1880_v22, 16  ;;  %v1900_v35 = vld [vmem:[%s1851_s27 + $0x24] sm:$0x1]  ;;  %v276_v38 = vshll.u32 %v1883_v23, 16 }
  0x19   : > { %v232_v34 = vrot.slane %v231_v24, 4  ;;  %v255_v36 = vrot.slane %v253_v26, 4  ;;  %v258_v37 = vrot.slane %v256_v27, 5  ;;  %v264_v40 = vrot.slane %v262_v31, 5  ;;  %v1907_v47 = vld [vmem:[%s1851_s27 + $0x28] sm:$0xf] }
  0x1a   : > { %v246_v39 = vrot.slane %v245_v29, 4  ;;  %v269_v41 = vrot.slane %v267_v32, 4  ;;  %v272_v42 = vrot.slane %v270_v33, 5  ;;  %v278_v45 = vrot.slane %v276_v38, 5  ;;  %v1914_v52 = vld [vmem:[%s1851_s27 + $0x2c] sm:$0x1] }
  0x1b   : > { %v237_v43 = vsel %vm1889_vm3, %v232_v34, %v236_v20  ;;  %v259_v44 = vor.u32 %v258_v37, %v255_v36  ;;  %v281_v46 = vshrl.u32 %v1894_v30, 16  ;;  %v284_v50 = vshll.u32 %v1894_v30, 16  ;;  %v1917_v53 = vld [vmem:[%s1851_s27 + $0x30] sm:$0xf]  ;;  %v1921_v58 = vld [vmem:[%s1851_s27 + $0x34] sm:$0x1] }
  0x1c   : > { %v251_v48 = vsel %vm1889_vm3, %v246_v39, %v250_v25  ;;  %v273_v49 = vor.u32 %v272_v42, %v269_v41  ;;  %v290_v51 = vshll.u32 %v1900_v35, 16  ;;  %v559_v57 = vrot.slane %v1877_v19, 5  ;;  %v1925_v63 = vld [vmem:[%s1851_s27 + $0x38] sm:$0xf]  ;;  %v1939_v20 = vld [vmem:[%s1851_s27 + $0x3c] sm:$0x1] }
  0x1d   : > { %v1418_v54 = vcombine.low %v237_v43, %v251_v48  ;;  %v260_v55 = vrot.slane %v259_v44, 4  ;;  %v283_v56 = vrot.slane %v281_v46, 4  ;;  %v286_v60 = vrot.slane %v284_v50, 5  ;;  %v1945_v24 = vld [vmem:[%s2155_s1 + $0x10] sm:$0xff]  }
  0x1e   : > { %v274_v59 = vrot.slane %v273_v49, 4  ;;  %v292_v61 = vrot.slane %v290_v51, 5  ;;  %v563_v62 = vrot.slane %v1883_v23, 5  ;;  %v567_v8 = vrot.slane %v1900_v35, 5 }
  0x1f   : > { %1565 = vmatprep.mubr.msk.bf16.mxu1 %vm357_vm2, %v1418_v54  ;;  %v265_v0 = vsel %vm1889_vm3, %v260_v55, %v264_v40  ;;  %v295_v9 = vshrl.u32 %v1907_v47, 16  ;;  %v298_v10 = vshll.u32 %v1907_v47, 16  ;;  %v287_v12 = vor.u32 %v286_v60, %v283_v56 }
  0x20   : > { %v279_v11 = vsel %vm1889_vm3, %v274_v59, %v278_v45  ;;  %v1468_v13 = vcombine.low %v251_v48, %v265_v0  ;;  %v304_v15 = vshll.u32 %v1914_v52, 16  ;;  %v309_v21 = vshrl.u32 %v1917_v53, 16  ;;  %v1748_v45 = vld [vmem:[%s2155_s1 + $0x30] sm:$0xff]  }
  0x21   : > { %v1936_v16 = vcombine.low %v265_v0, %v279_v11  ;;  %v297_v17 = vrot.slane %v295_v9, 4  ;;  %v300_v19 = vrot.slane %v298_v10, 5  ;;  %v288_v25 = vrot.slane %v287_v12, 4 }
  0x22   : > { %1605 = vmatprep.mubr.msk.bf16.mxu0 %vm357_vm2, %v1468_v13  ;;  %v306_v26 = vrot.slane %v304_v15, 5  ;;  %v312_v27 = vshll.u32 %v1917_v53, 16  ;;  %v318_v29 = vshll.u32 %v1921_v58, 16  ;;  %v311_v32 = vrot.slane %v309_v21, 4  ;;  %v2024_v21 = vld [vmem:[%s1851_s27 + $0x44] sm:$0x1] }
  0x23   : > { %1566 = vmatmul.mubr.msk.bf16.vlgmr.msra.gmra.mrb[0].mxu1 %vm357_vm2, %v1936_v16  ;;  %v301_v31 = vor.u32 %v300_v19, %v297_v17  ;;  %v323_v33 = vshrl.u32 %v1925_v63, 16  ;;  %v326_v34 = vshll.u32 %v1925_v63, 16  ;;  %v293_v36 = vsel %vm1889_vm3, %v288_v25, %v292_v61  ;;  %v2021_v19 = vld [vmem:[%s1851_s27 + $0x40] sm:$0xf] }
  0x24   : > { %1574 = vmatpush3.bf16.msra.mxu1 %v1837_v2  ;;  %v314_v37 = vrot.slane %v312_v27, 5  ;;  %v320_v38 = vrot.slane %v318_v29, 5  ;;  %v332_v39 = vshll.u32 %v1939_v20, 16  ;;  %v1469_v40 = vcombine.low %v279_v11, %v293_v36  ;;  %v1754_v27 = vld [vmem:[%s2155_s1 + $0x38] sm:$0xff]  }
  0x25   : > { %v302_v41 = vrot.slane %v301_v31, 4  ;;  %v325_v42 = vrot.slane %v323_v33, 4  ;;  %v328_v43 = vrot.slane %v326_v34, 5  ;;  %1583 = vmatprep.subr.bf16.mxu1 %v1945_v24  ;;  %v1437_v48 = vrot.slane %v1861_v6, 9 }
  0x26   : > { %v315_v2 = vor.u32 %v314_v37, %v311_v32  ;;  %v334_v46 = vrot.slane %v332_v39, 5  ;;  %v1438_v49 = vrot.slane %v1873_v14, 9  ;;  %1606 = vmatmul.mubr.msk.bf16.vlgmr.msra.gmra.mrb[0].mxu0 %vm357_vm2, %v1469_v40  ;;  %v1439_v54 = vrot.slane %v1880_v22, 9  ;;  %v218_v37 = vld [vmem:[%s1851_s27 + $0x4c] sm:$0x1] }
  0x27   : > { %v1973_v50 = vsel %vm1889_vm3, %v302_v41, %v306_v26  ;;  %v329_v51 = vor.u32 %v328_v43, %v325_v42  ;;  %v1440_v55 = vrot.slane %v1894_v30, 9  ;;  %1614 = vmatpush3.bf16.msra.mxu0 %v1846_v3  ;;  %v556_v60 = vsel %vm1960_vm6, %v1437_v48, %v555_v18 }
  0x28   : > { %v1979_v56 = vcombine.low %v293_v36, %v1973_v50  ;;  %v316_v59 = vrot.slane %v315_v2, 4  ;;  %v560_v61 = vsel %vm1960_vm6, %v1438_v49, %v559_v57  ;;  %1623 = vmatprep.subr.bf16.mxu0 %v1748_v45  ;;  %v1441_v18 = vrot.slane %v1907_v47, 9  ;;  %v217_v36 = vld [vmem:[%s1851_s27 + $0x48] sm:$0xf] }
  0x29   : > { %v330_v0 = vrot.slane %v329_v51, 4  ;;  %v1480_v9 = vcombine.low %v556_v60, %v560_v61  ;;  %v571_v10 = vrot.slane %v1914_v52, 5  ;;  %v1442_v11 = vrot.slane %v1917_v53, 9 }
  0x2a   : > { %1569 = vmatprep.mubr.msk.bf16.mxu1 %vm357_vm2, %v1979_v56  ;;  %v1991_v3 = vsel %vm1889_vm3, %v316_v59, %v320_v38  ;;  %v575_v12 = vrot.slane %v1921_v58, 5  ;;  %v564_v15 = vsel %vm1960_vm6, %v1439_v54, %v563_v62  ;;  %v568_v17 = vsel %vm1960_vm6, %v1440_v55, %v567_v8 }
  0x2b   : > { %v1998_v57 = vsel %vm1889_vm3, %v330_v0, %v334_v46  ;;  %1615 = vmatprep.mubr.msk.bf16.mxu0 %vm357_vm2, %v1480_v9  ;;  %v572_v52 = vsel %vm1960_vm6, %v1441_v18, %v571_v10  ;;  %v1481_v23 = vcombine.low %v564_v15, %v568_v17  ;;  %v1443_v35 = vrot.slane %v1925_v63, 9 }
  0x2c   : > { %v2006_v13 = vcombine.low %v1991_v3, %v1998_v57  ;;  %v576_v58 = vsel %vm1960_vm6, %v1442_v11, %v575_v12  ;;  %v579_v8 = vrot.slane %v1939_v20, 5  ;;  %v1477_v25 = vrot.slane %v2021_v19, 9 }
  0x2d   : > { %v1482_v62 = vcombine.low %v572_v52, %v576_v58  ;;  %v903_v26 = vrot.slane %v2024_v21, 5  ;;  %v1428_v29 = vcombine.low %v1873_v14, %v1880_v22  ;;  %v551_v31 = vrot.slane %v1858_v5, 5  ;;  %v1755_v5 = vld [vmem:[%s2155_s1 + $0x18] sm:$0xff]  }
  0x2e   : > { %1570 = vmatmul.mubr.msk.bf16.gmra.mrb[4].mxu1 %vm357_vm2, %v2006_v13  ;;  %v1429_v32 = vcombine.low %v1894_v30, %v1907_v47  ;;  %v580_v20 = vsel %vm1960_vm6, %v1443_v35, %v579_v8  ;;  %v1436_v34 = vrot.slane %v1855_v4, 9  ;;  %v1505_v38 = vrot.slane %v217_v36, 9 }
  0x2f   : > { %1575 = vmatprep.mubr.msk.bf16.mxu1 %vm357_vm2, %v1427_v7  ;;  %v2047_v33 = vsel %vm1960_vm6, %v1477_v25, %v903_v26  ;;  %v1196_v39 = vrot.slane %v218_v37, 5  ;;  %v1430_v42 = vcombine.low %v1917_v53, %v1925_v63  ;;  %v1448_v44 = vcombine.low %v568_v17, %v572_v52 }
  0x30   : > { %v1483_v40 = vcombine.low %v580_v20, %v2047_v33  ;;  %v552_v41 = vsel %vm1960_vm6, %v1436_v34, %v551_v31  ;;  %v1093_v2 = vshrl.u32 %v217_v36, 16  ;;  %v1096_v46 = vshll.u32 %v217_v36, 16 }
  0x31   : > { %v2061_v4 = vsel %vm1960_vm6, %v1505_v38, %v1196_v39  ;;  %v1446_v43 = vcombine.low %v552_v41, %v556_v60  ;;  %v788_v48 = vshrl.u32 %v2021_v19, 16  ;;  %v791_v49 = vshll.u32 %v2021_v19, 16 }
  0x32   : > { %1616 = vmatmul.mubr.msk.bf16.vlgmr.msra.gmra.mrb[0].mxu0 %vm357_vm2, %v1481_v23  ;;  %v1491_v51 = vcombine.low %v2021_v19, %v217_v36  ;;  %v1095_v59 = vrot.slane %v1093_v2, 4  ;;  %v1098_v60 = vrot.slane %v1096_v46, 5  ;;  %v1457_v0 = vcombine.low %v1861_v6, %v1873_v14 }
  0x33   : > { %1624 = vmatpush3.bf16.msra.mxu0 %v1748_v45  ;;  %1619 = vmatprep.mubr.msk.bf16.mxu0 %vm357_vm2, %v1482_v62  ;;  %v1447_v45 = vcombine.low %v560_v61, %v564_v15  ;;  %v790_v54 = vrot.slane %v788_v48, 4  ;;  %v793_v55 = vrot.slane %v791_v49, 5  ;;  %v1449_v61 = vcombine.low %v576_v58, %v580_v20 }
  0x34   : > { %1633 = vmatprep.subr.bf16.mxu0 %v1754_v27  ;;  %v797_v7 = vshll.u32 %v2024_v21, 16  ;;  %v1099_v18 = vor.u32 %v1098_v60, %v1095_v59  ;;  %v1102_v10 = vshll.u32 %v218_v37, 16  ;;  %v1458_v52 = vcombine.low %v1880_v22, %v1894_v30 }
  0x35   : > { %v794_v9 = vor.u32 %v793_v55, %v790_v54  ;;  %v1459_v6 = vcombine.low %v1907_v47, %v1917_v53  ;;  %v1460_v30 = vcombine.low %v1925_v63, %v2021_v19  ;;  %v1470_v47 = vcombine.low %v1973_v50, %v1991_v3 }
  0x36   : > { %1576 = vmatmul.mubr.msk.bf16.vlgmr.msra.gmra.mrb[0].mxu1 %vm357_vm2, %v1428_v29  ;;  %v799_v12 = vrot.slane %v797_v7, 5  ;;  %v1100_v15 = vrot.slane %v1099_v18, 4  ;;  %v1104_v17 = vrot.slane %v1102_v10, 5  ;;  %v1508_v28 = vcombine.low %v2047_v33, %v2061_v4 }
  0x37   : > { %1584 = vmatpush3.bf16.msra.mxu1 %v1945_v24  ;;  %1579 = vmatprep.mubr.msk.bf16.mxu1 %vm357_vm2, %v1429_v32  ;;  %v1757_v24 = vld [vmem:[%s2155_s1 + $0x40] sm:$0xff]   ;;  %v795_v11 = vrot.slane %v794_v9, 4 }
  0x38   : > { %1593 = vmatprep.subr.bf16.mxu1 %v1755_v5 }
  0x39   : > { %v800_v14 = vsel %vm1889_vm3, %v795_v11, %v799_v12 }
  0x3a   : > { %1620 = vmatmul.mubr.msk.bf16.gmra.mrb[4].mxu0 %vm357_vm2, %v1483_v40 }
  0x3b   : > { %1625 = vmatprep.mubr.msk.bf16.mxu0 %vm357_vm2, %v1428_v29 }
  0x3e   : > { %1580 = vmatmul.mubr.msk.bf16.gmra.mrb[4].mxu1 %vm357_vm2, %v1430_v42 }
  0x3f   : > { %1585 = vmatprep.mubr.msk.bf16.mxu1 %vm357_vm2, %v1446_v43 }
  0x42   : > { %1626 = vmatmul.mubr.msk.bf16.vlgmr.msra.gmra.mrb[0].mxu0 %vm357_vm2, %v1429_v32 }
  0x43   : > { %1634 = vmatpush3.bf16.msra.mxu0 %v1754_v27  ;;  %1629 = vmatprep.mubr.msk.bf16.mxu0 %vm357_vm2, %v1430_v42 }
  0x44   : > { %1643 = vmatprep.subr.bf16.mxu0 %v1757_v24 }
  0x46   : > { %1586 = vmatmul.mubr.msk.bf16.vlgmr.msra.gmra.mrb[0].mxu1 %vm357_vm2, %v1447_v45 }
  0x47   : > { %1594 = vmatpush3.bf16.msra.mxu1 %v1755_v5  ;;  %1589 = vmatprep.mubr.msk.bf16.mxu1 %vm357_vm2, %v1448_v44 }
  0x48   : > { %1653 = vmatprep.subr.bf16.mxu1 %v1830_v1 }
  0x4a   : > { %1630 = vmatmul.mubr.msk.bf16.gmra.mrb[4].mxu0 %vm357_vm2, %v1491_v51 }
  0x4b   : > { %1635 = vmatprep.mubr.msk.bf16.mxu0 %vm357_vm2, %v1936_v16  ;;  %v1105_v16 = vsel %vm1889_vm3, %v1100_v15, %v1104_v17 }
  0x4c   : > { %v1499_v22 = vcombine.low %v800_v14, %v1105_v16 }
  0x4e   : > { %1590 = vmatmul.mubr.msk.bf16.gmra.mrb[4].mxu1 %vm357_vm2, %v1449_v61 }
  0x4f   : > { %1595 = vmatprep.mubr.msk.bf16.mxu1 %vm357_vm2, %v1457_v0 }
  0x52   : > { %1636 = vmatmul.mubr.msk.bf16.vlgmr.msra.gmra.mrb[0].mxu0 %vm357_vm2, %v1979_v56 }
  0x53   : > { %1644 = vmatpush3.bf16.msra.mxu0 %v1757_v24  ;;  %1639 = vmatprep.mubr.msk.bf16.mxu0 %vm357_vm2, %v2006_v13  ;;  %v1514_v13 = vld [vmem:[%s2156_s2] ss:$0 sm:$0xff] }
  0x56   : > { %1596 = vmatmul.mubr.msk.bf16.vlgmr.msra.gmra.mrb[0].mxu1 %vm357_vm2, %v1458_v52 }
  0x57   : > { %1654 = vmatpush3.bf16.msra.mxu1 %v1830_v1  ;;  %1599 = vmatprep.mubr.msk.bf16.mxu1 %vm357_vm2, %v1459_v6  ;;  %v1471_v1 = vcombine.low %v1998_v57, %v800_v14 }
  0x5a   : > { %1640 = vmatmul.mubr.msk.bf16.gmra.mrb[4].mxu0 %vm357_vm2, %v1499_v22 }
  0x5b   : > { %1645 = vmatprep.mubr.msk.bf16.mxu0 %vm357_vm2, %v1447_v45 }
  0x5e   : > { %1600 = vmatmul.mubr.msk.bf16.gmra.mrb[4].mxu1 %vm357_vm2, %v1460_v30 }
  0x5f   : > { %1609 = vmatprep.mubr.msk.bf16.mxu1 %vm357_vm2, %v1470_v47 }
  0x62   : > { %1646 = vmatmul.mubr.msk.bf16.vlgmr.msra.gmra.mrb[0].mxu0 %vm357_vm2, %v1448_v44 }
  0x63   : > { %1649 = vmatprep.mubr.msk.bf16.mxu0 %vm357_vm2, %v1449_v61 }
  0x6a   : > { %1610 = vmatmul.mubr.msk.bf16.vlgmr.msra.gmra.mrb[4].mxu1 %vm357_vm2, %v1471_v1  ;;  %1650 = vmatmul.mubr.msk.bf16.gmra.mrb[4].mxu0 %vm357_vm2, %v1508_v28 }
 0x129   : > { %v1597_v53 = vpop.f32.mrb[0].mxu1 }
 0x12a   : > { %v748_v63 = vpop.f32.mrb[1].mxu1 }
 0x12b   : > { %v1598_v50 = vpop.f32.mrb[2].mxu1 }
 0x12c   : > { %v751_v56 = vpop.f32.mrb[3].mxu1 }
 0x135   : > { %v1647_v3 = vpop.f32.mrb[0].mxu0 }
 0x136   : > { %v1655_v58 = vadd.f32 %v1647_v3, %v1597_v53  ;;  %v1246_v19 = vpop.f32.mrb[1].mxu0 }
 0x137   : > { %v1656_v21 = vadd.f32 %v1246_v19, %v748_v63  ;;  %v1648_v57 = vpop.f32.mrb[2].mxu0 }
 0x138   : > { %v1294_v23 = vadd.f32 %v1655_v58, %v1514_v13  ;;  %v1657_v35 = vadd.f32 %v1648_v57, %v1598_v50  ;;  %v1249_v62 = vpop.f32.mrb[3].mxu0 }
 0x139   : > { %v1292_v8 = vadd.f32 %v1656_v21, %v1514_v13  ;;  %v1658_v25 = vadd.f32 %v1249_v62, %v751_v56 }
 0x13a   : > { %v1302_v26 = vmax.f32 %v1294_v23, 0.0  ;;  %v1295_v27 = vadd.f32 %v1657_v35, %v1514_v13 }
 0x13b   : > { %v1300_v29 = vmax.f32 %v1292_v8, 0.0  ;;  %v1293_v31 = vadd.f32 %v1658_v25, %v1514_v13 }
 0x13c   : > { %v1310_v32 = vpack.c.bf16 %v1302_v26, %v1302_v26  ;;  %v1303_v20 = vmax.f32 %v1295_v27, 0.0 }
 0x13d   : > { %v1611_v33 = vpop.f32.mrb[4].mxu1  ;;  %v1308_v34 = vpack.c.bf16 %v1300_v29, %v1300_v29  ;;  %v1301_v5 = vmax.f32 %v1293_v31, 0.0  ;;  %v1651_v36 = vpop.f32.mrb[4].mxu0 }
 0x13e   : > { %v877_v37 = vpop.f32.mrb[5].mxu1  ;;  %1319 = vst.msk [vmem:[%s2127_s20 + $0x8] sm:$0xf] %vm1316_vm7, %v1310_v32  ;;  %v1311_v38 = vpack.c.bf16 %v1303_v20, %v1303_v20  ;;  %v1659_v39 = vadd.f32 %v1651_v36, %v1611_v33  ;;  %v1262_v40 = vpop.f32.mrb[5].mxu0 }
 0x13f   : > { %v1612_v4 = vpop.f32.mrb[6].mxu1  ;;  %1317 = vst.msk [vmem:[%s2127_s20] sm:$0xf] %vm1316_vm7, %v1308_v34  ;;  %v1309_v41 = vpack.c.bf16 %v1301_v5, %v1301_v5  ;;  %v1660_v42 = vadd.f32 %v1262_v40, %v877_v37  ;;  %v1652_v43 = vpop.f32.mrb[6].mxu0 }
 0x140   : > { %v880_v24 = vpop.f32.mrb[7].mxu1  ;;  %1320 = vst.msk [vmem:[%s2127_s20 + $0xc] sm:$0xf] %vm1316_vm7, %v1311_v38  ;;  %v1298_v45 = vadd.f32 %v1659_v39, %v1514_v13  ;;  %v1661_v44 = vadd.f32 %v1652_v43, %v1612_v4  ;;  %v1265_v2 = vpop.f32.mrb[7].mxu0 }
 0x141   : > { %1318 = vst.msk [vmem:[%s2127_s20 + $0x4] sm:$0xf] %vm1316_vm7, %v1309_v41  ;;  %v1296_v46 = vadd.f32 %v1660_v42, %v1514_v13  ;;  %v1662_v48 = vadd.f32 %v1265_v2, %v880_v24 }
 0x142   : > { %v1306_v49 = vmax.f32 %v1298_v45, 0.0  ;;  %v1299_v51 = vadd.f32 %v1661_v44, %v1514_v13 }
 0x143   : > { %v1304_v54 = vmax.f32 %v1296_v46, 0.0  ;;  %v1297_v55 = vadd.f32 %v1662_v48, %v1514_v13 }
 0x144   : > { %v1314_v59 = vpack.c.bf16 %v1306_v49, %v1306_v49  ;;  %v1307_v60 = vmax.f32 %v1299_v51, 0.0 }
 0x145   : > { %v1312_v61 = vpack.c.bf16 %v1304_v54, %v1304_v54  ;;  %v1305_v0 = vmax.f32 %v1297_v55, 0.0 }
 0x146   : > { %1323 = vst.msk [vmem:[%s2127_s20 + $0x18] sm:$0xf] %vm1316_vm7, %v1314_v59  ;;  %v1315_v9 = vpack.c.bf16 %v1307_v60, %v1307_v60 }
 0x147   : > { %1321 = vst.msk [vmem:[%s2127_s20 + $0x10] sm:$0xf] %vm1316_vm7, %v1312_v61  ;;  %v1313_v7 = vpack.c.bf16 %v1305_v0, %v1305_v0 }
 0x148   : > { %1324 = vst.msk [vmem:[%s2127_s20 + $0x1c] sm:$0xf] %vm1316_vm7, %v1315_v9 }
 0x149   : > { %1322 = vst.msk [vmem:[%s2127_s20 + $0x14] sm:$0xf] %vm1316_vm7, %v1313_v7 }
 0x14a PF: > { %s13_s14 = sadd.s32 1, %s1784_s14   ;;  %s2162_s12 = smov %s1780_s13 }
 0x14b   : > { %p10_p5 = scmp.ge.s32.totalorder %s13_s14, 4   ;;  %s2163_s13 = smov %s2165_s15 }
 0x14d   :  { %12 = sbr.rel (!%p10_p5) target bundleno = 2 (0x2), region = 71 }

// kernel: _lambda_.60
= control target key start
LH: loop header
LB: loop body
LE: loop exit
PB: predicated region body
PF: predicated region fallthrough
CT: control target
= control target key end

     0   :  { %s2073_s15 = smov 0   ;;  %s2075_s16 = smov 0   ;;  %s2469_s0 = inlined_call_operand.vmem [shape: bf16[2,10,10,32], index: 0, kind: input, shape index: {}]   ;;  %s2470_s1 = inlined_call_operand.vmem [shape: bf16[3,3,32,32], index: 1, kind: input, shape index: {}]   ;;  %s2471_s2 = inlined_call_operand.vmem [shape: f32[1,32], index: 2, kind: input, shape index: {}]   ;;  %s2472_s3 = inlined_call_operand.vmem [shape: bf16[2,8,8,32], index: 3, kind: input, shape index: {}, may-alias: {3,4}]   ;;  %s2473_s4 = inlined_call_operand.vmem [shape: bf16[2,8,8,32], index: 4, kind: output, shape index: {}, may-alias: {3,4}]  }
   0x1   :  { %s2077_s17 = smov 0  }
   0x2 LB: > { %s26_s18 = sadd.s32 1, %s2042_s16  ;;  %p1589_p0 = scmp.ge.s32.totalorder %s2046_s17, 1  ;;  %s2046_s17 = sphi %s2077_s17, %s14_s17   ;;  %s2042_s16 = sphi %s2075_s16, %s2479_s16   ;;  %s2038_s15 = sphi %s2073_s15, %s2478_s15  }
   0x3   : > { %p28_p1 = scmp.ge.s32.totalorder %s26_s18, 2  ;;  %p193_p2 = scmp.lt.s32.totalorder %s2046_s17, 3 }
   0x5   : > { %s2481_s18 = smov (%p28_p1, %s26_s18), 0  ;;  %p194_p3 = pnand %p1589_p0, %p193_p2 }
   0x6   : > { %v1997_v0 = vld [vmem:[%s2470_s1 + $0x10] sm:$0xff] (!%p194_p3)   ;;  %p232_p4 = scmp.lt.s32.totalorder (!%p194_p3), %s2038_s15, 1  ;;  %v2097_v1 = vld [vmem:[%s2470_s1 + $0x40] sm:$0xff] (!%p194_p3)   ;;  %v1999_v2 = vld [vmem:[%s2470_s1 + $0x18] sm:$0xff] (!%p194_p3)   ;;  %vm286_vm0 = vsmask.f32 (!%p194_p3), 3328 }
   0x7   : > { %197 = sbr.rel (%p194_p3) target bundleno = 333 (0x14d), region = 36  ;;  %1796 = vmatprep.subr.bf16.mxu1 (!%p194_p3), %v1997_v0  ;;  %1844 = vmatprep.subr.bf16.mxu0 (!%p194_p3), %v2097_v1  ;;  %v2108_v3 = vld [vmem:[%s2470_s1 + $0x48] sm:$0xff] (!%p194_p3)   ;;  %v2115_v4 = vld [vmem:[%s2470_s1] sm:$0xff] (!%p194_p3)   ;;  %vm287_vm1 = vsmask.f32 (!%p194_p3), 7440  ;;  %v2126_v5 = vld [vmem:[%s2470_s1 + $0x50] sm:$0xff] (!%p194_p3)  }
   0x8   : > { %1797 = vmatpush3.bf16.msra.mxu1 (!%p194_p3), %v1997_v0  ;;  %1845 = vmatpush3.bf16.msra.mxu0 (!%p194_p3), %v2097_v1  ;;  %vm430_vm2 = vcmask (!%p194_p3), 261120   ;;  %vm2172_vm3 = vmor (!%p194_p3), %vm286_vm0, %vm287_vm1  ;;  %vm625_vm4 = vcmask (!%p194_p3), 1042432   ;;  %vm626_vm5 = vcmask (!%p194_p3), 1046532   ;;  %vm1475_vm7 = vcmask (!%p194_p3), 257024  }
   0x9   : > { %1798 = vmatprep.subr.bf16.mxu1 (!%p194_p3), %v1999_v2  ;;  %1846 = vmatprep.subr.bf16.mxu0 (!%p194_p3), %v2108_v3  ;;  %vm2238_vm6 = vmor (!%p194_p3), %vm625_vm4, %vm626_vm5 }
   0xc   : > { %1799 = vmatpush3.bf16.msra.mxu1 (!%p194_p3), %v1999_v2  ;;  %1847 = vmatpush3.bf16.msra.mxu0 (!%p194_p3), %v2108_v3 }
   0xd   : > { %1808 = vmatprep.subr.bf16.mxu1 (!%p194_p3), %v2115_v4  ;;  %1856 = vmatprep.subr.bf16.mxu0 (!%p194_p3), %v2126_v5 }
   0xe   : > { %s2483_s15 = smov (!%p232_p4, %s2038_s15), 1 }
   0xf   : > { %s1972_s27 = smul.u32 80, %s2483_s15  ;;  %s1721_s11 = sshll.u32 %s2483_s15, 5 }
  0x10   : > { %s245_s14 = scalar_lea.vmem %s2472_s3, %s1721_s11  ;;  %s2442_s22 = scalar_lea.vmem %s2473_s4, %s1721_s11 }
  0x11   : > { %s2121_s6 = scalar_lea.vmem %s2469_s0, %s1972_s27 }
  0x12   : > { %v2129_v6 = vld [vmem:[%s2121_s6] sm:$0xf]  ;;  %v2132_v7 = vld [vmem:[%s2121_s6 + $0x4] sm:$0x1]  ;;  %v2135_v8 = vld [vmem:[%s2121_s6 + $0x8] sm:$0xf] }
  0x13   : > { %v2139_v9 = vld [vmem:[%s2121_s6 + $0xc] sm:$0x1]  ;;  %v290_v10 = vshrl.u32 %v2129_v6, 16  ;;  %v293_v11 = vshll.u32 %v2129_v6, 16  ;;  %v299_v12 = vshll.u32 %v2132_v7, 16  ;;  %v304_v13 = vshrl.u32 %v2135_v8, 16 }
  0x14   : > { %v307_v14 = vshll.u32 %v2135_v8, 16  ;;  %v313_v15 = vshll.u32 %v2139_v9, 16  ;;  %v634_v16 = vrot.slane %v2139_v9, 5  ;;  %v2150_v17 = vld [vmem:[%s2121_s6 + $0x10] sm:$0xf] }
  0x15   : > { %v292_v18 = vrot.slane %v290_v10, 4  ;;  %v295_v19 = vrot.slane %v293_v11, 5  ;;  %v301_v20 = vrot.slane %v299_v12, 5  ;;  %v306_v21 = vrot.slane %v304_v13, 4  ;;  %v2154_v22 = vld [vmem:[%s2121_s6 + $0x14] sm:$0x1] }
  0x16   : > { %v309_v23 = vrot.slane %v307_v14, 5  ;;  %v315_v24 = vrot.slane %v313_v15, 5  ;;  %v2157_v25 = vld [vmem:[%s2121_s6 + $0x18] sm:$0xf]  ;;  %v2160_v26 = vld [vmem:[%s2121_s6 + $0x1c] sm:$0x1] }
  0x17   : > { %v296_v27 = vor.u32 %v295_v19, %v292_v18  ;;  %v2163_v28 = vld [vmem:[%s2121_s6 + $0x20] sm:$0xf]  ;;  %v2166_v29 = vld [vmem:[%s2121_s6 + $0x24] sm:$0x1]  ;;  %v318_v30 = vshrl.u32 %v2150_v17, 16  ;;  %v321_v31 = vshll.u32 %v2150_v17, 16 }
  0x18   : > { %v310_v33 = vor.u32 %v309_v23, %v306_v21  ;;  %v327_v34 = vshll.u32 %v2154_v22, 16  ;;  %v332_v35 = vshrl.u32 %v2157_v25, 16  ;;  %v335_v36 = vshll.u32 %v2157_v25, 16  ;;  %v2184_v49 = vld [vmem:[%s2121_s6 + $0x28] sm:$0xf] }
  0x19   : > { %v297_v37 = vrot.slane %v296_v27, 4  ;;  %v320_v38 = vrot.slane %v318_v30, 4  ;;  %v323_v39 = vrot.slane %v321_v31, 5  ;;  %v341_v40 = vshll.u32 %v2160_v26, 16  ;;  %v2191_v54 = vld [vmem:[%s2121_s6 + $0x2c] sm:$0x1] }
  0x1a   : > { %v311_v41 = vrot.slane %v310_v33, 4  ;;  %v329_v42 = vrot.slane %v327_v34, 5  ;;  %v334_v43 = vrot.slane %v332_v35, 4  ;;  %v337_v44 = vrot.slane %v335_v36, 5  ;;  %v2195_v59 = vld [vmem:[%s2121_s6 + $0x30] sm:$0xf] }
  0x1b   : > { %v302_v45 = vsel %vm2172_vm3, %v297_v37, %v301_v20  ;;  %v324_v46 = vor.u32 %v323_v39, %v320_v38  ;;  %v343_v47 = vrot.slane %v341_v40, 5  ;;  %v346_v48 = vshrl.u32 %v2163_v28, 16  ;;  %v2199_v0 = vld [vmem:[%s2121_s6 + $0x34] sm:$0x1]  ;;  %v2208_v13 = vld [vmem:[%s2121_s6 + $0x38] sm:$0xf] }
  0x1c   : > { %v316_v50 = vsel %vm2172_vm3, %v311_v41, %v315_v24  ;;  %v338_v51 = vor.u32 %v337_v44, %v334_v43  ;;  %v349_v52 = vshll.u32 %v2163_v28, 16  ;;  %v355_v53 = vshll.u32 %v2166_v29, 16  ;;  %v2214_v20 = vld [vmem:[%s2121_s6 + $0x3c] sm:$0x1]  ;;  %v2004_v24 = vld [vmem:[%s2470_s1 + $0x8] sm:$0xff]  }
  0x1d   : > { %v1599_v55 = vcombine.low %v302_v45, %v316_v50  ;;  %v325_v56 = vrot.slane %v324_v46, 4  ;;  %v348_v57 = vrot.slane %v346_v48, 4  ;;  %v638_v58 = vrot.slane %v2154_v22, 5  ;;  %v2003_v40 = vld [vmem:[%s2470_s1 + $0x58] sm:$0xff]  }
  0x1e   : > { %v339_v60 = vrot.slane %v338_v51, 4  ;;  %v351_v61 = vrot.slane %v349_v52, 5  ;;  %v357_v62 = vrot.slane %v355_v53, 5  ;;  %v642_v63 = vrot.slane %v2160_v26, 5  ;;  %v2015_v48 = vld [vmem:[%s2470_s1 + $0x78] sm:$0xff]  }
  0x1f   : > { %1800 = vmatprep.mubr.msk.bf16.mxu1 %vm430_vm2, %v1599_v55  ;;  %v330_v2 = vsel %vm2172_vm3, %v325_v56, %v329_v42  ;;  %v646_v10 = vrot.slane %v2166_v29, 5  ;;  %v360_v11 = vshrl.u32 %v2184_v49, 16  ;;  %v363_v12 = vshll.u32 %v2184_v49, 16 }
  0x20   : > { %v344_v14 = vsel %vm2172_vm3, %v339_v60, %v343_v47  ;;  %v352_v15 = vor.u32 %v351_v61, %v348_v57  ;;  %v1659_v18 = vcombine.low %v316_v50, %v330_v2  ;;  %v369_v19 = vshll.u32 %v2191_v54, 16 }
  0x21   : > { %v2216_v21 = vcombine.low %v330_v2, %v344_v14  ;;  %v362_v22 = vrot.slane %v360_v11, 4  ;;  %v365_v23 = vrot.slane %v363_v12, 5  ;;  %v374_v27 = vshrl.u32 %v2195_v59, 16 }
  0x22   : > { %v353_v30 = vrot.slane %v352_v15, 4  ;;  %1848 = vmatprep.mubr.msk.bf16.mxu0 %vm430_vm2, %v1659_v18  ;;  %v371_v31 = vrot.slane %v369_v19, 5  ;;  %v377_v33 = vshll.u32 %v2195_v59, 16  ;;  %v383_v34 = vshll.u32 %v2199_v0, 16 }
  0x23   : > { %1801 = vmatmul.mubr.msk.bf16.vlgmr.msra.gmra.mrb[0].mxu1 %vm430_vm2, %v2216_v21  ;;  %v366_v35 = vor.u32 %v365_v23, %v362_v22  ;;  %v376_v36 = vrot.slane %v374_v27, 4  ;;  %v388_v37 = vshrl.u32 %v2208_v13, 16  ;;  %v391_v38 = vshll.u32 %v2208_v13, 16 }
  0x24   : > { %v358_v39 = vsel %vm2172_vm3, %v353_v30, %v357_v62  ;;  %1809 = vmatpush3.bf16.msra.mxu1 %v2115_v4  ;;  %v379_v41 = vrot.slane %v377_v33, 5  ;;  %v385_v42 = vrot.slane %v383_v34, 5  ;;  %v397_v43 = vshll.u32 %v2214_v20, 16  ;;  %v2245_v4 = vld [vmem:[%s2470_s1 + $0x20] sm:$0xff]  }
  0x25   : > { %v1660_v44 = vcombine.low %v344_v14, %v358_v39  ;;  %v367_v45 = vrot.slane %v366_v35, 4  ;;  %1810 = vmatprep.subr.bf16.mxu1 %v2004_v24  ;;  %v390_v46 = vrot.slane %v388_v37, 4  ;;  %v393_v47 = vrot.slane %v391_v38, 5  ;;  %v2005_v14 = vld [vmem:[%s2470_s1 + $0x60] sm:$0xff]   ;;  %v2009_v35 = vld [vmem:[%s2470_s1 + $0x68] sm:$0xff]  }
  0x26   : > { %v380_v50 = vor.u32 %v379_v41, %v376_v36  ;;  %v399_v51 = vrot.slane %v397_v43, 5  ;;  %v1620_v52 = vrot.slane %v2135_v8, 9  ;;  %v1621_v53 = vrot.slane %v2150_v17, 9  ;;  %v280_v41 = vld [vmem:[%s2121_s6 + $0x48] sm:$0xf]  ;;  %v2013_v43 = vld [vmem:[%s2470_s1 + $0x70] sm:$0xff]  }
  0x27   : > { %1849 = vmatmul.mubr.msk.bf16.vlgmr.msra.gmra.mrb[0].mxu0 %vm430_vm2, %v1660_v44  ;;  %v2252_v55 = vsel %vm2172_vm3, %v367_v45, %v371_v31  ;;  %v394_v56 = vor.u32 %v393_v47, %v390_v46  ;;  %v1622_v57 = vrot.slane %v2157_v25, 9  ;;  %v1623_v60 = vrot.slane %v2163_v28, 9  ;;  %v2315_v31 = vld [vmem:[%s2121_s6 + $0x44] sm:$0x1] }
  0x28   : > { %1857 = vmatpush3.bf16.msra.mxu0 %v2126_v5  ;;  %v2258_v61 = vcombine.low %v358_v39, %v2252_v55  ;;  %v381_v62 = vrot.slane %v380_v50, 4  ;;  %1811 = vmatpush3.bf16.msra.mxu1 %v2004_v24  ;;  %v2264_v2 = vsel %vm2238_vm6, %v1620_v52, %v634_v16  ;;  %v2268_v11 = vsel %vm2238_vm6, %v1621_v53, %v638_v58  ;;  %v2014_v50 = vld [vmem:[%s2470_s1 + $0x30] sm:$0xff]  }
  0x29   : > { %1858 = vmatprep.subr.bf16.mxu0 %v2003_v40  ;;  %v395_v12 = vrot.slane %v394_v56, 4  ;;  %v1674_v5 = vcombine.low %v2264_v2, %v2268_v11  ;;  %1820 = vmatprep.subr.bf16.mxu1 %v2245_v4  ;;  %v1609_v16 = vcombine.low %v2129_v6, %v2135_v8  ;;  %v1624_v58 = vrot.slane %v2184_v49, 9 }
  0x2a   : > { %1804 = vmatprep.mubr.msk.bf16.mxu1 %vm430_vm2, %v2258_v61  ;;  %v2280_v9 = vsel %vm2172_vm3, %v381_v62, %v385_v42  ;;  %v650_v18 = vrot.slane %v2191_v54, 5  ;;  %v1625_v19 = vrot.slane %v2195_v59, 9  ;;  %v654_v22 = vrot.slane %v2199_v0, 5  ;;  %v2306_v54 = vld [vmem:[%s2121_s6 + $0x40] sm:$0xf] }
  0x2b   : > { %v2287_v15 = vsel %vm2172_vm3, %v395_v12, %v399_v51  ;;  %1860 = vmatprep.mubr.msk.bf16.mxu0 %vm430_vm2, %v1674_v5  ;;  %v643_v24 = vsel %vm2238_vm6, %v1622_v57, %v642_v63  ;;  %v647_v27 = vsel %vm2238_vm6, %v1623_v60, %v646_v10  ;;  %v1626_v29 = vrot.slane %v2208_v13, 9  ;;  %v281_v42 = vld [vmem:[%s2121_s6 + $0x4c] sm:$0x1]  ;;  %v2017_v60 = vld [vmem:[%s2470_s1 + $0x38] sm:$0xff]  }
  0x2c   : > { %1859 = vmatpush3.bf16.msra.mxu0 %v2003_v40  ;;  %v2295_v23 = vcombine.low %v2280_v9, %v2287_v15  ;;  %v651_v0 = vsel %vm2238_vm6, %v1624_v58, %v650_v18  ;;  %v2312_v30 = vsel %vm2238_vm6, %v1625_v19, %v654_v22  ;;  %v1675_v26 = vcombine.low %v643_v24, %v647_v27  ;;  %v2011_v40 = vld [vmem:[%s2470_s1 + $0x28] sm:$0xff]  }
  0x2d   : > { %1868 = vmatprep.subr.bf16.mxu0 %v2005_v14  ;;  %v1676_v63 = vcombine.low %v651_v0, %v2312_v30  ;;  %v658_v10 = vrot.slane %v2214_v20, 5  ;;  %v1669_v33 = vrot.slane %v2306_v54, 9  ;;  %v1006_v34 = vrot.slane %v2315_v31, 5 }
  0x2e   : > { %1805 = vmatmul.mubr.msk.bf16.gmra.mrb[4].mxu1 %vm430_vm2, %v2295_v23  ;;  %v1610_v36 = vcombine.low %v2150_v17, %v2157_v25  ;;  %v630_v37 = vrot.slane %v2132_v7, 5  ;;  %v1611_v38 = vcombine.low %v2163_v28, %v2184_v49  ;;  %v1619_v7 = vrot.slane %v2129_v6, 9 }
  0x2f   : > { %1812 = vmatprep.mubr.msk.bf16.mxu1 %vm430_vm2, %v1609_v16  ;;  %v659_v20 = vsel %vm2238_vm6, %v1626_v29, %v658_v10  ;;  %v2339_v39 = vsel %vm2238_vm6, %v1669_v33, %v1006_v34  ;;  %v1706_v44 = vrot.slane %v280_v41, 9  ;;  %v1323_v45 = vrot.slane %v281_v42, 5 }
  0x30   : > { %v1677_v46 = vcombine.low %v659_v20, %v2339_v39  ;;  %v631_v47 = vsel %vm2238_vm6, %v1619_v7, %v630_v37  ;;  %v1632_v52 = vcombine.low %v2268_v11, %v643_v24  ;;  %v1633_v53 = vcombine.low %v647_v27, %v651_v0  ;;  %v2018_v11 = vld [vmem:[%s2470_s1 + $0x80] sm:$0xff]  }
  0x31   : > { %v2356_v6 = vsel %vm2238_vm6, %v1706_v44, %v1323_v45  ;;  %v1631_v51 = vcombine.low %v631_v47, %v2264_v2  ;;  %v1212_v56 = vshrl.u32 %v280_v41, 16  ;;  %v1215_v57 = vshll.u32 %v280_v41, 16  ;;  %v1741_v45 = vld [vmem:[%s245_s14 + $0x18] sm:$0xff]   ;;  %v1740_v47 = vld [vmem:[%s245_s14 + $0x10] sm:$0xff]  }
  0x32   : > { %v883_v62 = vshrl.u32 %v2306_v54, 16  ;;  %v886_v2 = vshll.u32 %v2306_v54, 16  ;;  %v1688_v12 = vcombine.low %v2306_v54, %v280_v41  ;;  %v1634_v18 = vcombine.low %v2312_v30, %v659_v20 }
  0x33   : > { %1861 = vmatmul.mubr.msk.bf16.vlgmr.msra.gmra.mrb[0].mxu0 %vm430_vm2, %v1675_v26  ;;  %v1214_v16 = vrot.slane %v1212_v56, 4  ;;  %v1217_v58 = vrot.slane %v1215_v57, 5  ;;  %v1645_v19 = vcombine.low %v2135_v8, %v2150_v17  ;;  %v892_v24 = vshll.u32 %v2315_v31, 16  ;;  %v2021_v8 = vld [vmem:[%s2470_s1 + $0x88] sm:$0xff]  }
  0x34   : > { %1869 = vmatpush3.bf16.msra.mxu0 %v2005_v14  ;;  %1864 = vmatprep.mubr.msk.bf16.mxu0 %vm430_vm2, %v1676_v63  ;;  %v885_v5 = vrot.slane %v883_v62, 4  ;;  %v888_v14 = vrot.slane %v886_v2, 5  ;;  %v1221_v0 = vshll.u32 %v281_v42, 16  ;;  %v1646_v17 = vcombine.low %v2157_v25, %v2163_v28 }
  0x35   : > { %1870 = vmatprep.subr.bf16.mxu0 %v2009_v35  ;;  %v1218_v27 = vor.u32 %v1217_v58, %v1214_v16  ;;  %v894_v26 = vrot.slane %v892_v24, 5  ;;  %v1648_v28 = vcombine.low %v2208_v13, %v2306_v54  ;;  %v1661_v32 = vcombine.low %v2252_v55, %v2280_v9  ;;  %v1724_v9 = vld [vmem:[%s245_s14] sm:$0xff]  }
  0x36   : > { %1813 = vmatmul.mubr.msk.bf16.vlgmr.msra.gmra.mrb[0].mxu1 %vm430_vm2, %v1610_v36  ;;  %v889_v22 = vor.u32 %v888_v14, %v885_v5  ;;  %v1223_v63 = vrot.slane %v1221_v0, 5  ;;  %v1726_v42 = vunpack.c.h.bf16 %v1724_v9  ;;  %v1737_v2 = vunpack.c.l.bf16 %v1741_v45 }
  0x37   : > { %1821 = vmatpush3.bf16.msra.mxu1 %v2245_v4  ;;  %1816 = vmatprep.mubr.msk.bf16.mxu1 %vm430_vm2, %v1611_v38  ;;  %v1612_v4 = vcombine.low %v2195_v59, %v2208_v13  ;;  %v1219_v29 = vrot.slane %v1218_v27, 4  ;;  %v1733_v58 = vunpack.c.l.bf16 %v1740_v47  ;;  %v1738_v0 = vunpack.c.h.bf16 %v1741_v45 }
  0x38   : > { %1871 = vmatpush3.bf16.msra.mxu0 %v2009_v35  ;;  %1822 = vmatprep.subr.bf16.mxu1 %v2011_v40  ;;  %v890_v30 = vrot.slane %v889_v22, 4 }
  0x39   : > { %1880 = vmatprep.subr.bf16.mxu0 %v2013_v43  ;;  %v1224_v10 = vsel %vm2172_vm3, %v1219_v29, %v1223_v63 }
  0x3a   : > { %v895_v31 = vsel %vm2172_vm3, %v890_v30, %v894_v26 }
  0x3b   : > { %1865 = vmatmul.mubr.msk.bf16.gmra.mrb[4].mxu0 %vm430_vm2, %v1677_v46  ;;  %1823 = vmatpush3.bf16.msra.mxu1 %v2011_v40  ;;  %v1699_v25 = vcombine.low %v895_v31, %v1224_v10 }
  0x3c   : > { %1872 = vmatprep.mubr.msk.bf16.mxu0 %vm430_vm2, %v1610_v36  ;;  %1832 = vmatprep.subr.bf16.mxu1 %v2014_v50  ;;  %v1725_v36 = vunpack.c.l.bf16 %v1724_v9 }
  0x3e   : > { %1817 = vmatmul.mubr.msk.bf16.gmra.mrb[4].mxu1 %vm430_vm2, %v1612_v4 }
  0x3f   : > { %1824 = vmatprep.mubr.msk.bf16.mxu1 %vm430_vm2, %v1631_v51 }
  0x43   : > { %1873 = vmatmul.mubr.msk.bf16.vlgmr.msra.gmra.mrb[0].mxu0 %vm430_vm2, %v1611_v38 }
  0x44   : > { %1881 = vmatpush3.bf16.msra.mxu0 %v2013_v43  ;;  %1876 = vmatprep.mubr.msk.bf16.mxu0 %vm430_vm2, %v1612_v4 }
  0x45   : > { %1882 = vmatprep.subr.bf16.mxu0 %v2015_v48 }
  0x46   : > { %1825 = vmatmul.mubr.msk.bf16.vlgmr.msra.gmra.mrb[0].mxu1 %vm430_vm2, %v1632_v52 }
  0x47   : > { %1833 = vmatpush3.bf16.msra.mxu1 %v2014_v50  ;;  %1828 = vmatprep.mubr.msk.bf16.mxu1 %vm430_vm2, %v1633_v53 }
  0x48   : > { %1883 = vmatpush3.bf16.msra.mxu0 %v2015_v48  ;;  %1834 = vmatprep.subr.bf16.mxu1 %v2017_v60 }
  0x49   : > { %1892 = vmatprep.subr.bf16.mxu0 %v2018_v11 }
  0x4b   : > { %1877 = vmatmul.mubr.msk.bf16.gmra.mrb[4].mxu0 %vm430_vm2, %v1688_v12  ;;  %1835 = vmatpush3.bf16.msra.mxu1 %v2017_v60 }
  0x4c   : > { %1884 = vmatprep.mubr.msk.bf16.mxu0 %vm430_vm2, %v2216_v21  ;;  %1904 = vmatprep.subr.bf16.mxu1 %v2097_v1  ;;  %v1647_v21 = vcombine.low %v2184_v49, %v2195_v59  ;;  %v1711_v49 = vcombine.low %v2339_v39, %v2356_v6 }
  0x4e   : > { %1829 = vmatmul.mubr.msk.bf16.gmra.mrb[4].mxu1 %vm430_vm2, %v1634_v18 }
  0x4f   : > { %1836 = vmatprep.mubr.msk.bf16.mxu1 %vm430_vm2, %v1645_v19 }
  0x53   : > { %1885 = vmatmul.mubr.msk.bf16.vlgmr.msra.gmra.mrb[0].mxu0 %vm430_vm2, %v2258_v61  ;;  %v1739_v61 = vld [vmem:[%s245_s14 + $0x8] sm:$0xff]  }
  0x54   : > { %1893 = vmatpush3.bf16.msra.mxu0 %v2018_v11  ;;  %1888 = vmatprep.mubr.msk.bf16.mxu0 %vm430_vm2, %v2295_v23  ;;  %v1729_v33 = vunpack.c.l.bf16 %v1739_v61  ;;  %v1730_v39 = vunpack.c.h.bf16 %v1739_v61 }
  0x55   : > { %1894 = vmatprep.subr.bf16.mxu0 %v2021_v8 }
  0x56   : > { %1837 = vmatmul.mubr.msk.bf16.vlgmr.msra.gmra.mrb[0].mxu1 %vm430_vm2, %v1646_v17 }
  0x57   : > { %1906 = vmatpush3.bf16.msra.mxu1 %v2097_v1  ;;  %1840 = vmatprep.mubr.msk.bf16.mxu1 %vm430_vm2, %v1647_v21  ;;  %v1662_v1 = vcombine.low %v2287_v15, %v895_v31  ;;  %v1718_v15 = vld [vmem:[%s2471_s2] ss:$0 sm:$0xff] }
  0x58   : > { %1895 = vmatpush3.bf16.msra.mxu0 %v2021_v8  ;;  %1905 = vmatprep.subr.bf16.mxu1 %v2108_v3  ;;  %v1734_v8 = vunpack.c.h.bf16 %v1740_v47 }
  0x5b   : > { %1889 = vmatmul.mubr.msk.bf16.gmra.mrb[4].mxu0 %vm430_vm2, %v1699_v25  ;;  %1907 = vmatpush3.bf16.msra.mxu1 %v2108_v3 }
  0x5c   : > { %1896 = vmatprep.mubr.msk.bf16.mxu0 %vm430_vm2, %v1632_v52 }
  0x5e   : > { %1841 = vmatmul.mubr.msk.bf16.gmra.mrb[4].mxu1 %vm430_vm2, %v1648_v28 }
  0x5f   : > { %1852 = vmatprep.mubr.msk.bf16.mxu1 %vm430_vm2, %v1661_v32 }
  0x63   : > { %1897 = vmatmul.mubr.msk.bf16.vlgmr.msra.gmra.mrb[0].mxu0 %vm430_vm2, %v1633_v53 }
  0x64   : > { %1900 = vmatprep.mubr.msk.bf16.mxu0 %vm430_vm2, %v1634_v18 }
  0x6a   : > { %1853 = vmatmul.mubr.msk.bf16.vlgmr.msra.gmra.mrb[4].mxu1 %vm430_vm2, %v1662_v1 }
  0x6b   : > { %1901 = vmatmul.mubr.msk.bf16.gmra.mrb[4].mxu0 %vm430_vm2, %v1711_v49 }
 0x129   : > { %v1838_v3 = vpop.f32.mrb[0].mxu1 }
 0x12a   : > { %v843_v59 = vpop.f32.mrb[1].mxu1 }
 0x12b   : > { %v1839_v13 = vpop.f32.mrb[2].mxu1 }
 0x12c   : > { %v846_v55 = vpop.f32.mrb[3].mxu1 }
 0x136   : > { %v1898_v23 = vpop.f32.mrb[0].mxu0 }
 0x137   : > { %v1908_v54 = vadd.f32 %v1898_v23, %v1838_v3  ;;  %v1381_v34 = vpop.f32.mrb[1].mxu0 }
 0x138   : > { %v1909_v35 = vadd.f32 %v1381_v34, %v843_v59  ;;  %v1899_v37 = vpop.f32.mrb[2].mxu0 }
 0x139   : > { %v1429_v38 = vadd.f32 %v1908_v54, %v1718_v15  ;;  %v1910_v20 = vadd.f32 %v1899_v37, %v1839_v13  ;;  %v1384_v40 = vpop.f32.mrb[3].mxu0 }
 0x13a   : > { %v1427_v7 = vadd.f32 %v1909_v35, %v1718_v15  ;;  %v1911_v41 = vadd.f32 %v1384_v40, %v846_v55 }
 0x13b   : > { %v1453_v43 = vadd.f32 %v1729_v33, %v1429_v38  ;;  %v1430_v44 = vadd.f32 %v1910_v20, %v1718_v15 }
 0x13c   : > { %v1451_v46 = vadd.f32 %v1725_v36, %v1427_v7  ;;  %v1428_v6 = vadd.f32 %v1911_v41, %v1718_v15 }
 0x13d   : > { %v1461_v50 = vmax.f32 %v1453_v43, 0.0  ;;  %v1454_v4 = vadd.f32 %v1730_v39, %v1430_v44  ;;  %v1854_v51 = vpop.f32.mrb[4].mxu1 }
 0x13e   : > { %v1459_v48 = vmax.f32 %v1451_v46, 0.0  ;;  %v1452_v52 = vadd.f32 %v1726_v42, %v1428_v6  ;;  %v1902_v53 = vpop.f32.mrb[4].mxu0  ;;  %v980_v56 = vpop.f32.mrb[5].mxu1 }
 0x13f   : > { %v1469_v57 = vpack.c.bf16 %v1461_v50, %v1461_v50  ;;  %v1462_v60 = vmax.f32 %v1454_v4, 0.0  ;;  %v1912_v62 = vadd.f32 %v1902_v53, %v1854_v51  ;;  %v1397_v11 = vpop.f32.mrb[5].mxu0  ;;  %v1855_v12 = vpop.f32.mrb[6].mxu1 }
 0x140   : > { %v1467_v5 = vpack.c.bf16 %v1459_v48, %v1459_v48  ;;  %v1460_v14 = vmax.f32 %v1452_v52, 0.0  ;;  %v1913_v16 = vadd.f32 %v1397_v11, %v980_v56  ;;  %v1903_v18 = vpop.f32.mrb[6].mxu0  ;;  %v983_v19 = vpop.f32.mrb[7].mxu1 }
 0x141   : > { %1478 = vst.msk [vmem:[%s2442_s22 + $0x8] sm:$0xf] %vm1475_vm7, %v1469_v57  ;;  %v1470_v22 = vpack.c.bf16 %v1462_v60, %v1462_v60  ;;  %v1433_v24 = vadd.f32 %v1912_v62, %v1718_v15  ;;  %v1914_v27 = vadd.f32 %v1903_v18, %v1855_v12  ;;  %v1400_v30 = vpop.f32.mrb[7].mxu0 }
 0x142   : > { %1476 = vst.msk [vmem:[%s2442_s22] sm:$0xf] %vm1475_vm7, %v1467_v5  ;;  %v1468_v26 = vpack.c.bf16 %v1460_v14, %v1460_v14  ;;  %v1431_v29 = vadd.f32 %v1913_v16, %v1718_v15  ;;  %v1915_v63 = vadd.f32 %v1400_v30, %v983_v19 }
 0x143   : > { %1479 = vst.msk [vmem:[%s2442_s22 + $0xc] sm:$0xf] %vm1475_vm7, %v1470_v22  ;;  %v1457_v17 = vadd.f32 %v1737_v2, %v1433_v24  ;;  %v1434_v21 = vadd.f32 %v1914_v27, %v1718_v15 }
 0x144   : > { %1477 = vst.msk [vmem:[%s2442_s22 + $0x4] sm:$0xf] %vm1475_vm7, %v1468_v26  ;;  %v1455_v31 = vadd.f32 %v1733_v58, %v1431_v29  ;;  %v1432_v10 = vadd.f32 %v1915_v63, %v1718_v15 }
 0x145   : > { %v1465_v25 = vmax.f32 %v1457_v17, 0.0  ;;  %v1458_v28 = vadd.f32 %v1738_v0, %v1434_v21 }
 0x146   : > { %v1463_v32 = vmax.f32 %v1455_v31, 0.0  ;;  %v1456_v1 = vadd.f32 %v1734_v8, %v1432_v10 }
 0x147   : > { %v1473_v49 = vpack.c.bf16 %v1465_v25, %v1465_v25  ;;  %v1466_v3 = vmax.f32 %v1458_v28, 0.0 }
 0x148   : > { %v1471_v59 = vpack.c.bf16 %v1463_v32, %v1463_v32  ;;  %v1464_v13 = vmax.f32 %v1456_v1, 0.0 }
 0x149   : > { %1482 = vst.msk [vmem:[%s2442_s22 + $0x18] sm:$0xf] %vm1475_vm7, %v1473_v49  ;;  %v1474_v55 = vpack.c.bf16 %v1466_v3, %v1466_v3 }
 0x14a   : > { %1480 = vst.msk [vmem:[%s2442_s22 + $0x10] sm:$0xf] %vm1475_vm7, %v1471_v59  ;;  %v1472_v61 = vpack.c.bf16 %v1464_v13, %v1464_v13 }
 0x14b   : > { %1483 = vst.msk [vmem:[%s2442_s22 + $0x1c] sm:$0xf] %vm1475_vm7, %v1474_v55 }
 0x14c   : > { %1481 = vst.msk [vmem:[%s2442_s22 + $0x14] sm:$0xf] %vm1475_vm7, %v1472_v61 }
 0x14d PF: > { %s14_s17 = sadd.s32 1, %s2046_s17   ;;  %s2478_s15 = smov %s2042_s16 }
 0x14e   : > { %p11_p5 = scmp.ge.s32.totalorder %s14_s17, 4   ;;  %s2479_s16 = smov %s2481_s18 }
 0x150   :  { %13 = sbr.rel (!%p11_p5) target bundleno = 2 (0x2), region = 78 }

// kernel: _lambda_.68
= control target key start
LH: loop header
LB: loop body
LE: loop exit
PB: predicated region body
PF: predicated region fallthrough
CT: control target
= control target key end

     0   :  { %vm68_vm0 = vcmask 523264   ;;  %vm144_vm1 = vcmask 519168   ;;  %s247_s1 = inlined_call_operand.vmem [shape: bf16[64,64], index: 1, kind: input, shape index: {}]   ;;  %s248_s0 = inlined_call_operand.vmem [shape: bf16[32,64], index: 0, kind: input, shape index: {}]   ;;  %s249_s2 = inlined_call_operand.vmem [shape: f32[1,64], index: 2, kind: input, shape index: {}]   ;;  %s250_s3 = inlined_call_operand.vmem [shape: bf16[32,64], index: 3, kind: output, shape index: {}]  }
   0x1   :  { %v188_v0 = vld [vmem:[%s247_s1] sm:$0xff]   ;;  %v189_v1 = vld [vmem:[%s247_s1 + $0x8] sm:$0xff]   ;;  %v190_v2 = vld [vmem:[%s247_s1 + $0x10] sm:$0xff]  }
   0x2   :  { %176 = vmatprep.subr.bf16.mxu0 %v188_v0  ;;  %v192_v3 = vld [vmem:[%s248_s0] sm:$0xff]   ;;  %v191_v4 = vld [vmem:[%s247_s1 + $0x18] sm:$0xff]   ;;  %v193_v5 = vld [vmem:[%s248_s0 + $0x8] sm:$0xff]  }
   0x3   :  { %177 = vmatpush3.bf16.msra.mxu0 %v188_v0  ;;  %184 = vmatprep.mubr.msk.bf16.mxu0 %vm68_vm0, %v192_v3  ;;  %v153_v6 = vld [vmem:[%s249_s2] ss:$0 sm:$0xff] }
   0x4   :  { %178 = vmatprep.subr.bf16.mxu0 %v189_v1 }
   0x7   :  { %179 = vmatpush3.bf16.msra.mxu0 %v189_v1 }
   0x8   :  { %180 = vmatprep.subr.bf16.mxu0 %v190_v2 }
   0xb   :  { %181 = vmatpush3.bf16.msra.mxu0 %v190_v2 }
   0xc   :  { %182 = vmatprep.subr.bf16.mxu0 %v191_v4 }
   0xf   :  { %183 = vmatpush3.bf16.msra.mxu0 %v191_v4 }
  0x12   :  { %185 = vmatmul.mubr.msk.bf16.vlgmr.msra.gmra.mrb[0].mxu0 %vm68_vm0, %v193_v5 }
  0xe5   :  { %v186_v7 = vpop.f32.mrb[0].mxu0 }
  0xe6   :  { %v118_v8 = vadd.f32 %v186_v7, %v153_v6  ;;  %v109_v9 = vpop.f32.mrb[1].mxu0 }
  0xe7   :  { %v110_v10 = vadd.f32 %v153_v6, %v109_v9  ;;  %v187_v11 = vpop.f32.mrb[2].mxu0 }
  0xe8   :  { %v126_v12 = vmax.f32 %v118_v8, 0.0  ;;  %v121_v13 = vadd.f32 %v187_v11, %v153_v6  ;;  %v112_v14 = vpop.f32.mrb[3].mxu0 }
  0xe9   :  { %v124_v15 = vmax.f32 %v110_v10, 0.0  ;;  %v113_v16 = vadd.f32 %v153_v6, %v112_v14 }
  0xea   :  { %v168_v17 = vpack.c.bf16 %v126_v12, %v126_v12  ;;  %v127_v18 = vmax.f32 %v121_v13, 0.0 }
  0xeb   :  { %v166_v19 = vpack.c.bf16 %v124_v15, %v124_v15  ;;  %v125_v20 = vmax.f32 %v113_v16, 0.0 }
  0xec   :  { %147 = vst.msk [vmem:[%s250_s3 + $0x8] sm:$0xf] %vm144_vm1, %v168_v17  ;;  %v169_v21 = vpack.c.bf16 %v127_v18, %v127_v18 }
  0xed   :  { %145 = vst.msk [vmem:[%s250_s3] sm:$0xf] %vm144_vm1, %v166_v19  ;;  %v167_v22 = vpack.c.bf16 %v125_v20, %v125_v20 }
  0xee   :  { %148 = vst.msk [vmem:[%s250_s3 + $0xc] sm:$0xf] %vm144_vm1, %v169_v21 }
  0xef   :  { %146 = vst.msk [vmem:[%s250_s3 + $0x4] sm:$0xf] %vm144_vm1, %v167_v22 }

// kernel: _lambda_.67
= control target key start
LH: loop header
LB: loop body
LE: loop exit
PB: predicated region body
PF: predicated region fallthrough
CT: control target
= control target key end

     0   :  { %vm204_vm0 = vcmask 261120   ;;  %vm329_vm1 = vcmask 519168   ;;  %s550_s1 = inlined_call_operand.vmem [shape: bf16[288,64], index: 1, kind: input, shape index: {}]   ;;  %s551_s0 = inlined_call_operand.vmem [shape: bf16[32,288], index: 0, kind: input, shape index: {}]   ;;  %s552_s2 = inlined_call_operand.vmem [shape: f32[1,64], index: 2, kind: input, shape index: {}]   ;;  %s553_s3 = inlined_call_operand.vmem [shape: bf16[32,64], index: 3, kind: output, shape index: {}]  }
   0x1   :  { %v413_v0 = vld [vmem:[%s550_s1 + $0x40] sm:$0xff]   ;;  %v415_v2 = vld [vmem:[%s550_s1 + $0x48] sm:$0xff]   ;;  %v417_v4 = vld [vmem:[%s550_s1 + $0x50] sm:$0xff]  }
   0x2   :  { %v414_v1 = vld [vmem:[%s550_s1] sm:$0xff]   ;;  %373 = vmatprep.subr.bf16.mxu0 %v413_v0  ;;  %v416_v3 = vld [vmem:[%s550_s1 + $0x8] sm:$0xff]   ;;  %v418_v5 = vld [vmem:[%s550_s1 + $0x10] sm:$0xff]  }
   0x3   :  { %374 = vmatpush3.bf16.msra.mxu0 %v414_v1  ;;  %v419_v6 = vld [vmem:[%s550_s1 + $0x58] sm:$0xff]   ;;  %v421_v8 = vld [vmem:[%s550_s1 + $0x60] sm:$0xff]   ;;  %v423_v11 = vld [vmem:[%s550_s1 + $0x68] sm:$0xff]  }
   0x4   :  { %375 = vmatprep.subr.bf16.mxu0 %v415_v2  ;;  %v420_v7 = vld [vmem:[%s550_s1 + $0x18] sm:$0xff]   ;;  %v422_v9 = vld [vmem:[%s550_s1 + $0x20] sm:$0xff]   ;;  %v424_v12 = vld [vmem:[%s550_s1 + $0x28] sm:$0xff]  }
   0x5   :  { %v428_v10 = vld [vmem:[%s550_s1 + $0x80] sm:$0xff]   ;;  %v425_v13 = vld [vmem:[%s550_s1 + $0x70] sm:$0xff]   ;;  %v433_v15 = vld [vmem:[%s550_s1 + $0x88] sm:$0xff]  }
   0x6   :  { %405 = vmatprep.subr.bf16.mxu1 %v428_v10  ;;  %v432_v14 = vld [vmem:[%s551_s0 + $0x4] ss:$12 sps:$4 sm:$0xff]   ;;  %v434_v16 = vld [vmem:[%s551_s0 + $0x8] ss:$12 sps:$4 sm:$0xff]   ;;  %v435_v17 = vld [vmem:[%s551_s0 + $0x20] ss:$12 sps:$4 sm:$0xff]  }
   0x7   :  { %376 = vmatpush3.bf16.msra.mxu0 %v416_v3  ;;  %406 = vmatpush3.bf16.msra.mxu1 %v428_v10  ;;  %v426_v18 = vld [vmem:[%s550_s1 + $0x30] sm:$0xff]   ;;  %v427_v19 = vld [vmem:[%s550_s1 + $0x78] sm:$0xff]   ;;  %v430_v21 = vld [vmem:[%s551_s0] ss:$12 sps:$4 sm:$0xff]  }
   0x8   :  { %377 = vmatprep.subr.bf16.mxu0 %v417_v4  ;;  %243 = vmatprep.mubr.bf16.mxu0 %v432_v14  ;;  %v429_v20 = vld [vmem:[%s550_s1 + $0x38] sm:$0xff]   ;;  %v338_v30 = vld [vmem:[%s552_s2] ss:$0 sm:$0xff] }
   0x9   :  { %407 = vmatprep.subr.bf16.mxu1 %v433_v15  ;;  %409 = vmatprep.mubr.msk.bf16.mxu1 %vm204_vm0, %v434_v16  ;;  %v436_v22 = vld [vmem:[%s551_s0 + $0x1c] ss:$12 sps:$4 sm:$0xff]   ;;  %v438_v23 = vld [vmem:[%s551_s0 + $0x18] ss:$12 sps:$4 sm:$0xff]  }
   0xb   :  { %378 = vmatpush3.bf16.msra.mxu0 %v418_v5  ;;  %408 = vmatpush3.bf16.msra.mxu1 %v433_v15 }
   0xc   :  { %379 = vmatprep.subr.bf16.mxu0 %v419_v6 }
   0xe   :  { %410 = vmatmul.mubr.msk.bf16.vlgmr.msra.gmra.mrb[0].mxu1 %vm204_vm0, %v435_v17 }
   0xf   :  { %380 = vmatpush3.bf16.msra.mxu0 %v420_v7 }
  0x10   :  { %381 = vmatprep.subr.bf16.mxu0 %v421_v8 }
  0x13   :  { %382 = vmatpush3.bf16.msra.mxu0 %v422_v9 }
  0x14   :  { %383 = vmatprep.subr.bf16.mxu0 %v423_v11 }
  0x17   :  { %384 = vmatpush3.bf16.msra.mxu0 %v424_v12 }
  0x18   :  { %385 = vmatprep.subr.bf16.mxu0 %v425_v13 }
  0x1b   :  { %386 = vmatpush3.bf16.msra.mxu0 %v426_v18 }
  0x1c   :  { %387 = vmatprep.subr.bf16.mxu0 %v427_v19 }
  0x1f   :  { %388 = vmatpush3.bf16.msra.mxu0 %v429_v20 }
  0x22   :  { %244 = vmatmul.mubr.bf16.vlgmr.msra.gmra.mrb[0].mxu0 %v430_v21 }
  0x23   :  { %251 = vmatprep.mubr.bf16.mxu0 %v436_v22 }
  0x2a   :  { %252 = vmatmul.mubr.bf16.gmra.mrb[4].mxu0 %v438_v23 }
  0xe1   :  { %v411_v24 = vpop.f32.mrb[0].mxu1 }
  0xe2   :  { %v294_v25 = vpop.f32.mrb[1].mxu1 }
  0xe3   :  { %v412_v26 = vpop.f32.mrb[2].mxu1 }
  0xe4   :  { %v297_v27 = vpop.f32.mrb[3].mxu1 }
  0xf5   :  { %v389_v28 = vpop.f32.mrb[0].mxu0 }
  0xf6   :  { %v390_v29 = vpop.f32.mrb[1].mxu0 }
  0xf7   :  { %v391_v31 = vadd.f32 %v390_v29, %v389_v28  ;;  %v392_v32 = vpop.f32.mrb[2].mxu0 }
  0xf8   :  { %v393_v33 = vpop.f32.mrb[3].mxu0 }
  0xf9   :  { %v394_v34 = vadd.f32 %v393_v33, %v392_v32  ;;  %v246_v35 = vadd.f32 %v391_v31, %v338_v30 }
  0xfb   :  { %v295_v36 = vadd.f32 %v294_v25, %v246_v35  ;;  %v249_v37 = vadd.f32 %v394_v34, %v338_v30 }
  0xfd   :  { %v309_v38 = vmax.f32 %v295_v36, 0.0  ;;  %v298_v39 = vadd.f32 %v297_v27, %v249_v37  ;;  %v395_v40 = vpop.f32.mrb[4].mxu0 }
  0xfe   :  { %v396_v41 = vpop.f32.mrb[5].mxu0 }
  0xff   :  { %v369_v42 = vpack.c.bf16 %v309_v38, %v309_v38  ;;  %v310_v43 = vmax.f32 %v298_v39, 0.0  ;;  %v397_v44 = vadd.f32 %v396_v41, %v395_v40  ;;  %v398_v45 = vpop.f32.mrb[6].mxu0 }
 0x100   :  { %v399_v46 = vpop.f32.mrb[7].mxu0 }
 0x101   :  { %330 = vst.msk [vmem:[%s553_s3] sm:$0xf] %vm329_vm1, %v369_v42  ;;  %v370_v47 = vpack.c.bf16 %v310_v43, %v310_v43  ;;  %v254_v48 = vadd.f32 %v397_v44, %v338_v30  ;;  %v400_v49 = vadd.f32 %v399_v46, %v398_v45 }
 0x103   :  { %331 = vst.msk [vmem:[%s553_s3 + $0x4] sm:$0xf] %vm329_vm1, %v370_v47  ;;  %v303_v50 = vadd.f32 %v411_v24, %v254_v48  ;;  %v257_v51 = vadd.f32 %v400_v49, %v338_v30 }
 0x105   :  { %v311_v52 = vmax.f32 %v303_v50, 0.0  ;;  %v306_v53 = vadd.f32 %v412_v26, %v257_v51 }
 0x107   :  { %v371_v54 = vpack.c.bf16 %v311_v52, %v311_v52  ;;  %v312_v55 = vmax.f32 %v306_v53, 0.0 }
 0x109   :  { %332 = vst.msk [vmem:[%s553_s3 + $0x8] sm:$0xf] %vm329_vm1, %v371_v54  ;;  %v372_v56 = vpack.c.bf16 %v312_v55, %v312_v55 }
 0x10b   :  { %333 = vst.msk [vmem:[%s553_s3 + $0xc] sm:$0xf] %vm329_vm1, %v372_v56 }

// kernel: _lambda_.81
= control target key start
LH: loop header
LB: loop body
LE: loop exit
PB: predicated region body
PF: predicated region fallthrough
CT: control target
= control target key end

     0   :  { %s308_s1 = inlined_call_operand.vmem [shape: bf16[128,128], index: 1, kind: input, shape index: {}]   ;;  %s309_s0 = inlined_call_operand.vmem [shape: bf16[32,128], index: 0, kind: input, shape index: {}]   ;;  %s310_s2 = inlined_call_operand.vmem [shape: f32[1,128], index: 2, kind: input, shape index: {}]   ;;  %s311_s3 = inlined_call_operand.vmem [shape: bf16[32,128], index: 3, kind: output, shape index: {}]  }
   0x1   :  { %v239_v0 = vld [vmem:[%s308_s1] sm:$0xff]   ;;  %v240_v1 = vld [vmem:[%s308_s1 + $0x8] sm:$0xff]   ;;  %v241_v2 = vld [vmem:[%s308_s1 + $0x10] sm:$0xff]  }
   0x2   :  { %219 = vmatprep.subr.bf16.mxu0 %v239_v0  ;;  %v242_v3 = vld [vmem:[%s308_s1 + $0x18] sm:$0xff]   ;;  %v247_v4 = vld [vmem:[%s309_s0] sm:$0xff]   ;;  %v244_v6 = vld [vmem:[%s308_s1 + $0x28] sm:$0xff]  }
   0x3   :  { %220 = vmatpush3.bf16.msra.mxu0 %v239_v0  ;;  %235 = vmatprep.mubr.bf16.mxu0 %v247_v4  ;;  %v243_v5 = vld [vmem:[%s308_s1 + $0x20] sm:$0xff]   ;;  %v245_v7 = vld [vmem:[%s308_s1 + $0x30] sm:$0xff]   ;;  %v246_v8 = vld [vmem:[%s308_s1 + $0x38] sm:$0xff]  }
   0x4   :  { %221 = vmatprep.subr.bf16.mxu0 %v240_v1  ;;  %v248_v9 = vld [vmem:[%s309_s0 + $0x8] sm:$0xff]   ;;  %v179_v10 = vld [vmem:[%s310_s2] ss:$0 sm:$0xff] }
   0x7   :  { %222 = vmatpush3.bf16.msra.mxu0 %v240_v1 }
   0x8   :  { %223 = vmatprep.subr.bf16.mxu0 %v241_v2 }
   0xb   :  { %224 = vmatpush3.bf16.msra.mxu0 %v241_v2 }
   0xc   :  { %225 = vmatprep.subr.bf16.mxu0 %v242_v3 }
   0xf   :  { %226 = vmatpush3.bf16.msra.mxu0 %v242_v3 }
  0x10   :  { %227 = vmatprep.subr.bf16.mxu0 %v243_v5 }
  0x13   :  { %228 = vmatpush3.bf16.msra.mxu0 %v243_v5 }
  0x14   :  { %229 = vmatprep.subr.bf16.mxu0 %v244_v6 }
  0x17   :  { %230 = vmatpush3.bf16.msra.mxu0 %v244_v6 }
  0x18   :  { %231 = vmatprep.subr.bf16.mxu0 %v245_v7 }
  0x1b   :  { %232 = vmatpush3.bf16.msra.mxu0 %v245_v7 }
  0x1c   :  { %233 = vmatprep.subr.bf16.mxu0 %v246_v8 }
  0x1f   :  { %234 = vmatpush3.bf16.msra.mxu0 %v246_v8 }
  0x22   :  { %236 = vmatmul.mubr.bf16.vlgmr.msra.gmra.mrb[0].mxu0 %v248_v9 }
  0xf5   :  { %v237_v11 = vpop.f32.mrb[0].mxu0 }
  0xf6   :  { %v145_v12 = vadd.f32 %v237_v11, %v179_v10  ;;  %v136_v13 = vpop.f32.mrb[1].mxu0 }
  0xf7   :  { %v137_v14 = vadd.f32 %v179_v10, %v136_v13  ;;  %v238_v15 = vpop.f32.mrb[2].mxu0 }
  0xf8   :  { %v148_v16 = vadd.f32 %v238_v15, %v179_v10  ;;  %v139_v17 = vpop.f32.mrb[3].mxu0  ;;  %v153_v19 = vmax.f32 %v145_v12, 0.0 }
  0xf9   :  { %v140_v18 = vadd.f32 %v179_v10, %v139_v17  ;;  %v151_v21 = vmax.f32 %v137_v14, 0.0 }
  0xfa   :  { %v154_v20 = vmax.f32 %v148_v16, 0.0 }
  0xfb   :  { %v152_v22 = vmax.f32 %v140_v18, 0.0 }
  0xfc   :  { %v206_v23 = vpack.c.bf16 %v154_v20, %v153_v19 }
  0xfd   :  { %v201_v24 = vpack.c.bf16 %v152_v22, %v151_v21 }
  0xfe   :  { %208 = vst [vmem:[%s311_s3 + $0x8] sm:$0xff] %v206_v23  }
  0xff   :  { %202 = vst [vmem:[%s311_s3] sm:$0xff] %v201_v24  }

// kernel: _lambda_.69
= control target key start
LH: loop header
LB: loop body
LE: loop exit
PB: predicated region body
PF: predicated region fallthrough
CT: control target
= control target key end

     0   :  { %s1853_s15 = smov 0   ;;  %s1855_s16 = smov 0   ;;  %s2150_s0 = inlined_call_operand.vmem [shape: bf16[2,6,10,64], index: 0, kind: input, shape index: {}]   ;;  %s2151_s1 = inlined_call_operand.vmem [shape: bf16[3,3,64,64], index: 1, kind: input, shape index: {}]   ;;  %s2152_s2 = inlined_call_operand.vmem [shape: f32[1,64], index: 2, kind: input, shape index: {}]   ;;  %s2153_s3 = inlined_call_operand.vmem [shape: bf16[2,4,8,64], index: 3, kind: input, shape index: {}, may-alias: {3,4}]   ;;  %s2154_s4 = inlined_call_operand.vmem [shape: bf16[2,4,8,64], index: 4, kind: output, shape index: {}, may-alias: {3,4}]  }
   0x1   :  { %s1857_s17 = smov 0  }
   0x2 LB: > { %s26_s18 = sadd.s32 1, %s1822_s16  ;;  %p1385_p0 = scmp.ge.s32.totalorder %s1826_s17, 1  ;;  %s1826_s17 = sphi %s1857_s17, %s14_s17   ;;  %s1822_s16 = sphi %s1855_s16, %s2160_s16   ;;  %s1818_s15 = sphi %s1853_s15, %s2159_s15  }
   0x3   : > { %p28_p1 = scmp.ge.s32.totalorder %s26_s18, 2  ;;  %p193_p2 = scmp.lt.s32.totalorder %s1826_s17, 3 }
   0x5   : > { %s2162_s18 = smov (%p28_p1, %s26_s18), 0  ;;  %p194_p3 = pnand %p1385_p0, %p193_p2 }
   0x6   : > { %v1763_v0 = vld [vmem:[%s2151_s1 + $0x20] sm:$0xff] (!%p194_p3)   ;;  %p232_p4 = scmp.lt.s32.totalorder (!%p194_p3), %s1818_s15, 1  ;;  %v1765_v2 = vld [vmem:[%s2151_s1 + $0x28] sm:$0xff] (!%p194_p3)   ;;  %v1767_v4 = vld [vmem:[%s2151_s1 + $0x30] sm:$0xff] (!%p194_p3)   ;;  %vm282_vm0 = vsmask.f32 (!%p194_p3), 3328 }
   0x7   : > { %197 = sbr.rel (%p194_p3) target bundleno = 328 (0x148), region = 36  ;;  %v1764_v1 = vld [vmem:[%s2151_s1 + $0x80] sm:$0xff] (!%p194_p3)   ;;  %1598 = vmatprep.subr.bf16.mxu1 (!%p194_p3), %v1763_v0  ;;  %v1766_v3 = vld [vmem:[%s2151_s1 + $0x88] sm:$0xff] (!%p194_p3)   ;;  %v1768_v5 = vld [vmem:[%s2151_s1 + $0x90] sm:$0xff] (!%p194_p3)   ;;  %vm283_vm1 = vsmask.f32 (!%p194_p3), 7440 }
   0x8   : > { %1646 = vmatprep.subr.bf16.mxu0 (!%p194_p3), %v1764_v1  ;;  %1599 = vmatpush3.bf16.msra.mxu1 (!%p194_p3), %v1763_v0  ;;  %v1769_v6 = vld [vmem:[%s2151_s1 + $0x38] sm:$0xff] (!%p194_p3)   ;;  %v1924_v21 = vld [vmem:[%s2151_s1] sm:$0xff] (!%p194_p3)   ;;  %vm1945_vm2 = vmor (!%p194_p3), %vm282_vm0, %vm283_vm1  ;;  %vm380_vm3 = vcmask (!%p194_p3), 523264   ;;  %vm529_vm4 = vcmask (!%p194_p3), 1042432   ;;  %vm530_vm5 = vcmask (!%p194_p3), 1046532   ;;  %vm1275_vm7 = vcmask (!%p194_p3), 519168  }
   0x9   : > { %1647 = vmatpush3.bf16.msra.mxu0 (!%p194_p3), %v1764_v1  ;;  %1600 = vmatprep.subr.bf16.mxu1 (!%p194_p3), %v1765_v2  ;;  %v1770_v10 = vld [vmem:[%s2151_s1 + $0x98] sm:$0xff] (!%p194_p3)   ;;  %v1935_v25 = vld [vmem:[%s2151_s1 + $0xa0] sm:$0xff] (!%p194_p3)   ;;  %vm1985_vm6 = vmor (!%p194_p3), %vm529_vm4, %vm530_vm5 }
   0xa   : > { %1648 = vmatprep.subr.bf16.mxu0 (!%p194_p3), %v1766_v3  ;;  %v1802_v30 = vld [vmem:[%s2151_s1 + $0x110] sm:$0xff] (!%p194_p3)  }
   0xc   : > { %1601 = vmatpush3.bf16.msra.mxu1 (!%p194_p3), %v1765_v2 }
   0xd   : > { %1649 = vmatpush3.bf16.msra.mxu0 (!%p194_p3), %v1766_v3  ;;  %1602 = vmatprep.subr.bf16.mxu1 (!%p194_p3), %v1767_v4 }
   0xe   : > { %s2164_s15 = smov (!%p232_p4, %s1818_s15), 1  ;;  %1650 = vmatprep.subr.bf16.mxu0 %v1768_v5 }
   0xf   : > { %s1738_s29 = smul.u32 48, %s2164_s15  ;;  %s1533_s30 = sshll.u32 %s2164_s15, 4 }
  0x10   : > { %1603 = vmatpush3.bf16.msra.mxu1 %v1767_v4  ;;  %s245_s7 = scalar_lea.vmem %s2153_s3, %s1533_s30  ;;  %s255_s12 = scalar_lea.vmem %s2154_s4, %s1533_s30 }
  0x11   : > { %s1895_s8 = scalar_lea.vmem %s2150_s0, %s1738_s29  ;;  %1651 = vmatpush3.bf16.msra.mxu0 %v1768_v5  ;;  %1604 = vmatprep.subr.bf16.mxu1 %v1769_v6 }
  0x12   : > { %v1901_v7 = vld [vmem:[%s1895_s8] sm:$0xf]  ;;  %v1904_v8 = vld [vmem:[%s1895_s8 + $0x4] sm:$0x1]  ;;  %v1907_v9 = vld [vmem:[%s1895_s8 + $0x8] sm:$0xf]  ;;  %1652 = vmatprep.subr.bf16.mxu0 %v1770_v10 }
  0x13   : > { %v1913_v11 = vld [vmem:[%s1895_s8 + $0xc] sm:$0x1]  ;;  %v286_v12 = vshrl.u32 %v1901_v7, 16  ;;  %v289_v13 = vshll.u32 %v1901_v7, 16  ;;  %v295_v14 = vshll.u32 %v1904_v8, 16  ;;  %v300_v15 = vshrl.u32 %v1907_v9, 16 }
  0x14   : > { %v303_v16 = vshll.u32 %v1907_v9, 16  ;;  %v309_v17 = vshll.u32 %v1913_v11, 16  ;;  %v1927_v23 = vld [vmem:[%s1895_s8 + $0x10] sm:$0xf]  ;;  %v1930_v24 = vld [vmem:[%s1895_s8 + $0x14] sm:$0x1]  ;;  %1605 = vmatpush3.bf16.msra.mxu1 %v1769_v6  ;;  %v1407_v63 = vcombine.low %v1901_v7, %v1907_v9 }
  0x15   : > { %v288_v18 = vrot.slane %v286_v12, 4  ;;  %v291_v19 = vrot.slane %v289_v13, 5  ;;  %v302_v20 = vrot.slane %v300_v15, 4  ;;  %v297_v27 = vrot.slane %v295_v14, 5  ;;  %v1938_v28 = vld [vmem:[%s1895_s8 + $0x18] sm:$0xf]  ;;  %1653 = vmatpush3.bf16.msra.mxu0 %v1770_v10  ;;  %1610 = vmatprep.subr.bf16.mxu1 %v1924_v21 }
  0x16   : > { %v305_v22 = vrot.slane %v303_v16, 5  ;;  %v1941_v29 = vld [vmem:[%s1895_s8 + $0x1c] sm:$0x1]  ;;  %v311_v32 = vrot.slane %v309_v17, 5  ;;  %v1951_v34 = vld [vmem:[%s1895_s8 + $0x20] sm:$0xf]  ;;  %1658 = vmatprep.subr.bf16.mxu0 %v1935_v25 }
  0x17   : > { %v292_v26 = vor.u32 %v291_v19, %v288_v18  ;;  %v314_v35 = vshrl.u32 %v1927_v23, 16  ;;  %v317_v36 = vshll.u32 %v1927_v23, 16  ;;  %v323_v37 = vshll.u32 %v1930_v24, 16  ;;  %v1963_v43 = vld [vmem:[%s1895_s8 + $0x24] sm:$0x1]  ;;  %v1773_v6 = vld [vmem:[%s2151_s1 + $0x8] sm:$0xff]  }
  0x18   : > { %v306_v31 = vor.u32 %v305_v22, %v302_v20  ;;  %v328_v39 = vshrl.u32 %v1938_v28, 16  ;;  %v331_v40 = vshll.u32 %v1938_v28, 16  ;;  %v337_v41 = vshll.u32 %v1941_v29, 16  ;;  %v1774_v15 = vld [vmem:[%s2151_s1 + $0xa8] sm:$0xff]   ;;  %v1775_v17 = vld [vmem:[%s2151_s1 + $0x10] sm:$0xff]  }
  0x19   : > { %v293_v33 = vrot.slane %v292_v26, 4  ;;  %v316_v44 = vrot.slane %v314_v35, 4  ;;  %v319_v45 = vrot.slane %v317_v36, 5  ;;  %v325_v51 = vrot.slane %v323_v37, 5  ;;  %v1781_v37 = vld [vmem:[%s2151_s1 + $0xc0] sm:$0xff]  }
  0x1a   : > { %v307_v38 = vrot.slane %v306_v31, 4  ;;  %v330_v47 = vrot.slane %v328_v39, 4  ;;  %v333_v48 = vrot.slane %v331_v40, 5  ;;  %v339_v52 = vrot.slane %v337_v41, 5  ;;  %v1784_v41 = vld [vmem:[%s2151_s1 + $0xc8] sm:$0xff]  }
  0x1b   : > { %v298_v42 = vsel %vm1945_vm2, %v293_v33, %v297_v27  ;;  %v320_v50 = vor.u32 %v319_v45, %v316_v44  ;;  %v743_v54 = vshrl.u32 %v1951_v34, 16  ;;  %v746_v55 = vshll.u32 %v1951_v34, 16  ;;  %v1787_v44 = vld [vmem:[%s2151_s1 + $0x58] sm:$0xff]  }
  0x1c   : > { %v312_v46 = vsel %vm1945_vm2, %v307_v38, %v311_v32  ;;  %v334_v53 = vor.u32 %v333_v48, %v330_v47  ;;  %v752_v56 = vshll.u32 %v1963_v43, 16  ;;  %v538_v61 = vrot.slane %v1913_v11, 5  ;;  %v1783_v38 = vld [vmem:[%s2151_s1 + $0x48] sm:$0xff]   ;;  %v1788_v45 = vld [vmem:[%s2151_s1 + $0xd8] sm:$0xff]   ;;  %v1530_v11 = vld [vmem:[%s2152_s2] ss:$0 sm:$0xff] }
  0x1d   : > { %v1399_v49 = vcombine.low %v298_v42, %v312_v46  ;;  %v321_v57 = vrot.slane %v320_v50, 4  ;;  %v745_v59 = vrot.slane %v743_v54, 4  ;;  %v748_v60 = vrot.slane %v746_v55, 5  ;;  %v1785_v42 = vld [vmem:[%s2151_s1 + $0x50] sm:$0xff]   ;;  %v2071_v47 = vld [vmem:[%s1895_s8 + $0x28] sm:$0xf] }
  0x1e   : > { %v335_v58 = vrot.slane %v334_v53, 4  ;;  %v754_v2 = vrot.slane %v752_v56, 5  ;;  %v542_v5 = vrot.slane %v1930_v24, 5  ;;  %v1416_v12 = vrot.slane %v1907_v9, 9  ;;  %v1777_v24 = vld [vmem:[%s2151_s1 + $0x18] sm:$0xff]  }
  0x1f   : > { %1606 = vmatprep.mubr.msk.bf16.mxu1 %vm380_vm3, %v1399_v49  ;;  %v326_v62 = vsel %vm1945_vm2, %v321_v57, %v325_v51  ;;  %v749_v1 = vor.u32 %v748_v60, %v745_v59  ;;  %v1417_v13 = vrot.slane %v1927_v23, 9  ;;  %v534_v22 = vrot.slane %v1904_v8, 5  ;;  %v1790_v51 = vld [vmem:[%s2151_s1 + $0xe0] sm:$0xff]   ;;  %v273_v57 = vld [vmem:[%s1895_s8 + $0x2c] sm:$0x1]  ;;  %v1795_v60 = vld [vmem:[%s2151_s1 + $0xf0] sm:$0xff]  }
  0x20   : > { %v340_v0 = vsel %vm1945_vm2, %v335_v58, %v339_v52  ;;  %v1459_v3 = vcombine.low %v312_v46, %v326_v62  ;;  %v539_v18 = vsel %vm1985_vm6, %v1416_v12, %v538_v61  ;;  %v546_v26 = vrot.slane %v1941_v29, 5  ;;  %v1780_v29 = vld [vmem:[%s2151_s1 + $0x40] sm:$0xff]   ;;  %v1792_v52 = vld [vmem:[%s2151_s1 + $0x68] sm:$0xff]   ;;  %v1796_v61 = vld [vmem:[%s2151_s1 + $0x78] sm:$0xff]  }
  0x21   : > { %v1978_v4 = vcombine.low %v326_v62, %v340_v0  ;;  %v750_v10 = vrot.slane %v749_v1, 4  ;;  %v543_v19 = vsel %vm1985_vm6, %v1417_v13, %v542_v5  ;;  %v854_v27 = vrot.slane %v1963_v43, 5  ;;  %v1786_v43 = vld [vmem:[%s2151_s1 + $0xd0] sm:$0xff]   ;;  %v1789_v46 = vld [vmem:[%s2151_s1 + $0x60] sm:$0xff]   ;;  %v1793_v58 = vld [vmem:[%s2151_s1 + $0xe8] sm:$0xff]  }
  0x22   : > { %1654 = vmatprep.mubr.msk.bf16.mxu0 %vm380_vm3, %v1459_v3  ;;  %v1476_v20 = vcombine.low %v539_v18, %v543_v19  ;;  %v1415_v31 = vrot.slane %v1901_v7, 9  ;;  %v1418_v8 = vrot.slane %v1938_v28, 9  ;;  %v1467_v32 = vrot.slane %v1951_v34, 9  ;;  %v1800_v3 = vld [vmem:[%s2151_s1 + $0x100] sm:$0xff]  }
  0x23   : > { %1607 = vmatmul.mubr.msk.bf16.vlgmr.msra.gmra.mrb[0].mxu1 %vm380_vm3, %v1978_v4  ;;  %v1995_v14 = vsel %vm1945_vm2, %v750_v10, %v754_v2  ;;  %v1408_v33 = vcombine.low %v1927_v23, %v1938_v28  ;;  %v1044_v49 = vshrl.u32 %v2071_v47, 16  ;;  %v1047_v50 = vshll.u32 %v2071_v47, 16 }
  0x24   : > { %1611 = vmatpush3.bf16.msra.mxu1 %v1924_v21  ;;  %1618 = vmatprep.mubr.msk.bf16.mxu1 %vm380_vm3, %v1407_v63  ;;  %v1460_v16 = vcombine.low %v340_v0, %v1995_v14  ;;  %v1776_v21 = vld [vmem:[%s2151_s1 + $0xb0] sm:$0xff]   ;;  %v535_v35 = vsel %vm1985_vm6, %v1415_v31, %v534_v22  ;;  %v547_v7 = vsel %vm1985_vm6, %v1418_v8, %v546_v26  ;;  %v1053_v59 = vshll.u32 %v273_v57, 16  ;;  %v1797_v0 = vld [vmem:[%s2151_s1 + $0xf8] sm:$0xff]  }
  0x25   : > { %1612 = vmatprep.subr.bf16.mxu1 %v1773_v6  ;;  %v2039_v36 = vsel %vm1985_vm6, %v1467_v32, %v854_v27  ;;  %v1427_v39 = vcombine.low %v535_v35, %v539_v18  ;;  %v1428_v48 = vcombine.low %v543_v19, %v547_v7  ;;  %v1443_v53 = vcombine.low %v1907_v9, %v1927_v23  ;;  %v1794_v9 = vld [vmem:[%s2151_s1 + $0x70] sm:$0xff]   ;;  %v1536_v18 = vld [vmem:[%s245_s7] sm:$0xff]  }
  0x26   : > { %1655 = vmatmul.mubr.msk.bf16.vlgmr.msra.gmra.mrb[0].mxu0 %vm380_vm3, %v1460_v16  ;;  %v1477_v40 = vcombine.low %v547_v7, %v2039_v36  ;;  %v1492_v54 = vcombine.low %v1951_v34, %v2071_v47  ;;  %v1046_v55 = vrot.slane %v1044_v49, 4  ;;  %v1049_v56 = vrot.slane %v1047_v50, 5 }
  0x27   : > { %1659 = vmatpush3.bf16.msra.mxu0 %v1935_v25  ;;  %1666 = vmatprep.mubr.msk.bf16.mxu0 %vm380_vm3, %v1476_v20  ;;  %v1778_v25 = vld [vmem:[%s2151_s1 + $0xb8] sm:$0xff]   ;;  %v1055_v63 = vrot.slane %v1053_v59, 5  ;;  %v1444_v1 = vcombine.low %v1938_v28, %v1951_v34  ;;  %v1801_v28 = vld [vmem:[%s2151_s1 + $0x108] sm:$0xff]   ;;  %v1151_v34 = vrot.slane %v273_v57, 5  ;;  %v1514_v5 = vrot.slane %v2071_v47, 9 }
  0x28   : > { %1613 = vmatpush3.bf16.msra.mxu1 %v1773_v6  ;;  %1660 = vmatprep.subr.bf16.mxu0 %v1774_v15  ;;  %v1050_v23 = vor.u32 %v1049_v56, %v1046_v55  ;;  %v1803_v6 = vld [vmem:[%s2151_s1 + $0x118] sm:$0xff]   ;;  %v1537_v26 = vunpack.c.l.bf16 %v1536_v18  ;;  %v1538_v35 = vunpack.c.h.bf16 %v1536_v18 }
  0x29   : > { %1614 = vmatprep.subr.bf16.mxu1 %v1775_v17  ;;  %v1152_v10 = vsel %vm1985_vm6, %v1514_v5, %v1151_v34 }
  0x2a   : > { %v1051_v62 = vrot.slane %v1050_v23, 4  ;;  %v1523_v12 = vcombine.low %v2039_v36, %v1152_v10 }
  0x2b   : > { %1661 = vmatpush3.bf16.msra.mxu0 %v1774_v15 }
  0x2c   : > { %1615 = vmatpush3.bf16.msra.mxu1 %v1775_v17  ;;  %1662 = vmatprep.subr.bf16.mxu0 %v1776_v21  ;;  %v1056_v2 = vsel %vm1945_vm2, %v1051_v62, %v1055_v63  ;;  %v1543_v17 = vld [vmem:[%s245_s7 + $0x8] sm:$0xff]  }
  0x2d   : > { %1616 = vmatprep.subr.bf16.mxu1 %v1777_v24  ;;  %v1542_v8 = vunpack.c.h.bf16 %v1543_v17 }
  0x2f   : > { %1663 = vmatpush3.bf16.msra.mxu0 %v1776_v21  ;;  %v1541_v21 = vunpack.c.l.bf16 %v1543_v17 }
  0x30   : > { %1617 = vmatpush3.bf16.msra.mxu1 %v1777_v24  ;;  %1664 = vmatprep.subr.bf16.mxu0 %v1778_v25 }
  0x31   : > { %1622 = vmatprep.subr.bf16.mxu1 %v1780_v29 }
  0x33   : > { %1619 = vmatmul.mubr.msk.bf16.vlgmr.msra.gmra.mrb[0].mxu1 %vm380_vm3, %v1408_v33  ;;  %1665 = vmatpush3.bf16.msra.mxu0 %v1778_v25 }
  0x34   : > { %1623 = vmatpush3.bf16.msra.mxu1 %v1780_v29  ;;  %1670 = vmatprep.subr.bf16.mxu0 %v1781_v37 }
  0x35   : > { %1624 = vmatprep.subr.bf16.mxu1 %v1783_v38  ;;  %1630 = vmatprep.mubr.msk.bf16.mxu1 %vm380_vm3, %v1427_v39 }
  0x36   : > { %1667 = vmatmul.mubr.msk.bf16.vlgmr.msra.gmra.mrb[0].mxu0 %vm380_vm3, %v1477_v40 }
  0x37   : > { %1671 = vmatpush3.bf16.msra.mxu0 %v1781_v37  ;;  %1678 = vmatprep.mubr.msk.bf16.mxu0 %vm380_vm3, %v1408_v33 }
  0x38   : > { %1625 = vmatpush3.bf16.msra.mxu1 %v1783_v38  ;;  %1672 = vmatprep.subr.bf16.mxu0 %v1784_v41 }
  0x39   : > { %1626 = vmatprep.subr.bf16.mxu1 %v1785_v42 }
  0x3b   : > { %1673 = vmatpush3.bf16.msra.mxu0 %v1784_v41 }
  0x3c   : > { %1627 = vmatpush3.bf16.msra.mxu1 %v1785_v42  ;;  %1674 = vmatprep.subr.bf16.mxu0 %v1786_v43 }
  0x3d   : > { %1628 = vmatprep.subr.bf16.mxu1 %v1787_v44 }
  0x3f   : > { %1675 = vmatpush3.bf16.msra.mxu0 %v1786_v43 }
  0x40   : > { %1629 = vmatpush3.bf16.msra.mxu1 %v1787_v44  ;;  %1676 = vmatprep.subr.bf16.mxu0 %v1788_v45 }
  0x41   : > { %1634 = vmatprep.subr.bf16.mxu1 %v1789_v46 }
  0x43   : > { %1631 = vmatmul.mubr.msk.bf16.vlgmr.msra.gmra.mrb[0].mxu1 %vm380_vm3, %v1428_v48  ;;  %1677 = vmatpush3.bf16.msra.mxu0 %v1788_v45 }
  0x44   : > { %1635 = vmatpush3.bf16.msra.mxu1 %v1789_v46  ;;  %1682 = vmatprep.subr.bf16.mxu0 %v1790_v51 }
  0x45   : > { %1636 = vmatprep.subr.bf16.mxu1 %v1792_v52  ;;  %1642 = vmatprep.mubr.msk.bf16.mxu1 %vm380_vm3, %v1443_v53 }
  0x46   : > { %1679 = vmatmul.mubr.msk.bf16.vlgmr.msra.gmra.mrb[0].mxu0 %vm380_vm3, %v1492_v54 }
  0x47   : > { %1683 = vmatpush3.bf16.msra.mxu0 %v1790_v51  ;;  %1690 = vmatprep.mubr.msk.bf16.mxu0 %vm380_vm3, %v1978_v4  ;;  %v1507_v4 = vcombine.low %v1995_v14, %v1056_v2 }
  0x48   : > { %1637 = vmatpush3.bf16.msra.mxu1 %v1792_v52  ;;  %1684 = vmatprep.subr.bf16.mxu0 %v1793_v58 }
  0x49   : > { %1638 = vmatprep.subr.bf16.mxu1 %v1794_v9 }
  0x4b   : > { %1685 = vmatpush3.bf16.msra.mxu0 %v1793_v58 }
  0x4c   : > { %1639 = vmatpush3.bf16.msra.mxu1 %v1794_v9  ;;  %1686 = vmatprep.subr.bf16.mxu0 %v1795_v60 }
  0x4d   : > { %1640 = vmatprep.subr.bf16.mxu1 %v1796_v61 }
  0x4f   : > { %1687 = vmatpush3.bf16.msra.mxu0 %v1795_v60 }
  0x50   : > { %1641 = vmatpush3.bf16.msra.mxu1 %v1796_v61  ;;  %1688 = vmatprep.subr.bf16.mxu0 %v1797_v0 }
  0x53   : > { %1643 = vmatmul.mubr.msk.bf16.vlgmr.msra.gmra.mrb[0].mxu1 %vm380_vm3, %v1444_v1  ;;  %1689 = vmatpush3.bf16.msra.mxu0 %v1797_v0 }
  0x54   : > { %1694 = vmatprep.subr.bf16.mxu0 %v1800_v3 }
  0x56   : > { %1691 = vmatmul.mubr.msk.bf16.vlgmr.msra.gmra.mrb[0].mxu0 %vm380_vm3, %v1507_v4 }
  0x57   : > { %1695 = vmatpush3.bf16.msra.mxu0 %v1800_v3  ;;  %1702 = vmatprep.mubr.msk.bf16.mxu0 %vm380_vm3, %v1428_v48 }
  0x58   : > { %1696 = vmatprep.subr.bf16.mxu0 %v1801_v28 }
  0x5b   : > { %1697 = vmatpush3.bf16.msra.mxu0 %v1801_v28 }
  0x5c   : > { %1698 = vmatprep.subr.bf16.mxu0 %v1802_v30 }
  0x5f   : > { %1699 = vmatpush3.bf16.msra.mxu0 %v1802_v30 }
  0x60   : > { %1700 = vmatprep.subr.bf16.mxu0 %v1803_v6 }
  0x63   : > { %1701 = vmatpush3.bf16.msra.mxu0 %v1803_v6 }
  0x66   : > { %1703 = vmatmul.mubr.msk.bf16.vlgmr.msra.gmra.mrb[0].mxu0 %vm380_vm3, %v1523_v12 }
 0x126   : > { %v1644_v13 = vpop.f32.mrb[0].mxu1 }
 0x127   : > { %v723_v14 = vpop.f32.mrb[1].mxu1 }
 0x128   : > { %v1645_v15 = vpop.f32.mrb[2].mxu1 }
 0x129   : > { %v726_v16 = vpop.f32.mrb[3].mxu1 }
 0x139   : > { %v1704_v19 = vpop.f32.mrb[0].mxu0 }
 0x13a   : > { %v1706_v20 = vadd.f32 %v1704_v19, %v1644_v13  ;;  %v1225_v22 = vpop.f32.mrb[1].mxu0 }
 0x13b   : > { %v1707_v24 = vadd.f32 %v1225_v22, %v723_v14  ;;  %v1705_v27 = vpop.f32.mrb[2].mxu0 }
 0x13c   : > { %v1253_v25 = vadd.f32 %v1706_v20, %v1530_v11  ;;  %v1708_v31 = vadd.f32 %v1705_v27, %v1645_v15  ;;  %v1228_v32 = vpop.f32.mrb[3].mxu0 }
 0x13d   : > { %v1251_v29 = vadd.f32 %v1707_v24, %v1530_v11  ;;  %v1709_v33 = vadd.f32 %v1228_v32, %v726_v16 }
 0x13e   : > { %v1265_v7 = vadd.f32 %v1541_v21, %v1253_v25  ;;  %v1254_v36 = vadd.f32 %v1708_v31, %v1530_v11 }
 0x13f   : > { %v1263_v37 = vadd.f32 %v1537_v26, %v1251_v29  ;;  %v1252_v38 = vadd.f32 %v1709_v33, %v1530_v11 }
 0x140   : > { %v1269_v39 = vmax.f32 %v1265_v7, 0.0  ;;  %v1266_v40 = vadd.f32 %v1542_v8, %v1254_v36 }
 0x141   : > { %v1267_v41 = vmax.f32 %v1263_v37, 0.0  ;;  %v1264_v42 = vadd.f32 %v1538_v35, %v1252_v38 }
 0x142   : > { %v1273_v43 = vpack.c.bf16 %v1269_v39, %v1269_v39  ;;  %v1270_v44 = vmax.f32 %v1266_v40, 0.0 }
 0x143   : > { %v1271_v45 = vpack.c.bf16 %v1267_v41, %v1267_v41  ;;  %v1268_v46 = vmax.f32 %v1264_v42, 0.0 }
 0x144   : > { %1278 = vst.msk [vmem:[%s255_s12 + $0x8] sm:$0xf] %vm1275_vm7, %v1273_v43  ;;  %v1274_v47 = vpack.c.bf16 %v1270_v44, %v1270_v44 }
 0x145   : > { %1276 = vst.msk [vmem:[%s255_s12] sm:$0xf] %vm1275_vm7, %v1271_v45  ;;  %v1272_v48 = vpack.c.bf16 %v1268_v46, %v1268_v46 }
 0x146   : > { %1279 = vst.msk [vmem:[%s255_s12 + $0xc] sm:$0xf] %vm1275_vm7, %v1274_v47 }
 0x147   : > { %1277 = vst.msk [vmem:[%s255_s12 + $0x4] sm:$0xf] %vm1275_vm7, %v1272_v48 }
 0x148 PF: > { %s14_s17 = sadd.s32 1, %s1826_s17   ;;  %s2159_s15 = smov %s1822_s16 }
 0x149   : > { %p11_p5 = scmp.ge.s32.totalorder %s14_s17, 4   ;;  %s2160_s16 = smov %s2162_s18 }
 0x14b   :  { %13 = sbr.rel (!%p11_p5) target bundleno = 2 (0x2), region = 78 }

// kernel: _lambda_.80
= control target key start
LH: loop header
LB: loop body
LE: loop exit
PB: predicated region body
PF: predicated region fallthrough
CT: control target
= control target key end

     0   :  { %s1753_s12 = smov 0   ;;  %s1755_s13 = smov 0   ;;  %s2047_s0 = inlined_call_operand.vmem [shape: bf16[2,6,10,64], index: 0, kind: input, shape index: {}]   ;;  %s2048_s1 = inlined_call_operand.vmem [shape: bf16[3,3,64,128], index: 1, kind: input, shape index: {}]   ;;  %s2049_s2 = inlined_call_operand.vmem [shape: f32[1,128], index: 2, kind: input, shape index: {}]   ;;  %s2050_s3 = inlined_call_operand.vmem [shape: bf16[2,4,8,128], index: 3, kind: output, shape index: {}]  }
   0x1   :  { %s1757_s14 = smov 0  }
   0x2 LB: > { %s25_s15 = sadd.s32 1, %s1727_s13  ;;  %p1291_p0 = scmp.ge.s32.totalorder %s1731_s14, 1  ;;  %s1731_s14 = sphi %s1757_s14, %s13_s14   ;;  %s1727_s13 = sphi %s1755_s13, %s2056_s13   ;;  %s1723_s12 = sphi %s1753_s12, %s2055_s12  }
   0x3   : > { %p27_p1 = scmp.ge.s32.totalorder %s25_s15, 2  ;;  %p151_p2 = scmp.lt.s32.totalorder %s1731_s14, 3 }
   0x5   : > { %s2058_s15 = smov (%p27_p1, %s25_s15), 0  ;;  %p152_p3 = pnand %p1291_p0, %p151_p2 }
   0x6   : > { %v1668_v0 = vld [vmem:[%s2048_s1 + $0x20] sm:$0xff] (!%p152_p3)   ;;  %p179_p4 = scmp.lt.s32.totalorder (!%p152_p3), %s1723_s12, 1  ;;  %v1670_v2 = vld [vmem:[%s2048_s1 + $0x28] sm:$0xff] (!%p152_p3)   ;;  %v1672_v4 = vld [vmem:[%s2048_s1 + $0x30] sm:$0xff] (!%p152_p3)   ;;  %vm219_vm0 = vsmask.f32 (!%p152_p3), 3328 }
   0x7   : > { %155 = sbr.rel (%p152_p3) target bundleno = 326 (0x146), region = 32  ;;  %v1669_v1 = vld [vmem:[%s2048_s1 + $0x80] sm:$0xff] (!%p152_p3)   ;;  %1503 = vmatprep.subr.bf16.mxu1 (!%p152_p3), %v1668_v0  ;;  %v1671_v3 = vld [vmem:[%s2048_s1 + $0x88] sm:$0xff] (!%p152_p3)   ;;  %v1673_v5 = vld [vmem:[%s2048_s1 + $0x90] sm:$0xff] (!%p152_p3)   ;;  %vm220_vm1 = vsmask.f32 (!%p152_p3), 7440 }
   0x8   : > { %1551 = vmatprep.subr.bf16.mxu0 (!%p152_p3), %v1669_v1  ;;  %1504 = vmatpush3.bf16.msra.mxu1 (!%p152_p3), %v1668_v0  ;;  %v1674_v6 = vld [vmem:[%s2048_s1 + $0x38] sm:$0xff] (!%p152_p3)   ;;  %v1824_v21 = vld [vmem:[%s2048_s1] sm:$0xff] (!%p152_p3)   ;;  %vm1845_vm2 = vmor (!%p152_p3), %vm219_vm0, %vm220_vm1  ;;  %vm317_vm3 = vcmask (!%p152_p3), 523264   ;;  %vm466_vm4 = vcmask (!%p152_p3), 1042432   ;;  %vm467_vm5 = vcmask (!%p152_p3), 1046532  }
   0x9   : > { %1552 = vmatpush3.bf16.msra.mxu0 (!%p152_p3), %v1669_v1  ;;  %1505 = vmatprep.subr.bf16.mxu1 (!%p152_p3), %v1670_v2  ;;  %v1675_v10 = vld [vmem:[%s2048_s1 + $0x98] sm:$0xff] (!%p152_p3)   ;;  %v1835_v25 = vld [vmem:[%s2048_s1 + $0xa0] sm:$0xff] (!%p152_p3)   ;;  %vm1885_vm6 = vmor (!%p152_p3), %vm466_vm4, %vm467_vm5 }
   0xa   : > { %1553 = vmatprep.subr.bf16.mxu0 (!%p152_p3), %v1671_v3  ;;  %v1707_v30 = vld [vmem:[%s2048_s1 + $0x110] sm:$0xff] (!%p152_p3)  }
   0xc   : > { %1506 = vmatpush3.bf16.msra.mxu1 (!%p152_p3), %v1670_v2 }
   0xd   : > { %1554 = vmatpush3.bf16.msra.mxu0 (!%p152_p3), %v1671_v3  ;;  %1507 = vmatprep.subr.bf16.mxu1 (!%p152_p3), %v1672_v4 }
   0xe   : > { %s2060_s12 = smov (!%p179_p4, %s1723_s12), 1  ;;  %1555 = vmatprep.subr.bf16.mxu0 %v1673_v5 }
   0xf   : > { %s1643_s26 = smul.u32 48, %s2060_s12 }
  0x10   : > { %1508 = vmatpush3.bf16.msra.mxu1 %v1672_v4 }
  0x11   : > { %s1795_s4 = scalar_lea.vmem %s2047_s0, %s1643_s26  ;;  %1556 = vmatpush3.bf16.msra.mxu0 %v1673_v5  ;;  %1509 = vmatprep.subr.bf16.mxu1 %v1674_v6  ;;  %s1437_s26 = sshll.u32 %s2060_s12, 4 }
  0x12   : > { %v1801_v7 = vld [vmem:[%s1795_s4] sm:$0xf]  ;;  %v1804_v8 = vld [vmem:[%s1795_s4 + $0x4] sm:$0x1]  ;;  %v1807_v9 = vld [vmem:[%s1795_s4 + $0x8] sm:$0xf]  ;;  %1557 = vmatprep.subr.bf16.mxu0 %v1675_v10  ;;  %s192_s29 = scalar_lea.vmem %s2050_s3, %s1437_s26 }
  0x13   : > { %v1813_v11 = vld [vmem:[%s1795_s4 + $0xc] sm:$0x1]  ;;  %v223_v12 = vshrl.u32 %v1801_v7, 16  ;;  %v226_v13 = vshll.u32 %v1801_v7, 16  ;;  %v232_v14 = vshll.u32 %v1804_v8, 16  ;;  %v237_v15 = vshrl.u32 %v1807_v9, 16 }
  0x14   : > { %v240_v16 = vshll.u32 %v1807_v9, 16  ;;  %v246_v17 = vshll.u32 %v1813_v11, 16  ;;  %v1827_v23 = vld [vmem:[%s1795_s4 + $0x10] sm:$0xf]  ;;  %v1830_v24 = vld [vmem:[%s1795_s4 + $0x14] sm:$0x1]  ;;  %1510 = vmatpush3.bf16.msra.mxu1 %v1674_v6  ;;  %v1311_v63 = vcombine.low %v1801_v7, %v1807_v9 }
  0x15   : > { %v225_v18 = vrot.slane %v223_v12, 4  ;;  %v228_v19 = vrot.slane %v226_v13, 5  ;;  %v239_v20 = vrot.slane %v237_v15, 4  ;;  %v234_v27 = vrot.slane %v232_v14, 5  ;;  %v1838_v28 = vld [vmem:[%s1795_s4 + $0x18] sm:$0xf]  ;;  %1558 = vmatpush3.bf16.msra.mxu0 %v1675_v10  ;;  %1515 = vmatprep.subr.bf16.mxu1 %v1824_v21 }
  0x16   : > { %v242_v22 = vrot.slane %v240_v16, 5  ;;  %v1841_v29 = vld [vmem:[%s1795_s4 + $0x1c] sm:$0x1]  ;;  %v248_v32 = vrot.slane %v246_v17, 5  ;;  %v1851_v34 = vld [vmem:[%s1795_s4 + $0x20] sm:$0xf]  ;;  %1563 = vmatprep.subr.bf16.mxu0 %v1835_v25 }
  0x17   : > { %v229_v26 = vor.u32 %v228_v19, %v225_v18  ;;  %v251_v35 = vshrl.u32 %v1827_v23, 16  ;;  %v254_v36 = vshll.u32 %v1827_v23, 16  ;;  %v260_v37 = vshll.u32 %v1830_v24, 16  ;;  %v1863_v43 = vld [vmem:[%s1795_s4 + $0x24] sm:$0x1]  ;;  %v1678_v6 = vld [vmem:[%s2048_s1 + $0x8] sm:$0xff]  }
  0x18   : > { %v243_v31 = vor.u32 %v242_v22, %v239_v20  ;;  %v265_v39 = vshrl.u32 %v1838_v28, 16  ;;  %v268_v40 = vshll.u32 %v1838_v28, 16  ;;  %v274_v41 = vshll.u32 %v1841_v29, 16  ;;  %v1679_v15 = vld [vmem:[%s2048_s1 + $0xa8] sm:$0xff]   ;;  %v1680_v17 = vld [vmem:[%s2048_s1 + $0x10] sm:$0xff]  }
  0x19   : > { %v230_v33 = vrot.slane %v229_v26, 4  ;;  %v253_v44 = vrot.slane %v251_v35, 4  ;;  %v256_v45 = vrot.slane %v254_v36, 5  ;;  %v262_v51 = vrot.slane %v260_v37, 5  ;;  %v1686_v37 = vld [vmem:[%s2048_s1 + $0xc0] sm:$0xff]  }
  0x1a   : > { %v244_v38 = vrot.slane %v243_v31, 4  ;;  %v267_v47 = vrot.slane %v265_v39, 4  ;;  %v270_v48 = vrot.slane %v268_v40, 5  ;;  %v276_v52 = vrot.slane %v274_v41, 5  ;;  %v1689_v41 = vld [vmem:[%s2048_s1 + $0xc8] sm:$0xff]  }
  0x1b   : > { %v235_v42 = vsel %vm1845_vm2, %v230_v33, %v234_v27  ;;  %v257_v50 = vor.u32 %v256_v45, %v253_v44  ;;  %v680_v54 = vshrl.u32 %v1851_v34, 16  ;;  %v683_v55 = vshll.u32 %v1851_v34, 16  ;;  %v1692_v44 = vld [vmem:[%s2048_s1 + $0x58] sm:$0xff]  }
  0x1c   : > { %v249_v46 = vsel %vm1845_vm2, %v244_v38, %v248_v32  ;;  %v271_v53 = vor.u32 %v270_v48, %v267_v47  ;;  %v689_v56 = vshll.u32 %v1863_v43, 16  ;;  %v475_v61 = vrot.slane %v1813_v11, 5  ;;  %v1688_v38 = vld [vmem:[%s2048_s1 + $0x48] sm:$0xff]   ;;  %v1693_v45 = vld [vmem:[%s2048_s1 + $0xd8] sm:$0xff]  }
  0x1d   : > { %v1303_v49 = vcombine.low %v235_v42, %v249_v46  ;;  %v258_v57 = vrot.slane %v257_v50, 4  ;;  %v682_v59 = vrot.slane %v680_v54, 4  ;;  %v685_v60 = vrot.slane %v683_v55, 5  ;;  %v1690_v42 = vld [vmem:[%s2048_s1 + $0x50] sm:$0xff]   ;;  %v1971_v47 = vld [vmem:[%s1795_s4 + $0x28] sm:$0xf] }
  0x1e   : > { %v272_v58 = vrot.slane %v271_v53, 4  ;;  %v691_v2 = vrot.slane %v689_v56, 5  ;;  %v479_v5 = vrot.slane %v1830_v24, 5  ;;  %v1320_v12 = vrot.slane %v1807_v9, 9  ;;  %v1682_v24 = vld [vmem:[%s2048_s1 + $0x18] sm:$0xff]  }
  0x1f   : > { %1511 = vmatprep.mubr.msk.bf16.mxu1 %vm317_vm3, %v1303_v49  ;;  %v263_v62 = vsel %vm1845_vm2, %v258_v57, %v262_v51  ;;  %v686_v1 = vor.u32 %v685_v60, %v682_v59  ;;  %v1321_v13 = vrot.slane %v1827_v23, 9  ;;  %v471_v22 = vrot.slane %v1804_v8, 5  ;;  %v1695_v51 = vld [vmem:[%s2048_s1 + $0xe0] sm:$0xff]   ;;  %v210_v57 = vld [vmem:[%s1795_s4 + $0x2c] sm:$0x1]  ;;  %v1700_v60 = vld [vmem:[%s2048_s1 + $0xf0] sm:$0xff]  }
  0x20   : > { %v277_v0 = vsel %vm1845_vm2, %v272_v58, %v276_v52  ;;  %v1363_v3 = vcombine.low %v249_v46, %v263_v62  ;;  %v476_v18 = vsel %vm1885_vm6, %v1320_v12, %v475_v61  ;;  %v483_v26 = vrot.slane %v1841_v29, 5  ;;  %v1685_v29 = vld [vmem:[%s2048_s1 + $0x40] sm:$0xff]   ;;  %v1697_v52 = vld [vmem:[%s2048_s1 + $0x68] sm:$0xff]   ;;  %v1701_v61 = vld [vmem:[%s2048_s1 + $0x78] sm:$0xff]  }
  0x21   : > { %v1878_v4 = vcombine.low %v263_v62, %v277_v0  ;;  %v687_v10 = vrot.slane %v686_v1, 4  ;;  %v480_v19 = vsel %vm1885_vm6, %v1321_v13, %v479_v5  ;;  %v791_v27 = vrot.slane %v1863_v43, 5  ;;  %v1691_v43 = vld [vmem:[%s2048_s1 + $0xd0] sm:$0xff]   ;;  %v1694_v46 = vld [vmem:[%s2048_s1 + $0x60] sm:$0xff]   ;;  %v1698_v58 = vld [vmem:[%s2048_s1 + $0xe8] sm:$0xff]  }
  0x22   : > { %1559 = vmatprep.mubr.msk.bf16.mxu0 %vm317_vm3, %v1363_v3  ;;  %v1380_v20 = vcombine.low %v476_v18, %v480_v19  ;;  %v1319_v31 = vrot.slane %v1801_v7, 9  ;;  %v1322_v8 = vrot.slane %v1838_v28, 9  ;;  %v1371_v32 = vrot.slane %v1851_v34, 9  ;;  %v1705_v3 = vld [vmem:[%s2048_s1 + $0x100] sm:$0xff]  }
  0x23   : > { %1512 = vmatmul.mubr.msk.bf16.vlgmr.msra.gmra.mrb[0].mxu1 %vm317_vm3, %v1878_v4  ;;  %v1895_v14 = vsel %vm1845_vm2, %v687_v10, %v691_v2  ;;  %v1312_v33 = vcombine.low %v1827_v23, %v1838_v28  ;;  %v981_v49 = vshrl.u32 %v1971_v47, 16  ;;  %v984_v50 = vshll.u32 %v1971_v47, 16 }
  0x24   : > { %1516 = vmatpush3.bf16.msra.mxu1 %v1824_v21  ;;  %1523 = vmatprep.mubr.msk.bf16.mxu1 %vm317_vm3, %v1311_v63  ;;  %v1364_v16 = vcombine.low %v277_v0, %v1895_v14  ;;  %v1681_v21 = vld [vmem:[%s2048_s1 + $0xb0] sm:$0xff]   ;;  %v472_v35 = vsel %vm1885_vm6, %v1319_v31, %v471_v22  ;;  %v484_v7 = vsel %vm1885_vm6, %v1322_v8, %v483_v26  ;;  %v990_v59 = vshll.u32 %v210_v57, 16  ;;  %v1702_v0 = vld [vmem:[%s2048_s1 + $0xf8] sm:$0xff]  }
  0x25   : > { %1517 = vmatprep.subr.bf16.mxu1 %v1678_v6  ;;  %v1939_v36 = vsel %vm1885_vm6, %v1371_v32, %v791_v27  ;;  %v1331_v39 = vcombine.low %v472_v35, %v476_v18  ;;  %v1332_v48 = vcombine.low %v480_v19, %v484_v7  ;;  %v1347_v53 = vcombine.low %v1807_v9, %v1827_v23  ;;  %v1699_v9 = vld [vmem:[%s2048_s1 + $0x70] sm:$0xff]   ;;  %v1434_v18 = vld [vmem:[%s2049_s2] ss:$0 sm:$0xff] }
  0x26   : > { %1560 = vmatmul.mubr.msk.bf16.vlgmr.msra.gmra.mrb[0].mxu0 %vm317_vm3, %v1364_v16  ;;  %v1381_v40 = vcombine.low %v484_v7, %v1939_v36  ;;  %v1396_v54 = vcombine.low %v1851_v34, %v1971_v47  ;;  %v983_v55 = vrot.slane %v981_v49, 4  ;;  %v986_v56 = vrot.slane %v984_v50, 5 }
  0x27   : > { %1564 = vmatpush3.bf16.msra.mxu0 %v1835_v25  ;;  %1571 = vmatprep.mubr.msk.bf16.mxu0 %vm317_vm3, %v1380_v20  ;;  %v1683_v25 = vld [vmem:[%s2048_s1 + $0xb8] sm:$0xff]   ;;  %v992_v63 = vrot.slane %v990_v59, 5  ;;  %v1348_v1 = vcombine.low %v1838_v28, %v1851_v34  ;;  %v1706_v28 = vld [vmem:[%s2048_s1 + $0x108] sm:$0xff]   ;;  %v1088_v34 = vrot.slane %v210_v57, 5  ;;  %v1418_v5 = vrot.slane %v1971_v47, 9 }
  0x28   : > { %1518 = vmatpush3.bf16.msra.mxu1 %v1678_v6  ;;  %1565 = vmatprep.subr.bf16.mxu0 %v1679_v15  ;;  %v987_v23 = vor.u32 %v986_v56, %v983_v55  ;;  %v1708_v6 = vld [vmem:[%s2048_s1 + $0x118] sm:$0xff]  }
  0x29   : > { %1519 = vmatprep.subr.bf16.mxu1 %v1680_v17  ;;  %v1089_v10 = vsel %vm1885_vm6, %v1418_v5, %v1088_v34 }
  0x2a   : > { %v988_v62 = vrot.slane %v987_v23, 4  ;;  %v1427_v12 = vcombine.low %v1939_v36, %v1089_v10 }
  0x2b   : > { %1566 = vmatpush3.bf16.msra.mxu0 %v1679_v15 }
  0x2c   : > { %1520 = vmatpush3.bf16.msra.mxu1 %v1680_v17  ;;  %1567 = vmatprep.subr.bf16.mxu0 %v1681_v21  ;;  %v993_v2 = vsel %vm1845_vm2, %v988_v62, %v992_v63 }
  0x2d   : > { %1521 = vmatprep.subr.bf16.mxu1 %v1682_v24 }
  0x2f   : > { %1568 = vmatpush3.bf16.msra.mxu0 %v1681_v21 }
  0x30   : > { %1522 = vmatpush3.bf16.msra.mxu1 %v1682_v24  ;;  %1569 = vmatprep.subr.bf16.mxu0 %v1683_v25 }
  0x31   : > { %1527 = vmatprep.subr.bf16.mxu1 %v1685_v29 }
  0x33   : > { %1524 = vmatmul.mubr.msk.bf16.vlgmr.msra.gmra.mrb[0].mxu1 %vm317_vm3, %v1312_v33  ;;  %1570 = vmatpush3.bf16.msra.mxu0 %v1683_v25 }
  0x34   : > { %1528 = vmatpush3.bf16.msra.mxu1 %v1685_v29  ;;  %1575 = vmatprep.subr.bf16.mxu0 %v1686_v37 }
  0x35   : > { %1529 = vmatprep.subr.bf16.mxu1 %v1688_v38  ;;  %1535 = vmatprep.mubr.msk.bf16.mxu1 %vm317_vm3, %v1331_v39 }
  0x36   : > { %1572 = vmatmul.mubr.msk.bf16.vlgmr.msra.gmra.mrb[0].mxu0 %vm317_vm3, %v1381_v40 }
  0x37   : > { %1576 = vmatpush3.bf16.msra.mxu0 %v1686_v37  ;;  %1583 = vmatprep.mubr.msk.bf16.mxu0 %vm317_vm3, %v1312_v33 }
  0x38   : > { %1530 = vmatpush3.bf16.msra.mxu1 %v1688_v38  ;;  %1577 = vmatprep.subr.bf16.mxu0 %v1689_v41 }
  0x39   : > { %1531 = vmatprep.subr.bf16.mxu1 %v1690_v42 }
  0x3b   : > { %1578 = vmatpush3.bf16.msra.mxu0 %v1689_v41 }
  0x3c   : > { %1532 = vmatpush3.bf16.msra.mxu1 %v1690_v42  ;;  %1579 = vmatprep.subr.bf16.mxu0 %v1691_v43 }
  0x3d   : > { %1533 = vmatprep.subr.bf16.mxu1 %v1692_v44 }
  0x3f   : > { %1580 = vmatpush3.bf16.msra.mxu0 %v1691_v43 }
  0x40   : > { %1534 = vmatpush3.bf16.msra.mxu1 %v1692_v44  ;;  %1581 = vmatprep.subr.bf16.mxu0 %v1693_v45 }
  0x41   : > { %1539 = vmatprep.subr.bf16.mxu1 %v1694_v46 }
  0x43   : > { %1536 = vmatmul.mubr.msk.bf16.vlgmr.msra.gmra.mrb[0].mxu1 %vm317_vm3, %v1332_v48  ;;  %1582 = vmatpush3.bf16.msra.mxu0 %v1693_v45 }
  0x44   : > { %1540 = vmatpush3.bf16.msra.mxu1 %v1694_v46  ;;  %1587 = vmatprep.subr.bf16.mxu0 %v1695_v51 }
  0x45   : > { %1541 = vmatprep.subr.bf16.mxu1 %v1697_v52  ;;  %1547 = vmatprep.mubr.msk.bf16.mxu1 %vm317_vm3, %v1347_v53 }
  0x46   : > { %1584 = vmatmul.mubr.msk.bf16.vlgmr.msra.gmra.mrb[0].mxu0 %vm317_vm3, %v1396_v54 }
  0x47   : > { %1588 = vmatpush3.bf16.msra.mxu0 %v1695_v51  ;;  %1595 = vmatprep.mubr.msk.bf16.mxu0 %vm317_vm3, %v1878_v4  ;;  %v1411_v4 = vcombine.low %v1895_v14, %v993_v2 }
  0x48   : > { %1542 = vmatpush3.bf16.msra.mxu1 %v1697_v52  ;;  %1589 = vmatprep.subr.bf16.mxu0 %v1698_v58 }
  0x49   : > { %1543 = vmatprep.subr.bf16.mxu1 %v1699_v9 }
  0x4b   : > { %1590 = vmatpush3.bf16.msra.mxu0 %v1698_v58 }
  0x4c   : > { %1544 = vmatpush3.bf16.msra.mxu1 %v1699_v9  ;;  %1591 = vmatprep.subr.bf16.mxu0 %v1700_v60 }
  0x4d   : > { %1545 = vmatprep.subr.bf16.mxu1 %v1701_v61 }
  0x4f   : > { %1592 = vmatpush3.bf16.msra.mxu0 %v1700_v60 }
  0x50   : > { %1546 = vmatpush3.bf16.msra.mxu1 %v1701_v61  ;;  %1593 = vmatprep.subr.bf16.mxu0 %v1702_v0 }
  0x53   : > { %1548 = vmatmul.mubr.msk.bf16.vlgmr.msra.gmra.mrb[0].mxu1 %vm317_vm3, %v1348_v1  ;;  %1594 = vmatpush3.bf16.msra.mxu0 %v1702_v0 }
  0x54   : > { %1599 = vmatprep.subr.bf16.mxu0 %v1705_v3 }
  0x56   : > { %1596 = vmatmul.mubr.msk.bf16.vlgmr.msra.gmra.mrb[0].mxu0 %vm317_vm3, %v1411_v4 }
  0x57   : > { %1600 = vmatpush3.bf16.msra.mxu0 %v1705_v3  ;;  %1607 = vmatprep.mubr.msk.bf16.mxu0 %vm317_vm3, %v1332_v48 }
  0x58   : > { %1601 = vmatprep.subr.bf16.mxu0 %v1706_v28 }
  0x5b   : > { %1602 = vmatpush3.bf16.msra.mxu0 %v1706_v28 }
  0x5c   : > { %1603 = vmatprep.subr.bf16.mxu0 %v1707_v30 }
  0x5f   : > { %1604 = vmatpush3.bf16.msra.mxu0 %v1707_v30 }
  0x60   : > { %1605 = vmatprep.subr.bf16.mxu0 %v1708_v6 }
  0x63   : > { %1606 = vmatpush3.bf16.msra.mxu0 %v1708_v6 }
  0x66   : > { %1608 = vmatmul.mubr.msk.bf16.vlgmr.msra.gmra.mrb[0].mxu0 %vm317_vm3, %v1427_v12 }
 0x126   : > { %v1549_v13 = vpop.f32.mrb[0].mxu1 }
 0x127   : > { %v660_v14 = vpop.f32.mrb[1].mxu1 }
 0x128   : > { %v1550_v15 = vpop.f32.mrb[2].mxu1 }
 0x129   : > { %v663_v16 = vpop.f32.mrb[3].mxu1 }
 0x139   : > { %v1609_v17 = vpop.f32.mrb[0].mxu0 }
 0x13a   : > { %v1611_v19 = vadd.f32 %v1609_v17, %v1549_v13  ;;  %v1162_v20 = vpop.f32.mrb[1].mxu0 }
 0x13b   : > { %v1612_v11 = vadd.f32 %v1162_v20, %v660_v14  ;;  %v1610_v21 = vpop.f32.mrb[2].mxu0 }
 0x13c   : > { %v1190_v22 = vadd.f32 %v1611_v19, %v1434_v18  ;;  %v1613_v24 = vadd.f32 %v1610_v21, %v1550_v15  ;;  %v1165_v26 = vpop.f32.mrb[3].mxu0 }
 0x13d   : > { %v1188_v27 = vadd.f32 %v1612_v11, %v1434_v18  ;;  %v1614_v25 = vadd.f32 %v1165_v26, %v663_v16 }
 0x13e   : > { %v1191_v31 = vadd.f32 %v1613_v24, %v1434_v18  ;;  %v1194_v32 = vmax.f32 %v1190_v22, 0.0 }
 0x13f   : > { %v1189_v8 = vadd.f32 %v1614_v25, %v1434_v18  ;;  %v1192_v33 = vmax.f32 %v1188_v27, 0.0 }
 0x140   : > { %v1195_v29 = vmax.f32 %v1191_v31, 0.0 }
 0x141   : > { %v1193_v35 = vmax.f32 %v1189_v8, 0.0 }
 0x142   : > { %v1446_v7 = vpack.c.bf16 %v1195_v29, %v1194_v32 }
 0x143   : > { %v1441_v36 = vpack.c.bf16 %v1193_v35, %v1192_v33 }
 0x144   : > { %1448 = vst [vmem:[%s192_s29 + $0x8] sm:$0xff] %v1446_v7  }
 0x145   : > { %1442 = vst [vmem:[%s192_s29] sm:$0xff] %v1441_v36  }
 0x146 PF: > { %s13_s14 = sadd.s32 1, %s1731_s14   ;;  %s2055_s12 = smov %s1727_s13 }
 0x147   : > { %p10_p5 = scmp.ge.s32.totalorder %s13_s14, 4   ;;  %s2056_s13 = smov %s2058_s15 }
 0x149   :  { %12 = sbr.rel (!%p10_p5) target bundleno = 2 (0x2), region = 71 }

// kernel: _lambda_.82
= control target key start
LH: loop header
LB: loop body
LE: loop exit
PB: predicated region body
PF: predicated region fallthrough
CT: control target
= control target key end

     0   :  { %s1981_s15 = smov 0   ;;  %s1983_s16 = smov 0   ;;  %s2334_s0 = inlined_call_operand.vmem [shape: bf16[2,6,10,128], index: 0, kind: input, shape index: {}]   ;;  %s2335_s1 = inlined_call_operand.vmem [shape: bf16[3,384,128], index: 1, kind: input, shape index: {}]   ;;  %s2336_s2 = inlined_call_operand.vmem [shape: f32[1,128], index: 2, kind: input, shape index: {}]   ;;  %s2337_s3 = inlined_call_operand.vmem [shape: bf16[2,4,8,128], index: 3, kind: input, shape index: {}, may-alias: {3,4}]   ;;  %s2338_s4 = inlined_call_operand.vmem [shape: bf16[2,4,8,128], index: 4, kind: output, shape index: {}, may-alias: {3,4}]  }
   0x1   :  { %s1985_s17 = smov 0  }
   0x2 LB: > { %s26_s18 = sadd.s32 1, %s1950_s16  ;;  %p1410_p0 = scmp.ge.s32.totalorder %s1954_s17, 1  ;;  %s1954_s17 = sphi %s1985_s17, %s14_s17   ;;  %s1950_s16 = sphi %s1983_s16, %s2340_s16   ;;  %s1946_s15 = sphi %s1981_s15, %s2339_s15  }
   0x3   : > { %p28_p1 = scmp.ge.s32.totalorder %s26_s18, 2  ;;  %p193_p2 = scmp.lt.s32.totalorder %s1954_s17, 3 }
   0x5   : > { %s2342_s18 = smov (%p28_p1, %s26_s18), 0  ;;  %p194_p3 = pnand %p1410_p0, %p193_p2 }
   0x6   : > { %v1849_v0 = vld [vmem:[%s2335_s1 + $0x100] sm:$0xff] (!%p194_p3)   ;;  %v1852_v3 = vld [vmem:[%s2335_s1 + $0x108] sm:$0xff] (!%p194_p3)   ;;  %v1855_v6 = vld [vmem:[%s2335_s1 + $0x110] sm:$0xff] (!%p194_p3)   ;;  %p232_p4 = scmp.lt.s32.totalorder (!%p194_p3), %s1946_s15, 1 }
   0x7   : > { %197 = sbr.rel (%p194_p3) target bundleno = 342 (0x156), region = 36  ;;  %v1850_v1 = vld [vmem:[%s2335_s1 + $0x140] sm:$0xff] (!%p194_p3)   ;;  %1630 = vmatprep.subr.bf16.mxu0 (!%p194_p3), %v1849_v0  ;;  %v1853_v4 = vld [vmem:[%s2335_s1 + $0x148] sm:$0xff] (!%p194_p3)   ;;  %v1856_v7 = vld [vmem:[%s2335_s1 + $0x150] sm:$0xff] (!%p194_p3)  }
   0x8   : > { %v1851_v2 = vld [vmem:[%s2335_s1 + $0xc0] sm:$0xff] (!%p194_p3)   ;;  %1744 = vmatprep.subr.bf16.mxu1 (!%p194_p3), %v1850_v1  ;;  %v1854_v5 = vld [vmem:[%s2335_s1 + $0xc8] sm:$0xff] (!%p194_p3)   ;;  %v1857_v8 = vld [vmem:[%s2335_s1 + $0xd0] sm:$0xff] (!%p194_p3)  }
   0x9   : > { %1631 = vmatpush3.bf16.msra.mxu0 (!%p194_p3), %v1851_v2  ;;  %1745 = vmatpush3.bf16.msra.mxu1 (!%p194_p3), %v1850_v1  ;;  %v1858_v9 = vld [vmem:[%s2335_s1 + $0x118] sm:$0xff] (!%p194_p3)   ;;  %v1861_v12 = vld [vmem:[%s2335_s1 + $0x120] sm:$0xff] (!%p194_p3)   ;;  %v1864_v15 = vld [vmem:[%s2335_s1 + $0x128] sm:$0xff] (!%p194_p3)  }
   0xa   : > { %1632 = vmatprep.subr.bf16.mxu0 (!%p194_p3), %v1852_v3  ;;  %1746 = vmatprep.subr.bf16.mxu1 (!%p194_p3), %v1853_v4  ;;  %v1859_v10 = vld [vmem:[%s2335_s1 + $0x158] sm:$0xff] (!%p194_p3)   ;;  %v1862_v13 = vld [vmem:[%s2335_s1 + $0x160] sm:$0xff] (!%p194_p3)   ;;  %v1865_v16 = vld [vmem:[%s2335_s1 + $0x168] sm:$0xff] (!%p194_p3)  }
   0xb   : > { %v1860_v11 = vld [vmem:[%s2335_s1 + $0xd8] sm:$0xff] (!%p194_p3)   ;;  %v1863_v14 = vld [vmem:[%s2335_s1 + $0xe0] sm:$0xff] (!%p194_p3)   ;;  %v1866_v17 = vld [vmem:[%s2335_s1 + $0xe8] sm:$0xff] (!%p194_p3)  }
   0xc   : > { %v1867_v18 = vld [vmem:[%s2335_s1 + $0x130] sm:$0xff] (!%p194_p3)   ;;  %v1870_v21 = vld [vmem:[%s2335_s1 + $0x138] sm:$0xff] (!%p194_p3)   ;;  %v1877_v39 = vld [vmem:[%s2335_s1 + $0x40] sm:$0xff] (!%p194_p3)  }
   0xd   : > { %1633 = vmatpush3.bf16.msra.mxu0 (!%p194_p3), %v1854_v5  ;;  %1747 = vmatpush3.bf16.msra.mxu1 (!%p194_p3), %v1853_v4  ;;  %v1868_v19 = vld [vmem:[%s2335_s1 + $0x170] sm:$0xff] (!%p194_p3)   ;;  %v1871_v22 = vld [vmem:[%s2335_s1 + $0x178] sm:$0xff] (!%p194_p3)   ;;  %v1878_v41 = vld [vmem:[%s2335_s1 + $0x80] sm:$0xff] (!%p194_p3)  }
   0xe   : > { %1634 = vmatprep.subr.bf16.mxu0 %v1855_v6  ;;  %1748 = vmatprep.subr.bf16.mxu1 %v1856_v7  ;;  %s2344_s15 = smov (!%p232_p4, %s1946_s15), 1  ;;  %v1869_v20 = vld [vmem:[%s2335_s1 + $0xf0] sm:$0xff]   ;;  %v1872_v32 = vld [vmem:[%s2335_s1 + $0xf8] sm:$0xff]   ;;  %v1880_v52 = vld [vmem:[%s2335_s1] sm:$0xff]  }
   0xf   : > { %s1824_s5 = smul.u32 48, %s2344_s15  ;;  %v1882_v55 = vld [vmem:[%s2335_s1 + $0x88] sm:$0xff]   ;;  %v1885_v63 = vld [vmem:[%s2335_s1 + $0x90] sm:$0xff]   ;;  %v1888_v5 = vld [vmem:[%s2335_s1 + $0x98] sm:$0xff]   ;;  %s1608_s12 = sshll.u32 %s2344_s15, 4 }
  0x10   : > { %v1881_v57 = vld [vmem:[%s2335_s1 + $0x48] sm:$0xff]   ;;  %v1884_v0 = vld [vmem:[%s2335_s1 + $0x50] sm:$0xff]   ;;  %v1887_v6 = vld [vmem:[%s2335_s1 + $0x58] sm:$0xff]   ;;  %s245_s19 = scalar_lea.vmem %s2337_s3, %s1608_s12  ;;  %s255_s24 = scalar_lea.vmem %s2338_s4, %s1608_s12 }
  0x11   : > { %1635 = vmatpush3.bf16.msra.mxu0 %v1857_v8  ;;  %1749 = vmatpush3.bf16.msra.mxu1 %v1856_v7  ;;  %s2069_s14 = scalar_lea.vmem %s2334_s0, %s1824_s5  ;;  %v1883_v59 = vld [vmem:[%s2335_s1 + $0x8] sm:$0xff]   ;;  %v1886_v3 = vld [vmem:[%s2335_s1 + $0x10] sm:$0xff]  }
  0x12   : > { %1636 = vmatprep.subr.bf16.mxu0 %v1858_v9  ;;  %1750 = vmatprep.subr.bf16.mxu1 %v1859_v10  ;;  %v2081_v23 = vld [vmem:[%s2069_s14 + $0x8] sm:$0xf]  ;;  %v265_v24 = vld [vmem:[%s2069_s14 + $0xc] sm:$0x1]  ;;  %v2085_v25 = vld [vmem:[%s2069_s14 + $0x10] sm:$0xf] }
  0x13   : > { %v267_v26 = vld [vmem:[%s2069_s14 + $0x14] sm:$0x1]  ;;  %v2089_v27 = vcombine.low %v2081_v23, %v265_v24  ;;  %v2092_v28 = vld [vmem:[%s2069_s14 + $0x18] sm:$0xf]  ;;  %v269_v29 = vld [vmem:[%s2069_s14 + $0x1c] sm:$0x1]  ;;  %v1470_v51 = vcombine.low %v2081_v23, %v2085_v25 }
  0x14   : > { %v2096_v30 = vcombine.low %v2085_v25, %v267_v26  ;;  %v2099_v31 = vcombine.low %v2092_v28, %v269_v29  ;;  %v2117_v42 = vld [vmem:[%s2069_s14 + $0x20] sm:$0xf]  ;;  %v271_v43 = vld [vmem:[%s2069_s14 + $0x24] sm:$0x1]  ;;  %v1889_v9 = vld [vmem:[%s2335_s1 + $0x18] sm:$0xff]  }
  0x15   : > { %1637 = vmatpush3.bf16.msra.mxu0 %v1860_v11  ;;  %1751 = vmatpush3.bf16.msra.mxu1 %v1859_v10  ;;  %v312_v33 = vshrl.u32 %v2089_v27, 16  ;;  %v314_v34 = vshll.u32 %v2089_v27, 16  ;;  %v347_v35 = vrot.slane %v2089_v27, 1  ;;  %v2126_v47 = vcombine.low %v2117_v42, %v271_v43  ;;  %v1891_v10 = vld [vmem:[%s2335_s1 + $0xa0] sm:$0xff]   ;;  %v1899_v26 = vld [vmem:[%s2335_s1 + $0x30] sm:$0xff]  }
  0x16   : > { %1638 = vmatprep.subr.bf16.mxu0 %v1861_v12  ;;  %1752 = vmatprep.subr.bf16.mxu1 %v1862_v13  ;;  %v319_v36 = vshrl.u32 %v2096_v30, 16  ;;  %v321_v37 = vshll.u32 %v2096_v30, 16  ;;  %v348_v38 = vrot.slane %v2096_v30, 1  ;;  %v349_v45 = vrot.slane %v2099_v31, 1  ;;  %v1890_v11 = vld [vmem:[%s2335_s1 + $0x60] sm:$0xff]  }
  0x17   : > { %v316_v40 = vrot.slane %v314_v34, 1  ;;  %v350_v50 = vrot.slane %v2126_v47, 1  ;;  %v328_v56 = vshll.u32 %v2099_v31, 16  ;;  %v326_v58 = vshrl.u32 %v2099_v31, 16  ;;  %v1892_v12 = vld [vmem:[%s2335_s1 + $0x20] sm:$0xff]   ;;  %v1900_v34 = vld [vmem:[%s2335_s1 + $0x78] sm:$0xff]  }
  0x18   : > { %v323_v44 = vrot.slane %v321_v37, 1  ;;  %v1472_v46 = vcombine.low %v347_v35, %v348_v38  ;;  %v333_v61 = vshrl.u32 %v2126_v47, 16  ;;  %v335_v62 = vshll.u32 %v2126_v47, 16  ;;  %v1902_v37 = vld [vmem:[%s2335_s1 + $0x38] sm:$0xff]   ;;  %v1907_v43 = vld [vmem:[%s2335_s1 + $0x180] sm:$0xff]   ;;  %v1908_v31 = vld [vmem:[%s2335_s1 + $0x1c8] sm:$0xff]  }
  0x19   : > { %1639 = vmatpush3.bf16.msra.mxu0 %v1863_v14  ;;  %1753 = vmatpush3.bf16.msra.mxu1 %v1862_v13  ;;  %v2128_v48 = vor.u32 %v316_v40, %v312_v33  ;;  %v1475_v54 = vcombine.low %v349_v45, %v350_v50  ;;  %v330_v60 = vrot.slane %v328_v56, 1  ;;  %v1473_v8 = vcombine.low %v2092_v28, %v2117_v42  ;;  %v1894_v13 = vld [vmem:[%s2335_s1 + $0xa8] sm:$0xff]   ;;  %v1901_v33 = vld [vmem:[%s2335_s1 + $0xb8] sm:$0xff]   ;;  %v1918_v56 = vld [vmem:[%s2335_s1 + $0x1e0] sm:$0xff]  }
  0x1a   : > { %1640 = vmatprep.subr.bf16.mxu0 %v1864_v15  ;;  %1754 = vmatprep.subr.bf16.mxu1 %v1865_v16  ;;  %v2130_v49 = vor.u32 %v323_v44, %v319_v36  ;;  %v337_v2 = vrot.slane %v335_v62, 1  ;;  %v1893_v14 = vld [vmem:[%s2335_s1 + $0x68] sm:$0xff]   ;;  %v262_v15 = vld [vmem:[%s2069_s14] sm:$0xf]  ;;  %v1505_v40 = vcombine.low %v348_v38, %v349_v45  ;;  %v1913_v38 = vld [vmem:[%s2335_s1 + $0x210] sm:$0xff]  }
  0x1b   : > { %1760 = vmatprep.mubr.bf16.mxu1 %v1472_v46  ;;  %v2163_v1 = vor.u32 %v330_v60, %v326_v58  ;;  %v1909_v44 = vld [vmem:[%s2335_s1 + $0x208] sm:$0xff]   ;;  %v1912_v45 = vld [vmem:[%s2335_s1 + $0x1d0] sm:$0xff]   ;;  %v1503_v46 = vcombine.low %v2085_v25, %v2092_v28  ;;  %v1917_v28 = vld [vmem:[%s2335_s1 + $0x198] sm:$0xff]  }
  0x1c   : > { %v1471_v53 = vcombine.low %v2128_v48, %v2130_v49  ;;  %v2168_v4 = vor.u32 %v337_v2, %v333_v61  ;;  %v1922_v58 = vld [vmem:[%s2335_s1 + $0x228] sm:$0xff]   ;;  %v1925_v62 = vld [vmem:[%s2335_s1 + $0x230] sm:$0xff]  }
  0x1d   : > { %1641 = vmatpush3.bf16.msra.mxu0 %v1866_v17  ;;  %1755 = vmatpush3.bf16.msra.mxu1 %v1865_v16  ;;  %v263_v16 = vld [vmem:[%s2069_s14 + $0x4] sm:$0x1]  ;;  %v1895_v17 = vld [vmem:[%s2335_s1 + $0x28] sm:$0xff]   ;;  %v1504_v30 = vcombine.low %v2130_v49, %v2163_v1  ;;  %v1916_v49 = vld [vmem:[%s2335_s1 + $0x218] sm:$0xff]  }
  0x1e   : > { %1642 = vmatprep.subr.bf16.mxu0 %v1867_v18  ;;  %1756 = vmatprep.subr.bf16.mxu1 %v1868_v19  ;;  %v1474_v7 = vcombine.low %v2163_v1, %v2168_v4  ;;  %v1416_v18 = vcombine.low %v262_v15, %v263_v16  ;;  %v1921_v60 = vld [vmem:[%s2335_s1 + $0x1e8] sm:$0xff]   ;;  %v1924_v47 = vld [vmem:[%s2335_s1 + $0x1f0] sm:$0xff]  }
  0x1f   : > { %647 = vmatprep.mubr.bf16.mxu0 %v1471_v53  ;;  %v273_v53 = vld [vmem:[%s2069_s14 + $0x2c] sm:$0x1] }
  0x20   : > { %v346_v24 = vrot.slane %v1416_v18, 1  ;;  %v1923_v61 = vld [vmem:[%s2335_s1 + $0x1a8] sm:$0xff]  }
  0x21   : > { %1643 = vmatpush3.bf16.msra.mxu0 %v1869_v20  ;;  %1757 = vmatpush3.bf16.msra.mxu1 %v1868_v19  ;;  %v1898_v19 = vld [vmem:[%s2335_s1 + $0xb0] sm:$0xff]  }
  0x22   : > { %1644 = vmatprep.subr.bf16.mxu0 %v1870_v21  ;;  %1758 = vmatprep.subr.bf16.mxu1 %v1871_v22  ;;  %v1897_v20 = vld [vmem:[%s2335_s1 + $0x70] sm:$0xff]   ;;  %v305_v21 = vshrl.u32 %v1416_v18, 16 }
  0x25   : > { %1645 = vmatpush3.bf16.msra.mxu0 %v1872_v32  ;;  %1759 = vmatpush3.bf16.msra.mxu1 %v1871_v22  ;;  %v307_v22 = vshll.u32 %v1416_v18, 16  ;;  %v1502_v32 = vcombine.low %v346_v24, %v347_v35  ;;  %v1906_v35 = vld [vmem:[%s2335_s1 + $0x200] sm:$0xff]  }
  0x26   : > { %1668 = vmatprep.subr.bf16.mxu0 %v1877_v39  ;;  %1764 = vmatprep.subr.bf16.mxu1 %v1878_v41  ;;  %v1905_v39 = vld [vmem:[%s2335_s1 + $0x1c0] sm:$0xff]  }
  0x27   : > { %v309_v29 = vrot.slane %v307_v22, 1 }
  0x28   : > { %1761 = vmatmul.mubr.bf16.vlgmr.msra.gmra.mrb[0].mxu1 %v1475_v54  ;;  %648 = vmatmul.mubr.bf16.vlgmr.msra.gmra.mrb[0].mxu0 %v1470_v51  ;;  %v1915_v51 = vld [vmem:[%s2335_s1 + $0x1d8] sm:$0xff]   ;;  %v1919_v54 = vld [vmem:[%s2335_s1 + $0x220] sm:$0xff]  }
  0x29   : > { %1765 = vmatpush3.bf16.msra.mxu1 %v1878_v41  ;;  %1669 = vmatpush3.bf16.msra.mxu0 %v1880_v52  ;;  %v310_v36 = vor.u32 %v309_v29, %v305_v21  ;;  %v1500_v41 = vcombine.low %v262_v15, %v2081_v23  ;;  %v1910_v23 = vld [vmem:[%s2335_s1 + $0x188] sm:$0xff]  }
  0x2a   : > { %1766 = vmatprep.subr.bf16.mxu1 %v1882_v55  ;;  %1670 = vmatprep.subr.bf16.mxu0 %v1881_v57  ;;  %v272_v52 = vld [vmem:[%s2069_s14 + $0x28] sm:$0xf] }
  0x2b   : > { %655 = vmatprep.mubr.bf16.mxu0 %v1474_v7  ;;  %1780 = vmatprep.mubr.bf16.mxu1 %v1502_v32  ;;  %v1501_v27 = vcombine.low %v310_v36, %v2128_v48  ;;  %v1914_v48 = vld [vmem:[%s2335_s1 + $0x190] sm:$0xff]   ;;  %v1578_v25 = vcombine.low %v2117_v42, %v272_v52  ;;  %v1920_v42 = vld [vmem:[%s2335_s1 + $0x1a0] sm:$0xff]  }
  0x2d   : > { %1767 = vmatpush3.bf16.msra.mxu1 %v1882_v55  ;;  %1671 = vmatpush3.bf16.msra.mxu0 %v1883_v59  ;;  %v1421_v55 = vcombine.low %v272_v52, %v273_v53  ;;  %v1605_v52 = vld [vmem:[%s2336_s2] ss:$0 sm:$0xff] }
  0x2e   : > { %1768 = vmatprep.subr.bf16.mxu1 %v1885_v63  ;;  %1672 = vmatprep.subr.bf16.mxu0 %v1884_v0  ;;  %v1928_v0 = vld [vmem:[%s2335_s1 + $0x238] sm:$0xff]  }
  0x2f   : > { %v351_v57 = vrot.slane %v1421_v55, 1  ;;  %v340_v1 = vshrl.u32 %v1421_v55, 16 }
  0x30   : > { %656 = vmatmul.mubr.bf16.gmra.mrb[4].mxu0 %v1473_v8 }
  0x31   : > { %1769 = vmatpush3.bf16.msra.mxu1 %v1885_v63  ;;  %1673 = vmatpush3.bf16.msra.mxu0 %v1886_v3  ;;  %v1580_v59 = vcombine.low %v350_v50, %v351_v57  ;;  %v342_v63 = vshll.u32 %v1421_v55, 16  ;;  %v1926_v50 = vld [vmem:[%s2335_s1 + $0x1b0] sm:$0xff]   ;;  %v1927_v3 = vld [vmem:[%s2335_s1 + $0x1f8] sm:$0xff]  }
  0x32   : > { %1770 = vmatprep.subr.bf16.mxu1 %v1888_v5  ;;  %1674 = vmatprep.subr.bf16.mxu0 %v1887_v6 }
  0x33   : > { %901 = vmatprep.mubr.bf16.mxu0 %v1501_v27  ;;  %v344_v2 = vrot.slane %v342_v63, 1 }
  0x35   : > { %1771 = vmatpush3.bf16.msra.mxu1 %v1888_v5  ;;  %1675 = vmatpush3.bf16.msra.mxu0 %v1889_v9  ;;  %v1929_v5 = vld [vmem:[%s2335_s1 + $0x1b8] sm:$0xff]   ;;  %v345_v6 = vor.u32 %v344_v2, %v340_v1 }
  0x36   : > { %1772 = vmatprep.subr.bf16.mxu1 %v1891_v10  ;;  %1676 = vmatprep.subr.bf16.mxu0 %v1890_v11 }
  0x37   : > { %v1579_v7 = vcombine.low %v2168_v4, %v345_v6 }
  0x39   : > { %1773 = vmatpush3.bf16.msra.mxu1 %v1891_v10  ;;  %1677 = vmatpush3.bf16.msra.mxu0 %v1892_v12 }
  0x3a   : > { %1774 = vmatprep.subr.bf16.mxu1 %v1894_v13  ;;  %1678 = vmatprep.subr.bf16.mxu0 %v1893_v14 }
  0x3d   : > { %1775 = vmatpush3.bf16.msra.mxu1 %v1894_v13  ;;  %1679 = vmatpush3.bf16.msra.mxu0 %v1895_v17 }
  0x3e   : > { %1776 = vmatprep.subr.bf16.mxu1 %v1898_v19  ;;  %1680 = vmatprep.subr.bf16.mxu0 %v1897_v20 }
  0x41   : > { %1777 = vmatpush3.bf16.msra.mxu1 %v1898_v19  ;;  %1681 = vmatpush3.bf16.msra.mxu0 %v1899_v26 }
  0x42   : > { %1778 = vmatprep.subr.bf16.mxu1 %v1901_v33  ;;  %1682 = vmatprep.subr.bf16.mxu0 %v1900_v34 }
  0x45   : > { %1779 = vmatpush3.bf16.msra.mxu1 %v1901_v33  ;;  %1683 = vmatpush3.bf16.msra.mxu0 %v1902_v37 }
  0x46   : > { %1784 = vmatprep.subr.bf16.mxu1 %v1906_v35  ;;  %1706 = vmatprep.subr.bf16.mxu0 %v1905_v39 }
  0x48   : > { %1781 = vmatmul.mubr.bf16.vlgmr.msra.gmra.mrb[0].mxu1 %v1505_v40  ;;  %902 = vmatmul.mubr.bf16.vlgmr.msra.gmra.mrb[8].mxu0 %v1500_v41 }
  0x49   : > { %1785 = vmatpush3.bf16.msra.mxu1 %v1906_v35  ;;  %1707 = vmatpush3.bf16.msra.mxu0 %v1907_v43 }
  0x4a   : > { %1786 = vmatprep.subr.bf16.mxu1 %v1909_v44  ;;  %1708 = vmatprep.subr.bf16.mxu0 %v1908_v31 }
  0x4b   : > { %909 = vmatprep.mubr.bf16.mxu0 %v1504_v30  ;;  %1800 = vmatprep.mubr.bf16.mxu1 %v1505_v40 }
  0x4d   : > { %1787 = vmatpush3.bf16.msra.mxu1 %v1909_v44  ;;  %1709 = vmatpush3.bf16.msra.mxu0 %v1910_v23 }
  0x4e   : > { %1788 = vmatprep.subr.bf16.mxu1 %v1913_v38  ;;  %1710 = vmatprep.subr.bf16.mxu0 %v1912_v45 }
  0x50   : > { %910 = vmatmul.mubr.bf16.gmra.mrb[12].mxu0 %v1503_v46 }
  0x51   : > { %1789 = vmatpush3.bf16.msra.mxu1 %v1913_v38  ;;  %1711 = vmatpush3.bf16.msra.mxu0 %v1914_v48 }
  0x52   : > { %1790 = vmatprep.subr.bf16.mxu1 %v1916_v49  ;;  %1712 = vmatprep.subr.bf16.mxu0 %v1915_v51 }
  0x53   : > { %1200 = vmatprep.mubr.bf16.mxu0 %v1504_v30 }
  0x55   : > { %1791 = vmatpush3.bf16.msra.mxu1 %v1916_v49  ;;  %1713 = vmatpush3.bf16.msra.mxu0 %v1917_v28 }
  0x56   : > { %1792 = vmatprep.subr.bf16.mxu1 %v1919_v54  ;;  %1714 = vmatprep.subr.bf16.mxu0 %v1918_v56 }
  0x59   : > { %1793 = vmatpush3.bf16.msra.mxu1 %v1919_v54  ;;  %1715 = vmatpush3.bf16.msra.mxu0 %v1920_v42 }
  0x5a   : > { %1794 = vmatprep.subr.bf16.mxu1 %v1922_v58  ;;  %1716 = vmatprep.subr.bf16.mxu0 %v1921_v60 }
  0x5d   : > { %1795 = vmatpush3.bf16.msra.mxu1 %v1922_v58  ;;  %1717 = vmatpush3.bf16.msra.mxu0 %v1923_v61  ;;  %v1628_v58 = vld [vmem:[%s245_s19 + $0x8] sm:$0xff]  }
  0x5e   : > { %1796 = vmatprep.subr.bf16.mxu1 %v1925_v62  ;;  %1718 = vmatprep.subr.bf16.mxu0 %v1924_v47  ;;  %v1616_v1 = vunpack.c.l.bf16 %v1628_v58 }
  0x61   : > { %1797 = vmatpush3.bf16.msra.mxu1 %v1925_v62  ;;  %1719 = vmatpush3.bf16.msra.mxu0 %v1926_v50 }
  0x62   : > { %1798 = vmatprep.subr.bf16.mxu1 %v1928_v0  ;;  %1720 = vmatprep.subr.bf16.mxu0 %v1927_v3 }
  0x65   : > { %1799 = vmatpush3.bf16.msra.mxu1 %v1928_v0  ;;  %1721 = vmatpush3.bf16.msra.mxu0 %v1929_v5 }
  0x68   : > { %1801 = vmatmul.mubr.bf16.vlgmr.msra.gmra.mrb[0].mxu1 %v1580_v59  ;;  %1201 = vmatmul.mubr.bf16.vlgmr.msra.gmra.mrb[16].mxu0 %v1503_v46  ;;  %v1611_v46 = vld [vmem:[%s245_s19] sm:$0xff]  }
  0x69   : > { %1208 = vmatprep.mubr.bf16.mxu0 %v1579_v7  ;;  %v1613_v56 = vunpack.c.h.bf16 %v1611_v46 }
  0x70   : > { %1209 = vmatmul.mubr.bf16.gmra.mrb[20].mxu0 %v1578_v25  ;;  %v1612_v25 = vunpack.c.l.bf16 %v1611_v46 }
  0xfb   : > { %v1646_v8 = vpop.f32.mrb[0].mxu0 }
  0xfc   : > { %v1647_v9 = vpop.f32.mrb[1].mxu0 }
  0xfd   : > { %v1648_v10 = vadd.f32 %v1647_v9, %v1646_v8  ;;  %v1649_v11 = vpop.f32.mrb[2].mxu0 }
  0xfe   : > { %v1650_v12 = vpop.f32.mrb[3].mxu0 }
  0xff   : > { %v1651_v13 = vadd.f32 %v1650_v12, %v1649_v11 }
 0x103   : > { %v1652_v14 = vpop.f32.mrb[4].mxu0 }
 0x104   : > { %v1653_v15 = vpop.f32.mrb[5].mxu0 }
 0x105   : > { %v1654_v16 = vadd.f32 %v1653_v15, %v1652_v14  ;;  %v1655_v17 = vpop.f32.mrb[6].mxu0 }
 0x106   : > { %v1656_v18 = vpop.f32.mrb[7].mxu0 }
 0x107   : > { %v1657_v19 = vadd.f32 %v1656_v18, %v1655_v17 }
 0x11b   : > { %v1684_v20 = vpop.f32.mrb[8].mxu0 }
 0x11c   : > { %v1685_v21 = vpop.f32.mrb[9].mxu0 }
 0x11d   : > { %v1686_v4 = vadd.f32 %v1685_v21, %v1684_v20  ;;  %v1687_v22 = vpop.f32.mrb[10].mxu0 }
 0x11e   : > { %v1688_v24 = vpop.f32.mrb[11].mxu0 }
 0x11f   : > { %v1807_v26 = vadd.f32 %v1686_v4, %v1648_v10  ;;  %v1689_v29 = vadd.f32 %v1688_v24, %v1687_v22  ;;  %v1617_v10 = vunpack.c.h.bf16 %v1628_v58 }
 0x121   : > { %v1813_v32 = vadd.f32 %v1689_v29, %v1651_v13 }
 0x123   : > { %v1690_v33 = vpop.f32.mrb[12].mxu0 }
 0x124   : > { %v1691_v34 = vpop.f32.mrb[13].mxu0 }
 0x125   : > { %v1692_v36 = vadd.f32 %v1691_v34, %v1690_v33  ;;  %v1693_v37 = vpop.f32.mrb[14].mxu0 }
 0x126   : > { %v1694_v27 = vpop.f32.mrb[15].mxu0 }
 0x127   : > { %v1804_v35 = vadd.f32 %v1692_v36, %v1654_v16  ;;  %v1695_v39 = vadd.f32 %v1694_v27, %v1693_v37 }
 0x129   : > { %v1810_v40 = vadd.f32 %v1695_v39, %v1657_v19 }
 0x13b   : > { %v1802_v41 = vpop.f32.mrb[0].mxu1  ;;  %v1722_v43 = vpop.f32.mrb[16].mxu0 }
 0x13c   : > { %v1251_v44 = vpop.f32.mrb[1].mxu1  ;;  %v1723_v31 = vpop.f32.mrb[17].mxu0 }
 0x13d   : > { %v1803_v30 = vpop.f32.mrb[2].mxu1  ;;  %v1724_v23 = vadd.f32 %v1723_v31, %v1722_v43  ;;  %v1725_v38 = vpop.f32.mrb[18].mxu0 }
 0x13e   : > { %v1254_v45 = vpop.f32.mrb[3].mxu1  ;;  %v1726_v48 = vpop.f32.mrb[19].mxu0 }
 0x13f   : > { %v1808_v49 = vadd.f32 %v1807_v26, %v1724_v23  ;;  %v1727_v51 = vadd.f32 %v1726_v48, %v1725_v38 }
 0x141   : > { %v1809_v53 = vadd.f32 %v1808_v49, %v1251_v44  ;;  %v1814_v28 = vadd.f32 %v1813_v32, %v1727_v51 }
 0x143   : > { %v1277_v54 = vadd.f32 %v1809_v53, %v1605_v52  ;;  %v1815_v55 = vadd.f32 %v1814_v28, %v1254_v45  ;;  %v1728_v57 = vpop.f32.mrb[20].mxu0 }
 0x144   : > { %v1729_v42 = vpop.f32.mrb[21].mxu0 }
 0x145   : > { %v1289_v59 = vadd.f32 %v1612_v25, %v1277_v54  ;;  %v1278_v60 = vadd.f32 %v1815_v55, %v1605_v52  ;;  %v1730_v61 = vadd.f32 %v1729_v42, %v1728_v57  ;;  %v1731_v62 = vpop.f32.mrb[22].mxu0 }
 0x146   : > { %v1732_v63 = vpop.f32.mrb[23].mxu0 }
 0x147   : > { %v1290_v47 = vadd.f32 %v1613_v56, %v1278_v60  ;;  %v1805_v50 = vadd.f32 %v1804_v35, %v1730_v61  ;;  %v1733_v0 = vadd.f32 %v1732_v63, %v1731_v62  ;;  %v1293_v2 = vmax.f32 %v1289_v59, 0.0 }
 0x149   : > { %v1294_v3 = vmax.f32 %v1290_v47, 0.0  ;;  %v1806_v5 = vadd.f32 %v1805_v50, %v1802_v41  ;;  %v1811_v6 = vadd.f32 %v1810_v40, %v1733_v0 }
 0x14b   : > { %v1621_v7 = vpack.c.bf16 %v1294_v3, %v1293_v2  ;;  %v1279_v8 = vadd.f32 %v1806_v5, %v1605_v52  ;;  %v1812_v9 = vadd.f32 %v1811_v6, %v1803_v30 }
 0x14d   : > { %1622 = vst [vmem:[%s255_s24] sm:$0xff] %v1621_v7   ;;  %v1291_v11 = vadd.f32 %v1616_v1, %v1279_v8  ;;  %v1280_v12 = vadd.f32 %v1812_v9, %v1605_v52 }
 0x14f   : > { %v1292_v13 = vadd.f32 %v1617_v10, %v1280_v12  ;;  %v1295_v14 = vmax.f32 %v1291_v11, 0.0 }
 0x151   : > { %v1296_v15 = vmax.f32 %v1292_v13, 0.0 }
 0x153   : > { %v1626_v16 = vpack.c.bf16 %v1296_v15, %v1295_v14 }
 0x155   : > { %1629 = vst [vmem:[%s255_s24 + $0x8] sm:$0xff] %v1626_v16  }
 0x156 PF: > { %s14_s17 = sadd.s32 1, %s1954_s17   ;;  %s2339_s15 = smov %s1950_s16 }
 0x157   : > { %p11_p5 = scmp.ge.s32.totalorder %s14_s17, 4   ;;  %s2340_s16 = smov %s2342_s18 }
 0x159   :  { %13 = sbr.rel (!%p11_p5) target bundleno = 2 (0x2), region = 72 }

// kernel: _lambda_.94
= control target key start
LH: loop header
LB: loop body
LE: loop exit
PB: predicated region body
PF: predicated region fallthrough
CT: control target
= control target key end

     0   :  { %vm52_vm0 = vcmask 261120   ;;  %vm128_vm1 = vcmask 257024   ;;  %s215_s1 = inlined_call_operand.vmem [shape: bf16[32,32], index: 1, kind: input, shape index: {}]   ;;  %s216_s0 = inlined_call_operand.vmem [shape: bf16[32,32], index: 0, kind: input, shape index: {}]   ;;  %s217_s2 = inlined_call_operand.vmem [shape: f32[1,32], index: 2, kind: input, shape index: {}]   ;;  %s218_s3 = inlined_call_operand.vmem [shape: bf16[32,32], index: 3, kind: output, shape index: {}]  }
   0x1   :  { %v164_v0 = vld [vmem:[%s215_s1] sm:$0xff]   ;;  %v165_v1 = vld [vmem:[%s215_s1 + $0x8] sm:$0xff]  }
   0x2   :  { %156 = vmatprep.subr.bf16.mxu0 %v164_v0  ;;  %v166_v2 = vld [vmem:[%s216_s0] sm:$0xff]   ;;  %v167_v3 = vld [vmem:[%s216_s0 + $0x8] sm:$0xff]  }
   0x3   :  { %157 = vmatpush3.bf16.msra.mxu0 %v164_v0  ;;  %160 = vmatprep.mubr.msk.bf16.mxu0 %vm52_vm0, %v166_v2  ;;  %v137_v4 = vld [vmem:[%s217_s2] ss:$0 sm:$0xff] }
   0x4   :  { %158 = vmatprep.subr.bf16.mxu0 %v165_v1 }
   0x7   :  { %159 = vmatpush3.bf16.msra.mxu0 %v165_v1 }
   0xa   :  { %161 = vmatmul.mubr.msk.bf16.vlgmr.msra.gmra.mrb[0].mxu0 %vm52_vm0, %v167_v3 }
  0xdd   :  { %v162_v5 = vpop.f32.mrb[0].mxu0 }
  0xde   :  { %v102_v6 = vadd.f32 %v162_v5, %v137_v4  ;;  %v93_v7 = vpop.f32.mrb[1].mxu0 }
  0xdf   :  { %v94_v8 = vadd.f32 %v137_v4, %v93_v7  ;;  %v163_v9 = vpop.f32.mrb[2].mxu0 }
  0xe0   :  { %v110_v10 = vmax.f32 %v102_v6, 0.0  ;;  %v105_v11 = vadd.f32 %v163_v9, %v137_v4  ;;  %v96_v12 = vpop.f32.mrb[3].mxu0 }
  0xe1   :  { %v108_v13 = vmax.f32 %v94_v8, 0.0  ;;  %v97_v14 = vadd.f32 %v137_v4, %v96_v12 }
  0xe2   :  { %v150_v15 = vpack.c.bf16 %v110_v10, %v110_v10  ;;  %v111_v16 = vmax.f32 %v105_v11, 0.0 }
  0xe3   :  { %v148_v17 = vpack.c.bf16 %v108_v13, %v108_v13  ;;  %v109_v18 = vmax.f32 %v97_v14, 0.0 }
  0xe4   :  { %131 = vst.msk [vmem:[%s218_s3 + $0x8] sm:$0xf] %vm128_vm1, %v150_v15  ;;  %v151_v19 = vpack.c.bf16 %v111_v16, %v111_v16 }
  0xe5   :  { %129 = vst.msk [vmem:[%s218_s3] sm:$0xf] %vm128_vm1, %v148_v17  ;;  %v149_v20 = vpack.c.bf16 %v109_v18, %v109_v18 }
  0xe6   :  { %132 = vst.msk [vmem:[%s218_s3 + $0xc] sm:$0xf] %vm128_vm1, %v151_v19 }
  0xe7   :  { %130 = vst.msk [vmem:[%s218_s3 + $0x4] sm:$0xf] %vm128_vm1, %v149_v20 }

// kernel: _lambda_.93
= control target key start
LH: loop header
LB: loop body
LE: loop exit
PB: predicated region body
PF: predicated region fallthrough
CT: control target
= control target key end

     0   :  { %s1861_s12 = smov 0   ;;  %s1863_s13 = smov 0   ;;  %s2211_s0 = inlined_call_operand.vmem [shape: bf16[2,6,10,128], index: 0, kind: input, shape index: {}]   ;;  %s2212_s1 = inlined_call_operand.vmem [shape: bf16[3,384,32], index: 1, kind: input, shape index: {}]   ;;  %s2213_s2 = inlined_call_operand.vmem [shape: f32[1,32], index: 2, kind: input, shape index: {}]   ;;  %s2214_s3 = inlined_call_operand.vmem [shape: bf16[2,4,8,32], index: 3, kind: output, shape index: {}]  }
   0x1   :  { %s1865_s14 = smov 0  }
   0x2 LB: > { %s25_s15 = sadd.s32 1, %s1835_s13  ;;  %p1318_p0 = scmp.ge.s32.totalorder %s1839_s14, 1  ;;  %s1839_s14 = sphi %s1865_s14, %s13_s14   ;;  %s1835_s13 = sphi %s1863_s13, %s2216_s13   ;;  %s1831_s12 = sphi %s1861_s12, %s2215_s12  }
   0x3   : > { %p27_p1 = scmp.ge.s32.totalorder %s25_s15, 2  ;;  %p151_p2 = scmp.lt.s32.totalorder %s1839_s14, 3 }
   0x5   : > { %s2218_s15 = smov (%p27_p1, %s25_s15), 0  ;;  %p152_p3 = pnand %p1318_p0, %p151_p2 }
   0x6   : > { %v1734_v0 = vld [vmem:[%s2212_s1 + $0x100] sm:$0xff] (!%p152_p3)   ;;  %v1737_v3 = vld [vmem:[%s2212_s1 + $0x108] sm:$0xff] (!%p152_p3)   ;;  %v1740_v6 = vld [vmem:[%s2212_s1 + $0x110] sm:$0xff] (!%p152_p3)   ;;  %p179_p4 = scmp.lt.s32.totalorder (!%p152_p3), %s1831_s12, 1  ;;  %vm1226_vm0 = vcmask (!%p152_p3), 257024  }
   0x7   : > { %155 = sbr.rel (%p152_p3) target bundleno = 340 (0x154), region = 32  ;;  %v1735_v1 = vld [vmem:[%s2212_s1 + $0x140] sm:$0xff] (!%p152_p3)   ;;  %1515 = vmatprep.subr.bf16.mxu0 (!%p152_p3), %v1734_v0  ;;  %v1738_v4 = vld [vmem:[%s2212_s1 + $0x148] sm:$0xff] (!%p152_p3)   ;;  %v1741_v7 = vld [vmem:[%s2212_s1 + $0x150] sm:$0xff] (!%p152_p3)  }
   0x8   : > { %v1736_v2 = vld [vmem:[%s2212_s1 + $0xc0] sm:$0xff] (!%p152_p3)   ;;  %1629 = vmatprep.subr.bf16.mxu1 (!%p152_p3), %v1735_v1  ;;  %v1739_v5 = vld [vmem:[%s2212_s1 + $0xc8] sm:$0xff] (!%p152_p3)   ;;  %v1742_v8 = vld [vmem:[%s2212_s1 + $0xd0] sm:$0xff] (!%p152_p3)  }
   0x9   : > { %1516 = vmatpush3.bf16.msra.mxu0 (!%p152_p3), %v1736_v2  ;;  %1630 = vmatpush3.bf16.msra.mxu1 (!%p152_p3), %v1735_v1  ;;  %v1743_v9 = vld [vmem:[%s2212_s1 + $0x118] sm:$0xff] (!%p152_p3)   ;;  %v1746_v12 = vld [vmem:[%s2212_s1 + $0x120] sm:$0xff] (!%p152_p3)   ;;  %v1749_v15 = vld [vmem:[%s2212_s1 + $0x128] sm:$0xff] (!%p152_p3)  }
   0xa   : > { %1517 = vmatprep.subr.bf16.mxu0 (!%p152_p3), %v1737_v3  ;;  %1631 = vmatprep.subr.bf16.mxu1 (!%p152_p3), %v1738_v4  ;;  %v1744_v10 = vld [vmem:[%s2212_s1 + $0x158] sm:$0xff] (!%p152_p3)   ;;  %v1747_v13 = vld [vmem:[%s2212_s1 + $0x160] sm:$0xff] (!%p152_p3)   ;;  %v1750_v16 = vld [vmem:[%s2212_s1 + $0x168] sm:$0xff] (!%p152_p3)  }
   0xb   : > { %v1745_v11 = vld [vmem:[%s2212_s1 + $0xd8] sm:$0xff] (!%p152_p3)   ;;  %v1748_v14 = vld [vmem:[%s2212_s1 + $0xe0] sm:$0xff] (!%p152_p3)   ;;  %v1751_v17 = vld [vmem:[%s2212_s1 + $0xe8] sm:$0xff] (!%p152_p3)  }
   0xc   : > { %v1752_v18 = vld [vmem:[%s2212_s1 + $0x130] sm:$0xff] (!%p152_p3)   ;;  %v1755_v21 = vld [vmem:[%s2212_s1 + $0x138] sm:$0xff] (!%p152_p3)   ;;  %v1762_v39 = vld [vmem:[%s2212_s1 + $0x40] sm:$0xff] (!%p152_p3)  }
   0xd   : > { %1518 = vmatpush3.bf16.msra.mxu0 (!%p152_p3), %v1739_v5  ;;  %1632 = vmatpush3.bf16.msra.mxu1 (!%p152_p3), %v1738_v4  ;;  %v1753_v19 = vld [vmem:[%s2212_s1 + $0x170] sm:$0xff] (!%p152_p3)   ;;  %v1756_v22 = vld [vmem:[%s2212_s1 + $0x178] sm:$0xff] (!%p152_p3)   ;;  %v1763_v41 = vld [vmem:[%s2212_s1 + $0x80] sm:$0xff] (!%p152_p3)  }
   0xe   : > { %1519 = vmatprep.subr.bf16.mxu0 %v1740_v6  ;;  %1633 = vmatprep.subr.bf16.mxu1 %v1741_v7  ;;  %s2220_s12 = smov (!%p179_p4, %s1831_s12), 1  ;;  %v1754_v20 = vld [vmem:[%s2212_s1 + $0xf0] sm:$0xff]   ;;  %v1757_v32 = vld [vmem:[%s2212_s1 + $0xf8] sm:$0xff]   ;;  %v1765_v52 = vld [vmem:[%s2212_s1] sm:$0xff]  }
   0xf   : > { %s1709_s27 = smul.u32 48, %s2220_s12  ;;  %v1767_v55 = vld [vmem:[%s2212_s1 + $0x88] sm:$0xff]   ;;  %v1770_v63 = vld [vmem:[%s2212_s1 + $0x90] sm:$0xff]   ;;  %v1773_v5 = vld [vmem:[%s2212_s1 + $0x98] sm:$0xff]   ;;  %s1514_s4 = sshll.u32 %s2220_s12, 4 }
  0x10   : > { %v1766_v57 = vld [vmem:[%s2212_s1 + $0x48] sm:$0xff]   ;;  %v1769_v0 = vld [vmem:[%s2212_s1 + $0x50] sm:$0xff]   ;;  %v1772_v6 = vld [vmem:[%s2212_s1 + $0x58] sm:$0xff]   ;;  %s192_s6 = scalar_lea.vmem %s2214_s3, %s1514_s4 }
  0x11   : > { %1520 = vmatpush3.bf16.msra.mxu0 %v1742_v8  ;;  %1634 = vmatpush3.bf16.msra.mxu1 %v1741_v7  ;;  %s1949_s9 = scalar_lea.vmem %s2211_s0, %s1709_s27  ;;  %v1768_v59 = vld [vmem:[%s2212_s1 + $0x8] sm:$0xff]   ;;  %v1771_v3 = vld [vmem:[%s2212_s1 + $0x10] sm:$0xff]  }
  0x12   : > { %1521 = vmatprep.subr.bf16.mxu0 %v1743_v9  ;;  %1635 = vmatprep.subr.bf16.mxu1 %v1744_v10  ;;  %v1961_v23 = vld [vmem:[%s1949_s9 + $0x8] sm:$0xf]  ;;  %v202_v24 = vld [vmem:[%s1949_s9 + $0xc] sm:$0x1]  ;;  %v1965_v25 = vld [vmem:[%s1949_s9 + $0x10] sm:$0xf] }
  0x13   : > { %v204_v26 = vld [vmem:[%s1949_s9 + $0x14] sm:$0x1]  ;;  %v1969_v27 = vcombine.low %v1961_v23, %v202_v24  ;;  %v1972_v28 = vld [vmem:[%s1949_s9 + $0x18] sm:$0xf]  ;;  %v206_v29 = vld [vmem:[%s1949_s9 + $0x1c] sm:$0x1]  ;;  %v1376_v51 = vcombine.low %v1961_v23, %v1965_v25 }
  0x14   : > { %v1976_v30 = vcombine.low %v1965_v25, %v204_v26  ;;  %v1979_v31 = vcombine.low %v1972_v28, %v206_v29  ;;  %v1997_v42 = vld [vmem:[%s1949_s9 + $0x20] sm:$0xf]  ;;  %v208_v43 = vld [vmem:[%s1949_s9 + $0x24] sm:$0x1]  ;;  %v1774_v9 = vld [vmem:[%s2212_s1 + $0x18] sm:$0xff]  }
  0x15   : > { %1522 = vmatpush3.bf16.msra.mxu0 %v1745_v11  ;;  %1636 = vmatpush3.bf16.msra.mxu1 %v1744_v10  ;;  %v249_v33 = vshrl.u32 %v1969_v27, 16  ;;  %v251_v34 = vshll.u32 %v1969_v27, 16  ;;  %v284_v35 = vrot.slane %v1969_v27, 1  ;;  %v2006_v47 = vcombine.low %v1997_v42, %v208_v43  ;;  %v1776_v10 = vld [vmem:[%s2212_s1 + $0xa0] sm:$0xff]   ;;  %v1784_v26 = vld [vmem:[%s2212_s1 + $0x30] sm:$0xff]  }
  0x16   : > { %1523 = vmatprep.subr.bf16.mxu0 %v1746_v12  ;;  %1637 = vmatprep.subr.bf16.mxu1 %v1747_v13  ;;  %v256_v36 = vshrl.u32 %v1976_v30, 16  ;;  %v258_v37 = vshll.u32 %v1976_v30, 16  ;;  %v285_v38 = vrot.slane %v1976_v30, 1  ;;  %v286_v45 = vrot.slane %v1979_v31, 1  ;;  %v1775_v11 = vld [vmem:[%s2212_s1 + $0x60] sm:$0xff]  }
  0x17   : > { %v253_v40 = vrot.slane %v251_v34, 1  ;;  %v287_v50 = vrot.slane %v2006_v47, 1  ;;  %v265_v56 = vshll.u32 %v1979_v31, 16  ;;  %v263_v58 = vshrl.u32 %v1979_v31, 16  ;;  %v1777_v12 = vld [vmem:[%s2212_s1 + $0x20] sm:$0xff]   ;;  %v1785_v34 = vld [vmem:[%s2212_s1 + $0x78] sm:$0xff]  }
  0x18   : > { %v260_v44 = vrot.slane %v258_v37, 1  ;;  %v1378_v46 = vcombine.low %v284_v35, %v285_v38  ;;  %v270_v61 = vshrl.u32 %v2006_v47, 16  ;;  %v272_v62 = vshll.u32 %v2006_v47, 16  ;;  %v1787_v37 = vld [vmem:[%s2212_s1 + $0x38] sm:$0xff]   ;;  %v1792_v43 = vld [vmem:[%s2212_s1 + $0x180] sm:$0xff]   ;;  %v1793_v31 = vld [vmem:[%s2212_s1 + $0x1c8] sm:$0xff]  }
  0x19   : > { %1524 = vmatpush3.bf16.msra.mxu0 %v1748_v14  ;;  %1638 = vmatpush3.bf16.msra.mxu1 %v1747_v13  ;;  %v2008_v48 = vor.u32 %v253_v40, %v249_v33  ;;  %v1381_v54 = vcombine.low %v286_v45, %v287_v50  ;;  %v267_v60 = vrot.slane %v265_v56, 1  ;;  %v1379_v8 = vcombine.low %v1972_v28, %v1997_v42  ;;  %v1779_v13 = vld [vmem:[%s2212_s1 + $0xa8] sm:$0xff]   ;;  %v1786_v33 = vld [vmem:[%s2212_s1 + $0xb8] sm:$0xff]   ;;  %v1803_v56 = vld [vmem:[%s2212_s1 + $0x1e0] sm:$0xff]  }
  0x1a   : > { %1525 = vmatprep.subr.bf16.mxu0 %v1749_v15  ;;  %1639 = vmatprep.subr.bf16.mxu1 %v1750_v16  ;;  %v2010_v49 = vor.u32 %v260_v44, %v256_v36  ;;  %v274_v2 = vrot.slane %v272_v62, 1  ;;  %v1778_v14 = vld [vmem:[%s2212_s1 + $0x68] sm:$0xff]   ;;  %v199_v15 = vld [vmem:[%s1949_s9] sm:$0xf]  ;;  %v1411_v40 = vcombine.low %v285_v38, %v286_v45  ;;  %v1798_v38 = vld [vmem:[%s2212_s1 + $0x210] sm:$0xff]  }
  0x1b   : > { %1645 = vmatprep.mubr.bf16.mxu1 %v1378_v46  ;;  %v2043_v1 = vor.u32 %v267_v60, %v263_v58  ;;  %v1794_v44 = vld [vmem:[%s2212_s1 + $0x208] sm:$0xff]   ;;  %v1797_v45 = vld [vmem:[%s2212_s1 + $0x1d0] sm:$0xff]   ;;  %v1409_v46 = vcombine.low %v1965_v25, %v1972_v28  ;;  %v1802_v28 = vld [vmem:[%s2212_s1 + $0x198] sm:$0xff]  }
  0x1c   : > { %v1377_v53 = vcombine.low %v2008_v48, %v2010_v49  ;;  %v2048_v4 = vor.u32 %v274_v2, %v270_v61  ;;  %v1807_v58 = vld [vmem:[%s2212_s1 + $0x228] sm:$0xff]   ;;  %v1810_v62 = vld [vmem:[%s2212_s1 + $0x230] sm:$0xff]  }
  0x1d   : > { %1526 = vmatpush3.bf16.msra.mxu0 %v1751_v17  ;;  %1640 = vmatpush3.bf16.msra.mxu1 %v1750_v16  ;;  %v200_v16 = vld [vmem:[%s1949_s9 + $0x4] sm:$0x1]  ;;  %v1780_v17 = vld [vmem:[%s2212_s1 + $0x28] sm:$0xff]   ;;  %v1410_v30 = vcombine.low %v2010_v49, %v2043_v1  ;;  %v1801_v49 = vld [vmem:[%s2212_s1 + $0x218] sm:$0xff]  }
  0x1e   : > { %1527 = vmatprep.subr.bf16.mxu0 %v1752_v18  ;;  %1641 = vmatprep.subr.bf16.mxu1 %v1753_v19  ;;  %v1380_v7 = vcombine.low %v2043_v1, %v2048_v4  ;;  %v1322_v18 = vcombine.low %v199_v15, %v200_v16  ;;  %v1806_v60 = vld [vmem:[%s2212_s1 + $0x1e8] sm:$0xff]   ;;  %v1809_v47 = vld [vmem:[%s2212_s1 + $0x1f0] sm:$0xff]  }
  0x1f   : > { %584 = vmatprep.mubr.bf16.mxu0 %v1377_v53  ;;  %v210_v53 = vld [vmem:[%s1949_s9 + $0x2c] sm:$0x1] }
  0x20   : > { %v283_v24 = vrot.slane %v1322_v18, 1  ;;  %v1808_v61 = vld [vmem:[%s2212_s1 + $0x1a8] sm:$0xff]  }
  0x21   : > { %1528 = vmatpush3.bf16.msra.mxu0 %v1754_v20  ;;  %1642 = vmatpush3.bf16.msra.mxu1 %v1753_v19  ;;  %v1783_v19 = vld [vmem:[%s2212_s1 + $0xb0] sm:$0xff]  }
  0x22   : > { %1529 = vmatprep.subr.bf16.mxu0 %v1755_v21  ;;  %1643 = vmatprep.subr.bf16.mxu1 %v1756_v22  ;;  %v1782_v20 = vld [vmem:[%s2212_s1 + $0x70] sm:$0xff]   ;;  %v242_v21 = vshrl.u32 %v1322_v18, 16 }
  0x25   : > { %1530 = vmatpush3.bf16.msra.mxu0 %v1757_v32  ;;  %1644 = vmatpush3.bf16.msra.mxu1 %v1756_v22  ;;  %v244_v22 = vshll.u32 %v1322_v18, 16  ;;  %v1408_v32 = vcombine.low %v283_v24, %v284_v35  ;;  %v1791_v35 = vld [vmem:[%s2212_s1 + $0x200] sm:$0xff]  }
  0x26   : > { %1553 = vmatprep.subr.bf16.mxu0 %v1762_v39  ;;  %1649 = vmatprep.subr.bf16.mxu1 %v1763_v41  ;;  %v1790_v39 = vld [vmem:[%s2212_s1 + $0x1c0] sm:$0xff]  }
  0x27   : > { %v246_v29 = vrot.slane %v244_v22, 1 }
  0x28   : > { %1646 = vmatmul.mubr.bf16.vlgmr.msra.gmra.mrb[0].mxu1 %v1381_v54  ;;  %585 = vmatmul.mubr.bf16.vlgmr.msra.gmra.mrb[0].mxu0 %v1376_v51  ;;  %v1800_v51 = vld [vmem:[%s2212_s1 + $0x1d8] sm:$0xff]   ;;  %v1804_v54 = vld [vmem:[%s2212_s1 + $0x220] sm:$0xff]  }
  0x29   : > { %1650 = vmatpush3.bf16.msra.mxu1 %v1763_v41  ;;  %1554 = vmatpush3.bf16.msra.mxu0 %v1765_v52  ;;  %v247_v36 = vor.u32 %v246_v29, %v242_v21  ;;  %v1406_v41 = vcombine.low %v199_v15, %v1961_v23  ;;  %v1795_v23 = vld [vmem:[%s2212_s1 + $0x188] sm:$0xff]  }
  0x2a   : > { %1651 = vmatprep.subr.bf16.mxu1 %v1767_v55  ;;  %1555 = vmatprep.subr.bf16.mxu0 %v1766_v57  ;;  %v209_v52 = vld [vmem:[%s1949_s9 + $0x28] sm:$0xf] }
  0x2b   : > { %592 = vmatprep.mubr.bf16.mxu0 %v1380_v7  ;;  %1665 = vmatprep.mubr.bf16.mxu1 %v1408_v32  ;;  %v1407_v27 = vcombine.low %v247_v36, %v2008_v48  ;;  %v1799_v48 = vld [vmem:[%s2212_s1 + $0x190] sm:$0xff]   ;;  %v1484_v25 = vcombine.low %v1997_v42, %v209_v52  ;;  %v1805_v42 = vld [vmem:[%s2212_s1 + $0x1a0] sm:$0xff]  }
  0x2d   : > { %1652 = vmatpush3.bf16.msra.mxu1 %v1767_v55  ;;  %1556 = vmatpush3.bf16.msra.mxu0 %v1768_v59  ;;  %v1327_v55 = vcombine.low %v209_v52, %v210_v53 }
  0x2e   : > { %1653 = vmatprep.subr.bf16.mxu1 %v1770_v63  ;;  %1557 = vmatprep.subr.bf16.mxu0 %v1769_v0  ;;  %v1813_v0 = vld [vmem:[%s2212_s1 + $0x238] sm:$0xff]  }
  0x2f   : > { %v288_v57 = vrot.slane %v1327_v55, 1  ;;  %v277_v1 = vshrl.u32 %v1327_v55, 16 }
  0x30   : > { %593 = vmatmul.mubr.bf16.gmra.mrb[4].mxu0 %v1379_v8 }
  0x31   : > { %1654 = vmatpush3.bf16.msra.mxu1 %v1770_v63  ;;  %1558 = vmatpush3.bf16.msra.mxu0 %v1771_v3  ;;  %v1486_v59 = vcombine.low %v287_v50, %v288_v57  ;;  %v279_v63 = vshll.u32 %v1327_v55, 16  ;;  %v1811_v50 = vld [vmem:[%s2212_s1 + $0x1b0] sm:$0xff]   ;;  %v1812_v3 = vld [vmem:[%s2212_s1 + $0x1f8] sm:$0xff]  }
  0x32   : > { %1655 = vmatprep.subr.bf16.mxu1 %v1773_v5  ;;  %1559 = vmatprep.subr.bf16.mxu0 %v1772_v6 }
  0x33   : > { %838 = vmatprep.mubr.bf16.mxu0 %v1407_v27  ;;  %v281_v2 = vrot.slane %v279_v63, 1 }
  0x35   : > { %1656 = vmatpush3.bf16.msra.mxu1 %v1773_v5  ;;  %1560 = vmatpush3.bf16.msra.mxu0 %v1774_v9  ;;  %v1814_v5 = vld [vmem:[%s2212_s1 + $0x1b8] sm:$0xff]   ;;  %v282_v6 = vor.u32 %v281_v2, %v277_v1 }
  0x36   : > { %1657 = vmatprep.subr.bf16.mxu1 %v1776_v10  ;;  %1561 = vmatprep.subr.bf16.mxu0 %v1775_v11 }
  0x37   : > { %v1485_v7 = vcombine.low %v2048_v4, %v282_v6 }
  0x39   : > { %1658 = vmatpush3.bf16.msra.mxu1 %v1776_v10  ;;  %1562 = vmatpush3.bf16.msra.mxu0 %v1777_v12 }
  0x3a   : > { %1659 = vmatprep.subr.bf16.mxu1 %v1779_v13  ;;  %1563 = vmatprep.subr.bf16.mxu0 %v1778_v14 }
  0x3d   : > { %1660 = vmatpush3.bf16.msra.mxu1 %v1779_v13  ;;  %1564 = vmatpush3.bf16.msra.mxu0 %v1780_v17 }
  0x3e   : > { %1661 = vmatprep.subr.bf16.mxu1 %v1783_v19  ;;  %1565 = vmatprep.subr.bf16.mxu0 %v1782_v20 }
  0x41   : > { %1662 = vmatpush3.bf16.msra.mxu1 %v1783_v19  ;;  %1566 = vmatpush3.bf16.msra.mxu0 %v1784_v26 }
  0x42   : > { %1663 = vmatprep.subr.bf16.mxu1 %v1786_v33  ;;  %1567 = vmatprep.subr.bf16.mxu0 %v1785_v34 }
  0x45   : > { %1664 = vmatpush3.bf16.msra.mxu1 %v1786_v33  ;;  %1568 = vmatpush3.bf16.msra.mxu0 %v1787_v37 }
  0x46   : > { %1669 = vmatprep.subr.bf16.mxu1 %v1791_v35  ;;  %1591 = vmatprep.subr.bf16.mxu0 %v1790_v39 }
  0x48   : > { %1666 = vmatmul.mubr.bf16.vlgmr.msra.gmra.mrb[0].mxu1 %v1411_v40  ;;  %839 = vmatmul.mubr.bf16.vlgmr.msra.gmra.mrb[8].mxu0 %v1406_v41 }
  0x49   : > { %1670 = vmatpush3.bf16.msra.mxu1 %v1791_v35  ;;  %1592 = vmatpush3.bf16.msra.mxu0 %v1792_v43 }
  0x4a   : > { %1671 = vmatprep.subr.bf16.mxu1 %v1794_v44  ;;  %1593 = vmatprep.subr.bf16.mxu0 %v1793_v31 }
  0x4b   : > { %846 = vmatprep.mubr.bf16.mxu0 %v1410_v30  ;;  %1685 = vmatprep.mubr.bf16.mxu1 %v1411_v40 }
  0x4d   : > { %1672 = vmatpush3.bf16.msra.mxu1 %v1794_v44  ;;  %1594 = vmatpush3.bf16.msra.mxu0 %v1795_v23 }
  0x4e   : > { %1673 = vmatprep.subr.bf16.mxu1 %v1798_v38  ;;  %1595 = vmatprep.subr.bf16.mxu0 %v1797_v45 }
  0x50   : > { %847 = vmatmul.mubr.bf16.gmra.mrb[12].mxu0 %v1409_v46 }
  0x51   : > { %1674 = vmatpush3.bf16.msra.mxu1 %v1798_v38  ;;  %1596 = vmatpush3.bf16.msra.mxu0 %v1799_v48 }
  0x52   : > { %1675 = vmatprep.subr.bf16.mxu1 %v1801_v49  ;;  %1597 = vmatprep.subr.bf16.mxu0 %v1800_v51  ;;  %v1511_v51 = vld [vmem:[%s2213_s2] ss:$0 sm:$0xff] }
  0x53   : > { %1137 = vmatprep.mubr.bf16.mxu0 %v1410_v30 }
  0x55   : > { %1676 = vmatpush3.bf16.msra.mxu1 %v1801_v49  ;;  %1598 = vmatpush3.bf16.msra.mxu0 %v1802_v28 }
  0x56   : > { %1677 = vmatprep.subr.bf16.mxu1 %v1804_v54  ;;  %1599 = vmatprep.subr.bf16.mxu0 %v1803_v56 }
  0x59   : > { %1678 = vmatpush3.bf16.msra.mxu1 %v1804_v54  ;;  %1600 = vmatpush3.bf16.msra.mxu0 %v1805_v42 }
  0x5a   : > { %1679 = vmatprep.subr.bf16.mxu1 %v1807_v58  ;;  %1601 = vmatprep.subr.bf16.mxu0 %v1806_v60 }
  0x5d   : > { %1680 = vmatpush3.bf16.msra.mxu1 %v1807_v58  ;;  %1602 = vmatpush3.bf16.msra.mxu0 %v1808_v61 }
  0x5e   : > { %1681 = vmatprep.subr.bf16.mxu1 %v1810_v62  ;;  %1603 = vmatprep.subr.bf16.mxu0 %v1809_v47 }
  0x61   : > { %1682 = vmatpush3.bf16.msra.mxu1 %v1810_v62  ;;  %1604 = vmatpush3.bf16.msra.mxu0 %v1811_v50 }
  0x62   : > { %1683 = vmatprep.subr.bf16.mxu1 %v1813_v0  ;;  %1605 = vmatprep.subr.bf16.mxu0 %v1812_v3 }
  0x65   : > { %1684 = vmatpush3.bf16.msra.mxu1 %v1813_v0  ;;  %1606 = vmatpush3.bf16.msra.mxu0 %v1814_v5 }
  0x68   : > { %1686 = vmatmul.mubr.bf16.vlgmr.msra.gmra.mrb[0].mxu1 %v1486_v59  ;;  %1138 = vmatmul.mubr.bf16.vlgmr.msra.gmra.mrb[16].mxu0 %v1409_v46 }
  0x69   : > { %1145 = vmatprep.mubr.bf16.mxu0 %v1485_v7 }
  0x70   : > { %1146 = vmatmul.mubr.bf16.gmra.mrb[20].mxu0 %v1484_v25 }
  0xfb   : > { %v1531_v8 = vpop.f32.mrb[0].mxu0 }
  0xfc   : > { %v1532_v9 = vpop.f32.mrb[1].mxu0 }
  0xfd   : > { %v1533_v10 = vadd.f32 %v1532_v9, %v1531_v8  ;;  %v1534_v11 = vpop.f32.mrb[2].mxu0 }
  0xfe   : > { %v1535_v12 = vpop.f32.mrb[3].mxu0 }
  0xff   : > { %v1536_v13 = vadd.f32 %v1535_v12, %v1534_v11 }
 0x103   : > { %v1537_v14 = vpop.f32.mrb[4].mxu0 }
 0x104   : > { %v1538_v15 = vpop.f32.mrb[5].mxu0 }
 0x105   : > { %v1539_v16 = vadd.f32 %v1538_v15, %v1537_v14  ;;  %v1540_v17 = vpop.f32.mrb[6].mxu0 }
 0x106   : > { %v1541_v18 = vpop.f32.mrb[7].mxu0 }
 0x107   : > { %v1542_v19 = vadd.f32 %v1541_v18, %v1540_v17 }
 0x11b   : > { %v1569_v20 = vpop.f32.mrb[8].mxu0 }
 0x11c   : > { %v1570_v21 = vpop.f32.mrb[9].mxu0 }
 0x11d   : > { %v1571_v22 = vadd.f32 %v1570_v21, %v1569_v20  ;;  %v1572_v4 = vpop.f32.mrb[10].mxu0 }
 0x11e   : > { %v1573_v24 = vpop.f32.mrb[11].mxu0 }
 0x11f   : > { %v1692_v26 = vadd.f32 %v1571_v22, %v1533_v10  ;;  %v1574_v29 = vadd.f32 %v1573_v24, %v1572_v4 }
 0x121   : > { %v1698_v32 = vadd.f32 %v1574_v29, %v1536_v13 }
 0x123   : > { %v1575_v33 = vpop.f32.mrb[12].mxu0 }
 0x124   : > { %v1576_v34 = vpop.f32.mrb[13].mxu0 }
 0x125   : > { %v1577_v36 = vadd.f32 %v1576_v34, %v1575_v33  ;;  %v1578_v37 = vpop.f32.mrb[14].mxu0 }
 0x126   : > { %v1579_v27 = vpop.f32.mrb[15].mxu0 }
 0x127   : > { %v1689_v35 = vadd.f32 %v1577_v36, %v1539_v16  ;;  %v1580_v39 = vadd.f32 %v1579_v27, %v1578_v37 }
 0x129   : > { %v1695_v40 = vadd.f32 %v1580_v39, %v1542_v19 }
 0x13b   : > { %v1687_v41 = vpop.f32.mrb[0].mxu1  ;;  %v1607_v43 = vpop.f32.mrb[16].mxu0 }
 0x13c   : > { %v1188_v44 = vpop.f32.mrb[1].mxu1  ;;  %v1608_v31 = vpop.f32.mrb[17].mxu0 }
 0x13d   : > { %v1688_v30 = vpop.f32.mrb[2].mxu1  ;;  %v1609_v23 = vadd.f32 %v1608_v31, %v1607_v43  ;;  %v1610_v38 = vpop.f32.mrb[18].mxu0 }
 0x13e   : > { %v1191_v45 = vpop.f32.mrb[3].mxu1  ;;  %v1611_v46 = vpop.f32.mrb[19].mxu0 }
 0x13f   : > { %v1693_v48 = vadd.f32 %v1692_v26, %v1609_v23  ;;  %v1612_v49 = vadd.f32 %v1611_v46, %v1610_v38 }
 0x141   : > { %v1694_v52 = vadd.f32 %v1693_v48, %v1188_v44  ;;  %v1699_v53 = vadd.f32 %v1698_v32, %v1612_v49 }
 0x143   : > { %v1214_v25 = vadd.f32 %v1694_v52, %v1511_v51  ;;  %v1700_v28 = vadd.f32 %v1699_v53, %v1191_v45  ;;  %v1613_v54 = vpop.f32.mrb[20].mxu0 }
 0x144   : > { %v1614_v55 = vpop.f32.mrb[21].mxu0 }
 0x145   : > { %v1218_v56 = vmax.f32 %v1214_v25, 0.0  ;;  %v1215_v57 = vadd.f32 %v1700_v28, %v1511_v51  ;;  %v1615_v42 = vadd.f32 %v1614_v55, %v1613_v54  ;;  %v1616_v58 = vpop.f32.mrb[22].mxu0 }
 0x146   : > { %v1617_v59 = vpop.f32.mrb[23].mxu0 }
 0x147   : > { %v1222_v60 = vpack.c.bf16 %v1218_v56, %v1218_v56  ;;  %v1219_v61 = vmax.f32 %v1215_v57, 0.0  ;;  %v1690_v62 = vadd.f32 %v1689_v35, %v1615_v42  ;;  %v1618_v63 = vadd.f32 %v1617_v59, %v1616_v58 }
 0x149   : > { %1227 = vst.msk [vmem:[%s192_s6] sm:$0xf] %vm1226_vm0, %v1222_v60  ;;  %v1223_v47 = vpack.c.bf16 %v1219_v61, %v1219_v61  ;;  %v1691_v50 = vadd.f32 %v1690_v62, %v1687_v41  ;;  %v1696_v0 = vadd.f32 %v1695_v40, %v1618_v63 }
 0x14b   : > { %1228 = vst.msk [vmem:[%s192_s6 + $0x4] sm:$0xf] %vm1226_vm0, %v1223_v47  ;;  %v1216_v1 = vadd.f32 %v1691_v50, %v1511_v51  ;;  %v1697_v2 = vadd.f32 %v1696_v0, %v1688_v30 }
 0x14d   : > { %v1220_v3 = vmax.f32 %v1216_v1, 0.0  ;;  %v1217_v5 = vadd.f32 %v1697_v2, %v1511_v51 }
 0x14f   : > { %v1224_v6 = vpack.c.bf16 %v1220_v3, %v1220_v3  ;;  %v1221_v7 = vmax.f32 %v1217_v5, 0.0 }
 0x151   : > { %1229 = vst.msk [vmem:[%s192_s6 + $0x8] sm:$0xf] %vm1226_vm0, %v1224_v6  ;;  %v1225_v8 = vpack.c.bf16 %v1221_v7, %v1221_v7 }
 0x153   : > { %1230 = vst.msk [vmem:[%s192_s6 + $0xc] sm:$0xf] %vm1226_vm0, %v1225_v8 }
 0x154 PF: > { %s13_s14 = sadd.s32 1, %s1839_s14   ;;  %s2215_s12 = smov %s1835_s13 }
 0x155   : > { %p10_p5 = scmp.ge.s32.totalorder %s13_s14, 4   ;;  %s2216_s13 = smov %s2218_s15 }
 0x157   :  { %12 = sbr.rel (!%p10_p5) target bundleno = 2 (0x2), region = 65 }

// kernel: _lambda_.95
= control target key start
LH: loop header
LB: loop body
LE: loop exit
PB: predicated region body
PF: predicated region fallthrough
CT: control target
= control target key end

     0   :  { %s1587_s15 = smov 0   ;;  %s1589_s16 = smov 0   ;;  %s1820_s0 = inlined_call_operand.vmem [shape: bf16[2,6,10,32], index: 0, kind: input, shape index: {}]   ;;  %s1821_s1 = inlined_call_operand.vmem [shape: bf16[3,3,32,32], index: 1, kind: input, shape index: {}]   ;;  %s1822_s2 = inlined_call_operand.vmem [shape: f32[1,32], index: 2, kind: input, shape index: {}]   ;;  %s1823_s3 = inlined_call_operand.vmem [shape: bf16[2,4,8,32], index: 3, kind: input, shape index: {}, may-alias: {3,4}]   ;;  %s1824_s4 = inlined_call_operand.vmem [shape: bf16[2,4,8,32], index: 4, kind: output, shape index: {}, may-alias: {3,4}]  }
   0x1   :  { %s1591_s17 = smov 0  }
   0x2 LB: > { %s26_s18 = sadd.s32 1, %s1556_s16  ;;  %p1241_p0 = scmp.ge.s32.totalorder %s1560_s17, 1  ;;  %s1560_s17 = sphi %s1591_s17, %s14_s17   ;;  %s1556_s16 = sphi %s1589_s16, %s1830_s16   ;;  %s1552_s15 = sphi %s1587_s15, %s1829_s15  }
   0x3   : > { %p28_p1 = scmp.ge.s32.totalorder %s26_s18, 2  ;;  %p193_p2 = scmp.lt.s32.totalorder %s1560_s17, 3 }
   0x5   : > { %s1832_s18 = smov (%p28_p1, %s26_s18), 0  ;;  %p194_p3 = pnand %p1241_p0, %p193_p2 }
   0x6   : > { %v1515_v0 = vld [vmem:[%s1821_s1 + $0x40] sm:$0xff] (!%p194_p3)   ;;  %p232_p4 = scmp.lt.s32.totalorder (!%p194_p3), %s1552_s15, 1  ;;  %v1516_v1 = vld [vmem:[%s1821_s1 + $0x10] sm:$0xff] (!%p194_p3)   ;;  %v1517_v2 = vld [vmem:[%s1821_s1 + $0x48] sm:$0xff] (!%p194_p3)   ;;  %vm278_vm0 = vsmask.f32 (!%p194_p3), 3328 }
   0x7   : > { %197 = sbr.rel (%p194_p3) target bundleno = 312 (0x138), region = 36  ;;  %1418 = vmatprep.subr.bf16.mxu0 (!%p194_p3), %v1515_v0  ;;  %1386 = vmatprep.subr.bf16.mxu1 (!%p194_p3), %v1516_v1  ;;  %v1518_v3 = vld [vmem:[%s1821_s1 + $0x18] sm:$0xff] (!%p194_p3)   ;;  %v1623_v4 = vld [vmem:[%s1821_s1 + $0x50] sm:$0xff] (!%p194_p3)   ;;  %v1633_v5 = vld [vmem:[%s1821_s1] sm:$0xff] (!%p194_p3)   ;;  %vm279_vm1 = vsmask.f32 (!%p194_p3), 7440 }
   0x8   : > { %1419 = vmatpush3.bf16.msra.mxu0 (!%p194_p3), %v1515_v0  ;;  %1387 = vmatpush3.bf16.msra.mxu1 (!%p194_p3), %v1516_v1  ;;  %vm1669_vm2 = vmor (!%p194_p3), %vm278_vm0, %vm279_vm1  ;;  %vm360_vm3 = vcmask (!%p194_p3), 261120   ;;  %vm497_vm4 = vcmask (!%p194_p3), 1042432   ;;  %vm498_vm5 = vcmask (!%p194_p3), 1046532   ;;  %vm1131_vm7 = vcmask (!%p194_p3), 257024  }
   0x9   : > { %1420 = vmatprep.subr.bf16.mxu0 (!%p194_p3), %v1517_v2  ;;  %1388 = vmatprep.subr.bf16.mxu1 (!%p194_p3), %v1518_v3  ;;  %vm1701_vm6 = vmor (!%p194_p3), %vm497_vm4, %vm498_vm5 }
   0xc   : > { %1421 = vmatpush3.bf16.msra.mxu0 (!%p194_p3), %v1517_v2  ;;  %1389 = vmatpush3.bf16.msra.mxu1 (!%p194_p3), %v1518_v3  ;;  %v1522_v3 = vld [vmem:[%s1821_s1 + $0x8] sm:$0xff] (!%p194_p3)  }
   0xd   : > { %1426 = vmatprep.subr.bf16.mxu0 (!%p194_p3), %v1623_v4  ;;  %1394 = vmatprep.subr.bf16.mxu1 (!%p194_p3), %v1633_v5 }
   0xe   : > { %s1834_s15 = smov (!%p232_p4, %s1552_s15), 1 }
   0xf   : > { %s1490_s27 = smul.u32 48, %s1834_s15  ;;  %s1339_s11 = sshll.u32 %s1834_s15, 4 }
  0x10   : > { %s245_s14 = scalar_lea.vmem %s1823_s3, %s1339_s11  ;;  %s255_s22 = scalar_lea.vmem %s1824_s4, %s1339_s11 }
  0x11   : > { %s1628_s6 = scalar_lea.vmem %s1820_s0, %s1490_s27 }
  0x12   : > { %v1636_v6 = vld [vmem:[%s1628_s6] sm:$0xf]  ;;  %v1639_v7 = vld [vmem:[%s1628_s6 + $0x4] sm:$0x1]  ;;  %v1642_v8 = vld [vmem:[%s1628_s6 + $0x8] sm:$0xf] }
  0x13   : > { %v1645_v9 = vld [vmem:[%s1628_s6 + $0xc] sm:$0x1]  ;;  %v282_v10 = vshrl.u32 %v1636_v6, 16  ;;  %v285_v11 = vshll.u32 %v1636_v6, 16  ;;  %v291_v12 = vshll.u32 %v1639_v7, 16  ;;  %v296_v13 = vshrl.u32 %v1642_v8, 16 }
  0x14   : > { %v299_v14 = vshll.u32 %v1642_v8, 16  ;;  %v305_v15 = vshll.u32 %v1645_v9, 16  ;;  %v1655_v16 = vld [vmem:[%s1628_s6 + $0x10] sm:$0xf]  ;;  %v1659_v20 = vld [vmem:[%s1628_s6 + $0x14] sm:$0x1]  ;;  %v1257_v60 = vcombine.low %v1636_v6, %v1642_v8 }
  0x15   : > { %v284_v17 = vrot.slane %v282_v10, 4  ;;  %v287_v18 = vrot.slane %v285_v11, 5  ;;  %v298_v19 = vrot.slane %v296_v13, 4  ;;  %v1662_v22 = vld [vmem:[%s1628_s6 + $0x18] sm:$0xf]  ;;  %v293_v25 = vrot.slane %v291_v12, 5 }
  0x16   : > { %v301_v21 = vrot.slane %v299_v14, 5  ;;  %v1665_v23 = vld [vmem:[%s1628_s6 + $0x1c] sm:$0x1]  ;;  %v307_v26 = vrot.slane %v305_v15, 5  ;;  %v1674_v29 = vld [vmem:[%s1628_s6 + $0x20] sm:$0xf] }
  0x17   : > { %v288_v24 = vor.u32 %v287_v18, %v284_v17  ;;  %v310_v30 = vshrl.u32 %v1655_v16, 16  ;;  %v313_v31 = vshll.u32 %v1655_v16, 16  ;;  %v319_v32 = vshll.u32 %v1659_v20, 16  ;;  %v1685_v41 = vld [vmem:[%s1628_s6 + $0x24] sm:$0x1]  ;;  %v1521_v15 = vld [vmem:[%s1821_s1 + $0x58] sm:$0xff]  }
  0x18   : > { %v302_v28 = vor.u32 %v301_v21, %v298_v19  ;;  %v324_v34 = vshrl.u32 %v1662_v22, 16  ;;  %v327_v35 = vshll.u32 %v1662_v22, 16  ;;  %v333_v36 = vshll.u32 %v1665_v23, 16 }
  0x19   : > { %v289_v33 = vrot.slane %v288_v24, 4  ;;  %v312_v38 = vrot.slane %v310_v30, 4  ;;  %v315_v39 = vrot.slane %v313_v31, 5  ;;  %v321_v46 = vrot.slane %v319_v32, 5  ;;  %v1528_v31 = vld [vmem:[%s1821_s1 + $0x28] sm:$0xff]  }
  0x1a   : > { %v303_v37 = vrot.slane %v302_v28, 4  ;;  %v326_v42 = vrot.slane %v324_v34, 4  ;;  %v329_v43 = vrot.slane %v327_v35, 5  ;;  %v335_v47 = vrot.slane %v333_v36, 5  ;;  %v1531_v34 = vld [vmem:[%s1821_s1 + $0x30] sm:$0xff]  }
  0x1b   : > { %v294_v40 = vsel %vm1669_vm2, %v289_v33, %v293_v25  ;;  %v316_v45 = vor.u32 %v315_v39, %v312_v38  ;;  %v679_v50 = vshrl.u32 %v1674_v29, 16  ;;  %v682_v51 = vshll.u32 %v1674_v29, 16  ;;  %v1524_v25 = vld [vmem:[%s1821_s1 + $0x60] sm:$0xff]   ;;  %v1527_v33 = vld [vmem:[%s1821_s1 + $0x68] sm:$0xff]   ;;  %v1529_v38 = vld [vmem:[%s1821_s1 + $0x70] sm:$0xff]  }
  0x1c   : > { %v308_v44 = vsel %vm1669_vm2, %v303_v37, %v307_v26  ;;  %v330_v49 = vor.u32 %v329_v43, %v326_v42  ;;  %v688_v53 = vshll.u32 %v1685_v41, 16  ;;  %v506_v57 = vrot.slane %v1645_v9, 5  ;;  %v272_v35 = vld [vmem:[%s1628_s6 + $0x28] sm:$0xf]  ;;  %v273_v43 = vld [vmem:[%s1628_s6 + $0x2c] sm:$0x1] }
  0x1d   : > { %v1251_v48 = vcombine.low %v294_v40, %v308_v44  ;;  %v317_v52 = vrot.slane %v316_v45, 4  ;;  %v681_v55 = vrot.slane %v679_v50, 4  ;;  %v684_v56 = vrot.slane %v682_v51, 5 }
  0x1e   : > { %v331_v54 = vrot.slane %v330_v49, 4  ;;  %v510_v59 = vrot.slane %v1659_v20, 5  ;;  %v690_v63 = vrot.slane %v688_v53, 5  ;;  %v1264_v9 = vrot.slane %v1642_v8, 9  ;;  %v1526_v20 = vld [vmem:[%s1821_s1 + $0x20] sm:$0xff]   ;;  %v1537_v53 = vld [vmem:[%s1821_s1 + $0x88] sm:$0xff]  }
  0x1f   : > { %1390 = vmatprep.mubr.msk.bf16.mxu1 %vm360_vm3, %v1251_v48  ;;  %v322_v58 = vsel %vm1669_vm2, %v317_v52, %v321_v46  ;;  %v685_v62 = vor.u32 %v684_v56, %v681_v55  ;;  %v1265_v11 = vrot.slane %v1655_v16, 9  ;;  %v502_v12 = vrot.slane %v1639_v7, 5  ;;  %v1532_v48 = vld [vmem:[%s1821_s1 + $0x78] sm:$0xff]   ;;  %v1535_v49 = vld [vmem:[%s1821_s1 + $0x80] sm:$0xff]  }
  0x20   : > { %v336_v61 = vsel %vm1669_vm2, %v331_v54, %v335_v47  ;;  %v1291_v0 = vcombine.low %v308_v44, %v322_v58  ;;  %v507_v13 = vsel %vm1701_vm6, %v1264_v9, %v506_v57  ;;  %v1263_v17 = vrot.slane %v1636_v6, 9  ;;  %v1533_v44 = vld [vmem:[%s1821_s1 + $0x38] sm:$0xff]  }
  0x21   : > { %v1705_v2 = vcombine.low %v322_v58, %v336_v61  ;;  %v686_v10 = vrot.slane %v685_v62, 4  ;;  %v511_v7 = vsel %vm1701_vm6, %v1265_v11, %v510_v59  ;;  %v774_v21 = vrot.slane %v1685_v41, 5  ;;  %v1349_v59 = vld [vmem:[%s245_s14 + $0x8] sm:$0xff]   ;;  %v1336_v62 = vld [vmem:[%s1822_s2] ss:$0 sm:$0xff] }
  0x22   : > { %1422 = vmatprep.mubr.msk.bf16.mxu0 %vm360_vm3, %v1291_v0  ;;  %v1302_v19 = vcombine.low %v507_v13, %v511_v7  ;;  %v1266_v24 = vrot.slane %v1662_v22, 9  ;;  %v1297_v6 = vrot.slane %v1674_v29, 9  ;;  %v503_v26 = vsel %vm1701_vm6, %v1263_v17, %v502_v12 }
  0x23   : > { %1391 = vmatmul.mubr.msk.bf16.vlgmr.msra.gmra.mrb[0].mxu1 %vm360_vm3, %v1705_v2  ;;  %v1720_v14 = vsel %vm1669_vm2, %v686_v10, %v690_v63  ;;  %v1271_v30 = vcombine.low %v503_v26, %v507_v13  ;;  %v932_v36 = vshrl.u32 %v272_v35, 16  ;;  %v935_v37 = vshll.u32 %v272_v35, 16 }
  0x24   : > { %1395 = vmatpush3.bf16.msra.mxu1 %v1633_v5  ;;  %1398 = vmatprep.mubr.msk.bf16.mxu1 %vm360_vm3, %v1257_v60  ;;  %v1292_v18 = vcombine.low %v336_v61, %v1720_v14  ;;  %v514_v5 = vrot.slane %v1665_v23, 5  ;;  %v775_v28 = vsel %vm1701_vm6, %v1297_v6, %v774_v21  ;;  %v1281_v42 = vcombine.low %v1642_v8, %v1655_v16  ;;  %v1342_v60 = vld [vmem:[%s245_s14] sm:$0xff]  }
  0x25   : > { %1396 = vmatprep.subr.bf16.mxu1 %v1522_v3  ;;  %v934_v40 = vrot.slane %v932_v36, 4  ;;  %v937_v41 = vrot.slane %v935_v37, 5  ;;  %v1312_v45 = vcombine.low %v1674_v29, %v272_v35  ;;  %v941_v47 = vshll.u32 %v273_v43, 16 }
  0x26   : > { %1423 = vmatmul.mubr.msk.bf16.vlgmr.msra.gmra.mrb[0].mxu0 %vm360_vm3, %v1292_v18  ;;  %v515_v23 = vsel %vm1701_vm6, %v1266_v24, %v514_v5  ;;  %v1282_v50 = vcombine.low %v1662_v22, %v1674_v29  ;;  %v1023_v54 = vrot.slane %v273_v43, 5  ;;  %v1347_v0 = vunpack.c.l.bf16 %v1349_v59 }
  0x27   : > { %1427 = vmatpush3.bf16.msra.mxu0 %v1623_v4  ;;  %1430 = vmatprep.mubr.msk.bf16.mxu0 %vm360_vm3, %v1302_v19  ;;  %v1258_v4 = vcombine.low %v1655_v16, %v1662_v22  ;;  %v1303_v32 = vcombine.low %v515_v23, %v775_v28  ;;  %v1272_v39 = vcombine.low %v511_v7, %v515_v23  ;;  %v943_v16 = vrot.slane %v941_v47, 5 }
  0x28   : > { %1397 = vmatpush3.bf16.msra.mxu1 %v1522_v3  ;;  %1428 = vmatprep.subr.bf16.mxu0 %v1521_v15  ;;  %v938_v46 = vor.u32 %v937_v41, %v934_v40  ;;  %v1326_v22 = vrot.slane %v272_v35, 9  ;;  %v1343_v3 = vunpack.c.l.bf16 %v1342_v60  ;;  %v1348_v12 = vunpack.c.h.bf16 %v1349_v59 }
  0x29   : > { %1402 = vmatprep.subr.bf16.mxu1 %v1526_v20  ;;  %v1344_v7 = vunpack.c.h.bf16 %v1342_v60 }
  0x2a   : > { %v939_v8 = vrot.slane %v938_v46, 4  ;;  %v1024_v27 = vsel %vm1701_vm6, %v1326_v22, %v1023_v54 }
  0x2b   : > { %1429 = vmatpush3.bf16.msra.mxu0 %v1521_v15  ;;  %v1331_v29 = vcombine.low %v775_v28, %v1024_v27 }
  0x2c   : > { %1434 = vmatprep.subr.bf16.mxu0 %v1524_v25  ;;  %v944_v51 = vsel %vm1669_vm2, %v939_v8, %v943_v16 }
  0x2d   : > { %v1321_v52 = vcombine.low %v1720_v14, %v944_v51 }
  0x2f   : > { %1399 = vmatmul.mubr.msk.bf16.vlgmr.msra.gmra.mrb[0].mxu1 %vm360_vm3, %v1258_v4 }
  0x30   : > { %1403 = vmatpush3.bf16.msra.mxu1 %v1526_v20  ;;  %1406 = vmatprep.mubr.msk.bf16.mxu1 %vm360_vm3, %v1271_v30 }
  0x31   : > { %1404 = vmatprep.subr.bf16.mxu1 %v1528_v31 }
  0x32   : > { %1431 = vmatmul.mubr.msk.bf16.vlgmr.msra.gmra.mrb[0].mxu0 %vm360_vm3, %v1303_v32 }
  0x33   : > { %1435 = vmatpush3.bf16.msra.mxu0 %v1524_v25  ;;  %1438 = vmatprep.mubr.msk.bf16.mxu0 %vm360_vm3, %v1258_v4 }
  0x34   : > { %1405 = vmatpush3.bf16.msra.mxu1 %v1528_v31  ;;  %1436 = vmatprep.subr.bf16.mxu0 %v1527_v33 }
  0x35   : > { %1410 = vmatprep.subr.bf16.mxu1 %v1531_v34 }
  0x37   : > { %1437 = vmatpush3.bf16.msra.mxu0 %v1527_v33 }
  0x38   : > { %1442 = vmatprep.subr.bf16.mxu0 %v1529_v38 }
  0x3b   : > { %1407 = vmatmul.mubr.msk.bf16.vlgmr.msra.gmra.mrb[0].mxu1 %vm360_vm3, %v1272_v39 }
  0x3c   : > { %1411 = vmatpush3.bf16.msra.mxu1 %v1531_v34  ;;  %1414 = vmatprep.mubr.msk.bf16.mxu1 %vm360_vm3, %v1281_v42 }
  0x3d   : > { %1412 = vmatprep.subr.bf16.mxu1 %v1533_v44 }
  0x3e   : > { %1439 = vmatmul.mubr.msk.bf16.vlgmr.msra.gmra.mrb[0].mxu0 %vm360_vm3, %v1312_v45 }
  0x3f   : > { %1443 = vmatpush3.bf16.msra.mxu0 %v1529_v38  ;;  %1446 = vmatprep.mubr.msk.bf16.mxu0 %vm360_vm3, %v1705_v2 }
  0x40   : > { %1413 = vmatpush3.bf16.msra.mxu1 %v1533_v44  ;;  %1444 = vmatprep.subr.bf16.mxu0 %v1532_v48 }
  0x43   : > { %1445 = vmatpush3.bf16.msra.mxu0 %v1532_v48 }
  0x44   : > { %1450 = vmatprep.subr.bf16.mxu0 %v1535_v49 }
  0x47   : > { %1415 = vmatmul.mubr.msk.bf16.vlgmr.msra.gmra.mrb[0].mxu1 %vm360_vm3, %v1282_v50 }
  0x4a   : > { %1447 = vmatmul.mubr.msk.bf16.vlgmr.msra.gmra.mrb[0].mxu0 %vm360_vm3, %v1321_v52 }
  0x4b   : > { %1451 = vmatpush3.bf16.msra.mxu0 %v1535_v49  ;;  %1454 = vmatprep.mubr.msk.bf16.mxu0 %vm360_vm3, %v1272_v39 }
  0x4c   : > { %1452 = vmatprep.subr.bf16.mxu0 %v1537_v53 }
  0x4f   : > { %1453 = vmatpush3.bf16.msra.mxu0 %v1537_v53 }
  0x56   : > { %1455 = vmatmul.mubr.msk.bf16.vlgmr.msra.gmra.mrb[0].mxu0 %vm360_vm3, %v1331_v29 }
 0x11a   : > { %v1416_v55 = vpop.f32.mrb[0].mxu1 }
 0x11b   : > { %v659_v56 = vpop.f32.mrb[1].mxu1 }
 0x11c   : > { %v1417_v57 = vpop.f32.mrb[2].mxu1 }
 0x11d   : > { %v662_v58 = vpop.f32.mrb[3].mxu1 }
 0x129   : > { %v1456_v61 = vpop.f32.mrb[0].mxu0 }
 0x12a   : > { %v1458_v63 = vadd.f32 %v1456_v61, %v1416_v55  ;;  %v1081_v1 = vpop.f32.mrb[1].mxu0 }
 0x12b   : > { %v1459_v2 = vadd.f32 %v1081_v1, %v659_v56  ;;  %v1457_v9 = vpop.f32.mrb[2].mxu0 }
 0x12c   : > { %v1109_v10 = vadd.f32 %v1458_v63, %v1336_v62  ;;  %v1460_v11 = vadd.f32 %v1457_v9, %v1417_v57  ;;  %v1084_v13 = vpop.f32.mrb[3].mxu0 }
 0x12d   : > { %v1107_v14 = vadd.f32 %v1459_v2, %v1336_v62  ;;  %v1461_v15 = vadd.f32 %v1084_v13, %v662_v58 }
 0x12e   : > { %v1121_v17 = vadd.f32 %v1347_v0, %v1109_v10  ;;  %v1110_v18 = vadd.f32 %v1460_v11, %v1336_v62 }
 0x12f   : > { %v1119_v19 = vadd.f32 %v1343_v3, %v1107_v14  ;;  %v1108_v20 = vadd.f32 %v1461_v15, %v1336_v62 }
 0x130   : > { %v1125_v5 = vmax.f32 %v1121_v17, 0.0  ;;  %v1122_v21 = vadd.f32 %v1348_v12, %v1110_v18 }
 0x131   : > { %v1123_v24 = vmax.f32 %v1119_v19, 0.0  ;;  %v1120_v6 = vadd.f32 %v1344_v7, %v1108_v20 }
 0x132   : > { %v1129_v25 = vpack.c.bf16 %v1125_v5, %v1125_v5  ;;  %v1126_v26 = vmax.f32 %v1122_v21, 0.0 }
 0x133   : > { %v1127_v4 = vpack.c.bf16 %v1123_v24, %v1123_v24  ;;  %v1124_v23 = vmax.f32 %v1120_v6, 0.0 }
 0x134   : > { %1134 = vst.msk [vmem:[%s255_s22 + $0x8] sm:$0xf] %vm1131_vm7, %v1129_v25  ;;  %v1130_v28 = vpack.c.bf16 %v1126_v26, %v1126_v26 }
 0x135   : > { %1132 = vst.msk [vmem:[%s255_s22] sm:$0xf] %vm1131_vm7, %v1127_v4  ;;  %v1128_v30 = vpack.c.bf16 %v1124_v23, %v1124_v23 }
 0x136   : > { %1135 = vst.msk [vmem:[%s255_s22 + $0xc] sm:$0xf] %vm1131_vm7, %v1130_v28 }
 0x137   : > { %1133 = vst.msk [vmem:[%s255_s22 + $0x4] sm:$0xf] %vm1131_vm7, %v1128_v30 }
 0x138 PF: > { %s14_s17 = sadd.s32 1, %s1560_s17   ;;  %s1829_s15 = smov %s1556_s16 }
 0x139   : > { %p11_p5 = scmp.ge.s32.totalorder %s14_s17, 4   ;;  %s1830_s16 = smov %s1832_s18 }
 0x13b   :  { %13 = sbr.rel (!%p11_p5) target bundleno = 2 (0x2), region = 78 }

</bundles_post_ra>
